<compile_context>
chip_gen: v7x
topology: tpu7x:2x2x1
jax: 0.10.0
libtpu: 0.0.40
codegen_flags: <defaults>
</compile_context>

<pallas_src>
import functools

import jax
import jax.numpy as jnp
from jax import lax
from jax.experimental import pallas as pl
from jax.experimental.pallas import tpu as pltpu


# --------------------- generic matmul + bias (+ activation) ----------------- #
def _linear_kernel(x_ref, w_ref, b_ref, out_ref, *, activation):
    z = jnp.dot(x_ref[...], w_ref[...], preferred_element_type=jnp.float32) + b_ref[...]
    if activation == "tanh":
        z = jnp.tanh(z)
    elif activation == "relu":
        z = jnp.maximum(z, 0.0)
    out_ref[...] = z


def linear_pallas(x, w_t, b, activation=None):
    """(M, K) @ (K, F) + b.  Rows are split over a 'parallel' grid axis when M allows
    (uses both v7x TensorCores; one extra grid step is negligible on v5e/v6e)."""
    M, K = x.shape
    F = w_t.shape[1]
    split = 2 if (M % 16 == 0 and M >= 32) else 1
    Mb = M // split
    return pl.pallas_call(
        functools.partial(_linear_kernel, activation=activation),
        out_shape=jax.ShapeDtypeStruct((M, F), jnp.float32),
        grid=(split,),
        in_specs=[
            pl.BlockSpec((Mb, K), lambda i: (i, 0)),
            pl.BlockSpec((K, F), lambda i: (0, 0)),
            pl.BlockSpec((1, F), lambda i: (0, 0)),
        ],
        out_specs=pl.BlockSpec((Mb, F), lambda i: (i, 0)),
        compiler_params=pltpu.CompilerParams(dimension_semantics=("parallel",)),
    )(x.astype(jnp.float32), w_t.astype(jnp.float32),
      jnp.asarray(b, jnp.float32).reshape(1, F))


# ----------------------------- GRU kernels ---------------------------------- #
def _gru_step(g, whh_ref, bhh_ref, h_prev):
    # g: (3, N, H) hoisted input-side pre-activations [r, z, n] for this timestep.
    gh_r = jnp.dot(h_prev, whh_ref[0], preferred_element_type=jnp.float32) + bhh_ref[0]
    gh_z = jnp.dot(h_prev, whh_ref[1], preferred_element_type=jnp.float32) + bhh_ref[1]
    gh_n = jnp.dot(h_prev, whh_ref[2], preferred_element_type=jnp.float32) + bhh_ref[2]
    r = jax.nn.sigmoid(g[0] + gh_r)
    z = jax.nn.sigmoid(g[1] + gh_z)
    n = jnp.tanh(g[2] + r * gh_n)
    return (1.0 - z) * n + z * h_prev


def _gru_seq_kernel(gi_ref, whh_ref, bhh_ref, out_ref, h_ref):
    # gi_ref: (T, 3, N, H); out_ref: (T, N, H); h_ref scratch: (N, H)
    T = gi_ref.shape[0]
    h_ref[...] = jnp.zeros_like(h_ref)

    def step(t, carry):
        h = _gru_step(gi_ref[t], whh_ref, bhh_ref, h_ref[...])
        h_ref[...] = h
        out_ref[t] = h
        return carry

    lax.fori_loop(0, T, step, 0)


def _gru_last_linear_kernel(gi_ref, whh_ref, bhh_ref, wo_ref, bo_ref, out_ref, h_ref):
    # Same recurrence; only the final hidden state is kept and the output affine
    # (wo: (H, Fout)) is fused into the kernel epilogue.
    T = gi_ref.shape[0]
    h_ref[...] = jnp.zeros_like(h_ref)

    def step(t, carry):
        h_ref[...] = _gru_step(gi_ref[t], whh_ref, bhh_ref, h_ref[...])
        return carry

    lax.fori_loop(0, T, step, 0)
    out_ref[...] = (jnp.dot(h_ref[...], wo_ref[...], preferred_element_type=jnp.float32)
                    + bo_ref[...])


def _gru_input_proj(x, p):
    """Hoisted input projection: one fused (T*N, Din) @ (Din, 3H) matmul for ALL
    timesteps, reshaped into gate-major (T, 3, N, H) layout (XLA glue, outside the
    serial loop) so the recurrent kernel needs no lane slicing."""
    N, T, Din = x.shape
    H = p["whh"].shape[-1]
    xt = jnp.transpose(x, (1, 0, 2)).astype(jnp.float32)              # (T, N, Din)
    gi = linear_pallas(xt.reshape(T * N, Din), p["wih"], p["bih"])    # (T*N, 3H)
    return gi.reshape(T, N, 3, H).transpose(0, 2, 1, 3)               # (T, 3, N, H)


def gru_layer(x, p):
    """x: (N, T, Din) batch-first.  Returns all hidden states (N, T, H)."""
    N, T, _ = x.shape
    H = p["whh"].shape[-1]
    gi = _gru_input_proj(x, p)
    out = pl.pallas_call(
        _gru_seq_kernel,
        out_shape=jax.ShapeDtypeStruct((T, N, H), jnp.float32),
        grid=(1,),
        in_specs=[
            pl.BlockSpec((T, 3, N, H), lambda i: (0, 0, 0, 0)),
            pl.BlockSpec((3, H, H), lambda i: (0, 0, 0)),
            pl.BlockSpec((3, 1, H), lambda i: (0, 0, 0)),
        ],
        out_specs=pl.BlockSpec((T, N, H), lambda i: (0, 0, 0)),
        scratch_shapes=[pltpu.VMEM((N, H), jnp.float32)],
        compiler_params=pltpu.CompilerParams(dimension_semantics=("arbitrary",)),
    )(gi, p["whh"], p["bhh"])
    return jnp.transpose(out, (1, 0, 2))


def gru_last_linear(x, p, w_out, b_out):
    """GRU over x: (N, T, Din); returns affine_out(last hidden state) -> (N, Fout)."""
    N, T, _ = x.shape
    H = p["whh"].shape[-1]
    Fout = w_out.shape[0]
    gi = _gru_input_proj(x, p)
    return pl.pallas_call(
        _gru_last_linear_kernel,
        out_shape=jax.ShapeDtypeStruct((N, Fout), jnp.float32),
        grid=(1,),
        in_specs=[
            pl.BlockSpec((T, 3, N, H), lambda i: (0, 0, 0, 0)),
            pl.BlockSpec((3, H, H), lambda i: (0, 0, 0)),
            pl.BlockSpec((3, 1, H), lambda i: (0, 0, 0)),
            pl.BlockSpec((H, Fout), lambda i: (0, 0)),
            pl.BlockSpec((1, Fout), lambda i: (0, 0)),
        ],
        out_specs=pl.BlockSpec((N, Fout), lambda i: (0, 0)),
        scratch_shapes=[pltpu.VMEM((N, H), jnp.float32)],
        compiler_params=pltpu.CompilerParams(dimension_semantics=("arbitrary",)),
    )(gi, p["whh"], p["bhh"],
      w_out.T.astype(jnp.float32), b_out.reshape(1, Fout).astype(jnp.float32))


# -------------------- distance / matching-map kernel ------------------------ #
def _matching_kernel(u_ref, adiag_ref, r_ref, out_ref, *, eps):
    # u_ref: (U*Lu, d) all utterances of ONE batch item; r_ref: (Lr, d) its response;
    # adiag_ref: (1, d) = diag(A); out_ref: (2, U*Lu, Lr).
    u = u_ref[...]
    r = r_ref[...]
    # einsum('bud,dd,brd->bur'): repeated 'dd' -> only diag(A) participates.
    ua = u * adiag_ref[...]
    m1 = lax.dot_general(ua, r, (((1,), (1,)), ((), ())),
                         preferred_element_type=jnp.float32)          # (U*Lu, Lr)
    m2 = lax.dot_general(u, r, (((1,), (1,)), ((), ())),
                         preferred_element_type=jnp.float32)          # (U*Lu, Lr)
    u_norm = jnp.sqrt(jnp.sum(u * u, axis=-1, keepdims=True))          # (U*Lu, 1)
    r_norm = jnp.sqrt(jnp.sum(r * r, axis=-1, keepdims=True))          # (Lr, 1)
    denom = u_norm * jnp.transpose(r_norm) + eps
    out_ref[0] = m1
    out_ref[1] = m2 * pl.reciprocal(denom, approx=True)                # EUP slot


def matching_map(bU, A, bR, U, eps=1e-6):
    """bU: (B*U, Lu, d); bR: (B, Lr, d) -> (B*U, 2, Lu, Lr).
    One grid step per batch item handles all U utterances against the shared response
    (no jnp.repeat materialization of bR); grid is 'parallel' (v7x dual core)."""
    BU, Lu, d = bU.shape
    B, Lr, _ = bR.shape
    u_flat = bU.reshape(B, U * Lu, d).astype(jnp.float32)
    a_diag = jnp.diagonal(A).reshape(1, d).astype(jnp.float32)
    out = pl.pallas_call(
        functools.partial(_matching_kernel, eps=eps),
        out_shape=jax.ShapeDtypeStruct((B, 2, U * Lu, Lr), jnp.float32),
        grid=(B,),
        in_specs=[
            pl.BlockSpec((None, U * Lu, d), lambda b: (b, 0, 0)),
            pl.BlockSpec((1, d), lambda b: (0, 0)),
            pl.BlockSpec((None, Lr, d), lambda b: (b, 0, 0)),
        ],
        out_specs=pl.BlockSpec((None, 2, U * Lu, Lr), lambda b: (b, 0, 0, 0)),
        compiler_params=pltpu.CompilerParams(dimension_semantics=("parallel",)),
    )(u_flat, a_diag, bR.astype(jnp.float32))
    # (B, 2, U*Lu, Lr) -> (B*U, 2, Lu, Lr)
    return out.reshape(B, 2, U, Lu, Lr).transpose(0, 2, 1, 3, 4).reshape(BU, 2, Lu, Lr)


# ------------------------ conv (im2col matmul) kernel ------------------------ #
def _conv_mm_relu_kernel(pat_ref, w_ref, b_ref, out_ref):
    # pat_ref: (9*Ci, N*Ho*Wo); w_ref: (Cb, 9*Ci); b_ref: (Cb, 1); out_ref: (Cb, N*Ho*Wo)
    z = jnp.dot(w_ref[...], pat_ref[...], preferred_element_type=jnp.float32) + b_ref[...]
    out_ref[...] = jnp.maximum(z, 0.0)


def conv2d_3x3_relu(x, w, b):
    """x: (N, Ci, H, W) NCHW; w: (Co, Ci, 3, 3); b: (Co,) -> (N, Co, H-2, W-2).
    Whole batch collapsed into one lane-dense matmul; Co split on a 'parallel' grid."""
    N, Ci, H, W = x.shape
    Co = w.shape[0]
    Ho, Wo = H - 2, W - 2
    P = Ho * Wo
    cols = []
    for kh in range(3):
        for kw in range(3):
            cols.append(x[:, :, kh:kh + Ho, kw:kw + Wo].reshape(N, Ci, P))
    pat = jnp.concatenate(cols, axis=1)                                    # (N, 9Ci, P)
    pat = jnp.transpose(pat, (1, 0, 2)).reshape(9 * Ci, N * P).astype(jnp.float32)
    wmat = jnp.transpose(w, (0, 2, 3, 1)).reshape(Co, 9 * Ci).astype(jnp.float32)
    bcol = b.reshape(Co, 1).astype(jnp.float32)
    K, NP = 9 * Ci, N * P
    split = 2 if Co % 16 == 0 else 1
    Cb = Co // split
    out = pl.pallas_call(
        _conv_mm_relu_kernel,
        out_shape=jax.ShapeDtypeStruct((Co, NP), jnp.float32),
        grid=(split,),
        in_specs=[
            pl.BlockSpec((K, NP), lambda i: (0, 0)),
            pl.BlockSpec((Cb, K), lambda i: (i, 0)),
            pl.BlockSpec((Cb, 1), lambda i: (i, 0)),
        ],
        out_specs=pl.BlockSpec((Cb, NP), lambda i: (i, 0)),
        compiler_params=pltpu.CompilerParams(dimension_semantics=("parallel",)),
    )(pat, wmat, bcol)
    return out.reshape(Co, N, Ho, Wo).transpose(1, 0, 2, 3)


def maxpool2d(x, p):
    # nn.MaxPool2d(kernel=p, stride=p), floor mode (tiny downsampling glue).
    N, C, H, W = x.shape
    Hp, Wp = H // p, W // p
    return jnp.max(x[:, :, :Hp * p, :Wp * p].reshape(N, C, Hp, p, Wp, p), axis=(3, 5))


# ------------------------------- parameters --------------------------------- #
def init_params(key, vocab_size=100, emb_dim=400, hidden=200):
    keys = jax.random.split(key, 12)

    def nrm(k, shape, scale):
        return (scale * jax.random.normal(k, shape)).astype(jnp.float32)

    emb = nrm(keys[0], (vocab_size, emb_dim), 0.1)
    emb = emb.at[0].set(0.0)  # padding_idx = 0
    return {
        "embedding": emb,
        # TODO(synk): self.A is used in distance() but never defined in the reference
        # module's __init__; initialized here as a deterministic (hidden, hidden) matrix.
        # Only its diagonal participates (einsum 'bud,dd,brd->bur').
        "A": nrm(keys[1], (hidden, hidden), hidden ** -0.5),
        "gru_encoder": {
            # fused input weights: columns [r | z | n], each `hidden` wide
            "wih": nrm(keys[2], (emb_dim, 3 * hidden), emb_dim ** -0.5),
            "whh": nrm(keys[3], (3, hidden, hidden), hidden ** -0.5),
            "bih": jnp.zeros((3 * hidden,), jnp.float32),
            "bhh": jnp.zeros((3, 1, hidden), jnp.float32),
        },
        "conv1": {"w": nrm(keys[4], (16, 2, 3, 3), 0.11), "b": jnp.zeros((16,), jnp.float32)},
        "conv2": {"w": nrm(keys[5], (32, 16, 3, 3), 0.068), "b": jnp.zeros((32,), jnp.float32)},
        "conv3": {"w": nrm(keys[6], (64, 32, 3, 3), 0.048), "b": jnp.zeros((64,), jnp.float32)},
        "affine2": {"w": nrm(keys[7], (200, 576), 0.051), "b": jnp.zeros((200,), jnp.float32)},
        "gru_acc": {
            "wih": nrm(keys[8], (200, 3 * hidden), 200 ** -0.5),
            "whh": nrm(keys[9], (3, hidden, hidden), hidden ** -0.5),
            "bih": jnp.zeros((3 * hidden,), jnp.float32),
            "bhh": jnp.zeros((3, 1, hidden), jnp.float32),
        },
        "affine_out": {"w": nrm(keys[10], (1, hidden), 0.1), "b": jnp.zeros((1,), jnp.float32)},
    }


# --------------------------------- forward ----------------------------------- #
def forward(params, ctx, rep):
    """ctx: (B, U, Lu) int32 word ids; rep: (B, Lr) int32 word ids -> (B,) scores."""
    emb = params["embedding"]
    bU_emb = emb[ctx]                                   # (B, U, Lu, 400)
    bR_emb = emb[rep]                                   # (B, Lr, 400)
    # nn.Dropout(0.2): identity (inference mode).
    B, U, Lu, D = bU_emb.shape
    Lr = bR_emb.shape[1]

    # gru_encoder over the word axis; bU and bR share one pallas_call (N = B*U + B).
    if Lu == Lr:
        enc_in = jnp.concatenate([bU_emb.reshape(B * U, Lu, D), bR_emb], axis=0)
        enc_out = gru_layer(enc_in, params["gru_encoder"])              # (B*U+B, 50, 200)
        bU_rep, bR_rep = enc_out[:B * U], enc_out[B * U:]
    else:  # fallback (architecture requires Lu == Lr == 50 anyway)
        bU_rep = gru_layer(bU_emb.reshape(B * U, Lu, D), params["gru_encoder"])
        bR_rep = gru_layer(bR_emb, params["gru_encoder"])

    # UR matching: matching maps + CNN stack + affine2/tanh
    M = matching_map(bU_rep, params["A"], bR_rep, U)                    # (B*U, 2, 50, 50)
    Z = conv2d_3x3_relu(M, params["conv1"]["w"], params["conv1"]["b"])  # (B*U, 16, 48, 48)
    Z = maxpool2d(Z, 2)                                                  # (B*U, 16, 24, 24)
    Z = conv2d_3x3_relu(Z, params["conv2"]["w"], params["conv2"]["b"])  # (B*U, 32, 22, 22)
    Z = maxpool2d(Z, 2)                                                  # (B*U, 32, 11, 11)
    Z = conv2d_3x3_relu(Z, params["conv3"]["w"], params["conv3"]["b"])  # (B*U, 64, 9, 9)
    Z = maxpool2d(Z, 3)                                                  # (B*U, 64, 3, 3)
    Z = Z.reshape(B * U, -1)                                             # (B*U, 576)
    V = linear_pallas(Z, params["affine2"]["w"].T, params["affine2"]["b"],
                      activation="tanh")                                 # (B*U, 200)

    V = V.reshape(B, U, -1)
    # gru_acc + affine_out fused (only the last hidden state is needed).
    scores = gru_last_linear(V, params["gru_acc"],
                             params["affine_out"]["w"], params["affine_out"]["b"])
    return scores[:, 0]                                                  # (B,)


if __name__ == "__main__":
    key = jax.random.PRNGKey(0)
    pkey, ckey, rkey = jax.random.split(key, 3)
    params = init_params(pkey)

    # Lu = Lr = 50 is required by the architecture (affine2 expects 3*3*64 features).
    B, U, Lu, Lr = 2, 3, 50, 50
    ctx = jax.random.randint(ckey, (B, U, Lu), 1, 100, dtype=jnp.int32)
    rep = jax.random.randint(rkey, (B, Lr), 1, 100, dtype=jnp.int32)

    scores = jax.jit(forward)(params, ctx, rep)
    scores = jax.block_until_ready(scores)
    assert scores.shape == (B,) and scores.dtype == jnp.float32
    print("KERNEL_OK")
</pallas_src>

<mosaic_0001>
module attributes {stable_mosaic.version = 11 : i64} {
  func.func @_linear_kernel(%arg0: i32, %arg1: memref<200x400xf32, #tpu.memory_space<vmem>>, %arg2: memref<400x600xf32, #tpu.memory_space<vmem>>, %arg3: memref<1x600xf32, #tpu.memory_space<vmem>>, %arg4: memref<200x600xf32, #tpu.memory_space<vmem>>) attributes {dimension_semantics = [#tpu.dimension_semantics<parallel>], iteration_bounds = array<i64: 2>, scalar_prefetch = 0 : i64, scratch_operands = 0 : i64, tpu.core_type = #tpu.core_type<tc>, window_params = [{transform_indices = @transform_0, window_bounds = array<i64: 200, 400>}, {pipeline_mode = #tpu.pipeline_mode<synchronous>, transform_indices = @transform_1, window_bounds = array<i64: 400, 600>}, {pipeline_mode = #tpu.pipeline_mode<synchronous>, transform_indices = @transform_2, window_bounds = array<i64: 1, 600>}, {transform_indices = @transform_3, window_bounds = array<i64: 200, 600>}]} {
    %c0 = arith.constant 0 : index
    %c0_0 = arith.constant 0 : index
    %0 = vector.load %arg1[%c0, %c0_0] : memref<200x400xf32, #tpu.memory_space<vmem>>, vector<200x400xf32>
    %c0_1 = arith.constant 0 : index
    %c0_2 = arith.constant 0 : index
    %1 = vector.load %arg2[%c0_1, %c0_2] : memref<400x600xf32, #tpu.memory_space<vmem>>, vector<400x600xf32>
    %cst = arith.constant dense<0.000000e+00> : vector<200x600xf32>
    %2 = tpu.matmul %0, %1, %cst {dimension_numbers = #tpu.dot_dimension_numbers<[1], [0], [0], [1], [0, 0, 1, 1], [], []>} : vector<200x400xf32>, vector<400x600xf32>, vector<200x600xf32> -> vector<200x600xf32>
    %c0_3 = arith.constant 0 : index
    %c0_4 = arith.constant 0 : index
    %3 = vector.load %arg3[%c0_3, %c0_4] : memref<1x600xf32, #tpu.memory_space<vmem>>, vector<1x600xf32>
    %4 = vector.broadcast %3 : vector<1x600xf32> to vector<200x600xf32>
    %5 = arith.addf %2, %4 : vector<200x600xf32>
    %c0_5 = arith.constant 0 : index
    %c0_6 = arith.constant 0 : index
    %6 = vector.load %arg4[%c0_5, %c0_6] : memref<200x600xf32, #tpu.memory_space<vmem>>, vector<200x600xf32>
    tpu.vector_store %arg4[%c0_5, %c0_6], %5 {strides = array<i32>} : memref<200x600xf32, #tpu.memory_space<vmem>>, vector<200x600xf32>,
    return
  }
  func.func @transform_0(%arg0: i32) -> (i32, i32) {
    %c0_i32 = arith.constant 0 : i32
    %c0_i32_0 = arith.constant 0 : i32
    return %arg0, %c0_i32 : i32, i32
  }
  func.func @transform_1(%arg0: i32) -> (i32, i32) {
    %c0_i32 = arith.constant 0 : i32
    %c0_i32_0 = arith.constant 0 : i32
    %c0_i32_1 = arith.constant 0 : i32
    return %c0_i32, %c0_i32_0 : i32, i32
  }
  func.func @transform_2(%arg0: i32) -> (i32, i32) {
    %c0_i32 = arith.constant 0 : i32
    %c0_i32_0 = arith.constant 0 : i32
    %c0_i32_1 = arith.constant 0 : i32
    return %c0_i32, %c0_i32_0 : i32, i32
  }
  func.func @transform_3(%arg0: i32) -> (i32, i32) {
    %c0_i32 = arith.constant 0 : i32
    %c0_i32_0 = arith.constant 0 : i32
    return %arg0, %c0_i32 : i32, i32
  }
}

module attributes {stable_mosaic.version = 11 : i64} {
  func.func @_gru_seq_kernel(%arg0: i32, %arg1: memref<50x3x8x200xf32, #tpu.memory_space<vmem>>, %arg2: memref<3x200x200xf32, #tpu.memory_space<vmem>>, %arg3: memref<3x1x200xf32, #tpu.memory_space<vmem>>, %arg4: memref<50x8x200xf32, #tpu.memory_space<vmem>>, %arg5: memref<8x200xf32, #tpu.memory_space<vmem>>) attributes {dimension_semantics = [#tpu.dimension_semantics<arbitrary>], iteration_bounds = array<i64: 1>, scalar_prefetch = 0 : i64, scratch_operands = 1 : i64, tpu.core_type = #tpu.core_type<tc>, window_params = [{pipeline_mode = #tpu.pipeline_mode<synchronous>, transform_indices = @transform_0, window_bounds = array<i64: 50, 3, 8, 200>}, {pipeline_mode = #tpu.pipeline_mode<synchronous>, transform_indices = @transform_1, window_bounds = array<i64: 3, 200, 200>}, {pipeline_mode = #tpu.pipeline_mode<synchronous>, transform_indices = @transform_2, window_bounds = array<i64: 3, 1, 200>}, {pipeline_mode = #tpu.pipeline_mode<synchronous>, transform_indices = @transform_3, window_bounds = array<i64: 50, 8, 200>}]} {
    %cst = arith.constant 0.000000e+00 : f32
    %0 = vector.broadcast %cst : f32 to vector<8x200xf32>
    %c0 = arith.constant 0 : index
    %c0_0 = arith.constant 0 : index
    %1 = vector.load %arg5[%c0, %c0_0] : memref<8x200xf32, #tpu.memory_space<vmem>>, vector<8x200xf32>
    tpu.vector_store %arg5[%c0, %c0_0], %0 {strides = array<i32>} : memref<8x200xf32, #tpu.memory_space<vmem>>, vector<8x200xf32>,
    %c0_i32 = arith.constant 0 : i32
    %c50_i32 = arith.constant 50 : i32
    %2 = arith.addi %c0_i32, %c50_i32 : i32
    %c1_i32 = arith.constant 1 : i32
    scf.for %arg6 = %c0_i32 to %2 step %c1_i32  : i32 {
      %3 = arith.index_cast %arg6 : i32 to index
      %c0_2 = arith.constant 0 : index
      %c0_3 = arith.constant 0 : index
      %c0_4 = arith.constant 0 : index
      %4 = vector.load %arg1[%3, %c0_2, %c0_3, %c0_4] : memref<50x3x8x200xf32, #tpu.memory_space<vmem>>, vector<1x3x8x200xf32>
      %5 = vector.shape_cast %4 : vector<1x3x8x200xf32> to vector<3x8x200xf32>
      %c0_5 = arith.constant 0 : index
      %c0_6 = arith.constant 0 : index
      %6 = vector.load %arg5[%c0_5, %c0_6] : memref<8x200xf32, #tpu.memory_space<vmem>>, vector<8x200xf32>
      %c0_7 = arith.constant 0 : index
      %c0_8 = arith.constant 0 : index
      %c0_9 = arith.constant 0 : index
      %7 = vector.load %arg2[%c0_7, %c0_8, %c0_9] : memref<3x200x200xf32, #tpu.memory_space<vmem>>, vector<1x200x200xf32>
      %8 = vector.shape_cast %7 : vector<1x200x200xf32> to vector<200x200xf32>
      %cst_10 = arith.constant dense<0.000000e+00> : vector<8x200xf32>
      %9 = tpu.matmul %6, %8, %cst_10 {dimension_numbers = #tpu.dot_dimension_numbers<[1], [0], [0], [1], [0, 0, 1, 1], [], []>} : vector<8x200xf32>, vector<200x200xf32>, vector<8x200xf32> -> vector<8x200xf32>
      %c0_11 = arith.constant 0 : index
      %c0_12 = arith.constant 0 : index
      %c0_13 = arith.constant 0 : index
      %10 = vector.load %arg3[%c0_11, %c0_12, %c0_13] : memref<3x1x200xf32, #tpu.memory_space<vmem>>, vector<1x1x200xf32>
      %11 = vector.shape_cast %10 : vector<1x1x200xf32> to vector<1x200xf32>
      %12 = vector.broadcast %11 : vector<1x200xf32> to vector<8x200xf32>
      %13 = arith.addf %9, %12 : vector<8x200xf32>
      %c1 = arith.constant 1 : index
      %c0_14 = arith.constant 0 : index
      %c0_15 = arith.constant 0 : index
      %14 = vector.load %arg2[%c1, %c0_14, %c0_15] : memref<3x200x200xf32, #tpu.memory_space<vmem>>, vector<1x200x200xf32>
      %15 = vector.shape_cast %14 : vector<1x200x200xf32> to vector<200x200xf32>
      %cst_16 = arith.constant dense<0.000000e+00> : vector<8x200xf32>
      %16 = tpu.matmul %6, %15, %cst_16 {dimension_numbers = #tpu.dot_dimension_numbers<[1], [0], [0], [1], [0, 0, 1, 1], [], []>} : vector<8x200xf32>, vector<200x200xf32>, vector<8x200xf32> -> vector<8x200xf32>
      %c1_17 = arith.constant 1 : index
      %c0_18 = arith.constant 0 : index
      %c0_19 = arith.constant 0 : index
      %17 = vector.load %arg3[%c1_17, %c0_18, %c0_19] : memref<3x1x200xf32, #tpu.memory_space<vmem>>, vector<1x1x200xf32>
      %18 = vector.shape_cast %17 : vector<1x1x200xf32> to vector<1x200xf32>
      %19 = vector.broadcast %18 : vector<1x200xf32> to vector<8x200xf32>
      %20 = arith.addf %16, %19 : vector<8x200xf32>
      %c2 = arith.constant 2 : index
      %c0_20 = arith.constant 0 : index
      %c0_21 = arith.constant 0 : index
      %21 = vector.load %arg2[%c2, %c0_20, %c0_21] : memref<3x200x200xf32, #tpu.memory_space<vmem>>, vector<1x200x200xf32>
      %22 = vector.shape_cast %21 : vector<1x200x200xf32> to vector<200x200xf32>
      %cst_22 = arith.constant dense<0.000000e+00> : vector<8x200xf32>
      %23 = tpu.matmul %6, %22, %cst_22 {dimension_numbers = #tpu.dot_dimension_numbers<[1], [0], [0], [1], [0, 0, 1, 1], [], []>} : vector<8x200xf32>, vector<200x200xf32>, vector<8x200xf32> -> vector<8x200xf32>
      %c2_23 = arith.constant 2 : index
      %c0_24 = arith.constant 0 : index
      %c0_25 = arith.constant 0 : index
      %24 = vector.load %arg3[%c2_23, %c0_24, %c0_25] : memref<3x1x200xf32, #tpu.memory_space<vmem>>, vector<1x1x200xf32>
      %25 = vector.shape_cast %24 : vector<1x1x200xf32> to vector<1x200xf32>
      %26 = vector.broadcast %25 : vector<1x200xf32> to vector<8x200xf32>
      %27 = arith.addf %23, %26 : vector<8x200xf32>
      %28 = vector.extract_strided_slice %5 {offsets = [0, 0, 0], sizes = [1, 8, 200], strides = [1, 1, 1]} : vector<3x8x200xf32> to vector<1x8x200xf32>
      %29 = vector.shape_cast %28 : vector<1x8x200xf32> to vector<8x200xf32>
      %30 = arith.addf %29, %13 : vector<8x200xf32>
      %31 = arith.negf %30 : vector<8x200xf32>
      %32 = math.exp %31 : vector<8x200xf32>
      %cst_26 = arith.constant 1.000000e+00 : f32
      %33 = vector.broadcast %cst_26 : f32 to vector<8x200xf32>
      %34 = arith.addf %33, %32 : vector<8x200xf32>
      %35 = arith.divf %33, %34 : vector<8x200xf32>
      %36 = vector.extract_strided_slice %5 {offsets = [1, 0, 0], sizes = [1, 8, 200], strides = [1, 1, 1]} : vector<3x8x200xf32> to vector<1x8x200xf32>
      %37 = vector.shape_cast %36 : vector<1x8x200xf32> to vector<8x200xf32>
      %38 = arith.addf %37, %20 : vector<8x200xf32>
      %39 = arith.negf %38 : vector<8x200xf32>
      %40 = math.exp %39 : vector<8x200xf32>
      %cst_27 = arith.constant 1.000000e+00 : f32
      %41 = vector.broadcast %cst_27 : f32 to vector<8x200xf32>
      %42 = arith.addf %41, %40 : vector<8x200xf32>
      %43 = arith.divf %41, %42 : vector<8x200xf32>
      %44 = vector.extract_strided_slice %5 {offsets = [2, 0, 0], sizes = [1, 8, 200], strides = [1, 1, 1]} : vector<3x8x200xf32> to vector<1x8x200xf32>
      %45 = vector.shape_cast %44 : vector<1x8x200xf32> to vector<8x200xf32>
      %46 = arith.mulf %35, %27 : vector<8x200xf32>
      %47 = arith.addf %45, %46 : vector<8x200xf32>
      %48 = math.tanh %47 : vector<8x200xf32>
      %cst_28 = arith.constant 1.000000e+00 : f32
      %49 = vector.broadcast %cst_28 : f32 to vector<8x200xf32>
      %50 = arith.subf %49, %43 : vector<8x200xf32>
      %51 = arith.mulf %50, %48 : vector<8x200xf32>
      %52 = arith.mulf %43, %6 : vector<8x200xf32>
      %53 = arith.addf %51, %52 : vector<8x200xf32>
      %c0_29 = arith.constant 0 : index
      %c0_30 = arith.constant 0 : index
      %54 = vector.load %arg5[%c0_29, %c0_30] : memref<8x200xf32, #tpu.memory_space<vmem>>, vector<8x200xf32>
      tpu.vector_store %arg5[%c0_29, %c0_30], %53 {strides = array<i32>} : memref<8x200xf32, #tpu.memory_space<vmem>>, vector<8x200xf32>,
      %55 = arith.index_cast %arg6 : i32 to index
      %c0_31 = arith.constant 0 : index
      %c0_32 = arith.constant 0 : index
      %56 = vector.load %arg4[%55, %c0_31, %c0_32] : memref<50x8x200xf32, #tpu.memory_space<vmem>>, vector<1x8x200xf32>
      %57 = vector.shape_cast %56 : vector<1x8x200xf32> to vector<8x200xf32>
      %58 = vector.shape_cast %53 : vector<8x200xf32> to vector<1x8x200xf32>
      tpu.vector_store %arg4[%55, %c0_31, %c0_32], %58 {strides = array<i32>} : memref<50x8x200xf32, #tpu.memory_space<vmem>>, vector<1x8x200xf32>,
    }
    %c50_i32_1 = arith.constant 50 : i32
    return
  }
  func.func @transform_0(%arg0: i32) -> (i32, i32, i32, i32) {
    %c0_i32 = arith.constant 0 : i32
    %c0_i32_0 = arith.constant 0 : i32
    %c0_i32_1 = arith.constant 0 : i32
    %c0_i32_2 = arith.constant 0 : i32
    %c0_i32_3 = arith.constant 0 : i32
    return %c0_i32, %c0_i32_0, %c0_i32_1, %c0_i32_2 : i32, i32, i32, i32
  }
  func.func @transform_1(%arg0: i32) -> (i32, i32, i32) {
    %c0_i32 = arith.constant 0 : i32
    %c0_i32_0 = arith.constant 0 : i32
    %c0_i32_1 = arith.constant 0 : i32
    %c0_i32_2 = arith.constant 0 : i32
    return %c0_i32, %c0_i32_0, %c0_i32_1 : i32, i32, i32
  }
  func.func @transform_2(%arg0: i32) -> (i32, i32, i32) {
    %c0_i32 = arith.constant 0 : i32
    %c0_i32_0 = arith.constant 0 : i32
    %c0_i32_1 = arith.constant 0 : i32
    %c0_i32_2 = arith.constant 0 : i32
    return %c0_i32, %c0_i32_0, %c0_i32_1 : i32, i32, i32
  }
  func.func @transform_3(%arg0: i32) -> (i32, i32, i32) {
    %c0_i32 = arith.constant 0 : i32
    %c0_i32_0 = arith.constant 0 : i32
    %c0_i32_1 = arith.constant 0 : i32
    %c0_i32_2 = arith.constant 0 : i32
    return %c0_i32, %c0_i32_0, %c0_i32_1 : i32, i32, i32
  }
}

module attributes {stable_mosaic.version = 11 : i64} {
  func.func @_matching_kernel(%arg0: i32, %arg1: memref<1x150x200xf32, #tpu.memory_space<vmem>>, %arg2: memref<1x200xf32, #tpu.memory_space<vmem>>, %arg3: memref<1x50x200xf32, #tpu.memory_space<vmem>>, %arg4: memref<1x2x150x50xf32, #tpu.memory_space<vmem>>) attributes {dimension_semantics = [#tpu.dimension_semantics<parallel>], iteration_bounds = array<i64: 2>, scalar_prefetch = 0 : i64, scratch_operands = 0 : i64, tpu.core_type = #tpu.core_type<tc>, window_params = [{transform_indices = @transform_0, window_bounds = array<i64: 1, 150, 200>}, {pipeline_mode = #tpu.pipeline_mode<synchronous>, transform_indices = @transform_1, window_bounds = array<i64: 1, 200>}, {transform_indices = @transform_2, window_bounds = array<i64: 1, 50, 200>}, {transform_indices = @transform_3, window_bounds = array<i64: 1, 2, 150, 50>}]} {
    %c0 = arith.constant 0 : index
    %c0_0 = arith.constant 0 : index
    %c0_1 = arith.constant 0 : index
    %0 = vector.load %arg1[%c0, %c0_0, %c0_1] : memref<1x150x200xf32, #tpu.memory_space<vmem>>, vector<1x150x200xf32>
    %1 = vector.shape_cast %0 : vector<1x150x200xf32> to vector<150x200xf32>
    %c0_2 = arith.constant 0 : index
    %c0_3 = arith.constant 0 : index
    %c0_4 = arith.constant 0 : index
    %2 = vector.load %arg3[%c0_2, %c0_3, %c0_4] : memref<1x50x200xf32, #tpu.memory_space<vmem>>, vector<1x50x200xf32>
    %3 = vector.shape_cast %2 : vector<1x50x200xf32> to vector<50x200xf32>
    %c0_5 = arith.constant 0 : index
    %c0_6 = arith.constant 0 : index
    %4 = vector.load %arg2[%c0_5, %c0_6] : memref<1x200xf32, #tpu.memory_space<vmem>>, vector<1x200xf32>
    %5 = vector.broadcast %4 : vector<1x200xf32> to vector<150x200xf32>
    %6 = arith.mulf %1, %5 : vector<150x200xf32>
    %cst = arith.constant dense<0.000000e+00> : vector<150x50xf32>
    %7 = tpu.matmul %6, %3, %cst {dimension_numbers = #tpu.dot_dimension_numbers<[1], [1], [0], [0], [0, 0, 1, 0], [], []>} : vector<150x200xf32>, vector<50x200xf32>, vector<150x50xf32> -> vector<150x50xf32>
    %cst_7 = arith.constant dense<0.000000e+00> : vector<150x50xf32>
    %8 = tpu.matmul %1, %3, %cst_7 {dimension_numbers = #tpu.dot_dimension_numbers<[1], [1], [0], [0], [0, 0, 1, 0], [], []>} : vector<150x200xf32>, vector<50x200xf32>, vector<150x50xf32> -> vector<150x50xf32>
    %9 = arith.mulf %1, %1 : vector<150x200xf32>
    %cst_8 = arith.constant dense<0.000000e+00> : vector<150xf32>
    %10 = vector.multi_reduction <add>, %9, %cst_8 [1] : vector<150x200xf32> to vector<150xf32>
    %11 = vector.shape_cast %10 : vector<150xf32> to vector<150x1xf32>
    %12 = math.sqrt %11 : vector<150x1xf32>
    %13 = arith.mulf %3, %3 : vector<50x200xf32>
    %cst_9 = arith.constant dense<0.000000e+00> : vector<50xf32>
    %14 = vector.multi_reduction <add>, %13, %cst_9 [1] : vector<50x200xf32> to vector<50xf32>
    %15 = vector.shape_cast %14 : vector<50xf32> to vector<50x1xf32>
    %16 = math.sqrt %15 : vector<50x1xf32>
    %17 = tpu.transpose %16, [1, 0] : vector<50x1xf32> -> vector<1x50xf32>
    %18 = vector.broadcast %12 : vector<150x1xf32> to vector<150x50xf32>
    %19 = vector.broadcast %17 : vector<1x50xf32> to vector<150x50xf32>
    %20 = arith.mulf %18, %19 : vector<150x50xf32>
    %cst_10 = arith.constant 9.99999997E-7 : f32
    %21 = vector.broadcast %cst_10 : f32 to vector<150x50xf32>
    %22 = arith.addf %20, %21 : vector<150x50xf32>
    %c0_11 = arith.constant 0 : index
    %c0_12 = arith.constant 0 : index
    %c0_13 = arith.constant 0 : index
    %c0_14 = arith.constant 0 : index
    %23 = vector.load %arg4[%c0_11, %c0_12, %c0_13, %c0_14] : memref<1x2x150x50xf32, #tpu.memory_space<vmem>>, vector<1x1x150x50xf32>
    %24 = vector.shape_cast %23 : vector<1x1x150x50xf32> to vector<150x50xf32>
    %25 = vector.shape_cast %7 : vector<150x50xf32> to vector<1x1x150x50xf32>
    tpu.vector_store %arg4[%c0_11, %c0_12, %c0_13, %c0_14], %25 {strides = array<i32>} : memref<1x2x150x50xf32, #tpu.memory_space<vmem>>, vector<1x1x150x50xf32>,
    %26 = tpu.reciprocal %22 {approx = true} : vector<150x50xf32> -> vector<150x50xf32>
    %27 = arith.mulf %8, %26 : vector<150x50xf32>
    %c0_15 = arith.constant 0 : index
    %c1 = arith.constant 1 : index
    %c0_16 = arith.constant 0 : index
    %c0_17 = arith.constant 0 : index
    %28 = vector.load %arg4[%c0_15, %c1, %c0_16, %c0_17] : memref<1x2x150x50xf32, #tpu.memory_space<vmem>>, vector<1x1x150x50xf32>
    %29 = vector.shape_cast %28 : vector<1x1x150x50xf32> to vector<150x50xf32>
    %30 = vector.shape_cast %27 : vector<150x50xf32> to vector<1x1x150x50xf32>
    tpu.vector_store %arg4[%c0_15, %c1, %c0_16, %c0_17], %30 {strides = array<i32>} : memref<1x2x150x50xf32, #tpu.memory_space<vmem>>, vector<1x1x150x50xf32>,
    return
  }
  func.func @transform_0(%arg0: i32) -> (i32, i32, i32) {
    %c0_i32 = arith.constant 0 : i32
    %c0_i32_0 = arith.constant 0 : i32
    %c0_i32_1 = arith.constant 0 : i32
    return %arg0, %c0_i32, %c0_i32_0 : i32, i32, i32
  }
  func.func @transform_1(%arg0: i32) -> (i32, i32) {
    %c0_i32 = arith.constant 0 : i32
    %c0_i32_0 = arith.constant 0 : i32
    %c0_i32_1 = arith.constant 0 : i32
    return %c0_i32, %c0_i32_0 : i32, i32
  }
  func.func @transform_2(%arg0: i32) -> (i32, i32, i32) {
    %c0_i32 = arith.constant 0 : i32
    %c0_i32_0 = arith.constant 0 : i32
    %c0_i32_1 = arith.constant 0 : i32
    return %arg0, %c0_i32, %c0_i32_0 : i32, i32, i32
  }
  func.func @transform_3(%arg0: i32) -> (i32, i32, i32, i32) {
    %c0_i32 = arith.constant 0 : i32
    %c0_i32_0 = arith.constant 0 : i32
    %c0_i32_1 = arith.constant 0 : i32
    %c0_i32_2 = arith.constant 0 : i32
    return %arg0, %c0_i32, %c0_i32_0, %c0_i32_1 : i32, i32, i32, i32
  }
}

module attributes {stable_mosaic.version = 11 : i64} {
  func.func @_conv_mm_relu_kernel(%arg0: i32, %arg1: memref<18x13824xf32, #tpu.memory_space<vmem>>, %arg2: memref<8x18xf32, #tpu.memory_space<vmem>>, %arg3: memref<8x1xf32, #tpu.memory_space<vmem>>, %arg4: memref<8x13824xf32, #tpu.memory_space<vmem>>) attributes {dimension_semantics = [#tpu.dimension_semantics<parallel>], iteration_bounds = array<i64: 2>, scalar_prefetch = 0 : i64, scratch_operands = 0 : i64, tpu.core_type = #tpu.core_type<tc>, window_params = [{pipeline_mode = #tpu.pipeline_mode<synchronous>, transform_indices = @transform_0, window_bounds = array<i64: 18, 13824>}, {transform_indices = @transform_1, window_bounds = array<i64: 8, 18>}, {transform_indices = @transform_2, window_bounds = array<i64: 8, 1>}, {transform_indices = @transform_3, window_bounds = array<i64: 8, 13824>}]} {
    %c0 = arith.constant 0 : index
    %c0_0 = arith.constant 0 : index
    %0 = vector.load %arg2[%c0, %c0_0] : memref<8x18xf32, #tpu.memory_space<vmem>>, vector<8x18xf32>
    %c0_1 = arith.constant 0 : index
    %c0_2 = arith.constant 0 : index
    %1 = vector.load %arg1[%c0_1, %c0_2] : memref<18x13824xf32, #tpu.memory_space<vmem>>, vector<18x13824xf32>
    %cst = arith.constant dense<0.000000e+00> : vector<8x13824xf32>
    %2 = tpu.matmul %0, %1, %cst {dimension_numbers = #tpu.dot_dimension_numbers<[1], [0], [0], [1], [0, 0, 1, 1], [], []>} : vector<8x18xf32>, vector<18x13824xf32>, vector<8x13824xf32> -> vector<8x13824xf32>
    %c0_3 = arith.constant 0 : index
    %c0_4 = arith.constant 0 : index
    %3 = vector.load %arg3[%c0_3, %c0_4] : memref<8x1xf32, #tpu.memory_space<vmem>>, vector<8x1xf32>
    %4 = vector.broadcast %3 : vector<8x1xf32> to vector<8x13824xf32>
    %5 = arith.addf %2, %4 : vector<8x13824xf32>
    %cst_5 = arith.constant 0.000000e+00 : f32
    %6 = vector.broadcast %cst_5 : f32 to vector<8x13824xf32>
    %7 = arith.maximumf %5, %6 : vector<8x13824xf32>
    %c0_6 = arith.constant 0 : index
    %c0_7 = arith.constant 0 : index
    %8 = vector.load %arg4[%c0_6, %c0_7] : memref<8x13824xf32, #tpu.memory_space<vmem>>, vector<8x13824xf32>
    tpu.vector_store %arg4[%c0_6, %c0_7], %7 {strides = array<i32>} : memref<8x13824xf32, #tpu.memory_space<vmem>>, vector<8x13824xf32>,
    return
  }
  func.func @transform_0(%arg0: i32) -> (i32, i32) {
    %c0_i32 = arith.constant 0 : i32
    %c0_i32_0 = arith.constant 0 : i32
    %c0_i32_1 = arith.constant 0 : i32
    return %c0_i32, %c0_i32_0 : i32, i32
  }
  func.func @transform_1(%arg0: i32) -> (i32, i32) {
    %c0_i32 = arith.constant 0 : i32
    %c0_i32_0 = arith.constant 0 : i32
    return %arg0, %c0_i32 : i32, i32
  }
  func.func @transform_2(%arg0: i32) -> (i32, i32) {
    %c0_i32 = arith.constant 0 : i32
    %c0_i32_0 = arith.constant 0 : i32
    return %arg0, %c0_i32 : i32, i32
  }
  func.func @transform_3(%arg0: i32) -> (i32, i32) {
    %c0_i32 = arith.constant 0 : i32
    %c0_i32_0 = arith.constant 0 : i32
    return %arg0, %c0_i32 : i32, i32
  }
}

module attributes {stable_mosaic.version = 11 : i64} {
  func.func @_conv_mm_relu_kernel(%arg0: i32, %arg1: memref<144x2904xf32, #tpu.memory_space<vmem>>, %arg2: memref<16x144xf32, #tpu.memory_space<vmem>>, %arg3: memref<16x1xf32, #tpu.memory_space<vmem>>, %arg4: memref<16x2904xf32, #tpu.memory_space<vmem>>) attributes {dimension_semantics = [#tpu.dimension_semantics<parallel>], iteration_bounds = array<i64: 2>, scalar_prefetch = 0 : i64, scratch_operands = 0 : i64, tpu.core_type = #tpu.core_type<tc>, window_params = [{pipeline_mode = #tpu.pipeline_mode<synchronous>, transform_indices = @transform_0, window_bounds = array<i64: 144, 2904>}, {transform_indices = @transform_1, window_bounds = array<i64: 16, 144>}, {transform_indices = @transform_2, window_bounds = array<i64: 16, 1>}, {transform_indices = @transform_3, window_bounds = array<i64: 16, 2904>}]} {
    %c0 = arith.constant 0 : index
    %c0_0 = arith.constant 0 : index
    %0 = vector.load %arg2[%c0, %c0_0] : memref<16x144xf32, #tpu.memory_space<vmem>>, vector<16x144xf32>
    %c0_1 = arith.constant 0 : index
    %c0_2 = arith.constant 0 : index
    %1 = vector.load %arg1[%c0_1, %c0_2] : memref<144x2904xf32, #tpu.memory_space<vmem>>, vector<144x2904xf32>
    %cst = arith.constant dense<0.000000e+00> : vector<16x2904xf32>
    %2 = tpu.matmul %0, %1, %cst {dimension_numbers = #tpu.dot_dimension_numbers<[1], [0], [0], [1], [0, 0, 1, 1], [], []>} : vector<16x144xf32>, vector<144x2904xf32>, vector<16x2904xf32> -> vector<16x2904xf32>
    %c0_3 = arith.constant 0 : index
    %c0_4 = arith.constant 0 : index
    %3 = vector.load %arg3[%c0_3, %c0_4] : memref<16x1xf32, #tpu.memory_space<vmem>>, vector<16x1xf32>
    %4 = vector.broadcast %3 : vector<16x1xf32> to vector<16x2904xf32>
    %5 = arith.addf %2, %4 : vector<16x2904xf32>
    %cst_5 = arith.constant 0.000000e+00 : f32
    %6 = vector.broadcast %cst_5 : f32 to vector<16x2904xf32>
    %7 = arith.maximumf %5, %6 : vector<16x2904xf32>
    %c0_6 = arith.constant 0 : index
    %c0_7 = arith.constant 0 : index
    %8 = vector.load %arg4[%c0_6, %c0_7] : memref<16x2904xf32, #tpu.memory_space<vmem>>, vector<16x2904xf32>
    tpu.vector_store %arg4[%c0_6, %c0_7], %7 {strides = array<i32>} : memref<16x2904xf32, #tpu.memory_space<vmem>>, vector<16x2904xf32>,
    return
  }
  func.func @transform_0(%arg0: i32) -> (i32, i32) {
    %c0_i32 = arith.constant 0 : i32
    %c0_i32_0 = arith.constant 0 : i32
    %c0_i32_1 = arith.constant 0 : i32
    return %c0_i32, %c0_i32_0 : i32, i32
  }
  func.func @transform_1(%arg0: i32) -> (i32, i32) {
    %c0_i32 = arith.constant 0 : i32
    %c0_i32_0 = arith.constant 0 : i32
    return %arg0, %c0_i32 : i32, i32
  }
  func.func @transform_2(%arg0: i32) -> (i32, i32) {
    %c0_i32 = arith.constant 0 : i32
    %c0_i32_0 = arith.constant 0 : i32
    return %arg0, %c0_i32 : i32, i32
  }
  func.func @transform_3(%arg0: i32) -> (i32, i32) {
    %c0_i32 = arith.constant 0 : i32
    %c0_i32_0 = arith.constant 0 : i32
    return %arg0, %c0_i32 : i32, i32
  }
}

module attributes {stable_mosaic.version = 11 : i64} {
  func.func @_conv_mm_relu_kernel(%arg0: i32, %arg1: memref<288x486xf32, #tpu.memory_space<vmem>>, %arg2: memref<32x288xf32, #tpu.memory_space<vmem>>, %arg3: memref<32x1xf32, #tpu.memory_space<vmem>>, %arg4: memref<32x486xf32, #tpu.memory_space<vmem>>) attributes {dimension_semantics = [#tpu.dimension_semantics<parallel>], iteration_bounds = array<i64: 2>, scalar_prefetch = 0 : i64, scratch_operands = 0 : i64, tpu.core_type = #tpu.core_type<tc>, window_params = [{pipeline_mode = #tpu.pipeline_mode<synchronous>, transform_indices = @transform_0, window_bounds = array<i64: 288, 486>}, {transform_indices = @transform_1, window_bounds = array<i64: 32, 288>}, {transform_indices = @transform_2, window_bounds = array<i64: 32, 1>}, {transform_indices = @transform_3, window_bounds = array<i64: 32, 486>}]} {
    %c0 = arith.constant 0 : index
    %c0_0 = arith.constant 0 : index
    %0 = vector.load %arg2[%c0, %c0_0] : memref<32x288xf32, #tpu.memory_space<vmem>>, vector<32x288xf32>
    %c0_1 = arith.constant 0 : index
    %c0_2 = arith.constant 0 : index
    %1 = vector.load %arg1[%c0_1, %c0_2] : memref<288x486xf32, #tpu.memory_space<vmem>>, vector<288x486xf32>
    %cst = arith.constant dense<0.000000e+00> : vector<32x486xf32>
    %2 = tpu.matmul %0, %1, %cst {dimension_numbers = #tpu.dot_dimension_numbers<[1], [0], [0], [1], [0, 0, 1, 1], [], []>} : vector<32x288xf32>, vector<288x486xf32>, vector<32x486xf32> -> vector<32x486xf32>
    %c0_3 = arith.constant 0 : index
    %c0_4 = arith.constant 0 : index
    %3 = vector.load %arg3[%c0_3, %c0_4] : memref<32x1xf32, #tpu.memory_space<vmem>>, vector<32x1xf32>
    %4 = vector.broadcast %3 : vector<32x1xf32> to vector<32x486xf32>
    %5 = arith.addf %2, %4 : vector<32x486xf32>
    %cst_5 = arith.constant 0.000000e+00 : f32
    %6 = vector.broadcast %cst_5 : f32 to vector<32x486xf32>
    %7 = arith.maximumf %5, %6 : vector<32x486xf32>
    %c0_6 = arith.constant 0 : index
    %c0_7 = arith.constant 0 : index
    %8 = vector.load %arg4[%c0_6, %c0_7] : memref<32x486xf32, #tpu.memory_space<vmem>>, vector<32x486xf32>
    tpu.vector_store %arg4[%c0_6, %c0_7], %7 {strides = array<i32>} : memref<32x486xf32, #tpu.memory_space<vmem>>, vector<32x486xf32>,
    return
  }
  func.func @transform_0(%arg0: i32) -> (i32, i32) {
    %c0_i32 = arith.constant 0 : i32
    %c0_i32_0 = arith.constant 0 : i32
    %c0_i32_1 = arith.constant 0 : i32
    return %c0_i32, %c0_i32_0 : i32, i32
  }
  func.func @transform_1(%arg0: i32) -> (i32, i32) {
    %c0_i32 = arith.constant 0 : i32
    %c0_i32_0 = arith.constant 0 : i32
    return %arg0, %c0_i32 : i32, i32
  }
  func.func @transform_2(%arg0: i32) -> (i32, i32) {
    %c0_i32 = arith.constant 0 : i32
    %c0_i32_0 = arith.constant 0 : i32
    return %arg0, %c0_i32 : i32, i32
  }
  func.func @transform_3(%arg0: i32) -> (i32, i32) {
    %c0_i32 = arith.constant 0 : i32
    %c0_i32_0 = arith.constant 0 : i32
    return %arg0, %c0_i32 : i32, i32
  }
}

module attributes {stable_mosaic.version = 11 : i64} {
  func.func @_linear_kernel(%arg0: i32, %arg1: memref<6x576xf32, #tpu.memory_space<vmem>>, %arg2: memref<576x200xf32, #tpu.memory_space<vmem>>, %arg3: memref<1x200xf32, #tpu.memory_space<vmem>>, %arg4: memref<6x200xf32, #tpu.memory_space<vmem>>) attributes {dimension_semantics = [#tpu.dimension_semantics<parallel>], iteration_bounds = array<i64: 1>, scalar_prefetch = 0 : i64, scratch_operands = 0 : i64, tpu.core_type = #tpu.core_type<tc>, window_params = [{transform_indices = @transform_0, window_bounds = array<i64: 6, 576>}, {pipeline_mode = #tpu.pipeline_mode<synchronous>, transform_indices = @transform_1, window_bounds = array<i64: 576, 200>}, {pipeline_mode = #tpu.pipeline_mode<synchronous>, transform_indices = @transform_2, window_bounds = array<i64: 1, 200>}, {transform_indices = @transform_3, window_bounds = array<i64: 6, 200>}]} {
    %c0 = arith.constant 0 : index
    %c0_0 = arith.constant 0 : index
    %0 = vector.load %arg1[%c0, %c0_0] : memref<6x576xf32, #tpu.memory_space<vmem>>, vector<6x576xf32>
    %c0_1 = arith.constant 0 : index
    %c0_2 = arith.constant 0 : index
    %1 = vector.load %arg2[%c0_1, %c0_2] : memref<576x200xf32, #tpu.memory_space<vmem>>, vector<576x200xf32>
    %cst = arith.constant dense<0.000000e+00> : vector<6x200xf32>
    %2 = tpu.matmul %0, %1, %cst {dimension_numbers = #tpu.dot_dimension_numbers<[1], [0], [0], [1], [0, 0, 1, 1], [], []>} : vector<6x576xf32>, vector<576x200xf32>, vector<6x200xf32> -> vector<6x200xf32>
    %c0_3 = arith.constant 0 : index
    %c0_4 = arith.constant 0 : index
    %3 = vector.load %arg3[%c0_3, %c0_4] : memref<1x200xf32, #tpu.memory_space<vmem>>, vector<1x200xf32>
    %4 = vector.broadcast %3 : vector<1x200xf32> to vector<6x200xf32>
    %5 = arith.addf %2, %4 : vector<6x200xf32>
    %6 = math.tanh %5 : vector<6x200xf32>
    %c0_5 = arith.constant 0 : index
    %c0_6 = arith.constant 0 : index
    %7 = vector.load %arg4[%c0_5, %c0_6] : memref<6x200xf32, #tpu.memory_space<vmem>>, vector<6x200xf32>
    tpu.vector_store %arg4[%c0_5, %c0_6], %6 {strides = array<i32>} : memref<6x200xf32, #tpu.memory_space<vmem>>, vector<6x200xf32>,
    return
  }
  func.func @transform_0(%arg0: i32) -> (i32, i32) {
    %c0_i32 = arith.constant 0 : i32
    %c0_i32_0 = arith.constant 0 : i32
    return %arg0, %c0_i32 : i32, i32
  }
  func.func @transform_1(%arg0: i32) -> (i32, i32) {
    %c0_i32 = arith.constant 0 : i32
    %c0_i32_0 = arith.constant 0 : i32
    %c0_i32_1 = arith.constant 0 : i32
    return %c0_i32, %c0_i32_0 : i32, i32
  }
  func.func @transform_2(%arg0: i32) -> (i32, i32) {
    %c0_i32 = arith.constant 0 : i32
    %c0_i32_0 = arith.constant 0 : i32
    %c0_i32_1 = arith.constant 0 : i32
    return %c0_i32, %c0_i32_0 : i32, i32
  }
  func.func @transform_3(%arg0: i32) -> (i32, i32) {
    %c0_i32 = arith.constant 0 : i32
    %c0_i32_0 = arith.constant 0 : i32
    return %arg0, %c0_i32 : i32, i32
  }
}

module attributes {stable_mosaic.version = 11 : i64} {
  func.func @_linear_kernel(%arg0: i32, %arg1: memref<6x200xf32, #tpu.memory_space<vmem>>, %arg2: memref<200x600xf32, #tpu.memory_space<vmem>>, %arg3: memref<1x600xf32, #tpu.memory_space<vmem>>, %arg4: memref<6x600xf32, #tpu.memory_space<vmem>>) attributes {dimension_semantics = [#tpu.dimension_semantics<parallel>], iteration_bounds = array<i64: 1>, scalar_prefetch = 0 : i64, scratch_operands = 0 : i64, tpu.core_type = #tpu.core_type<tc>, window_params = [{transform_indices = @transform_0, window_bounds = array<i64: 6, 200>}, {pipeline_mode = #tpu.pipeline_mode<synchronous>, transform_indices = @transform_1, window_bounds = array<i64: 200, 600>}, {pipeline_mode = #tpu.pipeline_mode<synchronous>, transform_indices = @transform_2, window_bounds = array<i64: 1, 600>}, {transform_indices = @transform_3, window_bounds = array<i64: 6, 600>}]} {
    %c0 = arith.constant 0 : index
    %c0_0 = arith.constant 0 : index
    %0 = vector.load %arg1[%c0, %c0_0] : memref<6x200xf32, #tpu.memory_space<vmem>>, vector<6x200xf32>
    %c0_1 = arith.constant 0 : index
    %c0_2 = arith.constant 0 : index
    %1 = vector.load %arg2[%c0_1, %c0_2] : memref<200x600xf32, #tpu.memory_space<vmem>>, vector<200x600xf32>
    %cst = arith.constant dense<0.000000e+00> : vector<6x600xf32>
    %2 = tpu.matmul %0, %1, %cst {dimension_numbers = #tpu.dot_dimension_numbers<[1], [0], [0], [1], [0, 0, 1, 1], [], []>} : vector<6x200xf32>, vector<200x600xf32>, vector<6x600xf32> -> vector<6x600xf32>
    %c0_3 = arith.constant 0 : index
    %c0_4 = arith.constant 0 : index
    %3 = vector.load %arg3[%c0_3, %c0_4] : memref<1x600xf32, #tpu.memory_space<vmem>>, vector<1x600xf32>
    %4 = vector.broadcast %3 : vector<1x600xf32> to vector<6x600xf32>
    %5 = arith.addf %2, %4 : vector<6x600xf32>
    %c0_5 = arith.constant 0 : index
    %c0_6 = arith.constant 0 : index
    %6 = vector.load %arg4[%c0_5, %c0_6] : memref<6x600xf32, #tpu.memory_space<vmem>>, vector<6x600xf32>
    tpu.vector_store %arg4[%c0_5, %c0_6], %5 {strides = array<i32>} : memref<6x600xf32, #tpu.memory_space<vmem>>, vector<6x600xf32>,
    return
  }
  func.func @transform_0(%arg0: i32) -> (i32, i32) {
    %c0_i32 = arith.constant 0 : i32
    %c0_i32_0 = arith.constant 0 : i32
    return %arg0, %c0_i32 : i32, i32
  }
  func.func @transform_1(%arg0: i32) -> (i32, i32) {
    %c0_i32 = arith.constant 0 : i32
    %c0_i32_0 = arith.constant 0 : i32
    %c0_i32_1 = arith.constant 0 : i32
    return %c0_i32, %c0_i32_0 : i32, i32
  }
  func.func @transform_2(%arg0: i32) -> (i32, i32) {
    %c0_i32 = arith.constant 0 : i32
    %c0_i32_0 = arith.constant 0 : i32
    %c0_i32_1 = arith.constant 0 : i32
    return %c0_i32, %c0_i32_0 : i32, i32
  }
  func.func @transform_3(%arg0: i32) -> (i32, i32) {
    %c0_i32 = arith.constant 0 : i32
    %c0_i32_0 = arith.constant 0 : i32
    return %arg0, %c0_i32 : i32, i32
  }
}

module attributes {stable_mosaic.version = 11 : i64} {
  func.func @_gru_last_linear_kernel(%arg0: i32, %arg1: memref<3x3x2x200xf32, #tpu.memory_space<vmem>>, %arg2: memref<3x200x200xf32, #tpu.memory_space<vmem>>, %arg3: memref<3x1x200xf32, #tpu.memory_space<vmem>>, %arg4: memref<200x1xf32, #tpu.memory_space<vmem>>, %arg5: memref<1x1xf32, #tpu.memory_space<vmem>>, %arg6: memref<2x1xf32, #tpu.memory_space<vmem>>, %arg7: memref<2x200xf32, #tpu.memory_space<vmem>>) attributes {dimension_semantics = [#tpu.dimension_semantics<arbitrary>], iteration_bounds = array<i64: 1>, scalar_prefetch = 0 : i64, scratch_operands = 1 : i64, tpu.core_type = #tpu.core_type<tc>, window_params = [{pipeline_mode = #tpu.pipeline_mode<synchronous>, transform_indices = @transform_0, window_bounds = array<i64: 3, 3, 2, 200>}, {pipeline_mode = #tpu.pipeline_mode<synchronous>, transform_indices = @transform_1, window_bounds = array<i64: 3, 200, 200>}, {pipeline_mode = #tpu.pipeline_mode<synchronous>, transform_indices = @transform_2, window_bounds = array<i64: 3, 1, 200>}, {pipeline_mode = #tpu.pipeline_mode<synchronous>, transform_indices = @transform_3, window_bounds = array<i64: 200, 1>}, {pipeline_mode = #tpu.pipeline_mode<synchronous>, transform_indices = @transform_4, window_bounds = array<i64: 1, 1>}, {pipeline_mode = #tpu.pipeline_mode<synchronous>, transform_indices = @transform_5, window_bounds = array<i64: 2, 1>}]} {
    %cst = arith.constant 0.000000e+00 : f32
    %0 = vector.broadcast %cst : f32 to vector<2x200xf32>
    %c0 = arith.constant 0 : index
    %c0_0 = arith.constant 0 : index
    %1 = vector.load %arg7[%c0, %c0_0] : memref<2x200xf32, #tpu.memory_space<vmem>>, vector<2x200xf32>
    tpu.vector_store %arg7[%c0, %c0_0], %0 {strides = array<i32>} : memref<2x200xf32, #tpu.memory_space<vmem>>, vector<2x200xf32>,
    %c0_i32 = arith.constant 0 : i32
    %c3_i32 = arith.constant 3 : i32
    %2 = arith.addi %c0_i32, %c3_i32 : i32
    %c1_i32 = arith.constant 1 : i32
    scf.for %arg8 = %c0_i32 to %2 step %c1_i32  : i32 {
      %10 = arith.index_cast %arg8 : i32 to index
      %c0_11 = arith.constant 0 : index
      %c0_12 = arith.constant 0 : index
      %c0_13 = arith.constant 0 : index
      %11 = vector.load %arg1[%10, %c0_11, %c0_12, %c0_13] : memref<3x3x2x200xf32, #tpu.memory_space<vmem>>, vector<1x3x2x200xf32>
      %12 = vector.shape_cast %11 : vector<1x3x2x200xf32> to vector<3x2x200xf32>
      %c0_14 = arith.constant 0 : index
      %c0_15 = arith.constant 0 : index
      %13 = vector.load %arg7[%c0_14, %c0_15] : memref<2x200xf32, #tpu.memory_space<vmem>>, vector<2x200xf32>
      %c0_16 = arith.constant 0 : index
      %c0_17 = arith.constant 0 : index
      %c0_18 = arith.constant 0 : index
      %14 = vector.load %arg2[%c0_16, %c0_17, %c0_18] : memref<3x200x200xf32, #tpu.memory_space<vmem>>, vector<1x200x200xf32>
      %15 = vector.shape_cast %14 : vector<1x200x200xf32> to vector<200x200xf32>
      %cst_19 = arith.constant dense<0.000000e+00> : vector<2x200xf32>
      %16 = tpu.matmul %13, %15, %cst_19 {dimension_numbers = #tpu.dot_dimension_numbers<[1], [0], [0], [1], [0, 0, 1, 1], [], []>} : vector<2x200xf32>, vector<200x200xf32>, vector<2x200xf32> -> vector<2x200xf32>
      %c0_20 = arith.constant 0 : index
      %c0_21 = arith.constant 0 : index
      %c0_22 = arith.constant 0 : index
      %17 = vector.load %arg3[%c0_20, %c0_21, %c0_22] : memref<3x1x200xf32, #tpu.memory_space<vmem>>, vector<1x1x200xf32>
      %18 = vector.shape_cast %17 : vector<1x1x200xf32> to vector<1x200xf32>
      %19 = vector.broadcast %18 : vector<1x200xf32> to vector<2x200xf32>
      %20 = arith.addf %16, %19 : vector<2x200xf32>
      %c1 = arith.constant 1 : index
      %c0_23 = arith.constant 0 : index
      %c0_24 = arith.constant 0 : index
      %21 = vector.load %arg2[%c1, %c0_23, %c0_24] : memref<3x200x200xf32, #tpu.memory_space<vmem>>, vector<1x200x200xf32>
      %22 = vector.shape_cast %21 : vector<1x200x200xf32> to vector<200x200xf32>
      %cst_25 = arith.constant dense<0.000000e+00> : vector<2x200xf32>
      %23 = tpu.matmul %13, %22, %cst_25 {dimension_numbers = #tpu.dot_dimension_numbers<[1], [0], [0], [1], [0, 0, 1, 1], [], []>} : vector<2x200xf32>, vector<200x200xf32>, vector<2x200xf32> -> vector<2x200xf32>
      %c1_26 = arith.constant 1 : index
      %c0_27 = arith.constant 0 : index
      %c0_28 = arith.constant 0 : index
      %24 = vector.load %arg3[%c1_26, %c0_27, %c0_28] : memref<3x1x200xf32, #tpu.memory_space<vmem>>, vector<1x1x200xf32>
      %25 = vector.shape_cast %24 : vector<1x1x200xf32> to vector<1x200xf32>
      %26 = vector.broadcast %25 : vector<1x200xf32> to vector<2x200xf32>
      %27 = arith.addf %23, %26 : vector<2x200xf32>
      %c2 = arith.constant 2 : index
      %c0_29 = arith.constant 0 : index
      %c0_30 = arith.constant 0 : index
      %28 = vector.load %arg2[%c2, %c0_29, %c0_30] : memref<3x200x200xf32, #tpu.memory_space<vmem>>, vector<1x200x200xf32>
      %29 = vector.shape_cast %28 : vector<1x200x200xf32> to vector<200x200xf32>
      %cst_31 = arith.constant dense<0.000000e+00> : vector<2x200xf32>
      %30 = tpu.matmul %13, %29, %cst_31 {dimension_numbers = #tpu.dot_dimension_numbers<[1], [0], [0], [1], [0, 0, 1, 1], [], []>} : vector<2x200xf32>, vector<200x200xf32>, vector<2x200xf32> -> vector<2x200xf32>
      %c2_32 = arith.constant 2 : index
      %c0_33 = arith.constant 0 : index
      %c0_34 = arith.constant 0 : index
      %31 = vector.load %arg3[%c2_32, %c0_33, %c0_34] : memref<3x1x200xf32, #tpu.memory_space<vmem>>, vector<1x1x200xf32>
      %32 = vector.shape_cast %31 : vector<1x1x200xf32> to vector<1x200xf32>
      %33 = vector.broadcast %32 : vector<1x200xf32> to vector<2x200xf32>
      %34 = arith.addf %30, %33 : vector<2x200xf32>
      %35 = vector.extract_strided_slice %12 {offsets = [0, 0, 0], sizes = [1, 2, 200], strides = [1, 1, 1]} : vector<3x2x200xf32> to vector<1x2x200xf32>
      %36 = vector.shape_cast %35 : vector<1x2x200xf32> to vector<2x200xf32>
      %37 = arith.addf %36, %20 : vector<2x200xf32>
      %38 = arith.negf %37 : vector<2x200xf32>
      %39 = math.exp %38 : vector<2x200xf32>
      %cst_35 = arith.constant 1.000000e+00 : f32
      %40 = vector.broadcast %cst_35 : f32 to vector<2x200xf32>
      %41 = arith.addf %40, %39 : vector<2x200xf32>
      %42 = arith.divf %40, %41 : vector<2x200xf32>
      %43 = vector.extract_strided_slice %12 {offsets = [1, 0, 0], sizes = [1, 2, 200], strides = [1, 1, 1]} : vector<3x2x200xf32> to vector<1x2x200xf32>
      %44 = vector.shape_cast %43 : vector<1x2x200xf32> to vector<2x200xf32>
      %45 = arith.addf %44, %27 : vector<2x200xf32>
      %46 = arith.negf %45 : vector<2x200xf32>
      %47 = math.exp %46 : vector<2x200xf32>
      %cst_36 = arith.constant 1.000000e+00 : f32
      %48 = vector.broadcast %cst_36 : f32 to vector<2x200xf32>
      %49 = arith.addf %48, %47 : vector<2x200xf32>
      %50 = arith.divf %48, %49 : vector<2x200xf32>
      %51 = vector.extract_strided_slice %12 {offsets = [2, 0, 0], sizes = [1, 2, 200], strides = [1, 1, 1]} : vector<3x2x200xf32> to vector<1x2x200xf32>
      %52 = vector.shape_cast %51 : vector<1x2x200xf32> to vector<2x200xf32>
      %53 = arith.mulf %42, %34 : vector<2x200xf32>
      %54 = arith.addf %52, %53 : vector<2x200xf32>
      %55 = math.tanh %54 : vector<2x200xf32>
      %cst_37 = arith.constant 1.000000e+00 : f32
      %56 = vector.broadcast %cst_37 : f32 to vector<2x200xf32>
      %57 = arith.subf %56, %50 : vector<2x200xf32>
      %58 = arith.mulf %57, %55 : vector<2x200xf32>
      %59 = arith.mulf %50, %13 : vector<2x200xf32>
      %60 = arith.addf %58, %59 : vector<2x200xf32>
      %c0_38 = arith.constant 0 : index
      %c0_39 = arith.constant 0 : index
      %61 = vector.load %arg7[%c0_38, %c0_39] : memref<2x200xf32, #tpu.memory_space<vmem>>, vector<2x200xf32>
      tpu.vector_store %arg7[%c0_38, %c0_39], %60 {strides = array<i32>} : memref<2x200xf32, #tpu.memory_space<vmem>>, vector<2x200xf32>,
    }
    %c3_i32_1 = arith.constant 3 : i32
    %c0_2 = arith.constant 0 : index
    %c0_3 = arith.constant 0 : index
    %3 = vector.load %arg7[%c0_2, %c0_3] : memref<2x200xf32, #tpu.memory_space<vmem>>, vector<2x200xf32>
    %c0_4 = arith.constant 0 : index
    %c0_5 = arith.constant 0 : index
    %4 = vector.load %arg4[%c0_4, %c0_5] : memref<200x1xf32, #tpu.memory_space<vmem>>, vector<200x1xf32>
    %cst_6 = arith.constant dense<0.000000e+00> : vector<2x1xf32>
    %5 = tpu.matmul %3, %4, %cst_6 {dimension_numbers = #tpu.dot_dimension_numbers<[1], [0], [0], [1], [0, 0, 1, 1], [], []>} : vector<2x200xf32>, vector<200x1xf32>, vector<2x1xf32> -> vector<2x1xf32>
    %c0_7 = arith.constant 0 : index
    %c0_8 = arith.constant 0 : index
    %6 = vector.load %arg5[%c0_7, %c0_8] : memref<1x1xf32, #tpu.memory_space<vmem>>, vector<1x1xf32>
    %7 = vector.broadcast %6 : vector<1x1xf32> to vector<2x1xf32>
    %8 = arith.addf %5, %7 : vector<2x1xf32>
    %c0_9 = arith.constant 0 : index
    %c0_10 = arith.constant 0 : index
    %9 = vector.load %arg6[%c0_9, %c0_10] : memref<2x1xf32, #tpu.memory_space<vmem>>, vector<2x1xf32>
    tpu.vector_store %arg6[%c0_9, %c0_10], %8 {strides = array<i32>} : memref<2x1xf32, #tpu.memory_space<vmem>>, vector<2x1xf32>,
    return
  }
  func.func @transform_0(%arg0: i32) -> (i32, i32, i32, i32) {
    %c0_i32 = arith.constant 0 : i32
    %c0_i32_0 = arith.constant 0 : i32
    %c0_i32_1 = arith.constant 0 : i32
    %c0_i32_2 = arith.constant 0 : i32
    %c0_i32_3 = arith.constant 0 : i32
    return %c0_i32, %c0_i32_0, %c0_i32_1, %c0_i32_2 : i32, i32, i32, i32
  }
  func.func @transform_1(%arg0: i32) -> (i32, i32, i32) {
    %c0_i32 = arith.constant 0 : i32
    %c0_i32_0 = arith.constant 0 : i32
    %c0_i32_1 = arith.constant 0 : i32
    %c0_i32_2 = arith.constant 0 : i32
    return %c0_i32, %c0_i32_0, %c0_i32_1 : i32, i32, i32
  }
  func.func @transform_2(%arg0: i32) -> (i32, i32, i32) {
    %c0_i32 = arith.constant 0 : i32
    %c0_i32_0 = arith.constant 0 : i32
    %c0_i32_1 = arith.constant 0 : i32
    %c0_i32_2 = arith.constant 0 : i32
    return %c0_i32, %c0_i32_0, %c0_i32_1 : i32, i32, i32
  }
  func.func @transform_3(%arg0: i32) -> (i32, i32) {
    %c0_i32 = arith.constant 0 : i32
    %c0_i32_0 = arith.constant 0 : i32
    %c0_i32_1 = arith.constant 0 : i32
    return %c0_i32, %c0_i32_0 : i32, i32
  }
  func.func @transform_4(%arg0: i32) -> (i32, i32) {
    %c0_i32 = arith.constant 0 : i32
    %c0_i32_0 = arith.constant 0 : i32
    %c0_i32_1 = arith.constant 0 : i32
    return %c0_i32, %c0_i32_0 : i32, i32
  }
  func.func @transform_5(%arg0: i32) -> (i32, i32) {
    %c0_i32 = arith.constant 0 : i32
    %c0_i32_0 = arith.constant 0 : i32
    %c0_i32_1 = arith.constant 0 : i32
    return %c0_i32, %c0_i32_0 : i32, i32
  }
}

</mosaic_0001>

<bundles_post_ra>
// kernel: forward.9
= control target key start
LH: loop header
LB: loop body
LE: loop exit
PB: predicated region body
PF: predicated region fallthrough
CT: control target
= control target key end

     0   :  { %s2781_s12 = smov 0   ;;  %s4688_s0 = inlined_call_operand.vmem [shape: f32[400,400], index: 0, kind: input, shape index: {}]   ;;  %s4689_s1 = inlined_call_operand.vmem [shape: f32[400,600], index: 1, kind: input, shape index: {}]   ;;  %s4690_s2 = inlined_call_operand.vmem [shape: f32[1,600], index: 2, kind: input, shape index: {}]   ;;  %s4691_s3 = inlined_call_operand.vmem [shape: f32[400,600], index: 3, kind: output, shape index: {}]  }
   0x1 LB: > { %s2056_s13 = sadd.s32 4294967295, %s2758_s12   ;;  %p2060_p0 = scmp.ge.s32.totalorder %s2758_s12, 1  ;;  %s2758_s12 = sphi %s2781_s12, %s13_s12  }
   0x2   : > { %p139_p1 = scmp.lt.s32.totalorder %s2758_s12, 3 }
   0x4   : > { %p140_p2 = pnand %p2060_p0, %p139_p1 }
   0x6   : > { %143 = sbr.rel (%p140_p2) target bundleno = 593 (0x251), region = 32 }
   0xd   : > { %v280_v0 = vld [vmem:[%s4689_s1 + $0x8] sm:$0xff]  ;;  %v285_v1 = vld [vmem:[%s4689_s1 + $0x30] sm:$0xff]  ;;  %v279_v5 = vld [vmem:[%s4689_s1] sm:$0xff]  ;;  %s2854_s4 = smul.u32 25, %s2056_s13  ;;  %vm556_vm0 = vcmask 130048   ;;  %vm1876_vm1 = vcmask 719872  }
   0xe   : > { %v440_v2 = vld [vmem:[%s4689_s1 + $0x508] sm:$0xff]  ;;  %v2142_v3 = vpack.c.bf16 %v285_v1, %v280_v0  ;;  %v445_v4 = vld [vmem:[%s4689_s1 + $0x530] sm:$0xff]  ;;  %v439_v9 = vld [vmem:[%s4689_s1 + $0x500] sm:$0xff] }
   0xf   : > { %v284_v6 = vld [vmem:[%s4689_s1 + $0x28] sm:$0xff]  ;;  %v2206_v7 = vpack.c.bf16 %v445_v4, %v440_v2  ;;  %v290_v11 = vld [vmem:[%s4689_s1 + $0x58] sm:$0xff]  ;;  %v295_v13 = vld [vmem:[%s4689_s1 + $0x80] sm:$0xff]  ;;  %p166_p3 = scmp.lt.s32.totalorder %s2854_s4, 49 }
  0x10   : > { %v2144_v8 = vpack.c.bf16 %v284_v6, %v279_v5  ;;  %v444_v10 = vld [vmem:[%s4689_s1 + $0x528] sm:$0xff]  ;;  %2143 = vmatprep.subr.bf16.mxu1 %v2142_v3  ;;  %v450_v14 = vld [vmem:[%s4689_s1 + $0x558] sm:$0xff]  ;;  %v455_v15 = vld [vmem:[%s4689_s1 + $0x580] sm:$0xff]  ;;  %v2146_v16 = vpack.c.bf16 %v295_v13, %v290_v11 }
  0x11   : > { %v2208_v12 = vpack.c.bf16 %v444_v10, %v439_v9  ;;  %2207 = vmatprep.subr.bf16.mxu0 %v2206_v7  ;;  %v2210_v17 = vpack.c.bf16 %v455_v15, %v450_v14  ;;  %v289_v18 = vld [vmem:[%s4689_s1 + $0x50] sm:$0xff]  ;;  %v294_v19 = vld [vmem:[%s4689_s1 + $0x78] sm:$0xff]  ;;  %v300_v23 = vld [vmem:[%s4689_s1 + $0xa8] sm:$0xff]  ;;  %s4744_s4 = smov (!%p166_p3, %s2854_s4), 49 }
  0x12   : > { %2145 = vmatpush1.bf16.msra.mxu1 %v2144_v8  ;;  %v449_v20 = vld [vmem:[%s4689_s1 + $0x550] sm:$0xff]  ;;  %v2148_v21 = vpack.c.bf16 %v294_v19, %v289_v18  ;;  %v454_v22 = vld [vmem:[%s4689_s1 + $0x578] sm:$0xff]  ;;  %v460_v27 = vld [vmem:[%s4689_s1 + $0x5a8] sm:$0xff]  ;;  %s2141_s13 = sshll.u32 %s4744_s4, 5  ;;  %s2692_s10 = smul.u32 40, %s4744_s4 }
  0x13   : > { %2209 = vmatpush1.bf16.msra.mxu0 %v2208_v12  ;;  %v305_v24 = vld [vmem:[%s4689_s1 + $0xd0] sm:$0xff]  ;;  %2147 = vmatprep.subr.bf16.mxu1 %v2146_v16  ;;  %v2212_v25 = vpack.c.bf16 %v454_v22, %v449_v20  ;;  %v299_v29 = vld [vmem:[%s4689_s1 + $0xa0] sm:$0xff]  ;;  %v304_v31 = vld [vmem:[%s4689_s1 + $0xc8] sm:$0xff]  ;;  %s2968_s27 = scalar_lea.vmem %s4688_s0, %s2141_s13 }
  0x14   : > { %2211 = vmatprep.subr.bf16.mxu0 %v2210_v17  ;;  %v2150_v26 = vpack.c.bf16 %v305_v24, %v300_v23  ;;  %v465_v28 = vld [vmem:[%s4689_s1 + $0x5d0] sm:$0xff]  ;;  %v459_v32 = vld [vmem:[%s4689_s1 + $0x5a0] sm:$0xff]  ;;  %v464_v33 = vld [vmem:[%s4689_s1 + $0x5c8] sm:$0xff]  ;;  %v2152_v34 = vpack.c.bf16 %v304_v31, %v299_v29  ;;  %s4135_s14 = scalar_lea.vmem %s4691_s3, %s2692_s10 }
  0x15   : > { %v2214_v30 = vpack.c.bf16 %v465_v28, %v460_v27  ;;  %v310_v35 = vld [vmem:[%s4689_s1 + $0xf8] sm:$0xff]  ;;  %v315_v36 = vld [vmem:[%s4689_s1 + $0x120] sm:$0xff]  ;;  %v2216_v38 = vpack.c.bf16 %v464_v33, %v459_v32  ;;  %v309_v41 = vld [vmem:[%s4689_s1 + $0xf0] sm:$0xff] }
  0x16   : > { %2149 = vmatpush1.bf16.msra.mxu1 %v2148_v21  ;;  %v470_v37 = vld [vmem:[%s4689_s1 + $0x5f8] sm:$0xff]  ;;  %v2154_v39 = vpack.c.bf16 %v315_v36, %v310_v35  ;;  %v475_v40 = vld [vmem:[%s4689_s1 + $0x620] sm:$0xff]  ;;  %v469_v44 = vld [vmem:[%s4689_s1 + $0x5f0] sm:$0xff] }
  0x17   : > { %2213 = vmatpush1.bf16.msra.mxu0 %v2212_v25  ;;  %2151 = vmatprep.subr.bf16.mxu1 %v2150_v26  ;;  %v314_v42 = vld [vmem:[%s4689_s1 + $0x118] sm:$0xff]  ;;  %v2218_v43 = vpack.c.bf16 %v475_v40, %v470_v37  ;;  %v320_v46 = vld [vmem:[%s4689_s1 + $0x148] sm:$0xff]  ;;  %v325_v47 = vld [vmem:[%s4689_s1 + $0x170] sm:$0xff] }
  0x18   : > { %2215 = vmatprep.subr.bf16.mxu0 %v2214_v30  ;;  %v474_v45 = vld [vmem:[%s4689_s1 + $0x618] sm:$0xff]  ;;  %v480_v48 = vld [vmem:[%s4689_s1 + $0x648] sm:$0xff]  ;;  %v485_v49 = vld [vmem:[%s4689_s1 + $0x670] sm:$0xff]  ;;  %v2156_v50 = vpack.c.bf16 %v314_v42, %v309_v41  ;;  %v2158_v52 = vpack.c.bf16 %v325_v47, %v320_v46 }
  0x19   : > { %v2220_v51 = vpack.c.bf16 %v474_v45, %v469_v44  ;;  %v319_v53 = vld [vmem:[%s4689_s1 + $0x140] sm:$0xff]  ;;  %v324_v54 = vld [vmem:[%s4689_s1 + $0x168] sm:$0xff]  ;;  %v2222_v56 = vpack.c.bf16 %v485_v49, %v480_v48  ;;  %v330_v58 = vld [vmem:[%s4689_s1 + $0x198] sm:$0xff] }
  0x1a   : > { %2153 = vmatpush1.bf16.msra.mxu1 %v2152_v34  ;;  %v479_v55 = vld [vmem:[%s4689_s1 + $0x640] sm:$0xff]  ;;  %v484_v57 = vld [vmem:[%s4689_s1 + $0x668] sm:$0xff]  ;;  %v490_v60 = vld [vmem:[%s4689_s1 + $0x698] sm:$0xff]  ;;  %v2160_v62 = vpack.c.bf16 %v324_v54, %v319_v53 }
  0x1b   : > { %2217 = vmatpush1.bf16.msra.mxu0 %v2216_v38  ;;  %2155 = vmatprep.subr.bf16.mxu1 %v2154_v39  ;;  %v335_v59 = vld [vmem:[%s4689_s1 + $0x1c0] sm:$0xff]  ;;  %v2224_v63 = vpack.c.bf16 %v484_v57, %v479_v55  ;;  %v329_v1 = vld [vmem:[%s4689_s1 + $0x190] sm:$0xff]  ;;  %v334_v2 = vld [vmem:[%s4689_s1 + $0x1b8] sm:$0xff] }
  0x1c   : > { %2219 = vmatprep.subr.bf16.mxu0 %v2218_v43  ;;  %v495_v61 = vld [vmem:[%s4689_s1 + $0x6c0] sm:$0xff]  ;;  %v2162_v0 = vpack.c.bf16 %v335_v59, %v330_v58  ;;  %v489_v3 = vld [vmem:[%s4689_s1 + $0x690] sm:$0xff]  ;;  %v494_v5 = vld [vmem:[%s4689_s1 + $0x6b8] sm:$0xff]  ;;  %v2164_v10 = vpack.c.bf16 %v334_v2, %v329_v1 }
  0x1d   : > { %v2226_v4 = vpack.c.bf16 %v495_v61, %v490_v60  ;;  %v340_v6 = vld [vmem:[%s4689_s1 + $0x1e8] sm:$0xff]  ;;  %v345_v7 = vld [vmem:[%s4689_s1 + $0x210] sm:$0xff]  ;;  %v2228_v11 = vpack.c.bf16 %v494_v5, %v489_v3  ;;  %v339_v13 = vld [vmem:[%s4689_s1 + $0x1e0] sm:$0xff]  ;;  %v4702_v61 = vmov 0.0|0.0  }
  0x1e   : > { %2157 = vmatpush1.bf16.msra.mxu1 %v2156_v50  ;;  %v500_v8 = vld [vmem:[%s4689_s1 + $0x6e8] sm:$0xff]  ;;  %v505_v9 = vld [vmem:[%s4689_s1 + $0x710] sm:$0xff]  ;;  %v2166_v12 = vpack.c.bf16 %v345_v7, %v340_v6  ;;  %v499_v15 = vld [vmem:[%s4689_s1 + $0x6e0] sm:$0xff] }
  0x1f   : > { %2221 = vmatpush1.bf16.msra.mxu0 %v2220_v51  ;;  %2159 = vmatprep.subr.bf16.mxu1 %v2158_v52  ;;  %v344_v14 = vld [vmem:[%s4689_s1 + $0x208] sm:$0xff]  ;;  %v2230_v16 = vpack.c.bf16 %v505_v9, %v500_v8  ;;  %v350_v18 = vld [vmem:[%s4689_s1 + $0x238] sm:$0xff]  ;;  %v355_v19 = vld [vmem:[%s4689_s1 + $0x260] sm:$0xff] }
  0x20   : > { %2223 = vmatprep.subr.bf16.mxu0 %v2222_v56  ;;  %v504_v17 = vld [vmem:[%s4689_s1 + $0x708] sm:$0xff]  ;;  %v510_v20 = vld [vmem:[%s4689_s1 + $0x738] sm:$0xff]  ;;  %v515_v21 = vld [vmem:[%s4689_s1 + $0x760] sm:$0xff]  ;;  %v2168_v22 = vpack.c.bf16 %v344_v14, %v339_v13  ;;  %v2170_v25 = vpack.c.bf16 %v355_v19, %v350_v18 }
  0x21   : > { %v182_v23 = vld [vmem:[%s2968_s27 + $0x18] sm:$0xff]  ;;  %v2232_v24 = vpack.c.bf16 %v504_v17, %v499_v15  ;;  %v349_v26 = vld [vmem:[%s4689_s1 + $0x230] sm:$0xff]  ;;  %v2234_v29 = vpack.c.bf16 %v515_v21, %v510_v20  ;;  %v360_v31 = vld [vmem:[%s4689_s1 + $0x288] sm:$0xff] }
  0x22   : > { %2161 = vmatpush1.bf16.msra.mxu1 %v2160_v62  ;;  %v354_v27 = vld [vmem:[%s4689_s1 + $0x258] sm:$0xff]  ;;  %v509_v28 = vld [vmem:[%s4689_s1 + $0x730] sm:$0xff]  ;;  %2064 = vmatprep.mubr.msk.f32.mxu0 %vm556_vm0, %v182_v23  ;;  %v520_v33 = vld [vmem:[%s4689_s1 + $0x788] sm:$0xff] }
  0x23   : > { %2225 = vmatpush1.bf16.msra.mxu0 %v2224_v63  ;;  %2163 = vmatprep.subr.bf16.mxu1 %v2162_v0  ;;  %v514_v30 = vld [vmem:[%s4689_s1 + $0x758] sm:$0xff]  ;;  %v365_v32 = vld [vmem:[%s4689_s1 + $0x2b0] sm:$0xff]  ;;  %v2172_v35 = vpack.c.bf16 %v354_v27, %v349_v26  ;;  %v359_v38 = vld [vmem:[%s4689_s1 + $0x280] sm:$0xff] }
  0x24   : > { %2227 = vmatprep.subr.bf16.mxu0 %v2226_v4  ;;  %v525_v34 = vld [vmem:[%s4689_s1 + $0x7b0] sm:$0xff]  ;;  %v2236_v36 = vpack.c.bf16 %v514_v30, %v509_v28  ;;  %v2174_v37 = vpack.c.bf16 %v365_v32, %v360_v31  ;;  %v364_v39 = vld [vmem:[%s4689_s1 + $0x2a8] sm:$0xff]  ;;  %v519_v40 = vld [vmem:[%s4689_s1 + $0x780] sm:$0xff] }
  0x25   : > { %v2238_v41 = vpack.c.bf16 %v525_v34, %v520_v33  ;;  %v524_v42 = vld [vmem:[%s4689_s1 + $0x7a8] sm:$0xff]  ;;  %v370_v43 = vld [vmem:[%s4689_s1 + $0x2d8] sm:$0xff]  ;;  %v375_v44 = vld [vmem:[%s4689_s1 + $0x300] sm:$0xff]  ;;  %v2176_v45 = vpack.c.bf16 %v364_v39, %v359_v38 }
  0x26   : > { %2165 = vmatpush1.bf16.msra.mxu1 %v2164_v10  ;;  %v2240_v46 = vpack.c.bf16 %v524_v42, %v519_v40  ;;  %v2178_v47 = vpack.c.bf16 %v375_v44, %v370_v43  ;;  %v369_v48 = vld [vmem:[%s4689_s1 + $0x2d0] sm:$0xff]  ;;  %v374_v49 = vld [vmem:[%s4689_s1 + $0x2f8] sm:$0xff]  ;;  %v380_v50 = vld [vmem:[%s4689_s1 + $0x328] sm:$0xff] }
  0x27   : > { %2229 = vmatpush1.bf16.msra.mxu0 %v2228_v11  ;;  %2167 = vmatprep.subr.bf16.mxu1 %v2166_v12  ;;  %v385_v51 = vld [vmem:[%s4689_s1 + $0x350] sm:$0xff]  ;;  %v2180_v53 = vpack.c.bf16 %v374_v49, %v369_v48  ;;  %v186_v54 = vld [vmem:[%s2968_s27 + $0x38] sm:$0xff]  ;;  %v379_v56 = vld [vmem:[%s4689_s1 + $0x320] sm:$0xff] }
  0x28   : > { %2231 = vmatprep.subr.bf16.mxu0 %v2230_v16  ;;  %v181_v52 = vld [vmem:[%s2968_s27 + $0x10] sm:$0xff]  ;;  %v2182_v55 = vpack.c.bf16 %v385_v51, %v380_v50  ;;  %v384_v57 = vld [vmem:[%s4689_s1 + $0x348] sm:$0xff]  ;;  %v390_v58 = vld [vmem:[%s4689_s1 + $0x378] sm:$0xff] }
  0x29   : > { %v395_v59 = vld [vmem:[%s4689_s1 + $0x3a0] sm:$0xff]  ;;  %v3056_v60 = vld [vmem:[%s2968_s27 + $0x8] sm:$0xff]  ;;  %v185_v62 = vld [vmem:[%s2968_s27 + $0x30] sm:$0xff]  ;;  %v2184_v63 = vpack.c.bf16 %v384_v57, %v379_v56 }
  0x2a   : > { %2169 = vmatpush1.bf16.msra.mxu1 %v2168_v22  ;;  %696 = vmatprep.mubr.f32.mxu1 %v3056_v60  ;;  %v283_v0 = vld [vmem:[%s4689_s1 + $0x20] sm:$0xff]  ;;  %v2186_v1 = vpack.c.bf16 %v395_v59, %v390_v58  ;;  %v389_v2 = vld [vmem:[%s4689_s1 + $0x370] sm:$0xff]  ;;  %v394_v3 = vld [vmem:[%s4689_s1 + $0x398] sm:$0xff] }
  0x2b   : > { %2233 = vmatpush1.bf16.msra.mxu0 %v2232_v24  ;;  %2171 = vmatprep.subr.bf16.mxu1 %v2170_v25  ;;  %v288_v4 = vld [vmem:[%s4689_s1 + $0x48] sm:$0xff]  ;;  %v190_v5 = vld [vmem:[%s2968_s27 + $0x58] sm:$0xff]  ;;  %v405_v7 = vld [vmem:[%s4689_s1 + $0x3f0] sm:$0xff]  ;;  %v2188_v10 = vpack.c.bf16 %v394_v3, %v389_v2 }
  0x2c   : > { %2235 = vmatprep.subr.bf16.mxu0 %v2234_v29  ;;  %v400_v6 = vld [vmem:[%s4689_s1 + $0x3c8] sm:$0xff]  ;;  %v2343_v8 = vpack.c.bf16 %v288_v4, %v283_v0  ;;  %v189_v9 = vld [vmem:[%s2968_s27 + $0x50] sm:$0xff]  ;;  %v399_v11 = vld [vmem:[%s4689_s1 + $0x3c0] sm:$0xff] }
  0x2d   : > { %v2190_v12 = vpack.c.bf16 %v405_v7, %v400_v6  ;;  %v404_v13 = vld [vmem:[%s4689_s1 + $0x3e8] sm:$0xff]  ;;  %v293_v14 = vld [vmem:[%s4689_s1 + $0x70] sm:$0xff]  ;;  %v298_v15 = vld [vmem:[%s4689_s1 + $0x98] sm:$0xff] }
  0x2e   : > { %2173 = vmatpush1.bf16.msra.mxu1 %v2172_v35  ;;  %v194_v16 = vld [vmem:[%s2968_s27 + $0x78] sm:$0xff]  ;;  %v415_v18 = vld [vmem:[%s4689_s1 + $0x440] sm:$0xff]  ;;  %v2346_v19 = vpack.c.bf16 %v298_v15, %v293_v14  ;;  %v193_v20 = vld [vmem:[%s2968_s27 + $0x70] sm:$0xff]  ;;  %v2192_v21 = vpack.c.bf16 %v404_v13, %v399_v11 }
  0x2f   : > { %2237 = vmatpush1.bf16.msra.mxu0 %v2236_v36  ;;  %2175 = vmatprep.subr.bf16.mxu1 %v2174_v37  ;;  %v410_v17 = vld [vmem:[%s4689_s1 + $0x418] sm:$0xff]  ;;  %v409_v22 = vld [vmem:[%s4689_s1 + $0x410] sm:$0xff]  ;;  %v303_v25 = vld [vmem:[%s4689_s1 + $0xc0] sm:$0xff] }
  0x30   : > { %2239 = vmatprep.subr.bf16.mxu0 %v2238_v41  ;;  %v2194_v23 = vpack.c.bf16 %v415_v18, %v410_v17  ;;  %v414_v24 = vld [vmem:[%s4689_s1 + $0x438] sm:$0xff]  ;;  %v308_v26 = vld [vmem:[%s4689_s1 + $0xe8] sm:$0xff]  ;;  %v425_v29 = vld [vmem:[%s4689_s1 + $0x490] sm:$0xff] }
  0x31   : > { %v198_v27 = vld [vmem:[%s2968_s27 + $0x98] sm:$0xff]  ;;  %v420_v28 = vld [vmem:[%s4689_s1 + $0x468] sm:$0xff]  ;;  %v2349_v30 = vpack.c.bf16 %v308_v26, %v303_v25  ;;  %v197_v31 = vld [vmem:[%s2968_s27 + $0x90] sm:$0xff]  ;;  %v2196_v32 = vpack.c.bf16 %v414_v24, %v409_v22 }
  0x32   : > { %2177 = vmatpush1.bf16.msra.mxu1 %v2176_v45  ;;  %v419_v33 = vld [vmem:[%s4689_s1 + $0x460] sm:$0xff]  ;;  %v2198_v34 = vpack.c.bf16 %v425_v29, %v420_v28  ;;  %v424_v35 = vld [vmem:[%s4689_s1 + $0x488] sm:$0xff]  ;;  %v313_v36 = vld [vmem:[%s4689_s1 + $0x110] sm:$0xff] }
  0x33   : > { %2241 = vmatpush1.bf16.msra.mxu0 %v2240_v46  ;;  %2179 = vmatprep.subr.bf16.mxu1 %v2178_v47  ;;  %v318_v37 = vld [vmem:[%s4689_s1 + $0x138] sm:$0xff]  ;;  %v435_v40 = vld [vmem:[%s4689_s1 + $0x4e0] sm:$0xff]  ;;  %v2200_v42 = vpack.c.bf16 %v424_v35, %v419_v33  ;;  %v328_v44 = vld [vmem:[%s4689_s1 + $0x188] sm:$0xff] }
  0x34   : > { %2342 = vmatprep.subr.bf16.mxu0 %v4702_v61  ;;  %v202_v38 = vld [vmem:[%s2968_s27 + $0xb8] sm:$0xff]  ;;  %v2352_v41 = vpack.c.bf16 %v318_v37, %v313_v36  ;;  %v323_v43 = vld [vmem:[%s4689_s1 + $0x160] sm:$0xff]  ;;  %v201_v45 = vld [vmem:[%s2968_s27 + $0xb0] sm:$0xff] }
  0x35   : > { %v430_v39 = vld [vmem:[%s4689_s1 + $0x4b8] sm:$0xff]  ;;  %v429_v47 = vld [vmem:[%s4689_s1 + $0x4b0] sm:$0xff]  ;;  %v287_v51 = vld [vmem:[%s4689_s1 + $0x40] sm:$0xff] }
  0x36   : > { %912 = vmatmul.mubr.f32.vlgmr.msra.gmra.mrb[0].mxu0 %v181_v52  ;;  %2181 = vmatpush1.bf16.msra.mxu1 %v2180_v53  ;;  %v2202_v46 = vpack.c.bf16 %v435_v40, %v430_v39  ;;  %v434_v48 = vld [vmem:[%s4689_s1 + $0x4d8] sm:$0xff]  ;;  %v2355_v52 = vpack.c.bf16 %v328_v44, %v323_v43  ;;  %v333_v53 = vld [vmem:[%s4689_s1 + $0x1b0] sm:$0xff]  ;;  %v343_v2 = vld [vmem:[%s4689_s1 + $0x200] sm:$0xff] }
  0x37   : > { %2065 = vmatprep.mubr.msk.f32.mxu0 %vm556_vm0, %v186_v54  ;;  %2183 = vmatprep.subr.bf16.mxu1 %v2182_v55  ;;  %v206_v49 = vld [vmem:[%s2968_s27 + $0xd8] sm:$0xff]  ;;  %v2204_v55 = vpack.c.bf16 %v434_v48, %v429_v47  ;;  %v205_v56 = vld [vmem:[%s2968_s27 + $0xd0] sm:$0xff]  ;;  %v348_v3 = vld [vmem:[%s4689_s1 + $0x228] sm:$0xff] }
  0x38   : > { %2344 = vmatpush1.bf16.msra.mxu0 %v2343_v8  ;;  %v282_v50 = vld [vmem:[%s4689_s1 + $0x18] sm:$0xff]  ;;  %v281_v58 = vld [vmem:[%s4689_s1 + $0x10] sm:$0xff]  ;;  %v3198_v4 = vld [vmem:[%s2968_s27] sm:$0xff]  ;;  %v2361_v13 = vpack.c.bf16 %v348_v3, %v343_v2 }
  0x39   : > { %2345 = vmatprep.subr.bf16.mxu0 %v4702_v61  ;;  %v338_v54 = vld [vmem:[%s4689_s1 + $0x1d8] sm:$0xff]  ;;  %v2242_v57 = vpack.c.bf16 %v287_v51, %v282_v50  ;;  %v209_v6 = vld [vmem:[%s2968_s27 + $0xf0] sm:$0xff]  ;;  %v3203_v7 = vld [vmem:[%s2968_s27 + $0x28] sm:$0xff] }
  0x3a   : > { %918 = vmatmul.mubr.f32.gmra.mrb[2].mxu0 %v185_v62  ;;  %2185 = vmatpush1.bf16.msra.mxu1 %v2184_v63  ;;  %v286_v59 = vld [vmem:[%s4689_s1 + $0x38] sm:$0xff]  ;;  %v292_v63 = vld [vmem:[%s4689_s1 + $0x68] sm:$0xff]  ;;  %v2358_v0 = vpack.c.bf16 %v338_v54, %v333_v53  ;;  %v307_v14 = vld [vmem:[%s4689_s1 + $0xe0] sm:$0xff] }
  0x3b   : > { %2066 = vmatprep.mubr.msk.f32.mxu0 %vm556_vm0, %v190_v5  ;;  %2187 = vmatprep.subr.bf16.mxu1 %v2186_v1  ;;  %v210_v62 = vld [vmem:[%s2968_s27 + $0xf8] sm:$0xff]  ;;  %v297_v1 = vld [vmem:[%s4689_s1 + $0x90] sm:$0xff]  ;;  %v2244_v5 = vpack.c.bf16 %v286_v59, %v281_v58  ;;  %v296_v11 = vld [vmem:[%s4689_s1 + $0x88] sm:$0xff] }
  0x3c   : > { %2347 = vmatpush1.bf16.msra.mxu0 %v2346_v19  ;;  %v214_v8 = vld [vmem:[%s2968_s27 + $0x118] sm:$0xff]  ;;  %v353_v15 = vld [vmem:[%s4689_s1 + $0x250] sm:$0xff]  ;;  %v3227_v17 = vld [vmem:[%s2968_s27 + $0x20] sm:$0xff] }
  0x3d   : > { %2348 = vmatprep.subr.bf16.mxu0 %v4702_v61  ;;  %v213_v18 = vld [vmem:[%s2968_s27 + $0x110] sm:$0xff]  ;;  %v3233_v19 = vld [vmem:[%s2968_s27 + $0x48] sm:$0xff]  ;;  %v306_v24 = vld [vmem:[%s4689_s1 + $0xd8] sm:$0xff] }
  0x3e   : > { %924 = vmatmul.mubr.f32.gmra.mrb[4].mxu0 %v189_v9  ;;  %2189 = vmatpush1.bf16.msra.mxu1 %v2188_v10  ;;  %v2246_v9 = vpack.c.bf16 %v297_v1, %v292_v63  ;;  %v291_v10 = vld [vmem:[%s4689_s1 + $0x60] sm:$0xff]  ;;  %v312_v25 = vld [vmem:[%s4689_s1 + $0x108] sm:$0xff]  ;;  %v222_v33 = vld [vmem:[%s2968_s27 + $0x158] sm:$0xff] }
  0x3f   : > { %2067 = vmatprep.mubr.msk.f32.mxu0 %vm556_vm0, %v194_v16  ;;  %2191 = vmatprep.subr.bf16.mxu1 %v2190_v12  ;;  %v302_v12 = vld [vmem:[%s4689_s1 + $0xb8] sm:$0xff]  ;;  %v363_v28 = vld [vmem:[%s4689_s1 + $0x2a0] sm:$0xff]  ;;  %v368_v29 = vld [vmem:[%s4689_s1 + $0x2c8] sm:$0xff] }
  0x40   : > { %2350 = vmatpush1.bf16.msra.mxu0 %v2349_v30  ;;  %v358_v16 = vld [vmem:[%s4689_s1 + $0x278] sm:$0xff]  ;;  %v2250_v22 = vpack.c.bf16 %v307_v14, %v302_v12  ;;  %v3258_v30 = vld [vmem:[%s2968_s27 + $0x40] sm:$0xff]  ;;  %v316_v37 = vld [vmem:[%s4689_s1 + $0x128] sm:$0xff]  ;;  %v2367_v39 = vpack.c.bf16 %v368_v29, %v363_v28 }
  0x41   : > { %2351 = vmatprep.subr.bf16.mxu0 %v4702_v61  ;;  %v2364_v26 = vpack.c.bf16 %v358_v16, %v353_v15  ;;  %v311_v36 = vld [vmem:[%s4689_s1 + $0x100] sm:$0xff]  ;;  %v221_v44 = vld [vmem:[%s2968_s27 + $0x150] sm:$0xff]  ;;  %v326_v50 = vld [vmem:[%s4689_s1 + $0x178] sm:$0xff] }
  0x42   : > { %930 = vmatmul.mubr.f32.gmra.mrb[6].mxu0 %v193_v20  ;;  %2193 = vmatpush1.bf16.msra.mxu1 %v2192_v21  ;;  %v218_v20 = vld [vmem:[%s2968_s27 + $0x138] sm:$0xff]  ;;  %v2248_v21 = vpack.c.bf16 %v296_v11, %v291_v10  ;;  %v327_v40 = vld [vmem:[%s4689_s1 + $0x180] sm:$0xff]  ;;  %v2256_v47 = vpack.c.bf16 %v316_v37, %v311_v36  ;;  %v332_v51 = vld [vmem:[%s4689_s1 + $0x1a8] sm:$0xff] }
  0x43   : > { %2068 = vmatprep.mubr.msk.f32.mxu0 %vm556_vm0, %v198_v27  ;;  %2195 = vmatprep.subr.bf16.mxu1 %v2194_v23  ;;  %v301_v23 = vld [vmem:[%s4689_s1 + $0xb0] sm:$0xff]  ;;  %v3288_v43 = vld [vmem:[%s2968_s27 + $0x60] sm:$0xff]  ;;  %v3323_v58 = vld [vmem:[%s2968_s27 + $0xa8] sm:$0xff] }
  0x44   : > { %2353 = vmatpush1.bf16.msra.mxu0 %v2352_v41  ;;  %v317_v27 = vld [vmem:[%s4689_s1 + $0x130] sm:$0xff]  ;;  %v383_v54 = vld [vmem:[%s4689_s1 + $0x340] sm:$0xff]  ;;  %v230_v59 = vld [vmem:[%s2968_s27 + $0x198] sm:$0xff] }
  0x45   : > { %2354 = vmatprep.subr.bf16.mxu0 %v4702_v61  ;;  %v2254_v35 = vpack.c.bf16 %v317_v27, %v312_v25  ;;  %v373_v41 = vld [vmem:[%s4689_s1 + $0x2f0] sm:$0xff]  ;;  %v336_v1 = vld [vmem:[%s4689_s1 + $0x1c8] sm:$0xff]  ;;  %v342_v2 = vld [vmem:[%s4689_s1 + $0x1f8] sm:$0xff] }
  0x46   : > { %936 = vmatmul.mubr.f32.gmra.mrb[8].mxu0 %v197_v31  ;;  %2197 = vmatpush1.bf16.msra.mxu1 %v2196_v32  ;;  %v217_v31 = vld [vmem:[%s2968_s27 + $0x130] sm:$0xff]  ;;  %v3263_v32 = vld [vmem:[%s2968_s27 + $0x68] sm:$0xff]  ;;  %v234_v12 = vld [vmem:[%s2968_s27 + $0x1b8] sm:$0xff] }
  0x47   : > { %2069 = vmatprep.mubr.msk.f32.mxu0 %vm556_vm0, %v202_v38  ;;  %2199 = vmatprep.subr.bf16.mxu1 %v2198_v34  ;;  %v2252_v34 = vpack.c.bf16 %v306_v24, %v301_v23  ;;  %v322_v38 = vld [vmem:[%s4689_s1 + $0x158] sm:$0xff]  ;;  %v337_v53 = vld [vmem:[%s4689_s1 + $0x1d0] sm:$0xff]  ;;  %v3353_v11 = vld [vmem:[%s2968_s27 + $0xc8] sm:$0xff] }
  0x48   : > { %2356 = vmatpush1.bf16.msra.mxu0 %v2355_v52  ;;  %v2258_v48 = vpack.c.bf16 %v327_v40, %v322_v38  ;;  %v2262_v63 = vpack.c.bf16 %v337_v53, %v332_v51  ;;  %v229_v10 = vld [vmem:[%s2968_s27 + $0x190] sm:$0xff]  ;;  %v346_v16 = vld [vmem:[%s4689_s1 + $0x218] sm:$0xff]  ;;  %v408_v23 = vld [vmem:[%s4689_s1 + $0x408] sm:$0xff] }
  0x49   : > { %2357 = vmatprep.subr.bf16.mxu0 %v4702_v61  ;;  %v341_v15 = vld [vmem:[%s4689_s1 + $0x1f0] sm:$0xff]  ;;  %v3378_v24 = vld [vmem:[%s2968_s27 + $0xc0] sm:$0xff]  ;;  %v238_v27 = vld [vmem:[%s2968_s27 + $0x1d8] sm:$0xff] }
  0x4a   : > { %942 = vmatmul.mubr.f32.gmra.mrb[10].mxu0 %v201_v45  ;;  %2201 = vmatpush1.bf16.msra.mxu1 %v2200_v42  ;;  %v378_v42 = vld [vmem:[%s4689_s1 + $0x318] sm:$0xff]  ;;  %v3293_v45 = vld [vmem:[%s2968_s27 + $0x88] sm:$0xff]  ;;  %v233_v25 = vld [vmem:[%s2968_s27 + $0x1b0] sm:$0xff]  ;;  %v2268_v28 = vpack.c.bf16 %v346_v16, %v341_v15 }
  0x4b   : > { %2070 = vmatprep.mubr.msk.f32.mxu0 %vm556_vm0, %v206_v49  ;;  %2203 = vmatprep.subr.bf16.mxu1 %v2202_v46  ;;  %v226_v46 = vld [vmem:[%s2968_s27 + $0x178] sm:$0xff]  ;;  %v321_v49 = vld [vmem:[%s4689_s1 + $0x150] sm:$0xff]  ;;  %v2370_v52 = vpack.c.bf16 %v378_v42, %v373_v41  ;;  %v367_v36 = vld [vmem:[%s4689_s1 + $0x2c0] sm:$0xff] }
  0x4c   : > { %2359 = vmatpush1.bf16.msra.mxu0 %v2358_v0  ;;  %v331_v0 = vld [vmem:[%s4689_s1 + $0x1a0] sm:$0xff]  ;;  %v413_v37 = vld [vmem:[%s4689_s1 + $0x430] sm:$0xff]  ;;  %v418_v38 = vld [vmem:[%s4689_s1 + $0x458] sm:$0xff] }
  0x4d   : > { %2360 = vmatprep.subr.bf16.mxu0 %v4702_v61  ;;  %v237_v40 = vld [vmem:[%s2968_s27 + $0x1d0] sm:$0xff]  ;;  %v3413_v41 = vld [vmem:[%s2968_s27 + $0x108] sm:$0xff]  ;;  %v242_v42 = vld [vmem:[%s2968_s27 + $0x1f8] sm:$0xff] }
  0x4e   : > { %948 = vmatmul.mubr.f32.gmra.mrb[12].mxu0 %v205_v56  ;;  %2205 = vmatpush1.bf16.msra.mxu1 %v2204_v55  ;;  %v388_v55 = vld [vmem:[%s4689_s1 + $0x368] sm:$0xff]  ;;  %v3318_v56 = vld [vmem:[%s2968_s27 + $0x80] sm:$0xff]  ;;  %v377_v51 = vld [vmem:[%s4689_s1 + $0x310] sm:$0xff] }
  0x4f   : > { %2071 = vmatprep.mubr.msk.f32.mxu0 %vm556_vm0, %v210_v62  ;;  %2243 = vmatprep.subr.bf16.mxu1 %v2242_v57  ;;  %v225_v57 = vld [vmem:[%s2968_s27 + $0x170] sm:$0xff]  ;;  %v2260_v62 = vpack.c.bf16 %v326_v50, %v321_v49  ;;  %v2373_v3 = vpack.c.bf16 %v388_v55, %v383_v54  ;;  %v372_v49 = vld [vmem:[%s4689_s1 + $0x2e8] sm:$0xff]  ;;  %v2382_v50 = vpack.c.bf16 %v418_v38, %v413_v37  ;;  %v3438_v54 = vld [vmem:[%s2968_s27 + $0x100] sm:$0xff] }
  0x50   : > { %2362 = vmatpush1.bf16.msra.mxu0 %v2361_v13  ;;  %v2264_v13 = vpack.c.bf16 %v336_v1, %v331_v0  ;;  %v428_v53 = vld [vmem:[%s4689_s1 + $0x4a8] sm:$0xff]  ;;  %v241_v55 = vld [vmem:[%s2968_s27 + $0x1f0] sm:$0xff]  ;;  %v371_v0 = vld [vmem:[%s4689_s1 + $0x2e0] sm:$0xff] }
  0x51   : > { %697 = vmatmul.mubr.f32.vlgmr.msra.gmra.mrb[0].mxu1 %v3198_v4  ;;  %2363 = vmatprep.subr.bf16.mxu0 %v4702_v61  ;;  %v376_v1 = vld [vmem:[%s4689_s1 + $0x308] sm:$0xff]  ;;  %v3478_v15 = vld [vmem:[%s2968_s27 + $0x238] sm:$0xff]  ;;  %v407_v37 = vld [vmem:[%s4689_s1 + $0x400] sm:$0xff] }
  0x52   : > { %954 = vmatmul.mubr.f32.gmra.mrb[14].mxu0 %v209_v6  ;;  %2245 = vmatpush1.bf16.msra.mxu1 %v2244_v5  ;;  %v347_v5 = vld [vmem:[%s4689_s1 + $0x220] sm:$0xff]  ;;  %v393_v6 = vld [vmem:[%s4689_s1 + $0x390] sm:$0xff]  ;;  %4710 = vst [vmem:[#allocation2_spill] sm:$0xff] %v3478_v15 }
  0x53   : > { %702 = vmatprep.mubr.f32.mxu1 %v3203_v7  ;;  %2072 = vmatprep.mubr.msk.f32.mxu0 %vm556_vm0, %v214_v8  ;;  %v398_v8 = vld [vmem:[%s4689_s1 + $0x3b8] sm:$0xff]  ;;  %v2266_v14 = vpack.c.bf16 %v347_v5, %v342_v2  ;;  %v387_v5 = vld [vmem:[%s4689_s1 + $0x360] sm:$0xff] }
  0x54   : > { %2247 = vmatprep.subr.bf16.mxu1 %v2246_v9  ;;  %2365 = vmatpush1.bf16.msra.mxu0 %v2364_v26  ;;  %v3348_v9 = vld [vmem:[%s2968_s27 + $0xa0] sm:$0xff]  ;;  %v3383_v26 = vld [vmem:[%s2968_s27 + $0xe8] sm:$0xff]  ;;  %v382_v2 = vld [vmem:[%s4689_s1 + $0x338] sm:$0xff] }
  0x55   : > { %703 = vmatmul.mubr.f32.gmra.mrb[2].mxu1 %v3227_v17  ;;  %2366 = vmatprep.subr.bf16.mxu0 %v4702_v61  ;;  %v2282_v16 = vpack.c.bf16 %v387_v5, %v382_v2  ;;  %v3527_v38 = vld [vmem:[%s2968_s27 + $0x160] sm:$0xff]  ;;  %v422_v2 = vld [vmem:[%s4689_s1 + $0x478] sm:$0xff] }
  0x56   : > { %960 = vmatmul.mubr.f32.gmra.mrb[16].mxu0 %v213_v18  ;;  %708 = vmatprep.mubr.f32.mxu1 %v3233_v19  ;;  %v352_v18 = vld [vmem:[%s4689_s1 + $0x248] sm:$0xff]  ;;  %v3585_v5 = vld [vmem:[%s2968_s27 + $0x1a0] sm:$0xff] }
  0x57   : > { %2073 = vmatprep.mubr.msk.f32.mxu0 %vm556_vm0, %v218_v20  ;;  %2249 = vmatpush1.bf16.msra.mxu1 %v2248_v21  ;;  %v2376_v20 = vpack.c.bf16 %v398_v8, %v393_v6  ;;  %v357_v21 = vld [vmem:[%s4689_s1 + $0x270] sm:$0xff]  ;;  %v438_v8 = vld [vmem:[%s4689_s1 + $0x4f8] sm:$0xff] }
  0x58   : > { %2251 = vmatprep.subr.bf16.mxu1 %v2250_v22  ;;  %2368 = vmatpush1.bf16.msra.mxu0 %v2367_v39  ;;  %v403_v22 = vld [vmem:[%s4689_s1 + $0x3e0] sm:$0xff]  ;;  %v2270_v29 = vpack.c.bf16 %v357_v21, %v352_v18  ;;  %v433_v6 = vld [vmem:[%s4689_s1 + $0x4d0] sm:$0xff] }
  0x59   : > { %709 = vmatmul.mubr.f32.gmra.mrb[4].mxu1 %v3258_v30  ;;  %2369 = vmatprep.subr.bf16.mxu0 %v4702_v61  ;;  %v3408_v39 = vld [vmem:[%s2968_s27 + $0xe0] sm:$0xff]  ;;  %v381_v18 = vld [vmem:[%s4689_s1 + $0x330] sm:$0xff]  ;;  %v2388_v21 = vpack.c.bf16 %v438_v8, %v433_v6  ;;  %v3593_v8 = vld [vmem:[%s2968_s27 + $0x1c8] sm:$0xff] }
  0x5a   : > { %966 = vmatmul.mubr.f32.gmra.mrb[18].mxu0 %v217_v31  ;;  %714 = vmatprep.mubr.f32.mxu1 %v3263_v32  ;;  %v351_v31 = vld [vmem:[%s4689_s1 + $0x240] sm:$0xff]  ;;  %v3590_v6 = vld [vmem:[%s2968_s27 + $0x290] sm:$0xff] }
  0x5b   : > { %2074 = vmatprep.mubr.msk.f32.mxu0 %vm556_vm0, %v222_v33  ;;  %2253 = vmatpush1.bf16.msra.mxu1 %v2252_v34  ;;  %v356_v33 = vld [vmem:[%s4689_s1 + $0x268] sm:$0xff]  ;;  %v362_v34 = vld [vmem:[%s4689_s1 + $0x298] sm:$0xff]  ;;  %4717 = vst [vmem:[#allocation9_spill] sm:$0xff] %v3590_v6 }
  0x5c   : > { %2255 = vmatprep.subr.bf16.mxu1 %v2254_v35  ;;  %2371 = vmatpush1.bf16.msra.mxu0 %v2370_v52  ;;  %v2379_v35 = vpack.c.bf16 %v408_v23, %v403_v22  ;;  %v423_v52 = vld [vmem:[%s4689_s1 + $0x480] sm:$0xff]  ;;  %v392_v22 = vld [vmem:[%s4689_s1 + $0x388] sm:$0xff]  ;;  %v397_v23 = vld [vmem:[%s4689_s1 + $0x3b0] sm:$0xff] }
  0x5d   : > { %715 = vmatmul.mubr.f32.gmra.mrb[6].mxu1 %v3288_v43  ;;  %2372 = vmatprep.subr.bf16.mxu0 %v4702_v61 }
  0x5e   : > { %972 = vmatmul.mubr.f32.gmra.mrb[20].mxu0 %v221_v44  ;;  %720 = vmatprep.mubr.f32.mxu1 %v3293_v45  ;;  %v2272_v44 = vpack.c.bf16 %v356_v33, %v351_v31  ;;  %v3508_v31 = vld [vmem:[%s2968_s27 + $0x258] sm:$0xff]  ;;  %v2286_v33 = vpack.c.bf16 %v397_v23, %v392_v22  ;;  %v432_v22 = vld [vmem:[%s4689_s1 + $0x4c8] sm:$0xff]  ;;  %v437_v23 = vld [vmem:[%s4689_s1 + $0x4f0] sm:$0xff] }
  0x5f   : > { %2075 = vmatprep.mubr.msk.f32.mxu0 %vm556_vm0, %v226_v46  ;;  %2257 = vmatpush1.bf16.msra.mxu1 %v2256_v47  ;;  %v2274_v46 = vpack.c.bf16 %v367_v36, %v362_v34  ;;  %v361_v47 = vld [vmem:[%s4689_s1 + $0x290] sm:$0xff]  ;;  %4712 = vst [vmem:[#allocation4_spill] sm:$0xff] %v3508_v31  ;;  %v391_v34 = vld [vmem:[%s4689_s1 + $0x380] sm:$0xff]  ;;  %v402_v36 = vld [vmem:[%s4689_s1 + $0x3d8] sm:$0xff] }
  0x60   : > { %2259 = vmatprep.subr.bf16.mxu1 %v2258_v48  ;;  %2374 = vmatpush1.bf16.msra.mxu0 %v2373_v3  ;;  %v366_v48 = vld [vmem:[%s4689_s1 + $0x2b8] sm:$0xff]  ;;  %v2385_v3 = vpack.c.bf16 %v428_v53, %v423_v52  ;;  %v3556_v52 = vld [vmem:[%s2968_s27 + $0x180] sm:$0xff]  ;;  %v3561_v53 = vld [vmem:[%s2968_s27 + $0x270] sm:$0xff] }
  0x61   : > { %721 = vmatmul.mubr.f32.gmra.mrb[8].mxu1 %v3318_v56  ;;  %2375 = vmatprep.subr.bf16.mxu0 %v4702_v61  ;;  %4715 = vst [vmem:[#allocation7_spill] sm:$0xff] %v3561_v53 }
  0x62   : > { %978 = vmatmul.mubr.f32.gmra.mrb[22].mxu0 %v225_v57  ;;  %726 = vmatprep.mubr.f32.mxu1 %v3323_v58  ;;  %v3443_v57 = vld [vmem:[%s2968_s27 + $0x128] sm:$0xff] }
  0x63   : > { %2076 = vmatprep.mubr.msk.f32.mxu0 %vm556_vm0, %v230_v59  ;;  %2261 = vmatpush1.bf16.msra.mxu1 %v2260_v62  ;;  %v246_v59 = vld [vmem:[%s2968_s27 + $0x218] sm:$0xff]  ;;  %v2276_v62 = vpack.c.bf16 %v366_v48, %v361_v47  ;;  %v2290_v47 = vpack.c.bf16 %v407_v37, %v402_v36  ;;  %v401_v48 = vld [vmem:[%s4689_s1 + $0x3d0] sm:$0xff]  ;;  %v2302_v37 = vpack.c.bf16 %v437_v23, %v432_v22  ;;  %v3685_v22 = vld [vmem:[%s2968_s27 + $0x248] sm:$0xff] }
  0x64   : > { %2263 = vmatprep.subr.bf16.mxu1 %v2262_v63  ;;  %2377 = vmatpush1.bf16.msra.mxu0 %v2376_v20  ;;  %v2278_v63 = vpack.c.bf16 %v377_v51, %v372_v49  ;;  %v386_v20 = vld [vmem:[%s4689_s1 + $0x358] sm:$0xff]  ;;  %v417_v51 = vld [vmem:[%s4689_s1 + $0x450] sm:$0xff]  ;;  %v443_v23 = vld [vmem:[%s4689_s1 + $0x520] sm:$0xff] }
  0x65   : > { %727 = vmatmul.mubr.f32.gmra.mrb[10].mxu1 %v3348_v9  ;;  %2378 = vmatprep.subr.bf16.mxu0 %v4702_v61  ;;  %v406_v49 = vld [vmem:[%s4689_s1 + $0x3f8] sm:$0xff] }
  0x66   : > { %984 = vmatmul.mubr.f32.gmra.mrb[24].mxu0 %v229_v10  ;;  %732 = vmatprep.mubr.f32.mxu1 %v3353_v11  ;;  %v3468_v10 = vld [vmem:[%s2968_s27 + $0x120] sm:$0xff]  ;;  %v3625_v36 = vld [vmem:[%s2968_s27 + $0x2d8] sm:$0xff] }
  0x67   : > { %2077 = vmatprep.mubr.msk.f32.mxu0 %vm556_vm0, %v234_v12  ;;  %2265 = vmatpush1.bf16.msra.mxu1 %v2264_v13  ;;  %v3472_v12 = vld [vmem:[%s2968_s27 + $0x210] sm:$0xff]  ;;  %v3475_v13 = vld [vmem:[%s2968_s27 + $0x148] sm:$0xff]  ;;  %4720 = vst [vmem:[#allocation12_spill] sm:$0xff] %v3625_v36 }
  0x68   : > { %2267 = vmatprep.subr.bf16.mxu1 %v2266_v14  ;;  %2380 = vmatpush1.bf16.msra.mxu0 %v2379_v35  ;;  %v2280_v14 = vpack.c.bf16 %v376_v1, %v371_v0  ;;  %v396_v35 = vld [vmem:[%s4689_s1 + $0x3a8] sm:$0xff]  ;;  %v411_v0 = vld [vmem:[%s4689_s1 + $0x420] sm:$0xff] }
  0x69   : > { %733 = vmatmul.mubr.f32.gmra.mrb[12].mxu1 %v3378_v24  ;;  %2381 = vmatprep.subr.bf16.mxu0 %v4702_v61  ;;  %v416_v1 = vld [vmem:[%s4689_s1 + $0x448] sm:$0xff] }
  0x6a   : > { %990 = vmatmul.mubr.f32.gmra.mrb[26].mxu0 %v233_v25  ;;  %738 = vmatprep.mubr.f32.mxu1 %v3383_v26  ;;  %v3497_v25 = vld [vmem:[%s2968_s27 + $0x140] sm:$0xff] }
  0x6b   : > { %2078 = vmatprep.mubr.msk.f32.mxu0 %vm556_vm0, %v238_v27  ;;  %2269 = vmatpush1.bf16.msra.mxu1 %v2268_v28  ;;  %v3502_v27 = vld [vmem:[%s2968_s27 + $0x230] sm:$0xff]  ;;  %v3505_v28 = vld [vmem:[%s2968_s27 + $0x168] sm:$0xff] }
  0x6c   : > { %2271 = vmatprep.subr.bf16.mxu1 %v2270_v29  ;;  %2383 = vmatpush1.bf16.msra.mxu0 %v2382_v50  ;;  %4711 = vst [vmem:[#allocation3_spill] sm:$0xff] %v3502_v27  ;;  %v2284_v29 = vpack.c.bf16 %v386_v20, %v381_v18  ;;  %v412_v50 = vld [vmem:[%s4689_s1 + $0x428] sm:$0xff]  ;;  %v421_v20 = vld [vmem:[%s4689_s1 + $0x470] sm:$0xff] }
  0x6d   : > { %739 = vmatmul.mubr.f32.gmra.mrb[14].mxu1 %v3408_v39  ;;  %2384 = vmatprep.subr.bf16.mxu0 %v4702_v61 }
  0x6e   : > { %996 = vmatmul.mubr.f32.gmra.mrb[28].mxu0 %v237_v40  ;;  %744 = vmatprep.mubr.f32.mxu1 %v3413_v41  ;;  %v3532_v40 = vld [vmem:[%s2968_s27 + $0x250] sm:$0xff] }
  0x6f   : > { %2079 = vmatprep.mubr.msk.f32.mxu0 %vm556_vm0, %v242_v42  ;;  %2273 = vmatpush1.bf16.msra.mxu1 %v2272_v44  ;;  %4713 = vst [vmem:[#allocation5_spill] sm:$0xff] %v3532_v40  ;;  %v3535_v42 = vld [vmem:[%s2968_s27 + $0x188] sm:$0xff]  ;;  %v2288_v44 = vpack.c.bf16 %v396_v35, %v391_v34 }
  0x70   : > { %2275 = vmatprep.subr.bf16.mxu1 %v2274_v46  ;;  %2386 = vmatpush1.bf16.msra.mxu0 %v2385_v3  ;;  %v3538_v46 = vld [vmem:[%s2968_s27 + $0x278] sm:$0xff]  ;;  %v427_v3 = vld [vmem:[%s4689_s1 + $0x4a0] sm:$0xff]  ;;  %v3622_v34 = vld [vmem:[%s2968_s27 + $0x1e8] sm:$0xff] }
  0x71   : > { %745 = vmatmul.mubr.f32.gmra.mrb[16].mxu1 %v3438_v54  ;;  %2387 = vmatprep.subr.bf16.mxu0 %v4702_v61  ;;  %4714 = vst [vmem:[#allocation6_spill] sm:$0xff] %v3538_v46  ;;  %v2298_v18 = vpack.c.bf16 %v427_v3, %v422_v2  ;;  %v3660_v2 = vld [vmem:[%s2968_s27 + $0x200] sm:$0xff]  ;;  %v3665_v3 = vld [vmem:[%s2968_s27 + $0x2f0] sm:$0xff] }
  0x72   : > { %1002 = vmatmul.mubr.f32.gmra.mrb[30].mxu0 %v241_v55  ;;  %750 = vmatprep.mubr.f32.mxu1 %v3443_v57  ;;  %v3564_v55 = vld [vmem:[%s2968_s27 + $0x1a8] sm:$0xff]  ;;  %4723 = vst [vmem:[#allocation15_spill] sm:$0xff] %v3665_v3 }
  0x73   : > { %2080 = vmatprep.mubr.msk.f32.mxu0 %vm556_vm0, %v246_v59  ;;  %2277 = vmatpush1.bf16.msra.mxu1 %v2276_v62  ;;  %v2292_v59 = vpack.c.bf16 %v406_v49, %v401_v48  ;;  %v3567_v62 = vld [vmem:[%s2968_s27 + $0x298] sm:$0xff]  ;;  %v447_v49 = vld [vmem:[%s4689_s1 + $0x540] sm:$0xff] }
  0x74   : > { %2279 = vmatprep.subr.bf16.mxu1 %v2278_v63  ;;  %2389 = vmatpush1.bf16.msra.mxu0 %v2388_v21  ;;  %4716 = vst [vmem:[#allocation8_spill] sm:$0xff] %v3567_v62  ;;  %v2294_v63 = vpack.c.bf16 %v417_v51, %v412_v50  ;;  %v426_v21 = vld [vmem:[%s4689_s1 + $0x498] sm:$0xff]  ;;  %v3643_v50 = vld [vmem:[%s2968_s27 + $0x1e0] sm:$0xff]  ;;  %v3648_v51 = vld [vmem:[%s2968_s27 + $0x2d0] sm:$0xff] }
  0x75   : > { %751 = vmatmul.mubr.f32.gmra.mrb[18].mxu1 %v3468_v10  ;;  %2390 = vmatprep.subr.bf16.mxu0 %v4702_v61  ;;  %v2300_v35 = vpack.c.bf16 %v426_v21, %v421_v20  ;;  %v442_v48 = vld [vmem:[%s4689_s1 + $0x518] sm:$0xff]  ;;  %4721 = vst [vmem:[#allocation13_spill] sm:$0xff] %v3648_v51  ;;  %v3677_v20 = vld [vmem:[%s2968_s27 + $0x220] sm:$0xff]  ;;  %v3682_v21 = vld [vmem:[%s2968_s27 + $0x310] sm:$0xff] }
  0x76   : > { %1008 = vmatmul.mubr.f32.gmra.mrb[32].mxu0 %v3472_v12  ;;  %756 = vmatprep.mubr.f32.mxu1 %v3475_v13  ;;  %4725 = vst [vmem:[#allocation17_spill] sm:$0xff] %v3682_v21 }
  0x77   : > { %2081 = vmatprep.mubr.msk.f32.mxu0 %vm556_vm0, %v3478_v15  ;;  %2281 = vmatpush1.bf16.msra.mxu1 %v2280_v14  ;;  %v2296_v14 = vpack.c.bf16 %v416_v1, %v411_v0  ;;  %v3654_v0 = vld [vmem:[%s2968_s27 + $0x2f8] sm:$0xff]  ;;  %v2306_v1 = vpack.c.bf16 %v447_v49, %v442_v48  ;;  %v453_v48 = vld [vmem:[%s4689_s1 + $0x570] sm:$0xff] }
  0x78   : > { %2283 = vmatprep.subr.bf16.mxu1 %v2282_v16  ;;  %v3596_v16 = vld [vmem:[%s2968_s27 + $0x2b8] sm:$0xff]  ;;  %4722 = vst [vmem:[#allocation14_spill] sm:$0xff] %v3654_v0 }
  0x79   : > { %757 = vmatmul.mubr.f32.gmra.mrb[20].mxu1 %v3497_v25  ;;  %4718 = vst [vmem:[#allocation10_spill] sm:$0xff] %v3596_v16  ;;  %v458_v49 = vld [vmem:[%s4689_s1 + $0x598] sm:$0xff] }
  0x7a   : > { %1014 = vmatmul.mubr.f32.gmra.mrb[34].mxu0 %v3502_v27  ;;  %762 = vmatprep.mubr.f32.mxu1 %v3505_v28  ;;  %v456_v27 = vld [vmem:[%s4689_s1 + $0x588] sm:$0xff]  ;;  %v462_v15 = vld [vmem:[%s4689_s1 + $0x5b8] sm:$0xff] }
  0x7b   : > { %2082 = vmatprep.mubr.msk.f32.mxu0 %vm556_vm0, %v3508_v31  ;;  %2285 = vmatpush1.bf16.msra.mxu1 %v2284_v29  ;;  %v3614_v29 = vld [vmem:[%s2968_s27 + $0x1c0] sm:$0xff] }
  0x7c   : > { %2287 = vmatprep.subr.bf16.mxu1 %v2286_v33  ;;  %v3619_v33 = vld [vmem:[%s2968_s27 + $0x2b0] sm:$0xff]  ;;  %v451_v31 = vld [vmem:[%s4689_s1 + $0x560] sm:$0xff] }
  0x7d   : > { %763 = vmatmul.mubr.f32.gmra.mrb[22].mxu1 %v3527_v38  ;;  %4719 = vst [vmem:[#allocation11_spill] sm:$0xff] %v3619_v33 }
  0x7e   : > { %1020 = vmatmul.mubr.f32.gmra.mrb[36].mxu0 %v3532_v40  ;;  %768 = vmatprep.mubr.f32.mxu1 %v3535_v42  ;;  %v513_v40 = vld [vmem:[%s4689_s1 + $0x750] sm:$0xff] }
  0x7f   : > { %2083 = vmatprep.mubr.msk.f32.mxu0 %vm556_vm0, %v3538_v46  ;;  %2289 = vmatpush1.bf16.msra.mxu1 %v2288_v44  ;;  %v431_v44 = vld [vmem:[%s4689_s1 + $0x4c0] sm:$0xff]  ;;  %v457_v46 = vld [vmem:[%s4689_s1 + $0x590] sm:$0xff] }
  0x80   : > { %2291 = vmatprep.subr.bf16.mxu1 %v2290_v47  ;;  %v436_v47 = vld [vmem:[%s4689_s1 + $0x4e8] sm:$0xff] }
  0x81   : > { %769 = vmatmul.mubr.f32.gmra.mrb[24].mxu1 %v3556_v52 }
  0x82   : > { %1026 = vmatmul.mubr.f32.gmra.mrb[38].mxu0 %v3561_v53  ;;  %774 = vmatprep.mubr.f32.mxu1 %v3564_v55  ;;  %v4726_v53 = vmov 0.0|0.0  }
  0x83   : > { %2084 = vmatprep.mubr.msk.f32.mxu0 %vm556_vm0, %v3567_v62  ;;  %2293 = vmatpush1.bf16.msra.mxu1 %v2292_v59  ;;  %v3651_v59 = vld [vmem:[%s2968_s27 + $0x208] sm:$0xff]  ;;  %v3798_v62 = vld [vmem:[%s2968_s27 + $0x300] sm:$0xff] }
  0x84   : > { %2295 = vmatprep.subr.bf16.mxu1 %v2294_v63  ;;  %v2304_v63 = vpack.c.bf16 %v436_v47, %v431_v44  ;;  %v3701_v44 = vld [vmem:[%s2968_s27 + $0x268] sm:$0xff] }
  0x85   : > { %775 = vmatmul.mubr.f32.gmra.mrb[26].mxu1 %v3585_v5 }
  0x86   : > { %1032 = vmatmul.mubr.f32.gmra.mrb[40].mxu0 %v3590_v6  ;;  %780 = vmatprep.mubr.f32.mxu1 %v3593_v8  ;;  %v508_v6 = vld [vmem:[%s4689_s1 + $0x728] sm:$0xff] }
  0x87   : > { %2085 = vmatprep.mubr.msk.f32.mxu0 %vm556_vm0, %v3596_v16  ;;  %2297 = vmatpush1.bf16.msra.mxu1 %v2296_v14  ;;  %v3668_v14 = vld [vmem:[%s2968_s27 + $0x228] sm:$0xff]  ;;  %v3781_v16 = vld [vmem:[%s2968_s27 + $0x2e0] sm:$0xff] }
  0x88   : > { %2299 = vmatprep.subr.bf16.mxu1 %v2298_v18  ;;  %v3671_v18 = vld [vmem:[%s2968_s27 + $0x318] sm:$0xff] }
  0x89   : > { %781 = vmatmul.mubr.f32.gmra.mrb[28].mxu1 %v3614_v29  ;;  %4724 = vst [vmem:[#allocation16_spill] sm:$0xff] %v3671_v18 }
  0x8a   : > { %1038 = vmatmul.mubr.f32.gmra.mrb[42].mxu0 %v3619_v33  ;;  %786 = vmatprep.mubr.f32.mxu1 %v3622_v34  ;;  %v498_v33 = vld [vmem:[%s4689_s1 + $0x6d8] sm:$0xff] }
  0x8b   : > { %2086 = vmatprep.mubr.msk.f32.mxu0 %vm556_vm0, %v3625_v36  ;;  %2301 = vmatpush1.bf16.msra.mxu1 %v2300_v35  ;;  %v448_v35 = vld [vmem:[%s4689_s1 + $0x548] sm:$0xff]  ;;  %v493_v36 = vld [vmem:[%s4689_s1 + $0x6b0] sm:$0xff] }
  0x8c   : > { %2303 = vmatprep.subr.bf16.mxu1 %v2302_v37  ;;  %v3697_v37 = vld [vmem:[%s2968_s27 + $0x240] sm:$0xff]  ;;  %v2391_v47 = vpack.c.bf16 %v448_v35, %v443_v23  ;;  %v2394_v23 = vpack.c.bf16 %v458_v49, %v453_v48  ;;  %v3734_v48 = vld [vmem:[%s2968_s27 + $0x2a8] sm:$0xff] }
  0x8d   : > { %787 = vmatmul.mubr.f32.gmra.mrb[30].mxu1 %v3643_v50  ;;  %v463_v35 = vld [vmem:[%s4689_s1 + $0x5c0] sm:$0xff] }
  0x8e   : > { %1044 = vmatmul.mubr.f32.gmra.mrb[44].mxu0 %v3648_v51  ;;  %792 = vmatprep.mubr.f32.mxu1 %v3651_v59  ;;  %v488_v51 = vld [vmem:[%s4689_s1 + $0x688] sm:$0xff] }
  0x8f   : > { %2087 = vmatprep.mubr.msk.f32.mxu0 %vm556_vm0, %v3654_v0  ;;  %2305 = vmatpush1.bf16.msra.mxu1 %v2304_v63  ;;  %v3713_v63 = vld [vmem:[%s2968_s27 + $0x260] sm:$0xff] }
  0x90   : > { %2307 = vmatprep.subr.bf16.mxu1 %v2306_v1  ;;  %v3717_v1 = vld [vmem:[%s2968_s27 + $0x288] sm:$0xff]  ;;  %v483_v0 = vld [vmem:[%s4689_s1 + $0x660] sm:$0xff] }
  0x91   : > { %793 = vmatmul.mubr.f32.gmra.mrb[32].mxu1 %v3660_v2 }
  0x92   : > { %1050 = vmatmul.mubr.f32.gmra.mrb[46].mxu0 %v3665_v3  ;;  %798 = vmatprep.mubr.f32.mxu1 %v3668_v14  ;;  %v478_v3 = vld [vmem:[%s4689_s1 + $0x638] sm:$0xff] }
  0x93   : > { %2088 = vmatprep.mubr.msk.f32.mxu0 %vm556_vm0, %v3671_v18  ;;  %v473_v18 = vld [vmem:[%s4689_s1 + $0x610] sm:$0xff] }
  0x95   : > { %799 = vmatmul.mubr.f32.gmra.mrb[34].mxu1 %v3677_v20 }
  0x96   : > { %1056 = vmatmul.mubr.f32.gmra.mrb[48].mxu0 %v3682_v21  ;;  %804 = vmatprep.mubr.f32.mxu1 %v3685_v22  ;;  %v468_v21 = vld [vmem:[%s4689_s1 + $0x5e8] sm:$0xff] }
  0x97   : > { %1556 = vmatprep.mubr.f32.mxu0 %v3056_v60  ;;  %v2397_v49 = vpack.c.bf16 %v468_v21, %v463_v35  ;;  %v3751_v21 = vld [vmem:[%s2968_s27 + $0x2c8] sm:$0xff]  ;;  %v2400_v35 = vpack.c.bf16 %v478_v3, %v473_v18  ;;  %v2403_v18 = vpack.c.bf16 %v488_v51, %v483_v0  ;;  %v2406_v0 = vpack.c.bf16 %v498_v33, %v493_v36  ;;  %v441_v33 = vld [vmem:[%s4689_s1 + $0x510] sm:$0xff]  ;;  %v446_v36 = vld [vmem:[%s4689_s1 + $0x538] sm:$0xff] }
  0x98   : > { %v3768_v3 = vld [vmem:[%s2968_s27 + $0x2e8] sm:$0xff] }
  0x99   : > { %805 = vmatmul.mubr.f32.gmra.mrb[36].mxu1 %v3697_v37  ;;  %v3785_v51 = vld [vmem:[%s2968_s27 + $0x308] sm:$0xff] }
  0x9a   : > { %1557 = vmatmul.mubr.f32.vlgmr.msra.gmra.mrb[50].mxu0 %v3198_v4  ;;  %810 = vmatprep.mubr.f32.mxu1 %v3701_v44 }
  0x9b   : > { %1561 = vmatprep.mubr.f32.mxu0 %v3203_v7  ;;  %2392 = vmatpush1.bf16.msra.mxu0 %v2391_v47  ;;  %v3730_v47 = vld [vmem:[%s2968_s27 + $0x280] sm:$0xff] }
  0x9c   : > { %2393 = vmatprep.subr.bf16.mxu0 %v4702_v61 }
  0x9d   : > { %811 = vmatmul.mubr.f32.gmra.mrb[38].mxu1 %v3713_v63 }
  0x9e   : > { %1562 = vmatmul.mubr.f32.gmra.mrb[52].mxu0 %v3227_v17  ;;  %816 = vmatprep.mubr.f32.mxu1 %v3717_v1 }
  0x9f   : > { %1566 = vmatprep.mubr.f32.mxu0 %v3233_v19  ;;  %2395 = vmatpush1.bf16.msra.mxu0 %v2394_v23  ;;  %v3747_v23 = vld [vmem:[%s2968_s27 + $0x2a0] sm:$0xff] }
  0xa0   : > { %2396 = vmatprep.subr.bf16.mxu0 %v4702_v61 }
  0xa1   : > { %817 = vmatmul.mubr.f32.gmra.mrb[40].mxu1 %v3730_v47 }
  0xa2   : > { %1567 = vmatmul.mubr.f32.gmra.mrb[54].mxu0 %v3258_v30  ;;  %822 = vmatprep.mubr.f32.mxu1 %v3734_v48 }
  0xa3   : > { %1571 = vmatprep.mubr.f32.mxu0 %v3263_v32  ;;  %2398 = vmatpush1.bf16.msra.mxu0 %v2397_v49  ;;  %v3764_v49 = vld [vmem:[%s2968_s27 + $0x2c0] sm:$0xff] }
  0xa4   : > { %2399 = vmatprep.subr.bf16.mxu0 %v4702_v61 }
  0xa5   : > { %823 = vmatmul.mubr.f32.gmra.mrb[42].mxu1 %v3747_v23 }
  0xa6   : > { %1572 = vmatmul.mubr.f32.gmra.mrb[56].mxu0 %v3288_v43  ;;  %828 = vmatprep.mubr.f32.mxu1 %v3751_v21 }
  0xa7   : > { %1576 = vmatprep.mubr.f32.mxu0 %v3293_v45  ;;  %2401 = vmatpush1.bf16.msra.mxu0 %v2400_v35  ;;  %v503_v35 = vld [vmem:[%s4689_s1 + $0x700] sm:$0xff] }
  0xa8   : > { %2402 = vmatprep.subr.bf16.mxu0 %v4702_v61 }
  0xa9   : > { %829 = vmatmul.mubr.f32.gmra.mrb[44].mxu1 %v3764_v49 }
  0xaa   : > { %1577 = vmatmul.mubr.f32.gmra.mrb[58].mxu0 %v3318_v56  ;;  %834 = vmatprep.mubr.f32.mxu1 %v3768_v3 }
  0xab   : > { %1581 = vmatprep.mubr.f32.mxu0 %v3323_v58  ;;  %2404 = vmatpush1.bf16.msra.mxu0 %v2403_v18  ;;  %v2409_v18 = vpack.c.bf16 %v508_v6, %v503_v35  ;;  %v518_v6 = vld [vmem:[%s4689_s1 + $0x778] sm:$0xff] }
  0xac   : > { %2405 = vmatprep.subr.bf16.mxu0 %v4702_v61  ;;  %v452_v61 = vld [vmem:[%s4689_s1 + $0x568] sm:$0xff] }
  0xad   : > { %835 = vmatmul.mubr.f32.gmra.mrb[46].mxu1 %v3781_v16  ;;  %v2310_v35 = vpack.c.bf16 %v457_v46, %v452_v61  ;;  %v467_v61 = vld [vmem:[%s4689_s1 + $0x5e0] sm:$0xff] }
  0xae   : > { %1582 = vmatmul.mubr.f32.gmra.mrb[60].mxu0 %v3348_v9  ;;  %840 = vmatprep.mubr.f32.mxu1 %v3785_v51  ;;  %v523_v46 = vld [vmem:[%s4689_s1 + $0x7a0] sm:$0xff] }
  0xaf   : > { %1586 = vmatprep.mubr.f32.mxu0 %v3353_v11  ;;  %2407 = vmatpush1.bf16.msra.mxu0 %v2406_v0  ;;  %v2308_v0 = vpack.c.bf16 %v446_v36, %v441_v33  ;;  %v528_v33 = vld [vmem:[%s4689_s1 + $0x7c8] sm:$0xff]  ;;  %v461_v36 = vld [vmem:[%s4689_s1 + $0x5b0] sm:$0xff] }
  0xb0   : > { %2408 = vmatprep.subr.bf16.mxu0 %v4726_v53 }
  0xb1   : > { %841 = vmatmul.mubr.f32.gmra.mrb[48].mxu1 %v3798_v62 }
  0xb2   : > { %1587 = vmatmul.mubr.f32.gmra.mrb[62].mxu0 %v3378_v24  ;;  %1126 = vmatprep.mubr.f32.mxu1 %v3056_v60  ;;  %v2412_v60 = vpack.c.bf16 %v518_v6, %v513_v40  ;;  %v2314_v40 = vpack.c.bf16 %v467_v61, %v462_v15  ;;  %v2415_v6 = vpack.c.bf16 %v528_v33, %v523_v46  ;;  %v477_v15 = vld [vmem:[%s4689_s1 + $0x630] sm:$0xff]  ;;  %v486_v61 = vld [vmem:[%s4689_s1 + $0x678] sm:$0xff] }
  0xb3   : > { %1591 = vmatprep.mubr.f32.mxu0 %v3383_v26  ;;  %2410 = vmatpush1.bf16.msra.mxu0 %v2409_v18  ;;  %v466_v18 = vld [vmem:[%s4689_s1 + $0x5d8] sm:$0xff]  ;;  %v497_v46 = vld [vmem:[%s4689_s1 + $0x6d0] sm:$0xff] }
  0xb4   : > { %2411 = vmatprep.subr.bf16.mxu0 %v4726_v53 }
  0xb5   : > { %1127 = vmatmul.mubr.f32.vlgmr.msra.gmra.mrb[50].mxu1 %v3198_v4  ;;  %v2312_v4 = vpack.c.bf16 %v456_v27, %v451_v31  ;;  %v2316_v27 = vpack.c.bf16 %v466_v18, %v461_v36  ;;  %v471_v31 = vld [vmem:[%s4689_s1 + $0x600] sm:$0xff] }
  0xb6   : > { %1592 = vmatmul.mubr.f32.gmra.mrb[64].mxu0 %v3408_v39  ;;  %2309 = vmatpush1.bf16.msra.mxu1 %v2308_v0  ;;  %v476_v0 = vld [vmem:[%s4689_s1 + $0x628] sm:$0xff]  ;;  %v507_v36 = vld [vmem:[%s4689_s1 + $0x720] sm:$0xff] }
  0xb7   : > { %1132 = vmatprep.mubr.f32.mxu1 %v3203_v7  ;;  %1596 = vmatprep.mubr.f32.mxu0 %v3413_v41  ;;  %v472_v7 = vld [vmem:[%s4689_s1 + $0x608] sm:$0xff] }
  0xb8   : > { %2311 = vmatprep.subr.bf16.mxu1 %v2310_v35  ;;  %2413 = vmatpush1.bf16.msra.mxu0 %v2412_v60  ;;  %v2320_v35 = vpack.c.bf16 %v476_v0, %v471_v31  ;;  %v516_v31 = vld [vmem:[%s4689_s1 + $0x768] sm:$0xff]  ;;  %v527_v0 = vld [vmem:[%s4689_s1 + $0x7c0] sm:$0xff] }
  0xb9   : > { %1133 = vmatmul.mubr.f32.gmra.mrb[52].mxu1 %v3227_v17  ;;  %2414 = vmatprep.subr.bf16.mxu0 %v4726_v53  ;;  %v2318_v17 = vpack.c.bf16 %v477_v15, %v472_v7  ;;  %v487_v53 = vld [vmem:[%s4689_s1 + $0x680] sm:$0xff]  ;;  %v506_v7 = vld [vmem:[%s4689_s1 + $0x718] sm:$0xff]  ;;  %v517_v15 = vld [vmem:[%s4689_s1 + $0x770] sm:$0xff] }
  0xba   : > { %1597 = vmatmul.mubr.f32.gmra.mrb[66].mxu0 %v3438_v54  ;;  %1138 = vmatprep.mubr.f32.mxu1 %v3233_v19  ;;  %v482_v19 = vld [vmem:[%s4689_s1 + $0x658] sm:$0xff] }
  0xbb   : > { %1601 = vmatprep.mubr.f32.mxu0 %v3443_v57  ;;  %2313 = vmatpush1.bf16.msra.mxu1 %v2312_v4  ;;  %v2322_v60 = vpack.c.bf16 %v487_v53, %v482_v19 }
  0xbc   : > { %2315 = vmatprep.subr.bf16.mxu1 %v2314_v40  ;;  %2416 = vmatpush1.bf16.msra.mxu0 %v2415_v6  ;;  %v496_v40 = vld [vmem:[%s4689_s1 + $0x6c8] sm:$0xff] }
  0xbd   : > { %1139 = vmatmul.mubr.f32.gmra.mrb[54].mxu1 %v3258_v30  ;;  %v481_v30 = vld [vmem:[%s4689_s1 + $0x650] sm:$0xff] }
  0xbe   : > { %1602 = vmatmul.mubr.f32.gmra.mrb[68].mxu0 %v3468_v10  ;;  %1144 = vmatprep.mubr.f32.mxu1 %v3263_v32  ;;  %v492_v32 = vld [vmem:[%s4689_s1 + $0x6a8] sm:$0xff]  ;;  %v2324_v33 = vpack.c.bf16 %v486_v61, %v481_v30 }
  0xbf   : > { %1606 = vmatprep.mubr.f32.mxu0 %v3475_v13  ;;  %2317 = vmatpush1.bf16.msra.mxu1 %v2316_v27  ;;  %v2326_v4 = vpack.c.bf16 %v497_v46, %v492_v32  ;;  %v4114_v32 = vld [vmem:[%s2968_s27 + $0x130] sm:$0xff] }
  0xc0   : > { %2319 = vmatprep.subr.bf16.mxu1 %v2318_v17 }
  0xc1   : > { %1145 = vmatmul.mubr.f32.gmra.mrb[56].mxu1 %v3288_v43  ;;  %v491_v43 = vld [vmem:[%s4689_s1 + $0x6a0] sm:$0xff] }
  0xc2   : > { %1607 = vmatmul.mubr.f32.gmra.mrb[70].mxu0 %v3497_v25  ;;  %1150 = vmatprep.mubr.f32.mxu1 %v3293_v45  ;;  %v502_v45 = vld [vmem:[%s4689_s1 + $0x6f8] sm:$0xff]  ;;  %v2328_v18 = vpack.c.bf16 %v496_v40, %v491_v43 }
  0xc3   : > { %1611 = vmatprep.mubr.f32.mxu0 %v3505_v28  ;;  %2321 = vmatpush1.bf16.msra.mxu1 %v2320_v35  ;;  %v2330_v6 = vpack.c.bf16 %v507_v36, %v502_v45  ;;  %v526_v35 = vld [vmem:[%s4689_s1 + $0x7b8] sm:$0xff] }
  0xc4   : > { %2323 = vmatprep.subr.bf16.mxu1 %v2322_v60  ;;  %v4103_v60 = vld [vmem:[%s2968_s27 + $0x138] sm:$0xff] }
  0xc5   : > { %1151 = vmatmul.mubr.f32.gmra.mrb[58].mxu1 %v3318_v56  ;;  %v501_v56 = vld [vmem:[%s4689_s1 + $0x6f0] sm:$0xff] }
  0xc6   : > { %1612 = vmatmul.mubr.f32.gmra.mrb[72].mxu0 %v3527_v38  ;;  %1156 = vmatprep.mubr.f32.mxu1 %v3323_v58  ;;  %v512_v58 = vld [vmem:[%s4689_s1 + $0x748] sm:$0xff]  ;;  %v2332_v27 = vpack.c.bf16 %v506_v7, %v501_v56 }
  0xc7   : > { %1616 = vmatprep.mubr.f32.mxu0 %v3535_v42  ;;  %2325 = vmatpush1.bf16.msra.mxu1 %v2324_v33  ;;  %v2334_v17 = vpack.c.bf16 %v517_v15, %v512_v58  ;;  %v4148_v58 = vld [vmem:[%s2968_s27 + $0x178] sm:$0xff] }
  0xc8   : > { %2327 = vmatprep.subr.bf16.mxu1 %v2326_v4  ;;  %v4124_v4 = vld [vmem:[%s2968_s27 + $0x158] sm:$0xff] }
  0xc9   : > { %1157 = vmatmul.mubr.f32.gmra.mrb[60].mxu1 %v3348_v9  ;;  %v511_v9 = vld [vmem:[%s4689_s1 + $0x740] sm:$0xff] }
  0xca   : > { %1617 = vmatmul.mubr.f32.gmra.mrb[74].mxu0 %v3556_v52  ;;  %1162 = vmatprep.mubr.f32.mxu1 %v3353_v11  ;;  %v522_v11 = vld [vmem:[%s4689_s1 + $0x798] sm:$0xff]  ;;  %v2336_v19 = vpack.c.bf16 %v516_v31, %v511_v9 }
  0xcb   : > { %1621 = vmatprep.mubr.f32.mxu0 %v3564_v55  ;;  %2329 = vmatpush1.bf16.msra.mxu1 %v2328_v18  ;;  %v2338_v53 = vpack.c.bf16 %v527_v0, %v522_v11  ;;  %v4161_v0 = vld [vmem:[%s2968_s27 + $0x170] sm:$0xff] }
  0xcc   : > { %2331 = vmatprep.subr.bf16.mxu1 %v2330_v6  ;;  %v4139_v6 = vld [vmem:[%s2968_s27 + $0x150] sm:$0xff] }
  0xcd   : > { %1163 = vmatmul.mubr.f32.gmra.mrb[62].mxu1 %v3378_v24  ;;  %v521_v24 = vld [vmem:[%s4689_s1 + $0x790] sm:$0xff] }
  0xce   : > { %1622 = vmatmul.mubr.f32.gmra.mrb[76].mxu0 %v3585_v5  ;;  %1168 = vmatprep.mubr.f32.mxu1 %v3383_v26  ;;  %v2340_v26 = vpack.c.bf16 %v526_v35, %v521_v24  ;;  %v4170_v24 = vld [vmem:[%s2968_s27 + $0x198] sm:$0xff] }
  0xcf   : > { %1626 = vmatprep.mubr.f32.mxu0 %v3593_v8  ;;  %2333 = vmatpush1.bf16.msra.mxu1 %v2332_v27 }
  0xd0   : > { %2335 = vmatprep.subr.bf16.mxu1 %v2334_v17 }
  0xd1   : > { %1169 = vmatmul.mubr.f32.gmra.mrb[64].mxu1 %v3408_v39  ;;  %v2702_v39 = vld [vmem:[%s2968_s27 + $0x18] sm:$0xff] }
  0xd2   : > { %1627 = vmatmul.mubr.f32.gmra.mrb[78].mxu0 %v3614_v29  ;;  %1174 = vmatprep.mubr.f32.mxu1 %v3413_v41  ;;  %v2703_v41 = vld [vmem:[%s2968_s27 + $0x10] sm:$0xff] }
  0xd3   : > { %1631 = vmatprep.mubr.f32.mxu0 %v3622_v34  ;;  %2337 = vmatpush1.bf16.msra.mxu1 %v2336_v19 }
  0xd4   : > { %2339 = vmatprep.subr.bf16.mxu1 %v2338_v53 }
  0xd5   : > { %1175 = vmatmul.mubr.f32.gmra.mrb[66].mxu1 %v3438_v54  ;;  %v2704_v54 = vld [vmem:[%s2968_s27 + $0x38] sm:$0xff] }
  0xd6   : > { %1632 = vmatmul.mubr.f32.gmra.mrb[80].mxu0 %v3643_v50  ;;  %1180 = vmatprep.mubr.f32.mxu1 %v3443_v57  ;;  %v2705_v57 = vld [vmem:[%s2968_s27 + $0x30] sm:$0xff] }
  0xd7   : > { %1636 = vmatprep.mubr.f32.mxu0 %v3651_v59  ;;  %2341 = vmatpush1.bf16.msra.mxu1 %v2340_v26 }
  0xd9   : > { %1181 = vmatmul.mubr.f32.gmra.mrb[68].mxu1 %v3468_v10  ;;  %v2706_v10 = vld [vmem:[%s2968_s27 + $0x58] sm:$0xff] }
  0xda   : > { %1637 = vmatmul.mubr.f32.gmra.mrb[82].mxu0 %v3660_v2  ;;  %1186 = vmatprep.mubr.f32.mxu1 %v3475_v13  ;;  %v2707_v13 = vld [vmem:[%s2968_s27 + $0x50] sm:$0xff] }
  0xdb   : > { %1641 = vmatprep.mubr.f32.mxu0 %v3668_v14 }
  0xdd   : > { %1187 = vmatmul.mubr.f32.gmra.mrb[70].mxu1 %v3497_v25  ;;  %v2708_v25 = vld [vmem:[%s2968_s27 + $0x78] sm:$0xff] }
  0xde   : > { %1642 = vmatmul.mubr.f32.gmra.mrb[84].mxu0 %v3677_v20  ;;  %1192 = vmatprep.mubr.f32.mxu1 %v3505_v28 }
  0xdf   : > { %1646 = vmatprep.mubr.f32.mxu0 %v3685_v22 }
  0xe1   : > { %1193 = vmatmul.mubr.f32.gmra.mrb[72].mxu1 %v3527_v38  ;;  %v4014_v38 = vld [vmem:[%s2968_s27 + $0x70] sm:$0xff] }
  0xe2   : > { %1647 = vmatmul.mubr.f32.gmra.mrb[86].mxu0 %v3697_v37  ;;  %1198 = vmatprep.mubr.f32.mxu1 %v3535_v42 }
  0xe3   : > { %1651 = vmatprep.mubr.f32.mxu0 %v3701_v44 }
  0xe5   : > { %1199 = vmatmul.mubr.f32.gmra.mrb[74].mxu1 %v3556_v52  ;;  %v4021_v52 = vld [vmem:[%s2968_s27 + $0x98] sm:$0xff] }
  0xe6   : > { %1652 = vmatmul.mubr.f32.gmra.mrb[88].mxu0 %v3713_v63  ;;  %1204 = vmatprep.mubr.f32.mxu1 %v3564_v55 }
  0xe7   : > { %1656 = vmatprep.mubr.f32.mxu0 %v3717_v1 }
  0xe9   : > { %1205 = vmatmul.mubr.f32.gmra.mrb[76].mxu1 %v3585_v5  ;;  %v4029_v5 = vld [vmem:[%s2968_s27 + $0x90] sm:$0xff] }
  0xea   : > { %1657 = vmatmul.mubr.f32.gmra.mrb[90].mxu0 %v3730_v47  ;;  %1210 = vmatprep.mubr.f32.mxu1 %v3593_v8 }
  0xeb   : > { %1661 = vmatprep.mubr.f32.mxu0 %v3734_v48 }
  0xed   : > { %1211 = vmatmul.mubr.f32.gmra.mrb[78].mxu1 %v3614_v29  ;;  %v4036_v29 = vld [vmem:[%s2968_s27 + $0xb8] sm:$0xff] }
  0xee   : > { %1662 = vmatmul.mubr.f32.gmra.mrb[92].mxu0 %v3747_v23  ;;  %1216 = vmatprep.mubr.f32.mxu1 %v3622_v34 }
  0xef   : > { %1666 = vmatprep.mubr.f32.mxu0 %v3751_v21 }
  0xf1   : > { %1217 = vmatmul.mubr.f32.gmra.mrb[80].mxu1 %v3643_v50  ;;  %v4044_v50 = vld [vmem:[%s2968_s27 + $0xb0] sm:$0xff] }
  0xf2   : > { %1667 = vmatmul.mubr.f32.gmra.mrb[94].mxu0 %v3764_v49  ;;  %1222 = vmatprep.mubr.f32.mxu1 %v3651_v59 }
  0xf3   : > { %1671 = vmatprep.mubr.f32.mxu0 %v3768_v3 }
  0xf5   : > { %1223 = vmatmul.mubr.f32.gmra.mrb[82].mxu1 %v3660_v2  ;;  %v4051_v2 = vld [vmem:[%s2968_s27 + $0xd8] sm:$0xff] }
  0xf6   : > { %1672 = vmatmul.mubr.f32.gmra.mrb[96].mxu0 %v3781_v16  ;;  %1228 = vmatprep.mubr.f32.mxu1 %v3668_v14 }
  0xf7   : > { %1676 = vmatprep.mubr.f32.mxu0 %v3785_v51 }
  0xf9   : > { %1229 = vmatmul.mubr.f32.gmra.mrb[84].mxu1 %v3677_v20  ;;  %v4059_v20 = vld [vmem:[%s2968_s27 + $0xd0] sm:$0xff] }
  0xfa   : > { %1677 = vmatmul.mubr.f32.gmra.mrb[98].mxu0 %v3798_v62  ;;  %1234 = vmatprep.mubr.f32.mxu1 %v3685_v22 }
  0xfb   : > { %2114 = vmatprep.mubr.msk.f32.mxu0 %vm556_vm0, %v2702_v39 }
  0xfd   : > { %1235 = vmatmul.mubr.f32.gmra.mrb[86].mxu1 %v3697_v37  ;;  %v4066_v37 = vld [vmem:[%s2968_s27 + $0xf8] sm:$0xff] }
  0xfe   : > { %1747 = vmatmul.mubr.f32.vlgmr.msra.gmra.mrb[50].mxu0 %v2703_v41  ;;  %1240 = vmatprep.mubr.f32.mxu1 %v3701_v44 }
  0xff   : > { %2115 = vmatprep.mubr.msk.f32.mxu0 %vm556_vm0, %v2704_v54 }
 0x101   : > { %1241 = vmatmul.mubr.f32.gmra.mrb[88].mxu1 %v3713_v63  ;;  %v4075_v63 = vld [vmem:[%s2968_s27 + $0xf0] sm:$0xff] }
 0x102   : > { %1752 = vmatmul.mubr.f32.gmra.mrb[52].mxu0 %v2705_v57  ;;  %1246 = vmatprep.mubr.f32.mxu1 %v3717_v1 }
 0x103   : > { %2116 = vmatprep.mubr.msk.f32.mxu0 %vm556_vm0, %v2706_v10 }
 0x105   : > { %1247 = vmatmul.mubr.f32.gmra.mrb[90].mxu1 %v3730_v47  ;;  %v4082_v47 = vld [vmem:[%s2968_s27 + $0x118] sm:$0xff] }
 0x106   : > { %1757 = vmatmul.mubr.f32.gmra.mrb[54].mxu0 %v2707_v13  ;;  %1252 = vmatprep.mubr.f32.mxu1 %v3734_v48 }
 0x107   : > { %2117 = vmatprep.mubr.msk.f32.mxu0 %vm556_vm0, %v2708_v25 }
 0x109   : > { %1253 = vmatmul.mubr.f32.gmra.mrb[92].mxu1 %v3747_v23  ;;  %v4011_v28 = vpop.f32.mrb[0].mxu0 }
 0x10a   : > { %1762 = vmatmul.mubr.f32.gmra.mrb[56].mxu0 %v4014_v38  ;;  %1258 = vmatprep.mubr.f32.mxu1 %v3751_v21  ;;  %v4018_v42 = vpop.f32.mrb[1].mxu0  ;;  %v4090_v21 = vld [vmem:[%s2968_s27 + $0x110] sm:$0xff] }
 0x10b   : > { %2118 = vmatprep.mubr.msk.f32.mxu0 %vm556_vm0, %v4021_v52 }
 0x10d   : > { %1259 = vmatmul.mubr.f32.gmra.mrb[94].mxu1 %v3764_v49  ;;  %v4026_v55 = vpop.f32.mrb[2].mxu0  ;;  %v4097_v49 = vld [vmem:[%s4690_s2] sm:$0x1f] }
 0x10e   : > { %1767 = vmatmul.mubr.f32.gmra.mrb[58].mxu0 %v4029_v5  ;;  %1264 = vmatprep.mubr.f32.mxu1 %v3768_v3  ;;  %v4033_v8 = vpop.f32.mrb[3].mxu0 }
 0x10f   : > { %2119 = vmatprep.mubr.msk.f32.mxu0 %vm556_vm0, %v4036_v29 }
 0x111   : > { %1265 = vmatmul.mubr.f32.gmra.mrb[96].mxu1 %v3781_v16  ;;  %v4041_v34 = vpop.f32.mrb[4].mxu0  ;;  %v531_v16 = vlaneseq }
 0x112   : > { %1772 = vmatmul.mubr.f32.gmra.mrb[60].mxu0 %v4044_v50  ;;  %1270 = vmatprep.mubr.f32.mxu1 %v3785_v51  ;;  %v4048_v59 = vpop.f32.mrb[5].mxu0 }
 0x113   : > { %2120 = vmatprep.mubr.msk.f32.mxu0 %vm556_vm0, %v4051_v2 }
 0x115   : > { %1271 = vmatmul.mubr.f32.gmra.mrb[98].mxu1 %v3798_v62  ;;  %v4056_v14 = vpop.f32.mrb[6].mxu0  ;;  %v4070_v62 = vshrl.u32 %v531_v16, 7 }
 0x116   : > { %1777 = vmatmul.mubr.f32.gmra.mrb[62].mxu0 %v4059_v20  ;;  %2089 = vmatprep.mubr.msk.f32.mxu1 %vm556_vm0, %v2702_v39  ;;  %v4063_v22 = vpop.f32.mrb[7].mxu0 }
 0x117   : > { %2121 = vmatprep.mubr.msk.f32.mxu0 %vm556_vm0, %v4066_v37  ;;  %v533_v48 = vsub.s32 0, %v4070_v62  ;;  %v537_v3 = vsub.s32 1, %v4070_v62 }
 0x119   : > { %1342 = vmatmul.mubr.f32.vlgmr.msra.gmra.mrb[50].mxu1 %v2703_v41  ;;  %v4072_v44 = vpop.f32.mrb[8].mxu0  ;;  %v4108_v30 = vrot.slane %v4097_v49, %v533_v48  ;;  %v4119_v46 = vrot.slane %v4097_v49, %v537_v3  ;;  %v4227_v3 = vld [vmem:[%s2968_s27 + $0x1d0] sm:$0xff] }
 0x11a   : > { %1782 = vmatmul.mubr.f32.gmra.mrb[64].mxu0 %v4075_v63  ;;  %2090 = vmatprep.mubr.msk.f32.mxu1 %vm556_vm0, %v2704_v54  ;;  %v4079_v1 = vpop.f32.mrb[9].mxu0 }
 0x11b   : > { %2122 = vmatprep.mubr.msk.f32.mxu0 %vm556_vm0, %v4082_v47 }
 0x11d   : > { %1348 = vmatmul.mubr.f32.gmra.mrb[52].mxu1 %v2705_v57  ;;  %v4087_v23 = vpop.f32.mrb[10].mxu0 }
 0x11e   : > { %1787 = vmatmul.mubr.f32.gmra.mrb[66].mxu0 %v4090_v21  ;;  %2091 = vmatprep.mubr.msk.f32.mxu1 %vm556_vm0, %v2706_v10  ;;  %v4100_v51 = vpop.f32.mrb[11].mxu0  ;;  %v4183_v10 = vld [vmem:[%s2968_s27 + $0x190] sm:$0xff] }
 0x11f   : > { %2123 = vmatprep.mubr.msk.f32.mxu0 %vm556_vm0, %v4103_v60 }
 0x121   : > { %1354 = vmatmul.mubr.f32.gmra.mrb[54].mxu1 %v2707_v13  ;;  %v4110_v61 = vpop.f32.mrb[12].mxu0 }
 0x122   : > { %1792 = vmatmul.mubr.f32.gmra.mrb[68].mxu0 %v4114_v32  ;;  %2092 = vmatprep.mubr.msk.f32.mxu1 %vm556_vm0, %v2708_v25  ;;  %v4121_v33 = vpop.f32.mrb[13].mxu0 }
 0x123   : > { %2124 = vmatprep.mubr.msk.f32.mxu0 %vm556_vm0, %v4124_v4 }
 0x124   : > { %v698_v43 = vpop.f32.mrb[0].mxu1 }
 0x125   : > { %v699_v40 = vadd.f32 %v698_v43, %v4108_v30  ;;  %v700_v45 = vpop.f32.mrb[1].mxu1  ;;  %1360 = vmatmul.mubr.f32.gmra.mrb[56].mxu1 %v4014_v38  ;;  %v4130_v36 = vpop.f32.mrb[14].mxu0 }
 0x126   : > { %v701_v18 = vadd.f32 %v700_v45, %v4119_v46  ;;  %1797 = vmatmul.mubr.f32.gmra.mrb[70].mxu0 %v4139_v6  ;;  %2093 = vmatprep.mubr.msk.f32.mxu1 %vm556_vm0, %v4021_v52  ;;  %v4144_v56 = vpop.f32.mrb[15].mxu0 }
 0x127   : > { %v914_v7 = vadd.f32 %v4011_v28, %v699_v40  ;;  %2125 = vmatprep.mubr.msk.f32.mxu0 %vm556_vm0, %v4148_v58  ;;  %v4192_v28 = vld [vmem:[%s2968_s27 + $0x1b8] sm:$0xff] }
 0x128   : > { %v916_v15 = vadd.f32 %v4018_v42, %v701_v18  ;;  %v704_v27 = vpop.f32.mrb[2].mxu1  ;;  %v4236_v40 = vld [vmem:[%s2968_s27 + $0x1f8] sm:$0xff] }
 0x129   : > { %1872 = vst [vmem:[%s4135_s14] sm:$0xff] %v914_v7  ;;  %v705_v17 = vadd.f32 %v704_v27, %v4108_v30  ;;  %v706_v9 = vpop.f32.mrb[3].mxu1  ;;  %1366 = vmatmul.mubr.f32.gmra.mrb[58].mxu1 %v4029_v5  ;;  %v4156_v31 = vpop.f32.mrb[16].mxu0 }
 0x12a   : > { %1873 = vst [vmem:[%s4135_s14 + $0x8] sm:$0xff] %v916_v15  ;;  %v707_v11 = vadd.f32 %v706_v9, %v4119_v46  ;;  %1802 = vmatmul.mubr.f32.gmra.mrb[72].mxu0 %v4161_v0  ;;  %2094 = vmatprep.mubr.msk.f32.mxu1 %vm556_vm0, %v4036_v29  ;;  %v4166_v19 = vpop.f32.mrb[17].mxu0  ;;  %v4205_v29 = vld [vmem:[%s2968_s27 + $0x1b0] sm:$0xff] }
 0x12b   : > { %v920_v53 = vadd.f32 %v4026_v55, %v705_v17  ;;  %2126 = vmatprep.mubr.msk.f32.mxu0 %vm556_vm0, %v4170_v24  ;;  %v4249_v15 = vld [vmem:[%s2968_s27 + $0x1f0] sm:$0xff]  ;;  %v4258_v17 = vld [vmem:[%s2968_s27 + $0x218] sm:$0xff] }
 0x12c   : > { %v922_v35 = vadd.f32 %v4033_v8, %v707_v11  ;;  %v710_v26 = vpop.f32.mrb[4].mxu1 }
 0x12d   : > { %1878 = vst [vmem:[%s4135_s14 + $0x28] sm:$0xff] %v920_v53  ;;  %v711_v39 = vadd.f32 %v710_v26, %v4108_v30  ;;  %v712_v41 = vpop.f32.mrb[5].mxu1  ;;  %1372 = vmatmul.mubr.f32.gmra.mrb[60].mxu1 %v4044_v50  ;;  %v4178_v54 = vpop.f32.mrb[18].mxu0  ;;  %v4727_v26 = vld [vmem:[#allocation2_spill] sm:$0xff] }
 0x12e   : > { %1879 = vst [vmem:[%s4135_s14 + $0x30] sm:$0xff] %v922_v35  ;;  %v713_v57 = vadd.f32 %v712_v41, %v4119_v46  ;;  %1807 = vmatmul.mubr.f32.gmra.mrb[74].mxu0 %v4183_v10  ;;  %2095 = vmatprep.mubr.msk.f32.mxu1 %vm556_vm0, %v4051_v2  ;;  %v4188_v13 = vpop.f32.mrb[19].mxu0 }
 0x12f   : > { %v926_v25 = vadd.f32 %v4041_v34, %v711_v39  ;;  %2127 = vmatprep.mubr.msk.f32.mxu0 %vm556_vm0, %v4192_v28 }
 0x130   : > { %v928_v38 = vadd.f32 %v4048_v59, %v713_v57  ;;  %v716_v42 = vpop.f32.mrb[6].mxu1  ;;  %v4214_v59 = vld [vmem:[%s2968_s27 + $0x1d8] sm:$0xff] }
 0x131   : > { %1883 = vst [vmem:[%s4135_s14 + $0x50] sm:$0xff] %v926_v25  ;;  %v717_v52 = vadd.f32 %v716_v42, %v4108_v30  ;;  %v718_v55 = vpop.f32.mrb[7].mxu1  ;;  %1378 = vmatmul.mubr.f32.gmra.mrb[62].mxu1 %v4059_v20  ;;  %v4200_v5 = vpop.f32.mrb[20].mxu0 }
 0x132   : > { %1884 = vst [vmem:[%s4135_s14 + $0x58] sm:$0xff] %v928_v38  ;;  %v719_v8 = vadd.f32 %v718_v55, %v4119_v46  ;;  %1812 = vmatmul.mubr.f32.gmra.mrb[76].mxu0 %v4205_v29  ;;  %2096 = vmatprep.mubr.msk.f32.mxu1 %vm556_vm0, %v4066_v37  ;;  %v4210_v34 = vpop.f32.mrb[21].mxu0  ;;  %v4729_v38 = vld [vmem:[#allocation4_spill] sm:$0xff] }
 0x133   : > { %v932_v50 = vadd.f32 %v4056_v14, %v717_v52  ;;  %2128 = vmatprep.mubr.msk.f32.mxu0 %vm556_vm0, %v4214_v59 }
 0x134   : > { %v934_v2 = vadd.f32 %v4063_v22, %v719_v8  ;;  %v722_v16 = vpop.f32.mrb[8].mxu1 }
 0x135   : > { %1888 = vst [vmem:[%s4135_s14 + $0x78] sm:$0xff] %v932_v50  ;;  %v723_v20 = vadd.f32 %v722_v16, %v4108_v30  ;;  %v724_v48 = vpop.f32.mrb[9].mxu1  ;;  %1384 = vmatmul.mubr.f32.gmra.mrb[64].mxu1 %v4075_v63  ;;  %v4222_v37 = vpop.f32.mrb[22].mxu0 }
 0x136   : > { %1889 = vst [vmem:[%s4135_s14 + $0x80] sm:$0xff] %v934_v2  ;;  %v725_v14 = vadd.f32 %v724_v48, %v4119_v46  ;;  %1817 = vmatmul.mubr.f32.gmra.mrb[78].mxu0 %v4227_v3  ;;  %2097 = vmatprep.mubr.msk.f32.mxu1 %vm556_vm0, %v4082_v47  ;;  %v4232_v22 = vpop.f32.mrb[23].mxu0  ;;  %v4731_v2 = vld [vmem:[#allocation6_spill] sm:$0xff] }
 0x137   : > { %v938_v43 = vadd.f32 %v4072_v44, %v723_v20  ;;  %2129 = vmatprep.mubr.msk.f32.mxu0 %vm556_vm0, %v4236_v40 }
 0x138   : > { %v940_v63 = vadd.f32 %v4079_v1, %v725_v14  ;;  %v728_v45 = vpop.f32.mrb[10].mxu1 }
 0x139   : > { %1893 = vst [vmem:[%s4135_s14 + $0xa0] sm:$0xff] %v938_v43  ;;  %v729_v18 = vadd.f32 %v728_v45, %v4108_v30  ;;  %v730_v7 = vpop.f32.mrb[11].mxu1  ;;  %1390 = vmatmul.mubr.f32.gmra.mrb[66].mxu1 %v4090_v21  ;;  %v4244_v47 = vpop.f32.mrb[24].mxu0 }
 0x13a   : > { %1894 = vst [vmem:[%s4135_s14 + $0xa8] sm:$0xff] %v940_v63  ;;  %v731_v44 = vadd.f32 %v730_v7, %v4119_v46  ;;  %1822 = vmatmul.mubr.f32.gmra.mrb[80].mxu0 %v4249_v15  ;;  %2098 = vmatprep.mubr.msk.f32.mxu1 %vm556_vm0, %v4103_v60  ;;  %v4254_v1 = vpop.f32.mrb[25].mxu0  ;;  %v4733_v63 = vld [vmem:[#allocation8_spill] sm:$0xff] }
 0x13b   : > { %v944_v27 = vadd.f32 %v4087_v23, %v729_v18  ;;  %2130 = vmatprep.mubr.msk.f32.mxu0 %vm556_vm0, %v4258_v17 }
 0x13c   : > { %v946_v21 = vadd.f32 %v4100_v51, %v731_v44  ;;  %v734_v9 = vpop.f32.mrb[12].mxu1 }
 0x13d   : > { %1898 = vst [vmem:[%s4135_s14 + $0xc8] sm:$0xff] %v944_v27  ;;  %v735_v11 = vadd.f32 %v734_v9, %v4108_v30  ;;  %v736_v53 = vpop.f32.mrb[13].mxu1  ;;  %1396 = vmatmul.mubr.f32.gmra.mrb[68].mxu1 %v4114_v32  ;;  %v4266_v60 = vpop.f32.mrb[26].mxu0 }
 0x13e   : > { %1899 = vst [vmem:[%s4135_s14 + $0xd0] sm:$0xff] %v946_v21  ;;  %v737_v23 = vadd.f32 %v736_v53, %v4119_v46  ;;  %1827 = vmatmul.mubr.f32.gmra.mrb[82].mxu0 %v3472_v12  ;;  %2099 = vmatprep.mubr.msk.f32.mxu1 %vm556_vm0, %v4124_v4  ;;  %v4273_v51 = vpop.f32.mrb[27].mxu0  ;;  %v4735_v21 = vld [vmem:[#allocation10_spill] sm:$0xff] }
 0x13f   : > { %v950_v35 = vadd.f32 %v4110_v61, %v735_v11  ;;  %2131 = vmatprep.mubr.msk.f32.mxu0 %vm556_vm0, %v4727_v26  ;;  %v4728_v61 = vld [vmem:[#allocation3_spill] sm:$0xff]  ;;  %v4737_v26 = vld [vmem:[#allocation12_spill] sm:$0xff] }
 0x140   : > { %v952_v32 = vadd.f32 %v4121_v33, %v737_v23  ;;  %v740_v39 = vpop.f32.mrb[14].mxu1 }
 0x141   : > { %1903 = vst [vmem:[%s4135_s14 + $0xf0] sm:$0xff] %v950_v35  ;;  %v741_v41 = vadd.f32 %v740_v39, %v4108_v30  ;;  %v742_v57 = vpop.f32.mrb[15].mxu1  ;;  %1402 = vmatmul.mubr.f32.gmra.mrb[70].mxu1 %v4139_v6  ;;  %v4282_v12 = vpop.f32.mrb[28].mxu0 }
 0x142   : > { %1904 = vst [vmem:[%s4135_s14 + $0xf8] sm:$0xff] %v952_v32  ;;  %v743_v4 = vadd.f32 %v742_v57, %v4119_v46  ;;  %1832 = vmatmul.mubr.f32.gmra.mrb[84].mxu0 %v4728_v61  ;;  %2100 = vmatprep.mubr.msk.f32.mxu1 %vm556_vm0, %v4148_v58  ;;  %v4289_v33 = vpop.f32.mrb[29].mxu0  ;;  %v4739_v61 = vld [vmem:[#allocation14_spill] sm:$0xff] }
 0x143   : > { %v956_v25 = vadd.f32 %v4130_v36, %v741_v41  ;;  %2132 = vmatprep.mubr.msk.f32.mxu0 %vm556_vm0, %v4729_v38  ;;  %v4730_v36 = vld [vmem:[#allocation5_spill] sm:$0xff] }
 0x144   : > { %v958_v6 = vadd.f32 %v4144_v56, %v743_v4  ;;  %v746_v42 = vpop.f32.mrb[16].mxu1 }
 0x145   : > { %1908 = vst [vmem:[%s4135_s14 + $0x118] sm:$0xff] %v956_v25  ;;  %v747_v52 = vadd.f32 %v746_v42, %v4108_v30  ;;  %v748_v55 = vpop.f32.mrb[17].mxu1  ;;  %1408 = vmatmul.mubr.f32.gmra.mrb[72].mxu1 %v4161_v0  ;;  %v4298_v8 = vpop.f32.mrb[30].mxu0  ;;  %v2735_v42 = vld [vmem:[%s2968_s27 + $0x210] sm:$0xff] }
 0x146   : > { %1909 = vst [vmem:[%s4135_s14 + $0x120] sm:$0xff] %v958_v6  ;;  %v749_v58 = vadd.f32 %v748_v55, %v4119_v46  ;;  %1837 = vmatmul.mubr.f32.gmra.mrb[86].mxu0 %v4730_v36  ;;  %2101 = vmatprep.mubr.msk.f32.mxu1 %vm556_vm0, %v4170_v24  ;;  %v4305_v56 = vpop.f32.mrb[31].mxu0  ;;  %v2736_v55 = vld [vmem:[%s2968_s27 + $0x238] sm:$0xff]  ;;  %v4741_v36 = vld [vmem:[#allocation16_spill] sm:$0xff] }
 0x147   : > { %v962_v50 = vadd.f32 %v4156_v31, %v747_v52  ;;  %2133 = vmatprep.mubr.msk.f32.mxu0 %vm556_vm0, %v4731_v2  ;;  %v4732_v31 = vld [vmem:[#allocation7_spill] sm:$0xff] }
 0x148   : > { %v964_v0 = vadd.f32 %v4166_v19, %v749_v58  ;;  %v752_v16 = vpop.f32.mrb[18].mxu1 }
 0x149   : > { %1913 = vst [vmem:[%s4135_s14 + $0x140] sm:$0xff] %v962_v50  ;;  %v753_v20 = vadd.f32 %v752_v16, %v4108_v30  ;;  %v754_v48 = vpop.f32.mrb[19].mxu1  ;;  %1414 = vmatmul.mubr.f32.gmra.mrb[74].mxu1 %v4183_v10  ;;  %v4314_v14 = vpop.f32.mrb[32].mxu0 }
 0x14a   : > { %1914 = vst [vmem:[%s4135_s14 + $0x148] sm:$0xff] %v964_v0  ;;  %v755_v24 = vadd.f32 %v754_v48, %v4119_v46  ;;  %1842 = vmatmul.mubr.f32.gmra.mrb[88].mxu0 %v4732_v31  ;;  %2102 = vmatprep.mubr.msk.f32.mxu1 %vm556_vm0, %v4192_v28  ;;  %v4321_v19 = vpop.f32.mrb[33].mxu0  ;;  %v2738_v31 = vld [vmem:[%s2968_s27 + $0x258] sm:$0xff] }
 0x14b   : > { %v968_v43 = vadd.f32 %v4178_v54, %v753_v20  ;;  %2134 = vmatprep.mubr.msk.f32.mxu0 %vm556_vm0, %v4733_v63  ;;  %v4734_v54 = vld [vmem:[#allocation9_spill] sm:$0xff]  ;;  %v2737_v20 = vld [vmem:[%s2968_s27 + $0x230] sm:$0xff] }
 0x14c   : > { %v970_v10 = vadd.f32 %v4188_v13, %v755_v24  ;;  %v758_v45 = vpop.f32.mrb[20].mxu1  ;;  %v4742_v24 = vld [vmem:[#allocation17_spill] sm:$0xff] }
 0x14d   : > { %1918 = vst [vmem:[%s4135_s14 + $0x168] sm:$0xff] %v968_v43  ;;  %v759_v18 = vadd.f32 %v758_v45, %v4108_v30  ;;  %v760_v7 = vpop.f32.mrb[21].mxu1  ;;  %1420 = vmatmul.mubr.f32.gmra.mrb[76].mxu1 %v4205_v29  ;;  %v4330_v44 = vpop.f32.mrb[34].mxu0 }
 0x14e   : > { %1919 = vst [vmem:[%s4135_s14 + $0x170] sm:$0xff] %v970_v10  ;;  %v761_v28 = vadd.f32 %v760_v7, %v4119_v46  ;;  %1847 = vmatmul.mubr.f32.gmra.mrb[90].mxu0 %v4734_v54  ;;  %2103 = vmatprep.mubr.msk.f32.mxu1 %vm556_vm0, %v4214_v59  ;;  %v4337_v13 = vpop.f32.mrb[35].mxu0  ;;  %v2739_v7 = vld [vmem:[%s2968_s27 + $0x250] sm:$0xff] }
 0x14f   : > { %v974_v27 = vadd.f32 %v4200_v5, %v759_v18  ;;  %2135 = vmatprep.mubr.msk.f32.mxu0 %vm556_vm0, %v4735_v21  ;;  %v4736_v5 = vld [vmem:[#allocation11_spill] sm:$0xff] }
 0x150   : > { %v976_v29 = vadd.f32 %v4210_v34, %v761_v28  ;;  %v764_v9 = vpop.f32.mrb[22].mxu1 }
 0x151   : > { %1923 = vst [vmem:[%s4135_s14 + $0x190] sm:$0xff] %v974_v27  ;;  %v765_v11 = vadd.f32 %v764_v9, %v4108_v30  ;;  %v766_v53 = vpop.f32.mrb[23].mxu1  ;;  %1426 = vmatmul.mubr.f32.gmra.mrb[78].mxu1 %v4227_v3  ;;  %v4346_v23 = vpop.f32.mrb[36].mxu0  ;;  %v2740_v27 = vld [vmem:[%s2968_s27 + $0x278] sm:$0xff] }
 0x152   : > { %1924 = vst [vmem:[%s4135_s14 + $0x198] sm:$0xff] %v976_v29  ;;  %v767_v59 = vadd.f32 %v766_v53, %v4119_v46  ;;  %1852 = vmatmul.mubr.f32.gmra.mrb[92].mxu0 %v4736_v5  ;;  %2104 = vmatprep.mubr.msk.f32.mxu1 %vm556_vm0, %v4236_v40  ;;  %v4353_v34 = vpop.f32.mrb[37].mxu0  ;;  %v4738_v40 = vld [vmem:[#allocation13_spill] sm:$0xff]  ;;  %v2741_v53 = vld [vmem:[%s2968_s27 + $0x270] sm:$0xff] }
 0x153   : > { %v980_v35 = vadd.f32 %v4222_v37, %v765_v11  ;;  %2136 = vmatprep.mubr.msk.f32.mxu0 %vm556_vm0, %v4737_v26 }
 0x154   : > { %v982_v3 = vadd.f32 %v4232_v22, %v767_v59  ;;  %v770_v32 = vpop.f32.mrb[24].mxu1 }
 0x155   : > { %1928 = vst [vmem:[%s4135_s14 + $0x1b8] sm:$0xff] %v980_v35  ;;  %v771_v39 = vadd.f32 %v770_v32, %v4108_v30  ;;  %v772_v41 = vpop.f32.mrb[25].mxu1  ;;  %1432 = vmatmul.mubr.f32.gmra.mrb[80].mxu1 %v4249_v15  ;;  %v4362_v57 = vpop.f32.mrb[38].mxu0  ;;  %v2742_v35 = vld [vmem:[%s2968_s27 + $0x298] sm:$0xff] }
 0x156   : > { %1929 = vst [vmem:[%s4135_s14 + $0x1c0] sm:$0xff] %v982_v3  ;;  %v773_v37 = vadd.f32 %v772_v41, %v4119_v46  ;;  %1857 = vmatmul.mubr.f32.gmra.mrb[94].mxu0 %v4738_v40  ;;  %2105 = vmatprep.mubr.msk.f32.mxu1 %vm556_vm0, %v4258_v17  ;;  %v4369_v22 = vpop.f32.mrb[39].mxu0  ;;  %v4740_v17 = vld [vmem:[#allocation15_spill] sm:$0xff]  ;;  %v2743_v41 = vld [vmem:[%s2968_s27 + $0x290] sm:$0xff] }
 0x157   : > { %v986_v4 = vadd.f32 %v4244_v47, %v771_v39  ;;  %2137 = vmatprep.mubr.msk.f32.mxu0 %vm556_vm0, %v4739_v61 }
 0x158   : > { %v988_v15 = vadd.f32 %v4254_v1, %v773_v37  ;;  %v776_v25 = vpop.f32.mrb[26].mxu1 }
 0x159   : > { %1933 = vst [vmem:[%s4135_s14 + $0x1e0] sm:$0xff] %v986_v4  ;;  %v777_v38 = vadd.f32 %v776_v25, %v4108_v30  ;;  %v778_v6 = vpop.f32.mrb[27].mxu1  ;;  %1438 = vmatmul.mubr.f32.gmra.mrb[82].mxu1 %v2735_v42  ;;  %v4378_v52 = vpop.f32.mrb[40].mxu0  ;;  %v2744_v4 = vld [vmem:[%s2968_s27 + $0x2b8] sm:$0xff] }
 0x15a   : > { %1934 = vst [vmem:[%s4135_s14 + $0x1e8] sm:$0xff] %v988_v15  ;;  %v779_v47 = vadd.f32 %v778_v6, %v4119_v46  ;;  %1862 = vmatmul.mubr.f32.gmra.mrb[96].mxu0 %v4740_v17  ;;  %2106 = vmatprep.mubr.msk.f32.mxu1 %vm556_vm0, %v2736_v55  ;;  %v4385_v1 = vpop.f32.mrb[41].mxu0  ;;  %v2745_v6 = vld [vmem:[%s2968_s27 + $0x2b0] sm:$0xff] }
 0x15b   : > { %v992_v58 = vadd.f32 %v4266_v60, %v777_v38  ;;  %2138 = vmatprep.mubr.msk.f32.mxu0 %vm556_vm0, %v4741_v36  ;;  %v2747_v36 = vld [vmem:[%s2968_s27 + $0x2d0] sm:$0xff] }
 0x15c   : > { %v994_v50 = vadd.f32 %v4273_v51, %v779_v47  ;;  %v782_v2 = vpop.f32.mrb[28].mxu1  ;;  %v2746_v47 = vld [vmem:[%s2968_s27 + $0x2d8] sm:$0xff] }
 0x15d   : > { %1938 = vst [vmem:[%s4135_s14 + $0x208] sm:$0xff] %v992_v58  ;;  %v783_v0 = vadd.f32 %v782_v2, %v4108_v30  ;;  %v784_v16 = vpop.f32.mrb[29].mxu1  ;;  %1444 = vmatmul.mubr.f32.gmra.mrb[84].mxu1 %v2737_v20  ;;  %v4394_v48 = vpop.f32.mrb[42].mxu0  ;;  %v2748_v2 = vld [vmem:[%s2968_s27 + $0x2f8] sm:$0xff] }
 0x15e   : > { %1939 = vst [vmem:[%s4135_s14 + $0x210] sm:$0xff] %v994_v50  ;;  %v785_v60 = vadd.f32 %v784_v16, %v4119_v46  ;;  %1867 = vmatmul.mubr.f32.gmra.mrb[98].mxu0 %v4742_v24  ;;  %2107 = vmatprep.mubr.msk.f32.mxu1 %vm556_vm0, %v2738_v31  ;;  %v4401_v51 = vpop.f32.mrb[43].mxu0  ;;  %v2750_v31 = vld [vmem:[%s2968_s27 + $0x318] sm:$0xff] }
 0x15f   : > { %v998_v43 = vadd.f32 %v4282_v12, %v783_v0 }
 0x160   : > { %v1000_v63 = vadd.f32 %v4289_v33, %v785_v60  ;;  %v788_v10 = vpop.f32.mrb[30].mxu1  ;;  %v2749_v60 = vld [vmem:[%s2968_s27 + $0x2f0] sm:$0xff] }
 0x161   : > { %1943 = vst [vmem:[%s4135_s14 + $0x230] sm:$0xff] %v998_v43  ;;  %v789_v45 = vadd.f32 %v788_v10, %v4108_v30  ;;  %v790_v18 = vpop.f32.mrb[31].mxu1  ;;  %1450 = vmatmul.mubr.f32.gmra.mrb[86].mxu1 %v2739_v7  ;;  %v4408_v28 = vpop.f32.mrb[44].mxu0 }
 0x162   : > { %1944 = vst [vmem:[%s4135_s14 + $0x238] sm:$0xff] %v1000_v63  ;;  %v791_v54 = vadd.f32 %v790_v18, %v4119_v46  ;;  %2108 = vmatprep.mubr.msk.f32.mxu1 %vm556_vm0, %v2740_v27  ;;  %v4414_v12 = vpop.f32.mrb[45].mxu0 }
 0x163   : > { %v1004_v33 = vadd.f32 %v4298_v8, %v789_v45  ;;  %v2751_v45 = vld [vmem:[%s2968_s27 + $0x310] sm:$0xff] }
 0x164   : > { %v1006_v21 = vadd.f32 %v4305_v56, %v791_v54  ;;  %v794_v29 = vpop.f32.mrb[32].mxu1 }
 0x165   : > { %1948 = vst [vmem:[%s4135_s14 + $0x258] sm:$0xff] %v1004_v33  ;;  %v795_v9 = vadd.f32 %v794_v29, %v4108_v30  ;;  %v796_v11 = vpop.f32.mrb[33].mxu1  ;;  %1456 = vmatmul.mubr.f32.gmra.mrb[88].mxu1 %v2741_v53  ;;  %v4421_v59 = vpop.f32.mrb[46].mxu0 }
 0x166   : > { %1949 = vst [vmem:[%s4135_s14 + $0x260] sm:$0xff] %v1006_v21  ;;  %v797_v5 = vadd.f32 %v796_v11, %v4119_v46  ;;  %2109 = vmatprep.mubr.msk.f32.mxu1 %vm556_vm0, %v2742_v35  ;;  %v4427_v8 = vpop.f32.mrb[47].mxu0 }
 0x167   : > { %v1010_v56 = vadd.f32 %v4314_v14, %v795_v9 }
 0x168   : > { %v1012_v26 = vadd.f32 %v4321_v19, %v797_v5  ;;  %v800_v3 = vpop.f32.mrb[34].mxu1 }
 0x169   : > { %1953 = vst [vmem:[%s4135_s14 + $0x280] sm:$0xff] %v1010_v56  ;;  %v801_v32 = vadd.f32 %v800_v3, %v4108_v30  ;;  %v802_v39 = vpop.f32.mrb[35].mxu1  ;;  %1462 = vmatmul.mubr.f32.gmra.mrb[90].mxu1 %v2743_v41  ;;  %v4434_v37 = vpop.f32.mrb[48].mxu0 }
 0x16a   : > { %1954 = vst [vmem:[%s4135_s14 + $0x288] sm:$0xff] %v1012_v26  ;;  %v803_v40 = vadd.f32 %v802_v39, %v4119_v46  ;;  %2110 = vmatprep.mubr.msk.f32.mxu1 %vm556_vm0, %v2744_v4  ;;  %v4440_v14 = vpop.f32.mrb[49].mxu0 }
 0x16b   : > { %v1016_v19 = vadd.f32 %v4330_v44, %v801_v32 }
 0x16c   : > { %v1018_v61 = vadd.f32 %v4337_v13, %v803_v40  ;;  %v806_v15 = vpop.f32.mrb[36].mxu1 }
 0x16d   : > { %1958 = vst [vmem:[%s4135_s14 + $0x2a8] sm:$0xff] %v1016_v19  ;;  %v807_v25 = vadd.f32 %v806_v15, %v4108_v30  ;;  %v808_v38 = vpop.f32.mrb[37].mxu1  ;;  %1468 = vmatmul.mubr.f32.gmra.mrb[92].mxu1 %v2745_v6 }
 0x16e   : > { %1959 = vst [vmem:[%s4135_s14 + $0x2b0] sm:$0xff] %v1018_v61  ;;  %v809_v42 = vadd.f32 %v808_v38, %v4119_v46  ;;  %2111 = vmatprep.mubr.msk.f32.mxu1 %vm556_vm0, %v2746_v47  ;;  %v541_v47 = vsub.s32 2, %v4070_v62 }
 0x16f   : > { %v1022_v44 = vadd.f32 %v4346_v23, %v807_v25 }
 0x170   : > { %v1024_v13 = vadd.f32 %v4353_v34, %v809_v42  ;;  %v812_v17 = vpop.f32.mrb[38].mxu1 }
 0x171   : > { %1963 = vst [vmem:[%s4135_s14 + $0x2d0] sm:$0xff] %v1022_v44  ;;  %v813_v55 = vadd.f32 %v812_v17, %v4108_v30  ;;  %v814_v58 = vpop.f32.mrb[39].mxu1  ;;  %1474 = vmatmul.mubr.f32.gmra.mrb[94].mxu1 %v2747_v36  ;;  %v545_v17 = vsub.s32 3, %v4070_v62 }
 0x172   : > { %1964 = vst [vmem:[%s4135_s14 + $0x2d8] sm:$0xff] %v1024_v13  ;;  %v815_v50 = vadd.f32 %v814_v58, %v4119_v46  ;;  %2112 = vmatprep.mubr.msk.f32.mxu1 %vm556_vm0, %v2748_v2  ;;  %v4523_v58 = vrot.slane %v4097_v49, %v541_v47 }
 0x173   : > { %v1028_v23 = vadd.f32 %v4362_v57, %v813_v55  ;;  %v4527_v2 = vrot.slane %v4097_v49, %v545_v17 }
 0x174   : > { %v1030_v34 = vadd.f32 %v4369_v22, %v815_v50  ;;  %v818_v0 = vpop.f32.mrb[40].mxu1 }
 0x175   : > { %1968 = vst [vmem:[%s4135_s14 + $0x2f8] sm:$0xff] %v1028_v23  ;;  %v819_v16 = vadd.f32 %v818_v0, %v4108_v30  ;;  %v820_v20 = vpop.f32.mrb[41].mxu1  ;;  %1480 = vmatmul.mubr.f32.gmra.mrb[96].mxu1 %v2749_v60 }
 0x176   : > { %1969 = vst [vmem:[%s4135_s14 + $0x300] sm:$0xff] %v1030_v34  ;;  %v821_v24 = vadd.f32 %v820_v20, %v4119_v46  ;;  %2113 = vmatprep.mubr.msk.f32.mxu1 %vm556_vm0, %v2750_v31 }
 0x177   : > { %v1034_v57 = vadd.f32 %v4378_v52, %v819_v16 }
 0x178   : > { %v1036_v22 = vadd.f32 %v4385_v1, %v821_v24  ;;  %v824_v43 = vpop.f32.mrb[42].mxu1 }
 0x179   : > { %1973 = vst [vmem:[%s4135_s14 + $0x320] sm:$0xff] %v1034_v57  ;;  %v825_v63 = vadd.f32 %v824_v43, %v4108_v30  ;;  %v826_v10 = vpop.f32.mrb[43].mxu1  ;;  %1486 = vmatmul.mubr.f32.gmra.mrb[98].mxu1 %v2751_v45 }
 0x17a   : > { %1974 = vst [vmem:[%s4135_s14 + $0x328] sm:$0xff] %v1036_v22  ;;  %v827_v18 = vadd.f32 %v826_v10, %v4119_v46 }
 0x17b   : > { %v1040_v7 = vadd.f32 %v4394_v48, %v825_v63 }
 0x17c   : > { %v1042_v54 = vadd.f32 %v4401_v51, %v827_v18  ;;  %v830_v52 = vpop.f32.mrb[44].mxu1 }
 0x17d   : > { %1978 = vst [vmem:[%s4135_s14 + $0x348] sm:$0xff] %v1040_v7  ;;  %v831_v1 = vadd.f32 %v830_v52, %v4108_v30  ;;  %v832_v27 = vpop.f32.mrb[45].mxu1 }
 0x17e   : > { %1979 = vst [vmem:[%s4135_s14 + $0x350] sm:$0xff] %v1042_v54  ;;  %v833_v33 = vadd.f32 %v832_v27, %v4119_v46 }
 0x17f   : > { %v1046_v21 = vadd.f32 %v4408_v28, %v831_v1 }
 0x180   : > { %v1048_v29 = vadd.f32 %v4414_v12, %v833_v33  ;;  %v836_v9 = vpop.f32.mrb[46].mxu1 }
 0x181   : > { %1983 = vst [vmem:[%s4135_s14 + $0x370] sm:$0xff] %v1046_v21  ;;  %v837_v48 = vadd.f32 %v836_v9, %v4108_v30  ;;  %v838_v51 = vpop.f32.mrb[47].mxu1 }
 0x182   : > { %1984 = vst [vmem:[%s4135_s14 + $0x378] sm:$0xff] %v1048_v29  ;;  %v839_v11 = vadd.f32 %v838_v51, %v4119_v46 }
 0x183   : > { %v1052_v53 = vadd.f32 %v4421_v59, %v837_v48  ;;  %v549_v59 = vsub.s32 4, %v4070_v62 }
 0x184   : > { %v1054_v5 = vadd.f32 %v4427_v8, %v839_v11  ;;  %v842_v35 = vpop.f32.mrb[48].mxu1 }
 0x185   : > { %1988 = vst [vmem:[%s4135_s14 + $0x398] sm:$0xff] %v1052_v53  ;;  %v843_v28 = vadd.f32 %v842_v35, %v4108_v30  ;;  %v844_v12 = vpop.f32.mrb[49].mxu1  ;;  %v4500_v8 = vrot.slane %v4097_v49, %v549_v59 }
 0x186   : > { %1989 = vst [vmem:[%s4135_s14 + $0x3a0] sm:$0xff] %v1054_v5  ;;  %v845_v56 = vadd.f32 %v844_v12, %v4119_v46 }
 0x187   : > { %v1058_v26 = vadd.f32 %v4434_v37, %v843_v28 }
 0x188   : > { %v1060_v3 = vadd.f32 %v4440_v14, %v845_v56 }
 0x189   : > { %1993 = vst [vmem:[%s4135_s14 + $0x3c0] sm:$0xff] %v1058_v26 }
 0x18a   : > { %1994 = vst [vmem:[%s4135_s14 + $0x3c8] sm:$0xff] %v1060_v3 }
 0x1d1   : > { %v1748_v32 = vpop.f32.mrb[50].mxu0 }
 0x1d2   : > { %v2567_v30 = vadd.f32 %v1748_v32, %v4500_v8  ;;  %v1750_v39 = vpop.f32.mrb[51].mxu0 }
 0x1d4   : > { %1877 = vst.msk [vmem:[%s4135_s14 + $0x20] sm:$0xff] %vm1876_vm1, %v2567_v30 }
 0x1d5   : > { %v1753_v46 = vpop.f32.mrb[52].mxu0 }
 0x1d6   : > { %v2568_v41 = vadd.f32 %v1753_v46, %v4500_v8  ;;  %v1755_v37 = vpop.f32.mrb[53].mxu0 }
 0x1d8   : > { %1882 = vst.msk [vmem:[%s4135_s14 + $0x48] sm:$0xff] %vm1876_vm1, %v2568_v41 }
 0x1d9   : > { %v1758_v40 = vpop.f32.mrb[54].mxu0 }
 0x1da   : > { %v2569_v4 = vadd.f32 %v1758_v40, %v4500_v8  ;;  %v1760_v14 = vpop.f32.mrb[55].mxu0 }
 0x1dc   : > { %1887 = vst.msk [vmem:[%s4135_s14 + $0x70] sm:$0xff] %vm1876_vm1, %v2569_v4 }
 0x1dd   : > { %v1763_v19 = vpop.f32.mrb[56].mxu0 }
 0x1de   : > { %v2570_v61 = vadd.f32 %v1763_v19, %v4500_v8  ;;  %v1765_v15 = vpop.f32.mrb[57].mxu0 }
 0x1e0   : > { %1892 = vst.msk [vmem:[%s4135_s14 + $0x98] sm:$0xff] %vm1876_vm1, %v2570_v61 }
 0x1e1   : > { %v1768_v25 = vpop.f32.mrb[58].mxu0 }
 0x1e2   : > { %v2571_v38 = vadd.f32 %v1768_v25, %v4500_v8  ;;  %v1770_v6 = vpop.f32.mrb[59].mxu0 }
 0x1e4   : > { %1897 = vst.msk [vmem:[%s4135_s14 + $0xc0] sm:$0xff] %vm1876_vm1, %v2571_v38 }
 0x1e5   : > { %v1773_v42 = vpop.f32.mrb[60].mxu0 }
 0x1e6   : > { %v2572_v44 = vadd.f32 %v1773_v42, %v4500_v8  ;;  %v1775_v13 = vpop.f32.mrb[61].mxu0 }
 0x1e8   : > { %1902 = vst.msk [vmem:[%s4135_s14 + $0xe8] sm:$0xff] %vm1876_vm1, %v2572_v44 }
 0x1e9   : > { %v1778_v55 = vpop.f32.mrb[62].mxu0 }
 0x1ea   : > { %v2573_v36 = vadd.f32 %v1778_v55, %v4500_v8  ;;  %v1780_v50 = vpop.f32.mrb[63].mxu0 }
 0x1ec   : > { %1907 = vst.msk [vmem:[%s4135_s14 + $0x110] sm:$0xff] %vm1876_vm1, %v2573_v36  ;;  %v1343_v23 = vpop.f32.mrb[50].mxu1 }
 0x1ed   : > { %v2517_v34 = vadd.f32 %v1343_v23, %v4523_v58  ;;  %v1783_v62 = vpop.f32.mrb[64].mxu0  ;;  %v1345_v0 = vpop.f32.mrb[51].mxu1 }
 0x1ee   : > { %v2574_v16 = vadd.f32 %v1783_v62, %v4500_v8  ;;  %v2518_v20 = vadd.f32 %v1345_v0, %v4527_v2  ;;  %v1785_v60 = vpop.f32.mrb[65].mxu0 }
 0x1ef   : > { %1874 = vst [vmem:[%s4135_s14 + $0x10] sm:$0xff] %v2517_v34 }
 0x1f0   : > { %1912 = vst.msk [vmem:[%s4135_s14 + $0x138] sm:$0xff] %vm1876_vm1, %v2574_v16  ;;  %1875 = vst [vmem:[%s4135_s14 + $0x18] sm:$0xff] %v2518_v20  ;;  %v1349_v49 = vpop.f32.mrb[52].mxu1 }
 0x1f1   : > { %v2519_v24 = vadd.f32 %v1349_v49, %v4523_v58  ;;  %v1788_v31 = vpop.f32.mrb[66].mxu0  ;;  %v1351_v57 = vpop.f32.mrb[53].mxu1 }
 0x1f2   : > { %v2575_v22 = vadd.f32 %v1788_v31, %v4500_v8  ;;  %v2520_v43 = vadd.f32 %v1351_v57, %v4527_v2  ;;  %v1790_v63 = vpop.f32.mrb[67].mxu0 }
 0x1f3   : > { %1880 = vst [vmem:[%s4135_s14 + $0x38] sm:$0xff] %v2519_v24 }
 0x1f4   : > { %1917 = vst.msk [vmem:[%s4135_s14 + $0x160] sm:$0xff] %vm1876_vm1, %v2575_v22  ;;  %1881 = vst [vmem:[%s4135_s14 + $0x40] sm:$0xff] %v2520_v43  ;;  %v1355_v10 = vpop.f32.mrb[54].mxu1 }
 0x1f5   : > { %v2521_v45 = vadd.f32 %v1355_v10, %v4523_v58  ;;  %v1793_v18 = vpop.f32.mrb[68].mxu0  ;;  %v1357_v7 = vpop.f32.mrb[55].mxu1 }
 0x1f6   : > { %v2576_v54 = vadd.f32 %v1793_v18, %v4500_v8  ;;  %v2522_v52 = vadd.f32 %v1357_v7, %v4527_v2  ;;  %v1795_v1 = vpop.f32.mrb[69].mxu0 }
 0x1f7   : > { %1885 = vst [vmem:[%s4135_s14 + $0x60] sm:$0xff] %v2521_v45 }
 0x1f8   : > { %1922 = vst.msk [vmem:[%s4135_s14 + $0x188] sm:$0xff] %vm1876_vm1, %v2576_v54  ;;  %1886 = vst [vmem:[%s4135_s14 + $0x68] sm:$0xff] %v2522_v52  ;;  %v1361_v27 = vpop.f32.mrb[56].mxu1 }
 0x1f9   : > { %v2523_v33 = vadd.f32 %v1361_v27, %v4523_v58  ;;  %v1798_v21 = vpop.f32.mrb[70].mxu0  ;;  %v1363_v29 = vpop.f32.mrb[57].mxu1 }
 0x1fa   : > { %v2577_v9 = vadd.f32 %v1798_v21, %v4500_v8  ;;  %v2524_v48 = vadd.f32 %v1363_v29, %v4527_v2  ;;  %v1800_v51 = vpop.f32.mrb[71].mxu0 }
 0x1fb   : > { %1890 = vst [vmem:[%s4135_s14 + $0x88] sm:$0xff] %v2523_v33 }
 0x1fc   : > { %1927 = vst.msk [vmem:[%s4135_s14 + $0x1b0] sm:$0xff] %vm1876_vm1, %v2577_v9  ;;  %1891 = vst [vmem:[%s4135_s14 + $0x90] sm:$0xff] %v2524_v48  ;;  %v1367_v11 = vpop.f32.mrb[58].mxu1 }
 0x1fd   : > { %v2525_v53 = vadd.f32 %v1367_v11, %v4523_v58  ;;  %v1803_v5 = vpop.f32.mrb[72].mxu0  ;;  %v1369_v35 = vpop.f32.mrb[59].mxu1 }
 0x1fe   : > { %v2578_v28 = vadd.f32 %v1803_v5, %v4500_v8  ;;  %v2526_v12 = vadd.f32 %v1369_v35, %v4527_v2  ;;  %v1805_v56 = vpop.f32.mrb[73].mxu0 }
 0x1ff   : > { %1895 = vst [vmem:[%s4135_s14 + $0xb0] sm:$0xff] %v2525_v53 }
 0x200   : > { %1932 = vst.msk [vmem:[%s4135_s14 + $0x1d8] sm:$0xff] %vm1876_vm1, %v2578_v28  ;;  %1896 = vst [vmem:[%s4135_s14 + $0xb8] sm:$0xff] %v2526_v12  ;;  %v1373_v26 = vpop.f32.mrb[60].mxu1 }
 0x201   : > { %v2527_v3 = vadd.f32 %v1373_v26, %v4523_v58  ;;  %v1808_v59 = vpop.f32.mrb[74].mxu0  ;;  %v1375_v32 = vpop.f32.mrb[61].mxu1 }
 0x202   : > { %v2579_v30 = vadd.f32 %v1808_v59, %v4500_v8  ;;  %v2528_v39 = vadd.f32 %v1375_v32, %v4527_v2  ;;  %v1810_v46 = vpop.f32.mrb[75].mxu0 }
 0x203   : > { %1900 = vst [vmem:[%s4135_s14 + $0xd8] sm:$0xff] %v2527_v3 }
 0x204   : > { %1937 = vst.msk [vmem:[%s4135_s14 + $0x200] sm:$0xff] %vm1876_vm1, %v2579_v30  ;;  %1901 = vst [vmem:[%s4135_s14 + $0xe0] sm:$0xff] %v2528_v39  ;;  %v1379_v41 = vpop.f32.mrb[62].mxu1 }
 0x205   : > { %v2529_v37 = vadd.f32 %v1379_v41, %v4523_v58  ;;  %v1813_v40 = vpop.f32.mrb[76].mxu0  ;;  %v1381_v4 = vpop.f32.mrb[63].mxu1 }
 0x206   : > { %v2580_v14 = vadd.f32 %v1813_v40, %v4500_v8  ;;  %v2530_v19 = vadd.f32 %v1381_v4, %v4527_v2  ;;  %v1815_v61 = vpop.f32.mrb[77].mxu0 }
 0x207   : > { %1905 = vst [vmem:[%s4135_s14 + $0x100] sm:$0xff] %v2529_v37 }
 0x208   : > { %1942 = vst.msk [vmem:[%s4135_s14 + $0x228] sm:$0xff] %vm1876_vm1, %v2580_v14  ;;  %1906 = vst [vmem:[%s4135_s14 + $0x108] sm:$0xff] %v2530_v19  ;;  %v1385_v15 = vpop.f32.mrb[64].mxu1 }
 0x209   : > { %v2531_v25 = vadd.f32 %v1385_v15, %v4523_v58  ;;  %v1818_v38 = vpop.f32.mrb[78].mxu0  ;;  %v1387_v6 = vpop.f32.mrb[65].mxu1 }
 0x20a   : > { %v2581_v42 = vadd.f32 %v1818_v38, %v4500_v8  ;;  %v2532_v47 = vadd.f32 %v1387_v6, %v4527_v2  ;;  %v1820_v44 = vpop.f32.mrb[79].mxu0 }
 0x20b   : > { %1910 = vst [vmem:[%s4135_s14 + $0x128] sm:$0xff] %v2531_v25 }
 0x20c   : > { %1947 = vst.msk [vmem:[%s4135_s14 + $0x250] sm:$0xff] %vm1876_vm1, %v2581_v42  ;;  %1911 = vst [vmem:[%s4135_s14 + $0x130] sm:$0xff] %v2532_v47  ;;  %v1391_v13 = vpop.f32.mrb[66].mxu1 }
 0x20d   : > { %v2533_v17 = vadd.f32 %v1391_v13, %v4523_v58  ;;  %v1823_v55 = vpop.f32.mrb[80].mxu0  ;;  %v1393_v36 = vpop.f32.mrb[67].mxu1 }
 0x20e   : > { %v2582_v50 = vadd.f32 %v1823_v55, %v4500_v8  ;;  %v2534_v23 = vadd.f32 %v1393_v36, %v4527_v2  ;;  %v1825_v34 = vpop.f32.mrb[81].mxu0 }
 0x20f   : > { %1915 = vst [vmem:[%s4135_s14 + $0x150] sm:$0xff] %v2533_v17 }
 0x210   : > { %1952 = vst.msk [vmem:[%s4135_s14 + $0x278] sm:$0xff] %vm1876_vm1, %v2582_v50  ;;  %1916 = vst [vmem:[%s4135_s14 + $0x158] sm:$0xff] %v2534_v23  ;;  %v1397_v62 = vpop.f32.mrb[68].mxu1 }
 0x211   : > { %v2535_v0 = vadd.f32 %v1397_v62, %v4523_v58  ;;  %v1828_v16 = vpop.f32.mrb[82].mxu0  ;;  %v1399_v20 = vpop.f32.mrb[69].mxu1 }
 0x212   : > { %v2583_v60 = vadd.f32 %v1828_v16, %v4500_v8  ;;  %v2536_v49 = vadd.f32 %v1399_v20, %v4527_v2  ;;  %v1830_v24 = vpop.f32.mrb[83].mxu0 }
 0x213   : > { %1920 = vst [vmem:[%s4135_s14 + $0x178] sm:$0xff] %v2535_v0 }
 0x214   : > { %1957 = vst.msk [vmem:[%s4135_s14 + $0x2a0] sm:$0xff] %vm1876_vm1, %v2583_v60  ;;  %1921 = vst [vmem:[%s4135_s14 + $0x180] sm:$0xff] %v2536_v49  ;;  %v1403_v31 = vpop.f32.mrb[70].mxu1 }
 0x215   : > { %v2537_v57 = vadd.f32 %v1403_v31, %v4523_v58  ;;  %v1833_v22 = vpop.f32.mrb[84].mxu0  ;;  %v1405_v43 = vpop.f32.mrb[71].mxu1 }
 0x216   : > { %v2584_v63 = vadd.f32 %v1833_v22, %v4500_v8  ;;  %v2538_v10 = vadd.f32 %v1405_v43, %v4527_v2  ;;  %v1835_v45 = vpop.f32.mrb[85].mxu0 }
 0x217   : > { %1925 = vst [vmem:[%s4135_s14 + $0x1a0] sm:$0xff] %v2537_v57 }
 0x218   : > { %1962 = vst.msk [vmem:[%s4135_s14 + $0x2c8] sm:$0xff] %vm1876_vm1, %v2584_v63  ;;  %1926 = vst [vmem:[%s4135_s14 + $0x1a8] sm:$0xff] %v2538_v10  ;;  %v1409_v18 = vpop.f32.mrb[72].mxu1 }
 0x219   : > { %v2539_v7 = vadd.f32 %v1409_v18, %v4523_v58  ;;  %v1838_v54 = vpop.f32.mrb[86].mxu0  ;;  %v1411_v52 = vpop.f32.mrb[73].mxu1 }
 0x21a   : > { %v2585_v1 = vadd.f32 %v1838_v54, %v4500_v8  ;;  %v2540_v27 = vadd.f32 %v1411_v52, %v4527_v2  ;;  %v1840_v33 = vpop.f32.mrb[87].mxu0 }
 0x21b   : > { %1930 = vst [vmem:[%s4135_s14 + $0x1c8] sm:$0xff] %v2539_v7 }
 0x21c   : > { %1967 = vst.msk [vmem:[%s4135_s14 + $0x2f0] sm:$0xff] %vm1876_vm1, %v2585_v1  ;;  %1931 = vst [vmem:[%s4135_s14 + $0x1d0] sm:$0xff] %v2540_v27  ;;  %v1415_v21 = vpop.f32.mrb[74].mxu1 }
 0x21d   : > { %v2541_v29 = vadd.f32 %v1415_v21, %v4523_v58  ;;  %v1843_v9 = vpop.f32.mrb[88].mxu0  ;;  %v1417_v48 = vpop.f32.mrb[75].mxu1 }
 0x21e   : > { %v2586_v51 = vadd.f32 %v1843_v9, %v4500_v8  ;;  %v2542_v11 = vadd.f32 %v1417_v48, %v4527_v2  ;;  %v1845_v53 = vpop.f32.mrb[89].mxu0 }
 0x21f   : > { %1935 = vst [vmem:[%s4135_s14 + $0x1f0] sm:$0xff] %v2541_v29 }
 0x220   : > { %1972 = vst.msk [vmem:[%s4135_s14 + $0x318] sm:$0xff] %vm1876_vm1, %v2586_v51  ;;  %1936 = vst [vmem:[%s4135_s14 + $0x1f8] sm:$0xff] %v2542_v11  ;;  %v1421_v5 = vpop.f32.mrb[76].mxu1 }
 0x221   : > { %v2543_v35 = vadd.f32 %v1421_v5, %v4523_v58  ;;  %v1848_v28 = vpop.f32.mrb[90].mxu0  ;;  %v1423_v12 = vpop.f32.mrb[77].mxu1 }
 0x222   : > { %v2587_v56 = vadd.f32 %v1848_v28, %v4500_v8  ;;  %v2544_v26 = vadd.f32 %v1423_v12, %v4527_v2  ;;  %v1850_v3 = vpop.f32.mrb[91].mxu0 }
 0x223   : > { %1940 = vst [vmem:[%s4135_s14 + $0x218] sm:$0xff] %v2543_v35 }
 0x224   : > { %1977 = vst.msk [vmem:[%s4135_s14 + $0x340] sm:$0xff] %vm1876_vm1, %v2587_v56  ;;  %1941 = vst [vmem:[%s4135_s14 + $0x220] sm:$0xff] %v2544_v26  ;;  %v1427_v59 = vpop.f32.mrb[78].mxu1 }
 0x225   : > { %v2545_v32 = vadd.f32 %v1427_v59, %v4523_v58  ;;  %v1853_v30 = vpop.f32.mrb[92].mxu0  ;;  %v1429_v39 = vpop.f32.mrb[79].mxu1 }
 0x226   : > { %v2588_v46 = vadd.f32 %v1853_v30, %v4500_v8  ;;  %v2546_v41 = vadd.f32 %v1429_v39, %v4527_v2  ;;  %v1855_v37 = vpop.f32.mrb[93].mxu0 }
 0x227   : > { %1945 = vst [vmem:[%s4135_s14 + $0x240] sm:$0xff] %v2545_v32 }
 0x228   : > { %1982 = vst.msk [vmem:[%s4135_s14 + $0x368] sm:$0xff] %vm1876_vm1, %v2588_v46  ;;  %1946 = vst [vmem:[%s4135_s14 + $0x248] sm:$0xff] %v2546_v41  ;;  %v1433_v40 = vpop.f32.mrb[80].mxu1 }
 0x229   : > { %v2547_v4 = vadd.f32 %v1433_v40, %v4523_v58  ;;  %v1858_v14 = vpop.f32.mrb[94].mxu0  ;;  %v1435_v19 = vpop.f32.mrb[81].mxu1 }
 0x22a   : > { %v2589_v61 = vadd.f32 %v1858_v14, %v4500_v8  ;;  %v2548_v15 = vadd.f32 %v1435_v19, %v4527_v2  ;;  %v1860_v25 = vpop.f32.mrb[95].mxu0 }
 0x22b   : > { %1950 = vst [vmem:[%s4135_s14 + $0x268] sm:$0xff] %v2547_v4 }
 0x22c   : > { %1987 = vst.msk [vmem:[%s4135_s14 + $0x390] sm:$0xff] %vm1876_vm1, %v2589_v61  ;;  %1951 = vst [vmem:[%s4135_s14 + $0x270] sm:$0xff] %v2548_v15  ;;  %v1439_v38 = vpop.f32.mrb[82].mxu1 }
 0x22d   : > { %v2549_v6 = vadd.f32 %v1439_v38, %v4523_v58  ;;  %v1863_v42 = vpop.f32.mrb[96].mxu0  ;;  %v1441_v47 = vpop.f32.mrb[83].mxu1 }
 0x22e   : > { %v2590_v44 = vadd.f32 %v1863_v42, %v4500_v8  ;;  %v2550_v13 = vadd.f32 %v1441_v47, %v4527_v2  ;;  %v1865_v17 = vpop.f32.mrb[97].mxu0 }
 0x22f   : > { %1955 = vst [vmem:[%s4135_s14 + $0x290] sm:$0xff] %v2549_v6 }
 0x230   : > { %1992 = vst.msk [vmem:[%s4135_s14 + $0x3b8] sm:$0xff] %vm1876_vm1, %v2590_v44  ;;  %1956 = vst [vmem:[%s4135_s14 + $0x298] sm:$0xff] %v2550_v13  ;;  %v1445_v55 = vpop.f32.mrb[84].mxu1 }
 0x231   : > { %v2551_v36 = vadd.f32 %v1445_v55, %v4523_v58  ;;  %v1868_v50 = vpop.f32.mrb[98].mxu0  ;;  %v1447_v23 = vpop.f32.mrb[85].mxu1 }
 0x232   : > { %v2591_v34 = vadd.f32 %v1868_v50, %v4500_v8  ;;  %v2552_v62 = vadd.f32 %v1447_v23, %v4527_v2  ;;  %v1870_v0 = vpop.f32.mrb[99].mxu0 }
 0x233   : > { %1960 = vst [vmem:[%s4135_s14 + $0x2b8] sm:$0xff] %v2551_v36 }
 0x234   : > { %1997 = vst.msk [vmem:[%s4135_s14 + $0x3e0] sm:$0xff] %vm1876_vm1, %v2591_v34  ;;  %1961 = vst [vmem:[%s4135_s14 + $0x2c0] sm:$0xff] %v2552_v62  ;;  %v1451_v16 = vpop.f32.mrb[86].mxu1 }
 0x235   : > { %v2553_v20 = vadd.f32 %v1451_v16, %v4523_v58  ;;  %v1453_v60 = vpop.f32.mrb[87].mxu1 }
 0x236   : > { %v2554_v49 = vadd.f32 %v1453_v60, %v4527_v2 }
 0x237   : > { %1965 = vst [vmem:[%s4135_s14 + $0x2e0] sm:$0xff] %v2553_v20 }
 0x238   : > { %1966 = vst [vmem:[%s4135_s14 + $0x2e8] sm:$0xff] %v2554_v49  ;;  %v1457_v8 = vpop.f32.mrb[88].mxu1 }
 0x239   : > { %v2555_v24 = vadd.f32 %v1457_v8, %v4523_v58  ;;  %v1459_v31 = vpop.f32.mrb[89].mxu1 }
 0x23a   : > { %v2556_v57 = vadd.f32 %v1459_v31, %v4527_v2 }
 0x23b   : > { %1970 = vst [vmem:[%s4135_s14 + $0x308] sm:$0xff] %v2555_v24 }
 0x23c   : > { %1971 = vst [vmem:[%s4135_s14 + $0x310] sm:$0xff] %v2556_v57  ;;  %v1463_v22 = vpop.f32.mrb[90].mxu1 }
 0x23d   : > { %v2557_v43 = vadd.f32 %v1463_v22, %v4523_v58  ;;  %v1465_v63 = vpop.f32.mrb[91].mxu1 }
 0x23e   : > { %v2558_v10 = vadd.f32 %v1465_v63, %v4527_v2 }
 0x23f   : > { %1975 = vst [vmem:[%s4135_s14 + $0x330] sm:$0xff] %v2557_v43 }
 0x240   : > { %1976 = vst [vmem:[%s4135_s14 + $0x338] sm:$0xff] %v2558_v10  ;;  %v1469_v45 = vpop.f32.mrb[92].mxu1 }
 0x241   : > { %v2559_v18 = vadd.f32 %v1469_v45, %v4523_v58  ;;  %v1471_v7 = vpop.f32.mrb[93].mxu1 }
 0x242   : > { %v2560_v54 = vadd.f32 %v1471_v7, %v4527_v2 }
 0x243   : > { %1980 = vst [vmem:[%s4135_s14 + $0x358] sm:$0xff] %v2559_v18 }
 0x244   : > { %1981 = vst [vmem:[%s4135_s14 + $0x360] sm:$0xff] %v2560_v54  ;;  %v1475_v52 = vpop.f32.mrb[94].mxu1 }
 0x245   : > { %v2561_v1 = vadd.f32 %v1475_v52, %v4523_v58  ;;  %v1477_v27 = vpop.f32.mrb[95].mxu1 }
 0x246   : > { %v2562_v33 = vadd.f32 %v1477_v27, %v4527_v2 }
 0x247   : > { %1985 = vst [vmem:[%s4135_s14 + $0x380] sm:$0xff] %v2561_v1 }
 0x248   : > { %1986 = vst [vmem:[%s4135_s14 + $0x388] sm:$0xff] %v2562_v33  ;;  %v1481_v21 = vpop.f32.mrb[96].mxu1 }
 0x249   : > { %v2563_v29 = vadd.f32 %v1481_v21, %v4523_v58  ;;  %v1483_v9 = vpop.f32.mrb[97].mxu1 }
 0x24a   : > { %v2564_v48 = vadd.f32 %v1483_v9, %v4527_v2 }
 0x24b   : > { %1990 = vst [vmem:[%s4135_s14 + $0x3a8] sm:$0xff] %v2563_v29 }
 0x24c   : > { %1991 = vst [vmem:[%s4135_s14 + $0x3b0] sm:$0xff] %v2564_v48  ;;  %v1487_v51 = vpop.f32.mrb[98].mxu1 }
 0x24d   : > { %v2565_v11 = vadd.f32 %v1487_v51, %v4523_v58  ;;  %v1489_v53 = vpop.f32.mrb[99].mxu1 }
 0x24e   : > { %v2566_v5 = vadd.f32 %v1489_v53, %v4527_v2 }
 0x24f   : > { %1995 = vst [vmem:[%s4135_s14 + $0x3d0] sm:$0xff] %v2565_v11 }
 0x250   : > { %1996 = vst [vmem:[%s4135_s14 + $0x3d8] sm:$0xff] %v2566_v5 }
 0x251 PF: > { %s13_s12 = sadd.s32 1, %s2758_s12  }
 0x252   : > { %p10_p4 = scmp.ge.s32.totalorder %s13_s12, 4  }
 0x254   :  { %12 = sbr.rel (!%p10_p4) target bundleno = 1 (0x1), region = 62 }

// kernel: forward.10
= control target key start
LH: loop header
LB: loop body
LE: loop exit
PB: predicated region body
PF: predicated region fallthrough
CT: control target
= control target key end

     0   :  { %vm15_vm0 = vcmask 588800   ;;  %v797_v0 = vmov 0.0   ;;  %s819_s12 = smov 0   ;;  %s1319_s0 = inlined_call_operand.vmem [shape: f32[50,3,8,200], index: 0, kind: input, shape index: {}]   ;;  %s1320_s1 = inlined_call_operand.vmem [shape: f32[3,200,200], index: 1, kind: input, shape index: {}]   ;;  %s1321_s2 = inlined_call_operand.vmem [shape: f32[3,1,200], index: 2, kind: input, shape index: {}]   ;;  %s1322_s3 = inlined_call_operand.vmem [shape: f32[50,8,200], index: 3, kind: output, shape index: {}]  }
   0x1   :  { %14 = vst [vmem:[#allocation2] sm:$0xff] %v797_v0  ;;  %16 = vst.msk [vmem:[#allocation2 + $0x8] sm:$0xff] %vm15_vm0, %v797_v0 }
   0x2 LB: > { %v35_v1 = vld [vmem:[%s1320_s1 + $0x8] sm:$0xff]  ;;  %v37_v2 = vld [vmem:[%s1320_s1 + $0x18] sm:$0xff]  ;;  %v34_v3 = vld [vmem:[%s1320_s1] sm:$0xff]  ;;  %s614_s29 = smul.u32 48, %s795_s12  ;;  %s615_s10 = sshll.u32 %s795_s12, 4  ;;  %s795_s12 = sphi %s819_s12, %s22_s12  }
   0x3   : > { %v616_v4 = vpack.c.bf16 %v37_v2, %v35_v1  ;;  %v36_v5 = vld [vmem:[%s1320_s1 + $0x10] sm:$0xff]  ;;  %v39_v6 = vld [vmem:[%s1320_s1 + $0x28] sm:$0xff]  ;;  %v41_v7 = vld [vmem:[%s1320_s1 + $0x38] sm:$0xff]  ;;  %s486_s14 = scalar_lea.vmem %s1322_s3, %s615_s10  ;;  %s22_s12 = sadd.s32 1, %s795_s12  }
   0x4   : > { %v618_v8 = vpack.c.bf16 %v36_v5, %v34_v3  ;;  %v620_v9 = vpack.c.bf16 %v41_v7, %v39_v6  ;;  %v38_v10 = vld [vmem:[%s1320_s1 + $0x20] sm:$0xff]  ;;  %v40_v11 = vld [vmem:[%s1320_s1 + $0x30] sm:$0xff]  ;;  %v43_v12 = vld [vmem:[%s1320_s1 + $0x48] sm:$0xff]  ;;  %s1294_s5 = scalar_lea.vmem %s1319_s0, %s614_s29  ;;  %p19_p0 = scmp.ge.s32.totalorder %s22_s12, 50  }
   0x5   : > { %617 = vmatprep.subr.bf16.mxu0 %v616_v4  ;;  %v45_v13 = vld [vmem:[%s1320_s1 + $0x58] sm:$0xff]  ;;  %v622_v14 = vpack.c.bf16 %v40_v11, %v38_v10  ;;  %v42_v16 = vld [vmem:[%s1320_s1 + $0x40] sm:$0xff]  ;;  %v44_v17 = vld [vmem:[%s1320_s1 + $0x50] sm:$0xff] }
   0x6   : > { %619 = vmatpush1.bf16.msra.mxu0 %v618_v8  ;;  %v624_v15 = vpack.c.bf16 %v45_v13, %v43_v12  ;;  %v47_v18 = vld [vmem:[%s1320_s1 + $0x68] sm:$0xff]  ;;  %v49_v19 = vld [vmem:[%s1320_s1 + $0x78] sm:$0xff]  ;;  %v626_v20 = vpack.c.bf16 %v44_v17, %v42_v16  ;;  %v46_v22 = vld [vmem:[%s1320_s1 + $0x60] sm:$0xff] }
   0x7   : > { %621 = vmatprep.subr.bf16.mxu0 %v620_v9  ;;  %v628_v21 = vpack.c.bf16 %v49_v19, %v47_v18  ;;  %v48_v23 = vld [vmem:[%s1320_s1 + $0x70] sm:$0xff]  ;;  %v51_v24 = vld [vmem:[%s1320_s1 + $0x88] sm:$0xff]  ;;  %v53_v25 = vld [vmem:[%s1320_s1 + $0x98] sm:$0xff] }
   0x8   : > { %v630_v26 = vpack.c.bf16 %v48_v23, %v46_v22  ;;  %v505_v27 = vld [vmem:[%s1320_s1 + $0x198] sm:$0xff]  ;;  %v507_v28 = vld [vmem:[%s1320_s1 + $0x1a8] sm:$0xff]  ;;  %v504_v29 = vld [vmem:[%s1320_s1 + $0x190] sm:$0xff]  ;;  %v632_v30 = vpack.c.bf16 %v53_v25, %v51_v24 }
   0x9   : > { %v50_v31 = vld [vmem:[%s1320_s1 + $0x80] sm:$0xff]  ;;  %v52_v32 = vld [vmem:[%s1320_s1 + $0x90] sm:$0xff]  ;;  %v664_v33 = vpack.c.bf16 %v507_v28, %v505_v27  ;;  %v55_v35 = vld [vmem:[%s1320_s1 + $0xa8] sm:$0xff] }
   0xa   : > { %623 = vmatpush1.bf16.msra.mxu0 %v622_v14  ;;  %v506_v34 = vld [vmem:[%s1320_s1 + $0x1a0] sm:$0xff]  ;;  %v57_v36 = vld [vmem:[%s1320_s1 + $0xb8] sm:$0xff]  ;;  %v511_v39 = vld [vmem:[%s1320_s1 + $0x1c8] sm:$0xff]  ;;  %v634_v42 = vpack.c.bf16 %v52_v32, %v50_v31 }
   0xb   : > { %625 = vmatprep.subr.bf16.mxu0 %v624_v15  ;;  %v666_v37 = vpack.c.bf16 %v506_v34, %v504_v29  ;;  %v509_v38 = vld [vmem:[%s1320_s1 + $0x1b8] sm:$0xff]  ;;  %665 = vmatprep.subr.bf16.mxu1 %v664_v33  ;;  %v508_v40 = vld [vmem:[%s1320_s1 + $0x1b0] sm:$0xff]  ;;  %v510_v41 = vld [vmem:[%s1320_s1 + $0x1c0] sm:$0xff]  ;;  %v636_v47 = vpack.c.bf16 %v57_v36, %v55_v35 }
   0xc   : > { %v54_v43 = vld [vmem:[%s1320_s1 + $0xa0] sm:$0xff]  ;;  %v56_v44 = vld [vmem:[%s1320_s1 + $0xb0] sm:$0xff]  ;;  %v668_v45 = vpack.c.bf16 %v511_v39, %v509_v38  ;;  %v670_v46 = vpack.c.bf16 %v510_v41, %v508_v40  ;;  %v59_v48 = vld [vmem:[%s1320_s1 + $0xc8] sm:$0xff] }
   0xd   : > { %667 = vmatpush1.bf16.msra.mxu1 %v666_v37  ;;  %v513_v49 = vld [vmem:[%s1320_s1 + $0x1d8] sm:$0xff]  ;;  %v515_v50 = vld [vmem:[%s1320_s1 + $0x1e8] sm:$0xff]  ;;  %v512_v53 = vld [vmem:[%s1320_s1 + $0x1d0] sm:$0xff]  ;;  %v638_v56 = vpack.c.bf16 %v56_v44, %v54_v43 }
   0xe   : > { %627 = vmatpush1.bf16.msra.mxu0 %v626_v20  ;;  %v61_v51 = vld [vmem:[%s1320_s1 + $0xd8] sm:$0xff]  ;;  %669 = vmatprep.subr.bf16.mxu1 %v668_v45  ;;  %v672_v52 = vpack.c.bf16 %v515_v50, %v513_v49  ;;  %v514_v54 = vld [vmem:[%s1320_s1 + $0x1e0] sm:$0xff]  ;;  %v60_v57 = vld [vmem:[%s1320_s1 + $0xd0] sm:$0xff] }
   0xf   : > { %629 = vmatprep.subr.bf16.mxu0 %v628_v21  ;;  %v58_v55 = vld [vmem:[%s1320_s1 + $0xc0] sm:$0xff]  ;;  %v674_v58 = vpack.c.bf16 %v514_v54, %v512_v53  ;;  %v517_v59 = vld [vmem:[%s1320_s1 + $0x1f8] sm:$0xff]  ;;  %v519_v60 = vld [vmem:[%s1320_s1 + $0x208] sm:$0xff]  ;;  %v640_v61 = vpack.c.bf16 %v61_v51, %v59_v48 }
  0x10   : > { %v63_v62 = vld [vmem:[%s1320_s1 + $0xe8] sm:$0xff]  ;;  %v676_v63 = vpack.c.bf16 %v519_v60, %v517_v59  ;;  %v516_v0 = vld [vmem:[%s1320_s1 + $0x1f0] sm:$0xff]  ;;  %v518_v1 = vld [vmem:[%s1320_s1 + $0x200] sm:$0xff]  ;;  %v642_v6 = vpack.c.bf16 %v60_v57, %v58_v55 }
  0x11   : > { %671 = vmatpush1.bf16.msra.mxu1 %v670_v46  ;;  %v65_v2 = vld [vmem:[%s1320_s1 + $0xf8] sm:$0xff]  ;;  %v962_v3 = vld [vmem:[#allocation2 + $0x8] sm:$0xff]  ;;  %v62_v7 = vld [vmem:[%s1320_s1 + $0xe0] sm:$0xff]  ;;  %v678_v9 = vpack.c.bf16 %v518_v1, %v516_v0 }
  0x12   : > { %631 = vmatpush1.bf16.msra.mxu0 %v630_v26  ;;  %673 = vmatprep.subr.bf16.mxu1 %v672_v52  ;;  %v521_v4 = vld [vmem:[%s1320_s1 + $0x218] sm:$0xff]  ;;  %v523_v5 = vld [vmem:[%s1320_s1 + $0x228] sm:$0xff]  ;;  %v64_v8 = vld [vmem:[%s1320_s1 + $0xf0] sm:$0xff]  ;;  %v644_v10 = vpack.c.bf16 %v65_v2, %v63_v62 }
  0x13   : > { %633 = vmatprep.subr.bf16.mxu0 %v632_v30  ;;  %503 = vmatprep.mubr.msk.f32.mxu0 %vm15_vm0, %v962_v3  ;;  %v67_v11 = vld [vmem:[%s1320_s1 + $0x108] sm:$0xff]  ;;  %v680_v12 = vpack.c.bf16 %v523_v5, %v521_v4  ;;  %v520_v13 = vld [vmem:[%s1320_s1 + $0x210] sm:$0xff]  ;;  %v522_v14 = vld [vmem:[%s1320_s1 + $0x220] sm:$0xff]  ;;  %v646_v18 = vpack.c.bf16 %v64_v8, %v62_v7 }
  0x14   : > { %555 = vmatprep.mubr.msk.f32.mxu1 %vm15_vm0, %v962_v3  ;;  %v69_v15 = vld [vmem:[%s1320_s1 + $0x118] sm:$0xff]  ;;  %v527_v17 = vld [vmem:[%s1320_s1 + $0x248] sm:$0xff]  ;;  %v66_v19 = vld [vmem:[%s1320_s1 + $0x100] sm:$0xff]  ;;  %v682_v21 = vpack.c.bf16 %v522_v14, %v520_v13 }
  0x15   : > { %675 = vmatpush1.bf16.msra.mxu1 %v674_v58  ;;  %v525_v16 = vld [vmem:[%s1320_s1 + $0x238] sm:$0xff]  ;;  %v68_v20 = vld [vmem:[%s1320_s1 + $0x110] sm:$0xff]  ;;  %v648_v22 = vpack.c.bf16 %v69_v15, %v67_v11  ;;  %v71_v23 = vld [vmem:[%s1320_s1 + $0x128] sm:$0xff] }
  0x16   : > { %635 = vmatpush1.bf16.msra.mxu0 %v634_v42  ;;  %677 = vmatprep.subr.bf16.mxu1 %v676_v63  ;;  %v684_v24 = vpack.c.bf16 %v527_v17, %v525_v16  ;;  %v524_v25 = vld [vmem:[%s1320_s1 + $0x230] sm:$0xff]  ;;  %v526_v26 = vld [vmem:[%s1320_s1 + $0x240] sm:$0xff]  ;;  %v73_v27 = vld [vmem:[%s1320_s1 + $0x138] sm:$0xff]  ;;  %v650_v30 = vpack.c.bf16 %v68_v20, %v66_v19 }
  0x17   : > { %637 = vmatprep.subr.bf16.mxu0 %v636_v47  ;;  %v529_v28 = vld [vmem:[%s1320_s1 + $0x258] sm:$0xff]  ;;  %v531_v29 = vld [vmem:[%s1320_s1 + $0x268] sm:$0xff]  ;;  %v70_v31 = vld [vmem:[%s1320_s1 + $0x120] sm:$0xff]  ;;  %v686_v33 = vpack.c.bf16 %v526_v26, %v524_v25  ;;  %v652_v34 = vpack.c.bf16 %v73_v27, %v71_v23 }
  0x18   : > { %v72_v32 = vld [vmem:[%s1320_s1 + $0x130] sm:$0xff]  ;;  %v75_v35 = vld [vmem:[%s1320_s1 + $0x148] sm:$0xff]  ;;  %v688_v36 = vpack.c.bf16 %v531_v29, %v529_v28  ;;  %v530_v38 = vld [vmem:[%s1320_s1 + $0x260] sm:$0xff] }
  0x19   : > { %679 = vmatpush1.bf16.msra.mxu1 %v678_v9  ;;  %v528_v37 = vld [vmem:[%s1320_s1 + $0x250] sm:$0xff]  ;;  %v77_v39 = vld [vmem:[%s1320_s1 + $0x158] sm:$0xff]  ;;  %v535_v41 = vld [vmem:[%s1320_s1 + $0x288] sm:$0xff]  ;;  %v654_v42 = vpack.c.bf16 %v72_v32, %v70_v31 }
  0x1a   : > { %639 = vmatpush1.bf16.msra.mxu0 %v638_v56  ;;  %681 = vmatprep.subr.bf16.mxu1 %v680_v12  ;;  %v533_v40 = vld [vmem:[%s1320_s1 + $0x278] sm:$0xff]  ;;  %v74_v43 = vld [vmem:[%s1320_s1 + $0x140] sm:$0xff]  ;;  %v76_v44 = vld [vmem:[%s1320_s1 + $0x150] sm:$0xff]  ;;  %v690_v45 = vpack.c.bf16 %v530_v38, %v528_v37  ;;  %v656_v46 = vpack.c.bf16 %v77_v39, %v75_v35 }
  0x1b   : > { %641 = vmatprep.subr.bf16.mxu0 %v640_v61  ;;  %v79_v47 = vld [vmem:[%s1320_s1 + $0x168] sm:$0xff]  ;;  %v692_v48 = vpack.c.bf16 %v535_v41, %v533_v40  ;;  %v532_v49 = vld [vmem:[%s1320_s1 + $0x270] sm:$0xff]  ;;  %v534_v50 = vld [vmem:[%s1320_s1 + $0x280] sm:$0xff]  ;;  %v658_v54 = vpack.c.bf16 %v76_v44, %v74_v43 }
  0x1c   : > { %v81_v51 = vld [vmem:[%s1320_s1 + $0x178] sm:$0xff]  ;;  %v539_v53 = vld [vmem:[%s1320_s1 + $0x2a8] sm:$0xff]  ;;  %v78_v55 = vld [vmem:[%s1320_s1 + $0x160] sm:$0xff]  ;;  %v694_v56 = vpack.c.bf16 %v534_v50, %v532_v49 }
  0x1d   : > { %683 = vmatpush1.bf16.msra.mxu1 %v682_v21  ;;  %v537_v52 = vld [vmem:[%s1320_s1 + $0x298] sm:$0xff]  ;;  %v660_v57 = vpack.c.bf16 %v81_v51, %v79_v47  ;;  %v80_v58 = vld [vmem:[%s1320_s1 + $0x170] sm:$0xff]  ;;  %v538_v61 = vld [vmem:[%s1320_s1 + $0x2a0] sm:$0xff] }
  0x1e   : > { %643 = vmatpush1.bf16.msra.mxu0 %v642_v6  ;;  %685 = vmatprep.subr.bf16.mxu1 %v684_v24  ;;  %v696_v59 = vpack.c.bf16 %v539_v53, %v537_v52  ;;  %v536_v60 = vld [vmem:[%s1320_s1 + $0x290] sm:$0xff]  ;;  %v541_v62 = vld [vmem:[%s1320_s1 + $0x2b8] sm:$0xff]  ;;  %v543_v63 = vld [vmem:[%s1320_s1 + $0x2c8] sm:$0xff]  ;;  %v662_v0 = vpack.c.bf16 %v80_v58, %v78_v55 }
  0x1f   : > { %645 = vmatprep.subr.bf16.mxu0 %v644_v10  ;;  %v698_v1 = vpack.c.bf16 %v538_v61, %v536_v60  ;;  %v83_v2 = vld [vmem:[%s1320_s1 + $0x188] sm:$0xff]  ;;  %v700_v4 = vpack.c.bf16 %v543_v63, %v541_v62  ;;  %v540_v5 = vld [vmem:[%s1320_s1 + $0x2b0] sm:$0xff]  ;;  %v542_v6 = vld [vmem:[%s1320_s1 + $0x2c0] sm:$0xff] }
  0x20   : > { %v557_v7 = vld [vmem:[%s1320_s1 + $0x328] sm:$0xff]  ;;  %v559_v8 = vld [vmem:[%s1320_s1 + $0x338] sm:$0xff]  ;;  %v556_v9 = vld [vmem:[%s1320_s1 + $0x320] sm:$0xff]  ;;  %v702_v15 = vpack.c.bf16 %v542_v6, %v540_v5 }
  0x21   : > { %687 = vmatpush1.bf16.msra.mxu1 %v686_v33  ;;  %v558_v10 = vld [vmem:[%s1320_s1 + $0x330] sm:$0xff]  ;;  %v545_v11 = vld [vmem:[%s1320_s1 + $0x2d8] sm:$0xff]  ;;  %v547_v12 = vld [vmem:[%s1320_s1 + $0x2e8] sm:$0xff]  ;;  %v712_v17 = vpack.c.bf16 %v559_v8, %v557_v7 }
  0x22   : > { %647 = vmatpush1.bf16.msra.mxu0 %v646_v18  ;;  %689 = vmatprep.subr.bf16.mxu1 %v688_v36  ;;  %v561_v13 = vld [vmem:[%s1320_s1 + $0x348] sm:$0xff]  ;;  %v563_v14 = vld [vmem:[%s1320_s1 + $0x358] sm:$0xff]  ;;  %v82_v16 = vld [vmem:[%s1320_s1 + $0x180] sm:$0xff]  ;;  %v714_v21 = vpack.c.bf16 %v558_v10, %v556_v9 }
  0x23   : > { %649 = vmatprep.subr.bf16.mxu0 %v648_v22  ;;  %v544_v18 = vld [vmem:[%s1320_s1 + $0x2d0] sm:$0xff]  ;;  %v546_v19 = vld [vmem:[%s1320_s1 + $0x2e0] sm:$0xff]  ;;  %v704_v22 = vpack.c.bf16 %v547_v12, %v545_v11  ;;  %v549_v23 = vld [vmem:[%s1320_s1 + $0x2f8] sm:$0xff]  ;;  %v716_v25 = vpack.c.bf16 %v563_v14, %v561_v13 }
  0x24   : > { %v1130_v20 = vld [vmem:[#allocation2] sm:$0xff]  ;;  %v551_v24 = vld [vmem:[%s1320_s1 + $0x308] sm:$0xff]  ;;  %v562_v27 = vld [vmem:[%s1320_s1 + $0x350] sm:$0xff] }
  0x25   : > { %691 = vmatpush1.bf16.msra.mxu1 %v690_v45  ;;  %v560_v26 = vld [vmem:[%s1320_s1 + $0x340] sm:$0xff]  ;;  %v565_v28 = vld [vmem:[%s1320_s1 + $0x368] sm:$0xff]  ;;  %v567_v29 = vld [vmem:[%s1320_s1 + $0x378] sm:$0xff]  ;;  %v708_v31 = vpack.c.bf16 %v551_v24, %v549_v23 }
  0x26   : > { %651 = vmatpush1.bf16.msra.mxu0 %v650_v30  ;;  %693 = vmatprep.subr.bf16.mxu1 %v692_v48  ;;  %v706_v30 = vpack.c.bf16 %v546_v19, %v544_v18  ;;  %v548_v32 = vld [vmem:[%s1320_s1 + $0x2f0] sm:$0xff]  ;;  %v550_v33 = vld [vmem:[%s1320_s1 + $0x300] sm:$0xff]  ;;  %v720_v35 = vpack.c.bf16 %v567_v29, %v565_v28  ;;  %v569_v38 = vld [vmem:[%s1320_s1 + $0x388] sm:$0xff] }
  0x27   : > { %653 = vmatprep.subr.bf16.mxu0 %v652_v34  ;;  %v718_v34 = vpack.c.bf16 %v562_v27, %v560_v26  ;;  %v564_v36 = vld [vmem:[%s1320_s1 + $0x360] sm:$0xff]  ;;  %v566_v37 = vld [vmem:[%s1320_s1 + $0x370] sm:$0xff]  ;;  %v571_v39 = vld [vmem:[%s1320_s1 + $0x398] sm:$0xff]  ;;  %v710_v40 = vpack.c.bf16 %v550_v33, %v548_v32 }
  0x28   : > { %v722_v41 = vpack.c.bf16 %v566_v37, %v564_v36  ;;  %v724_v43 = vpack.c.bf16 %v571_v39, %v569_v38  ;;  %v568_v44 = vld [vmem:[%s1320_s1 + $0x380] sm:$0xff]  ;;  %v570_v45 = vld [vmem:[%s1320_s1 + $0x390] sm:$0xff]  ;;  %v575_v47 = vld [vmem:[%s1320_s1 + $0x3b8] sm:$0xff]  ;;  %v86_v36 = vlaneseq }
  0x29   : > { %695 = vmatpush1.bf16.msra.mxu1 %v694_v56  ;;  %v552_v48 = vld [vmem:[%s1320_s1 + $0x310] sm:$0xff]  ;;  %v726_v49 = vpack.c.bf16 %v570_v45, %v568_v44  ;;  %v572_v51 = vld [vmem:[%s1320_s1 + $0x3a0] sm:$0xff]  ;;  %v577_v53 = vld [vmem:[%s1320_s1 + $0x3c8] sm:$0xff] }
  0x2a   : > { %655 = vmatpush1.bf16.msra.mxu0 %v654_v42  ;;  %697 = vmatprep.subr.bf16.mxu1 %v696_v59  ;;  %v553_v42 = vld [vmem:[%s1320_s1 + $0x318] sm:$0xff]  ;;  %v574_v52 = vld [vmem:[%s1320_s1 + $0x3b0] sm:$0xff]  ;;  %v581_v59 = vld [vmem:[%s1320_s1 + $0x3e8] sm:$0xff]  ;;  %v87_v38 = vshrl.u32 %v86_v36, 7 }
  0x2b   : > { %657 = vmatprep.subr.bf16.mxu0 %v656_v46  ;;  %v573_v46 = vld [vmem:[%s1320_s1 + $0x3a8] sm:$0xff]  ;;  %v730_v55 = vpack.c.bf16 %v574_v52, %v572_v51  ;;  %v578_v58 = vld [vmem:[%s1320_s1 + $0x3d0] sm:$0xff]  ;;  %v583_v60 = vld [vmem:[%s1320_s1 + $0x3f8] sm:$0xff] }
  0x2c   : > { %v728_v50 = vpack.c.bf16 %v575_v47, %v573_v46  ;;  %v736_v62 = vpack.c.bf16 %v583_v60, %v581_v59  ;;  %v580_v63 = vld [vmem:[%s1320_s1 + $0x3e0] sm:$0xff]  ;;  %v586_v7 = vld [vmem:[%s1320_s1 + $0x410] sm:$0xff]  ;;  %v589_v8 = vld [vmem:[%s1320_s1 + $0x428] sm:$0xff] }
  0x2d   : > { %699 = vmatpush1.bf16.msra.mxu1 %v698_v1  ;;  %v585_v1 = vld [vmem:[%s1320_s1 + $0x408] sm:$0xff]  ;;  %v584_v6 = vld [vmem:[%s1320_s1 + $0x400] sm:$0xff]  ;;  %v591_v9 = vld [vmem:[%s1320_s1 + $0x438] sm:$0xff] }
  0x2e   : > { %659 = vmatpush1.bf16.msra.mxu0 %v658_v54  ;;  %701 = vmatprep.subr.bf16.mxu1 %v700_v4  ;;  %v579_v54 = vld [vmem:[%s1320_s1 + $0x3d8] sm:$0xff]  ;;  %v742_v10 = vpack.c.bf16 %v586_v7, %v584_v6  ;;  %v744_v11 = vpack.c.bf16 %v591_v9, %v589_v8  ;;  %v588_v12 = vld [vmem:[%s1320_s1 + $0x420] sm:$0xff]  ;;  %v590_v13 = vld [vmem:[%s1320_s1 + $0x430] sm:$0xff] }
  0x2f   : > { %661 = vmatprep.subr.bf16.mxu0 %v660_v57  ;;  %v732_v56 = vpack.c.bf16 %v579_v54, %v577_v53  ;;  %v576_v57 = vld [vmem:[%s1320_s1 + $0x3c0] sm:$0xff]  ;;  %v593_v14 = vld [vmem:[%s1320_s1 + $0x448] sm:$0xff]  ;;  %v594_v19 = vld [vmem:[%s1320_s1 + $0x450] sm:$0xff] }
  0x30   : > { %v734_v61 = vpack.c.bf16 %v578_v58, %v576_v57  ;;  %v592_v18 = vld [vmem:[%s1320_s1 + $0x440] sm:$0xff]  ;;  %v598_v26 = vld [vmem:[%s1320_s1 + $0x470] sm:$0xff]  ;;  %v601_v27 = vld [vmem:[%s1320_s1 + $0x488] sm:$0xff] }
  0x31   : > { %703 = vmatpush1.bf16.msra.mxu1 %v702_v15  ;;  %v595_v15 = vld [vmem:[%s1320_s1 + $0x458] sm:$0xff]  ;;  %v750_v23 = vpack.c.bf16 %v594_v19, %v592_v18  ;;  %v602_v32 = vld [vmem:[%s1320_s1 + $0x490] sm:$0xff]  ;;  %v554_v51 = vld [vmem:[%s1321_s2 + $0x2] sm:$0x3] }
  0x32   : > { %663 = vmatpush1.bf16.msra.mxu0 %v662_v0  ;;  %705 = vmatprep.subr.bf16.mxu1 %v704_v22  ;;  %v582_v0 = vld [vmem:[%s1320_s1 + $0x3f0] sm:$0xff]  ;;  %v599_v22 = vld [vmem:[%s1320_s1 + $0x478] sm:$0xff]  ;;  %v606_v8 = vld [vmem:[%s1321_s2 + $0x4] sm:$0x3] }
  0x33   : > { %147 = vmatprep.subr.mxu0 %v83_v2  ;;  %v587_v2 = vld [vmem:[%s1320_s1 + $0x418] sm:$0xff]  ;;  %v738_v4 = vpack.c.bf16 %v582_v0, %v580_v63  ;;  %v28_v59 = vld [vmem:[%s1294_s5 + $0x10] sm:$0xff]  ;;  %v30_v18 = vld [vmem:[%s1294_s5 + $0x20] sm:$0xff] }
  0x34   : > { %v740_v5 = vpack.c.bf16 %v587_v2, %v585_v1  ;;  %v603_v28 = vld [vmem:[%s1320_s1 + $0x498] sm:$0xff] }
  0x35   : > { %707 = vmatpush1.bf16.msra.mxu1 %v706_v30  ;;  %v756_v30 = vpack.c.bf16 %v603_v28, %v601_v27 }
  0x36   : > { %148 = vmatpush1.msra.mxu0 %v82_v16  ;;  %709 = vmatprep.subr.bf16.mxu1 %v708_v31  ;;  %v746_v16 = vpack.c.bf16 %v590_v13, %v588_v12  ;;  %v600_v31 = vld [vmem:[%s1320_s1 + $0x480] sm:$0xff] }
  0x37   : > { %164 = vmatmul.mubr.f32.vlgmr.msra.gmra.mrb[0].mxu0 %v1130_v20  ;;  %713 = vmatprep.subr.bf16.mxu0 %v712_v17  ;;  %v748_v17 = vpack.c.bf16 %v595_v15, %v593_v14  ;;  %v758_v33 = vpack.c.bf16 %v602_v32, %v600_v31 }
  0x38   : > { %715 = vmatpush1.bf16.msra.mxu0 %v714_v21  ;;  %607 = vmatprep.mubr.msk.f32.mxu0 %vm15_vm0, %v962_v3  ;;  %v597_v21 = vld [vmem:[%s1320_s1 + $0x468] sm:$0xff] }
  0x39   : > { %717 = vmatprep.subr.bf16.mxu0 %v716_v25  ;;  %711 = vmatpush1.bf16.msra.mxu1 %v710_v40  ;;  %v752_v24 = vpack.c.bf16 %v599_v22, %v597_v21  ;;  %v596_v25 = vld [vmem:[%s1320_s1 + $0x460] sm:$0xff]  ;;  %v88_v40 = vsub.s32 0, %v87_v38 }
  0x3a   : > { %282 = vmatprep.subr.mxu1 %v553_v42  ;;  %v754_v29 = vpack.c.bf16 %v598_v26, %v596_v25  ;;  %v92_v42 = vsub.s32 1, %v87_v38 }
  0x3b   : > { %v227_v54 = vrot.slane %v554_v51, %v88_v40 }
  0x3c   : > { %719 = vmatpush1.bf16.msra.mxu0 %v718_v34  ;;  %v605_v34 = vld [vmem:[%s1320_s1 + $0x4a8] sm:$0xff]  ;;  %v366_v13 = vrot.slane %v606_v8, %v92_v42 }
  0x3d   : > { %721 = vmatprep.subr.bf16.mxu0 %v720_v35  ;;  %283 = vmatpush1.msra.mxu1 %v552_v48  ;;  %v604_v35 = vld [vmem:[%s1320_s1 + $0x4a0] sm:$0xff] }
  0x3e   : > { %299 = vmatmul.mubr.f32.vlgmr.msra.gmra.mrb[0].mxu1 %v1130_v20  ;;  %v26_v48 = vld [vmem:[%s1294_s5] sm:$0xff] }
  0x40   : > { %723 = vmatpush1.bf16.msra.mxu0 %v722_v41  ;;  %v84_v41 = vld [vmem:[%s1321_s2] sm:$0x3] }
  0x41   : > { %725 = vmatprep.subr.bf16.mxu0 %v724_v43  ;;  %v89_v43 = vrot.slane %v84_v41, %v88_v40  ;;  %v93_v44 = vrot.slane %v84_v41, %v92_v42 }
  0x44   : > { %727 = vmatpush1.bf16.msra.mxu0 %v726_v49 }
  0x45   : > { %729 = vmatprep.subr.bf16.mxu0 %v728_v50  ;;  %v27_v50 = vld [vmem:[%s1294_s5 + $0x8] sm:$0xff] }
  0x48   : > { %731 = vmatpush1.bf16.msra.mxu0 %v730_v55  ;;  %v231_v55 = vrot.slane %v554_v51, %v92_v42 }
  0x49   : > { %733 = vmatprep.subr.bf16.mxu0 %v732_v56 }
  0x4c   : > { %735 = vmatpush1.bf16.msra.mxu0 %v734_v61  ;;  %v29_v61 = vld [vmem:[%s1294_s5 + $0x18] sm:$0xff] }
  0x4d   : > { %737 = vmatprep.subr.bf16.mxu0 %v736_v62 }
  0x50   : > { %739 = vmatpush1.bf16.msra.mxu0 %v738_v4 }
  0x51   : > { %741 = vmatprep.subr.bf16.mxu0 %v740_v5 }
  0x54   : > { %743 = vmatpush1.bf16.msra.mxu0 %v742_v10 }
  0x55   : > { %745 = vmatprep.subr.bf16.mxu0 %v744_v11  ;;  %v362_v11 = vrot.slane %v606_v8, %v88_v40 }
  0x58   : > { %747 = vmatpush1.bf16.msra.mxu0 %v746_v16 }
  0x59   : > { %749 = vmatprep.subr.bf16.mxu0 %v748_v17 }
  0x5c   : > { %751 = vmatpush1.bf16.msra.mxu0 %v750_v23  ;;  %v31_v23 = vld [vmem:[%s1294_s5 + $0x28] sm:$0xff] }
  0x5d   : > { %753 = vmatprep.subr.bf16.mxu0 %v752_v24 }
  0x60   : > { %755 = vmatpush1.bf16.msra.mxu0 %v754_v29 }
  0x61   : > { %757 = vmatprep.subr.bf16.mxu0 %v756_v30 }
  0x64   : > { %759 = vmatpush1.bf16.msra.mxu0 %v758_v33 }
  0x65   : > { %417 = vmatprep.subr.mxu0 %v605_v34 }
  0x68   : > { %418 = vmatpush1.msra.mxu0 %v604_v35 }
  0x69   : > { %434 = vmatmul.mubr.f32.vlgmr.msra.gmra.mrb[2].mxu0 %v1130_v20 }
 0x10a   : > { %v165_v37 = vpop.f32.mrb[0].mxu0 }
 0x10b   : > { %v167_v39 = vpop.f32.mrb[1].mxu0  ;;  %v166_v46 = vadd.f32 %v165_v37, %v89_v43 }
 0x10c   : > { %v168_v49 = vadd.f32 %v167_v39, %v93_v44 }
 0x10d   : > { %v440_v52 = vadd.f32 %v166_v46, %v26_v48 }
 0x10e   : > { %v441_v53 = vadd.f32 %v168_v49, %v27_v50 }
 0x10f   : > { %v608_v56 = vmul.f32 -1.442695, %v440_v52 }
 0x110   : > { %v609_v57 = vmul.f32 -1.442695, %v441_v53 }
 0x111   : > { %v300_v45 = vpop.f32.mrb[0].mxu1  ;;  %769 = vpow2.f32 %v608_v56 }
 0x112   : > { %v302_v47 = vpop.f32.mrb[1].mxu1  ;;  %v301_v58 = vadd.f32 %v300_v45, %v227_v54  ;;  %771 = vpow2.f32 %v609_v57 }
 0x113   : > { %v303_v60 = vadd.f32 %v302_v47, %v231_v55 }
 0x114   : > { %v454_v62 = vadd.f32 %v301_v58, %v28_v59 }
 0x115   : > { %v455_v63 = vadd.f32 %v303_v60, %v29_v61 }
 0x116   : > { %v610_v0 = vmul.f32 -1.442695, %v454_v62 }
 0x117   : > { %v611_v1 = vmul.f32 -1.442695, %v455_v63 }
 0x118   : > { %773 = vpow2.f32 %v610_v0 }
 0x119   : > { %775 = vpow2.f32 %v611_v1 }
 0x11b   : > { %v770_v2 = vpop.eup %769 }
 0x11c   : > { %v772_v4 = vpop.eup %771  ;;  %v448_v5 = vadd.f32 1.0, %v770_v2 }
 0x11d   : > { %v449_v6 = vadd.f32 1.0, %v772_v4 }
 0x11e   : > { %777 = vrcp.f32 %v448_v5 }
 0x11f   : > { %779 = vrcp.f32 %v449_v6 }
 0x122   : > { %v774_v7 = vpop.eup %773 }
 0x123   : > { %v776_v9 = vpop.eup %775  ;;  %v462_v10 = vadd.f32 1.0, %v774_v7 }
 0x124   : > { %v463_v12 = vadd.f32 1.0, %v776_v9 }
 0x125   : > { %781 = vrcp.f32 %v462_v10 }
 0x126   : > { %783 = vrcp.f32 %v463_v12 }
 0x128   : > { %v778_v17 = vpop.eup %777 }
 0x129   : > { %v780_v21 = vpop.eup %779 }
 0x12f   : > { %v782_v27 = vpop.eup %781 }
 0x130   : > { %v784_v28 = vpop.eup %783  ;;  %v474_v29 = vsub.f32 1.0, %v782_v27  ;;  %v478_v33 = vmul.f32 %v782_v27, %v1130_v20 }
 0x131   : > { %v475_v30 = vsub.f32 1.0, %v784_v28  ;;  %v479_v35 = vmul.f32 %v784_v28, %v962_v3 }
 0x13c   : > { %v435_v14 = vpop.f32.mrb[2].mxu0 }
 0x13d   : > { %v436_v15 = vadd.f32 %v435_v14, %v362_v11  ;;  %v437_v16 = vpop.f32.mrb[3].mxu0 }
 0x13e   : > { %v438_v19 = vadd.f32 %v437_v16, %v366_v13 }
 0x13f   : > { %v468_v22 = vmul.f32 %v778_v17, %v436_v15 }
 0x140   : > { %v469_v24 = vmul.f32 %v780_v21, %v438_v19 }
 0x141   : > { %v470_v25 = vadd.f32 %v468_v22, %v30_v18 }
 0x142   : > { %v471_v26 = vadd.f32 %v469_v24, %v31_v23 }
 0x143   : > { %785 = vtanh.f32 %v470_v25 }
 0x144   : > { %787 = vtanh.f32 %v471_v26 }
 0x14d   : > { %v786_v31 = vpop.eup %785  ;;  %21 = sbr.rel (!%p19_p0) target bundleno = 2 (0x2), region = 45 }
 0x14e   : > { %v788_v32 = vpop.eup %787  ;;  %v476_v34 = vmul.f32 %v786_v31, %v474_v29 }
 0x14f   : > { %v477_v36 = vmul.f32 %v788_v32, %v475_v30 }
 0x150   : > { %v480_v37 = vadd.f32 %v478_v33, %v476_v34 }
 0x151   : > { %v481_v38 = vadd.f32 %v479_v35, %v477_v36 }
 0x152   : > { %482 = vst [vmem:[#allocation2] sm:$0xff] %v480_v37  ;;  %487 = vst [vmem:[%s486_s14] sm:$0xff] %v480_v37 }
 0x153   : > { %483 = vst.msk [vmem:[#allocation2 + $0x8] sm:$0xff] %vm15_vm0, %v481_v38  ;;  %488 = vst.msk [vmem:[%s486_s14 + $0x8] sm:$0xff] %vm15_vm0, %v481_v38 }

// kernel: forward.11
= control target key start
LH: loop header
LB: loop body
LE: loop exit
PB: predicated region body
PF: predicated region fallthrough
CT: control target
= control target key end

     0   :  { %s1553_s12 = smov 0   ;;  %s2423_s0 = inlined_call_operand.vmem [shape: f32[2,150,200], index: 0, kind: input, shape index: {}]   ;;  %s2424_s1 = inlined_call_operand.vmem [shape: f32[1,200], index: 1, kind: input, shape index: {}]   ;;  %s2425_s2 = inlined_call_operand.vmem [shape: f32[2,50,200], index: 2, kind: input, shape index: {}]   ;;  %s2426_s3 = inlined_call_operand.vmem [shape: f32[2,2,150,50], index: 3, kind: output, shape index: {}]  }
   0x1 LB: > { %s1313_s13 = sadd.s32 4294967295, %s1531_s12   ;;  %p1317_p0 = scmp.ge.s32.totalorder %s1531_s12, 1  ;;  %s1531_s12 = sphi %s1553_s12, %s13_s12  }
   0x2   : > { %p147_p1 = scmp.lt.s32.totalorder %s1531_s12, 3 }
   0x4   : > { %p148_p2 = pnand %p1317_p0, %p147_p1 }
   0x5   : > { %p176_p3 = scmp.lt.s32.totalorder (!%p148_p2), %s1313_s13, 1  ;;  %v245_v0 = vlaneseq (!%p148_p2)  ;;  %v1568_v2 = vld [vmem:[%s2424_s1] sm:$0x3] (!%p148_p2)  ;;  %vm293_vm0 = vcmask (!%p148_p2), 588800   ;;  %vm1037_vm2 = vcmask (!%p148_p2), 1041408   ;;  %vm1039_vm3 = vcmask (!%p148_p2), 582656  }
   0x6   : > { %151 = sbr.rel (%p148_p2) target bundleno = 350 (0x15e), region = 32  ;;  %vm1590_vm1 = vmpackc.low (!%p148_p2), %vm293_vm0, %vm293_vm0  ;;  %vm859_vm4 = vcmask (!%p148_p2), 1045504   ;;  %vm861_vm5 = vcmask (!%p148_p2), 586752  }
   0x7   : > { %v1563_v1 = vshrl.u32 (!%p148_p2), %v245_v0, 7 }
   0x9   : > { %v251_v3 = vsub.s32 (!%p148_p2), 1, %v1563_v1  ;;  %v247_v5 = vsub.s32 (!%p148_p2), 0, %v1563_v1 }
   0xb   : > { %v1581_v4 = vrot.slane (!%p148_p2), %v1568_v2, %v251_v3 }
   0xd   : > { %s2430_s13 = smov (!%p176_p3, %s1313_s13), 1 }
   0xe   : > { %s1424_s16 = smul.u32 304, %s2430_s13 }
   0xf   : > { %s1425_s17 = smul.u32 112, %s2430_s13 }
  0x10   : > { %s1578_s20 = scalar_lea.vmem %s2423_s0, %s1424_s16  ;;  %s2014_s26 = scalar_lea.vmem %s2426_s3, %s1424_s16 }
  0x11   : > { %s1586_s23 = scalar_lea.vmem %s2425_s2, %s1425_s17  ;;  %v1595_v6 = vld [vmem:[%s1578_s20 + $0x8] sm:$0xff]  ;;  %v1640_v56 = vld [vmem:[%s1578_s20 + $0x18] sm:$0xff]  ;;  %v1643_v57 = vld [vmem:[%s1578_s20 + $0x10] sm:$0xff] }
  0x12   : > { %v230_v7 = vld [vmem:[%s1586_s23 + $0x8] sm:$0xff]  ;;  %v232_v8 = vld [vmem:[%s1586_s23 + $0x18] sm:$0xff]  ;;  %v229_v9 = vld [vmem:[%s1586_s23] sm:$0xff]  ;;  %1354 = vmatprep.mubr.msk.f32.mxu1 %vm293_vm0, %v1595_v6  ;;  %v256_v10 = vmul.f32 %v1581_v4, %v1595_v6  ;;  %v750_v59 = vmul.f32 %v1595_v6, %v1595_v6  ;;  %v751_v61 = vmul.f32 %v1643_v57, %v1643_v57  ;;  %v752_v62 = vmul.f32 %v1640_v56, %v1640_v56 }
  0x13   : > { %v1394_v11 = vpack.c.bf16 %v232_v8, %v230_v7  ;;  %v1002_v12 = vmul.f32 %v232_v8, %v232_v8  ;;  %v231_v13 = vld [vmem:[%s1586_s23 + $0x10] sm:$0xff]  ;;  %v999_v14 = vmul.f32 %v229_v9, %v229_v9  ;;  %v1000_v15 = vmul.f32 %v230_v7, %v230_v7  ;;  %v233_v16 = vld [vmem:[%s1586_s23 + $0x20] sm:$0xff]  ;;  %v234_v17 = vld [vmem:[%s1586_s23 + $0x28] sm:$0xff] }
  0x14   : > { %v1397_v18 = vpack.c.bf16 %v231_v13, %v229_v9  ;;  %v236_v19 = vld [vmem:[%s1586_s23 + $0x38] sm:$0xff]  ;;  %v1003_v20 = vmul.f32 %v233_v16, %v233_v16  ;;  %v1004_v21 = vmul.f32 %v234_v17, %v234_v17  ;;  %v1001_v22 = vmul.f32 %v231_v13, %v231_v13  ;;  %v235_v23 = vld [vmem:[%s1586_s23 + $0x30] sm:$0xff]  ;;  %1328 = vmatprep.mubr.msk.f32.mxu0 %vm293_vm0, %v256_v10  ;;  %v237_v28 = vld [vmem:[%s1586_s23 + $0x40] sm:$0xff] }
  0x15   : > { %1411 = vmatprep.subr.msk.bf16.mxu1 %vm1590_vm1, %v1394_v11  ;;  %1396 = vmatprep.subr.msk.bf16.mxu0 %vm1590_vm1, %v1394_v11  ;;  %v1013_v24 = vsel %vm293_vm0, %v1000_v15, 0.0  ;;  %v1399_v25 = vpack.c.bf16 %v236_v19, %v234_v17  ;;  %v1017_v26 = vsel %vm293_vm0, %v1002_v12, 0.0  ;;  %v1005_v27 = vmul.f32 %v235_v23, %v235_v23  ;;  %v238_v29 = vld [vmem:[%s1586_s23 + $0x48] sm:$0xff]  ;;  %v239_v33 = vld [vmem:[%s1586_s23 + $0x50] sm:$0xff]  ;;  %v240_v34 = vld [vmem:[%s1586_s23 + $0x58] sm:$0xff] }
  0x16   : > { %1413 = vmatpush1.bf16.xpose.msra.mxu1 %v1397_v18  ;;  %1398 = vmatpush1.bf16.xpose.msra.mxu0 %v1397_v18  ;;  %v1014_v30 = vadd.f32 %v1013_v24, %v999_v14  ;;  %v1021_v31 = vsel %vm293_vm0, %v1004_v21, 0.0  ;;  %v1006_v32 = vmul.f32 %v236_v19, %v236_v19  ;;  %v1622_v35 = vld [vmem:[%s1586_s23 + $0x60] sm:$0x3]  ;;  %v242_v37 = vld [vmem:[%s1586_s23 + $0x68] sm:$0x3]  ;;  %v1018_v38 = vadd.f32 %v1017_v26, %v1001_v22  ;;  %v1648_v60 = vld [vmem:[%s1578_s20 + $0x38] sm:$0xff] }
  0x17   : > { %v1022_v36 = vadd.f32 %v1021_v31, %v1003_v20  ;;  %1416 = vmatprep.subr.msk.bf16.mxu1 %vm1590_vm1, %v1399_v25  ;;  %1401 = vmatprep.subr.msk.bf16.mxu0 %vm1590_vm1, %v1399_v25  ;;  %v1007_v40 = vmul.f32 %v237_v28, %v237_v28  ;;  %v1008_v41 = vmul.f32 %v238_v29, %v238_v29  ;;  %v1655_v63 = vld [vmem:[%s1578_s20 + $0x30] sm:$0xff]  ;;  %v1658_v0 = vld [vmem:[%s1578_s20 + $0x58] sm:$0xff]  ;;  %v791_v6 = vsel %vm293_vm0, %v752_v62, 0.0  ;;  %v191_v11 = vld [vmem:[%s1578_s20] sm:$0xff] }
  0x18   : > { %1015 = vadd.xlane.f32.xlu0 %v1014_v30  ;;  %v1025_v39 = vsel %vm293_vm0, %v1006_v32, 0.0  ;;  %v1009_v43 = vmul.f32 %v239_v33, %v239_v33  ;;  %v1010_v44 = vmul.f32 %v240_v34, %v240_v34  ;;  %v1011_v45 = vmul.f32 %v1622_v35, %v1622_v35  ;;  %v1674_v13 = vld [vmem:[%s1578_s20 + $0x50] sm:$0xff]  ;;  %v1685_v17 = vld [vmem:[%s1578_s20 + $0x20] sm:$0xff]  ;;  %v1688_v18 = vld [vmem:[%s1578_s20 + $0x78] sm:$0xff] }
  0x19   : > { %1023 = vadd.xlane.f32.xlu1 %v1022_v36  ;;  %v1026_v42 = vadd.f32 %v1025_v39, %v1005_v27  ;;  %v1402_v46 = vpack.c.bf16 %v235_v23, %v233_v16  ;;  %v1029_v47 = vsel %vm293_vm0, %v1008_v41, 0.0  ;;  %v1012_v48 = vmul.f32 %v242_v37, %v242_v37  ;;  %v1682_v16 = vld [vmem:[%s1578_s20 + $0x28] sm:$0xff]  ;;  %v1700_v25 = vld [vmem:[%s1578_s20 + $0x40] sm:$0xff]  ;;  %v1706_v27 = vld [vmem:[%s1578_s20 + $0x70] sm:$0xff] }
  0x1a   : > { %v1404_v49 = vpack.c.bf16 %v240_v34, %v238_v29  ;;  %v1033_v50 = vsel %vm293_vm0, %v1010_v44, 0.0  ;;  %v1030_v51 = vadd.f32 %v1029_v47, %v1007_v40  ;;  %v1038_v53 = vsel %vm1037_vm2, %v1011_v45, 0.0  ;;  %v1703_v26 = vld [vmem:[%s1578_s20 + $0x48] sm:$0xff]  ;;  %v1712_v30 = vld [vmem:[%s1578_s20 + $0x98] sm:$0xff]  ;;  %v1730_v41 = vld [vmem:[%s1578_s20 + $0x60] sm:$0xff] }
  0x1b   : > { %v1034_v52 = vadd.f32 %v1033_v50, %v1009_v43  ;;  %v1040_v54 = vsel %vm1039_vm3, %v1012_v48, 0.0  ;;  %v1407_v58 = vpack.c.bf16 %v239_v33, %v237_v28  ;;  %v756_v3 = vmul.f32 %v1648_v60, %v1648_v60  ;;  %v1736_v44 = vld [vmem:[%s1578_s20 + $0x88] sm:$0xff]  ;;  %v1739_v45 = vld [vmem:[%s1578_s20 + $0x90] sm:$0xff]  ;;  %v1744_v47 = vld [vmem:[%s1578_s20 + $0xb8] sm:$0xff] }
  0x1c   : > { %1019 = vadd.xlane.f32.xlu0 %v1018_v38  ;;  %v1041_v55 = vadd.f32 %v1040_v54, %v1038_v53  ;;  %v755_v7 = vmul.f32 %v1655_v63, %v1655_v63  ;;  %v760_v8 = vmul.f32 %v1658_v0, %v1658_v0  ;;  %v792_v9 = vadd.f32 %v791_v6, %v751_v61  ;;  %v1768_v61 = vld [vmem:[%s1578_s20 + $0xb0] sm:$0xff]  ;;  %v1773_v6 = vld [vmem:[%s1578_s20 + $0xd8] sm:$0xff] }
  0x1d   : > { %1027 = vadd.xlane.f32.xlu1 %v1026_v42  ;;  %v799_v10 = vsel %vm293_vm0, %v756_v3, 0.0  ;;  %v787_v12 = vsel %vm293_vm0, %v750_v59, 0.0  ;;  %v749_v14 = vmul.f32 %v191_v11, %v191_v11  ;;  %v1679_v15 = vrot.slane %v1568_v2, %v247_v5  ;;  %v1765_v59 = vld [vmem:[%s1578_s20 + $0xa8] sm:$0xff] }
  0x1e   : > { %1418 = vmatpush1.bf16.xpose.msra.mxu1 %v1402_v46  ;;  %1403 = vmatpush1.bf16.xpose.msra.mxu0 %v1402_v46  ;;  %v800_v19 = vadd.f32 %v799_v10, %v755_v7  ;;  %v759_v20 = vmul.f32 %v1674_v13, %v1674_v13  ;;  %v807_v21 = vsel %vm293_vm0, %v760_v8, 0.0  ;;  %v764_v22 = vmul.f32 %v1688_v18, %v1688_v18 }
  0x1f   : > { %1421 = vmatprep.subr.msk.bf16.mxu1 %vm1590_vm1, %v1404_v49  ;;  %1406 = vmatprep.subr.msk.bf16.mxu0 %vm1590_vm1, %v1404_v49  ;;  %v788_v23 = vadd.f32 %v787_v12, %v749_v14  ;;  %v753_v2 = vmul.f32 %v1685_v17, %v1685_v17  ;;  %v754_v24 = vmul.f32 %v1682_v16, %v1682_v16 }
  0x20   : > { %1031 = vadd.xlane.f32.xlu0 %v1030_v51  ;;  %v757_v29 = vmul.f32 %v1700_v25, %v1700_v25  ;;  %v808_v31 = vadd.f32 %v807_v21, %v759_v20  ;;  %v763_v32 = vmul.f32 %v1706_v27, %v1706_v27  ;;  %v758_v34 = vmul.f32 %v1703_v26, %v1703_v26  ;;  %v1798_v20 = vld [vmem:[%s1578_s20 + $0xd0] sm:$0xff] }
  0x21   : > { %1035 = vadd.xlane.f32.xlu1 %v1034_v52  ;;  %v795_v28 = vsel %vm293_vm0, %v754_v24, 0.0  ;;  %v255_v36 = vmul.f32 %v1679_v15, %v191_v11  ;;  %v815_v38 = vsel %vm293_vm0, %v764_v22, 0.0  ;;  %v768_v39 = vmul.f32 %v1712_v30, %v1712_v30 }
  0x22   : > { %v796_v33 = vadd.f32 %v795_v28, %v753_v2  ;;  %v258_v40 = vmul.f32 %v1581_v4, %v1640_v56  ;;  %v803_v42 = vsel %vm293_vm0, %v758_v34, 0.0  ;;  %v816_v48 = vadd.f32 %v815_v38, %v763_v32  ;;  %v1822_v34 = vld [vmem:[%s1578_s20 + $0xc0] sm:$0xff] }
  0x23   : > { %v804_v46 = vadd.f32 %v803_v42, %v757_v29  ;;  %v767_v49 = vmul.f32 %v1739_v45, %v1739_v45  ;;  %v766_v51 = vmul.f32 %v1736_v44, %v1736_v44  ;;  %v257_v52 = vmul.f32 %v1679_v15, %v1643_v57 }
  0x24   : > { %1042 = vadd.xlane.f32.xlu0 %v1041_v55  ;;  %v823_v53 = vsel %vm293_vm0, %v768_v39, 0.0  ;;  %v772_v54 = vmul.f32 %v1744_v47, %v1744_v47  ;;  %v260_v55 = vmul.f32 %v1581_v4, %v1682_v16  ;;  %v771_v7 = vmul.f32 %v1768_v61, %v1768_v61 }
  0x25   : > { %789 = vadd.xlane.f32.xlu1 %v788_v23  ;;  %v819_v8 = vsel %vm293_vm0, %v766_v51, 0.0  ;;  %v259_v10 = vmul.f32 %v1679_v15, %v1685_v17  ;;  %v776_v12 = vmul.f32 %v1773_v6, %v1773_v6  ;;  %v262_v14 = vmul.f32 %v1581_v4, %v1648_v60  ;;  %v1803_v23 = vld [vmem:[%s1578_s20 + $0xf8] sm:$0xff]  ;;  %v1852_v51 = vld [vmem:[%s1578_s20 + $0xe0] sm:$0xff] }
  0x26   : > { %1423 = vmatpush1.bf16.xpose.msra.mxu1 %v1407_v58  ;;  %1408 = vmatpush1.bf16.xpose.msra.mxu0 %v1407_v58  ;;  %v1762_v58 = vld [vmem:[%s1578_s20 + $0x80] sm:$0xff]  ;;  %v775_v2 = vmul.f32 %v1798_v20, %v1798_v20  ;;  %v261_v29 = vmul.f32 %v1679_v15, %v1655_v63  ;;  %v780_v32 = vmul.f32 %v1803_v23, %v1803_v23 }
  0x27   : > { %1353 = vmatprep.subr.msk.mxu1 %vm293_vm0, %v242_v37  ;;  %1327 = vmatprep.subr.msk.mxu0 %vm293_vm0, %v242_v37  ;;  %v1720_v37 = vld [vmem:[%s1578_s20 + $0x68] sm:$0xff]  ;;  %v765_v3 = vmul.f32 %v1762_v58, %v1762_v58  ;;  %v773_v39 = vmul.f32 %v1822_v34, %v1822_v34 }
  0x28   : > { %793 = vadd.xlane.f32.xlu0 %v792_v9  ;;  %v762_v43 = vmul.f32 %v1720_v37, %v1720_v37  ;;  %v770_v9 = vmul.f32 %v1765_v59, %v1765_v59 }
  0x29   : > { %797 = vadd.xlane.f32.xlu1 %v796_v33  ;;  %v820_v21 = vadd.f32 %v819_v8, %v765_v3  ;;  %v264_v33 = vmul.f32 %v1581_v4, %v1703_v26  ;;  %v268_v8 = vmul.f32 %v1581_v4, %v1720_v37 }
  0x2a   : > { %v811_v50 = vsel %vm293_vm0, %v762_v43, 0.0  ;;  %v827_v24 = vsel %vm293_vm0, %v770_v9, 0.0  ;;  %v1877_v9 = vld [vmem:[%s1578_s20 + $0x100] sm:$0xff] }
  0x2c   : > { %801 = vadd.xlane.f32.xlu0 %v800_v19  ;;  %v1792_v19 = vld [vmem:[%s1578_s20 + $0xa0] sm:$0xff] }
  0x2d   : > { %805 = vadd.xlane.f32.xlu1 %v804_v46  ;;  %v769_v22 = vmul.f32 %v1792_v19, %v1792_v19 }
  0x2e   : > { %602 = vmatpush1.xpose.msra.mxu1 %v1622_v35  ;;  %385 = vmatpush1.xpose.msra.mxu0 %v1622_v35  ;;  %v761_v35 = vmul.f32 %v1730_v41, %v1730_v41 }
  0x2f   : > { %v828_v38 = vadd.f32 %v827_v24, %v769_v22 }
  0x30   : > { %809 = vadd.xlane.f32.xlu0 %v808_v31  ;;  %v812_v62 = vadd.f32 %v811_v50, %v761_v35  ;;  %v839_v31 = vsel %vm293_vm0, %v776_v12, 0.0  ;;  %v263_v35 = vmul.f32 %v1679_v15, %v1700_v25  ;;  %v266_v50 = vmul.f32 %v1581_v4, %v1658_v0 }
  0x31   : > { %654 = vmatmul.mubr.f32.vlgmr.msra.gmra.mrb[0].mxu1 %v191_v11  ;;  %437 = vmatmul.mubr.f32.vlgmr.msra.gmra.mrb[0].mxu0 %v255_v36  ;;  %v831_v11 = vsel %vm293_vm0, %v772_v54, 0.0  ;;  %v1828_v36 = vld [vmem:[%s1578_s20 + $0xf0] sm:$0xff]  ;;  %v777_v54 = vmul.f32 %v1852_v51, %v1852_v51  ;;  %v781_v12 = vmul.f32 %v1877_v9, %v1877_v9 }
  0x32   : > { %1355 = vmatprep.mubr.msk.f32.mxu1 %vm293_vm0, %v1640_v56  ;;  %1329 = vmatprep.mubr.msk.f32.mxu0 %vm293_vm0, %v258_v40  ;;  %v824_v56 = vadd.f32 %v823_v53, %v767_v49  ;;  %v1833_v40 = vld [vmem:[%s1578_s20 + $0x118] sm:$0xff]  ;;  %v779_v42 = vmul.f32 %v1828_v36, %v1828_v36 }
  0x33   : > { %813 = vadd.xlane.f32.xlu1 %v812_v62  ;;  %v784_v49 = vmul.f32 %v1833_v40, %v1833_v40 }
  0x34   : > { %817 = vadd.xlane.f32.xlu0 %v816_v48  ;;  %v847_v48 = vsel %vm293_vm0, %v780_v32, 0.0  ;;  %v273_v32 = vmul.f32 %v1679_v15, %v1739_v45 }
  0x35   : > { %659 = vmatmul.mubr.f32.gmra.mrb[2].mxu1 %v1643_v57  ;;  %442 = vmatmul.mubr.f32.gmra.mrb[2].mxu0 %v257_v52  ;;  %v1795_v57 = vld [vmem:[%s1578_s20 + $0xc8] sm:$0xff]  ;;  %v1858_v52 = vld [vmem:[%s1578_s20 + $0x110] sm:$0xff] }
  0x36   : > { %1356 = vmatprep.mubr.msk.f32.mxu1 %vm293_vm0, %v1682_v16  ;;  %1330 = vmatprep.mubr.msk.f32.mxu0 %vm293_vm0, %v260_v55  ;;  %v832_v16 = vadd.f32 %v831_v11, %v771_v7  ;;  %v774_v28 = vmul.f32 %v1795_v57, %v1795_v57  ;;  %v783_v55 = vmul.f32 %v1858_v52, %v1858_v52  ;;  %v855_v7 = vsel %vm293_vm0, %v784_v49, 0.0  ;;  %v1883_v11 = vld [vmem:[%s1578_s20 + $0x120] sm:$0x3f] }
  0x37   : > { %821 = vadd.xlane.f32.xlu1 %v820_v21 }
  0x38   : > { %825 = vadd.xlane.f32.xlu0 %v824_v56  ;;  %v835_v43 = vsel %vm293_vm0, %v774_v28, 0.0  ;;  %v265_v56 = vmul.f32 %v1679_v15, %v1674_v13 }
  0x39   : > { %664 = vmatmul.mubr.f32.gmra.mrb[4].mxu1 %v1685_v17  ;;  %447 = vmatmul.mubr.f32.gmra.mrb[4].mxu0 %v259_v10  ;;  %v1825_v17 = vld [vmem:[%s1578_s20 + $0xe8] sm:$0xff]  ;;  %v836_v53 = vadd.f32 %v835_v43, %v773_v39 }
  0x3a   : > { %1357 = vmatprep.mubr.msk.f32.mxu1 %vm293_vm0, %v1648_v60  ;;  %1331 = vmatprep.mubr.msk.f32.mxu0 %vm293_vm0, %v262_v14  ;;  %v840_v60 = vadd.f32 %v839_v31, %v775_v2  ;;  %v778_v46 = vmul.f32 %v1825_v17, %v1825_v17  ;;  %v1880_v10 = vld [vmem:[%s1578_s20 + $0x128] sm:$0x3f]  ;;  %v785_v14 = vmul.f32 %v1883_v11, %v1883_v11 }
  0x3b   : > { %829 = vadd.xlane.f32.xlu1 %v828_v38  ;;  %v786_v22 = vmul.f32 %v1880_v10, %v1880_v10  ;;  %v270_v2 = vmul.f32 %v1581_v4, %v1688_v18  ;;  %v291_v38 = vmul.f32 %v1679_v15, %v1883_v11 }
  0x3c   : > { %833 = vadd.xlane.f32.xlu0 %v832_v16  ;;  %v843_v62 = vsel %vm293_vm0, %v778_v46, 0.0  ;;  %v267_v16 = vmul.f32 %v1679_v15, %v1730_v41  ;;  %v860_v28 = vsel %vm859_vm4, %v785_v14, 0.0  ;;  %vm1167_vm4 = vcmask 408576  }
  0x3d   : > { %669 = vmatmul.mubr.f32.gmra.mrb[6].mxu1 %v1655_v63  ;;  %452 = vmatmul.mubr.f32.gmra.mrb[6].mxu0 %v261_v29  ;;  %v1855_v63 = vld [vmem:[%s1578_s20 + $0x108] sm:$0xff]  ;;  %v862_v29 = vsel %vm861_vm5, %v786_v22, 0.0 }
  0x3e   : > { %1358 = vmatprep.mubr.msk.f32.mxu1 %vm293_vm0, %v1703_v26  ;;  %1332 = vmatprep.mubr.msk.f32.mxu0 %vm293_vm0, %v264_v33  ;;  %v848_v26 = vadd.f32 %v847_v48, %v779_v42  ;;  %v782_v3 = vmul.f32 %v1855_v63, %v1855_v63  ;;  %v863_v31 = vadd.f32 %v862_v29, %v860_v28 }
  0x3f   : > { %837 = vadd.xlane.f32.xlu1 %v836_v53  ;;  %v286_v33 = vmul.f32 %v1581_v4, %v1803_v23 }
  0x40   : > { %841 = vadd.xlane.f32.xlu0 %v840_v60  ;;  %v851_v21 = vsel %vm293_vm0, %v782_v3, 0.0 }
  0x41   : > { %674 = vmatmul.mubr.f32.gmra.mrb[8].mxu1 %v1700_v25  ;;  %457 = vmatmul.mubr.f32.gmra.mrb[8].mxu0 %v263_v35  ;;  %v844_v25 = vadd.f32 %v843_v62, %v777_v54  ;;  %v852_v24 = vadd.f32 %v851_v21, %v781_v12 }
  0x42   : > { %1359 = vmatprep.mubr.msk.f32.mxu1 %vm293_vm0, %v1658_v0  ;;  %1333 = vmatprep.mubr.msk.f32.mxu0 %vm293_vm0, %v266_v50  ;;  %v856_v0 = vadd.f32 %v855_v7, %v783_v55 }
  0x43   : > { %845 = vadd.xlane.f32.xlu1 %v844_v25 }
  0x44   : > { %849 = vadd.xlane.f32.xlu0 %v848_v26 }
  0x45   : > { %679 = vmatmul.mubr.f32.gmra.mrb[10].mxu1 %v1674_v13  ;;  %462 = vmatmul.mubr.f32.gmra.mrb[10].mxu0 %v265_v56  ;;  %v269_v13 = vmul.f32 %v1679_v15, %v1706_v27 }
  0x46   : > { %1360 = vmatprep.mubr.msk.f32.mxu1 %vm293_vm0, %v1720_v37  ;;  %1334 = vmatprep.mubr.msk.f32.mxu0 %vm293_vm0, %v268_v8  ;;  %v272_v37 = vmul.f32 %v1581_v4, %v1736_v44 }
  0x47   : > { %853 = vadd.xlane.f32.xlu1 %v852_v24 }
  0x48   : > { %857 = vadd.xlane.f32.xlu0 %v856_v0 }
  0x49   : > { %684 = vmatmul.mubr.f32.gmra.mrb[12].mxu1 %v1730_v41  ;;  %467 = vmatmul.mubr.f32.gmra.mrb[12].mxu0 %v267_v16  ;;  %v271_v41 = vmul.f32 %v1679_v15, %v1762_v58 }
  0x4a   : > { %1361 = vmatprep.mubr.msk.f32.mxu1 %vm293_vm0, %v1688_v18  ;;  %1335 = vmatprep.mubr.msk.f32.mxu0 %vm293_vm0, %v270_v2  ;;  %v274_v18 = vmul.f32 %v1581_v4, %v1712_v30 }
  0x4b   : > { %864 = vadd.xlane.f32.xlu1 %v863_v31 }
  0x4d   : > { %689 = vmatmul.mubr.f32.gmra.mrb[14].mxu1 %v1706_v27  ;;  %472 = vmatmul.mubr.f32.gmra.mrb[14].mxu0 %v269_v13  ;;  %v276_v27 = vmul.f32 %v1581_v4, %v1765_v59 }
  0x4e   : > { %1362 = vmatprep.mubr.msk.f32.mxu1 %vm293_vm0, %v1736_v44  ;;  %1336 = vmatprep.mubr.msk.f32.mxu0 %vm293_vm0, %v272_v37  ;;  %v275_v44 = vmul.f32 %v1679_v15, %v1792_v19 }
  0x51   : > { %694 = vmatmul.mubr.f32.gmra.mrb[16].mxu1 %v1762_v58  ;;  %477 = vmatmul.mubr.f32.gmra.mrb[16].mxu0 %v271_v41  ;;  %v278_v58 = vmul.f32 %v1581_v4, %v1744_v47 }
  0x52   : > { %1363 = vmatprep.mubr.msk.f32.mxu1 %vm293_vm0, %v1712_v30  ;;  %1337 = vmatprep.mubr.msk.f32.mxu0 %vm293_vm0, %v274_v18  ;;  %v277_v30 = vmul.f32 %v1679_v15, %v1768_v61 }
  0x55   : > { %699 = vmatmul.mubr.f32.gmra.mrb[18].mxu1 %v1739_v45  ;;  %482 = vmatmul.mubr.f32.gmra.mrb[18].mxu0 %v273_v32  ;;  %v280_v45 = vmul.f32 %v1581_v4, %v1795_v57 }
  0x56   : > { %1364 = vmatprep.mubr.msk.f32.mxu1 %vm293_vm0, %v1765_v59  ;;  %1338 = vmatprep.mubr.msk.f32.mxu0 %vm293_vm0, %v276_v27  ;;  %v279_v59 = vmul.f32 %v1679_v15, %v1822_v34 }
  0x59   : > { %704 = vmatmul.mubr.f32.gmra.mrb[20].mxu1 %v1792_v19  ;;  %487 = vmatmul.mubr.f32.gmra.mrb[20].mxu0 %v275_v44  ;;  %v282_v19 = vmul.f32 %v1581_v4, %v1773_v6 }
  0x5a   : > { %1365 = vmatprep.mubr.msk.f32.mxu1 %vm293_vm0, %v1744_v47  ;;  %1339 = vmatprep.mubr.msk.f32.mxu0 %vm293_vm0, %v278_v58  ;;  %v281_v47 = vmul.f32 %v1679_v15, %v1798_v20 }
  0x5d   : > { %709 = vmatmul.mubr.f32.gmra.mrb[22].mxu1 %v1768_v61  ;;  %492 = vmatmul.mubr.f32.gmra.mrb[22].mxu0 %v277_v30  ;;  %v284_v61 = vmul.f32 %v1581_v4, %v1825_v17 }
  0x5e   : > { %1366 = vmatprep.mubr.msk.f32.mxu1 %vm293_vm0, %v1795_v57  ;;  %1340 = vmatprep.mubr.msk.f32.mxu0 %vm293_vm0, %v280_v45  ;;  %v283_v57 = vmul.f32 %v1679_v15, %v1852_v51 }
  0x61   : > { %714 = vmatmul.mubr.f32.gmra.mrb[24].mxu1 %v1822_v34  ;;  %497 = vmatmul.mubr.f32.gmra.mrb[24].mxu0 %v279_v59  ;;  %v287_v34 = vmul.f32 %v1679_v15, %v1877_v9 }
  0x62   : > { %1367 = vmatprep.mubr.msk.f32.mxu1 %vm293_vm0, %v1773_v6  ;;  %1341 = vmatprep.mubr.msk.f32.mxu0 %vm293_vm0, %v282_v19  ;;  %v285_v6 = vmul.f32 %v1679_v15, %v1828_v36 }
  0x65   : > { %719 = vmatmul.mubr.f32.gmra.mrb[26].mxu1 %v1798_v20  ;;  %502 = vmatmul.mubr.f32.gmra.mrb[26].mxu0 %v281_v47  ;;  %v288_v20 = vmul.f32 %v1581_v4, %v1855_v63 }
  0x66   : > { %1368 = vmatprep.mubr.msk.f32.mxu1 %vm293_vm0, %v1825_v17  ;;  %1342 = vmatprep.mubr.msk.f32.mxu0 %vm293_vm0, %v284_v61  ;;  %v290_v17 = vmul.f32 %v1581_v4, %v1833_v40 }
  0x69   : > { %724 = vmatmul.mubr.f32.gmra.mrb[28].mxu1 %v1852_v51  ;;  %507 = vmatmul.mubr.f32.gmra.mrb[28].mxu0 %v283_v57 }
  0x6a   : > { %1369 = vmatprep.mubr.msk.f32.mxu1 %vm293_vm0, %v1803_v23  ;;  %1343 = vmatprep.mubr.msk.f32.mxu0 %vm293_vm0, %v286_v33  ;;  %v289_v23 = vmul.f32 %v1679_v15, %v1858_v52 }
  0x6d   : > { %729 = vmatmul.mubr.f32.gmra.mrb[30].mxu1 %v1828_v36  ;;  %512 = vmatmul.mubr.f32.gmra.mrb[30].mxu0 %v285_v6  ;;  %v292_v36 = vmul.f32 %v1581_v4, %v1880_v10 }
  0x6e   : > { %1370 = vmatprep.mubr.msk.f32.mxu1 %vm293_vm0, %v1855_v63  ;;  %1344 = vmatprep.mubr.msk.f32.mxu0 %vm293_vm0, %v288_v20 }
  0x71   : > { %734 = vmatmul.mubr.f32.gmra.mrb[32].mxu1 %v1877_v9  ;;  %517 = vmatmul.mubr.f32.gmra.mrb[32].mxu0 %v287_v34 }
  0x72   : > { %1371 = vmatprep.mubr.msk.f32.mxu1 %vm293_vm0, %v1833_v40  ;;  %1345 = vmatprep.mubr.msk.f32.mxu0 %vm293_vm0, %v290_v17 }
  0x75   : > { %739 = vmatmul.mubr.f32.gmra.mrb[34].mxu1 %v1858_v52  ;;  %522 = vmatmul.mubr.f32.gmra.mrb[34].mxu0 %v289_v23 }
  0x76   : > { %1372 = vmatprep.mubr.msk.f32.mxu1 %vm293_vm0, %v1880_v10  ;;  %1346 = vmatprep.mubr.msk.f32.mxu0 %vm293_vm0, %v292_v36 }
  0x79   : > { %744 = vmatmul.mubr.f32.gmra.mrb[36].mxu1 %v1883_v11  ;;  %527 = vmatmul.mubr.f32.gmra.mrb[36].mxu0 %v291_v38 }
  0xa5   : > { %v1016_v39 = vpop.xlane.xlu0 %1015 }
  0xa6   : > { %1435 = vrsqrt.f32 %v1016_v39  ;;  %v1024_v40 = vpop.xlane.xlu1 %1023  ;;  %vm1046_vm6 = vcmp.eq.f32.partialorder %v1016_v39, inf  ;;  %v1049_v48 = vand.u32 2147483648, %v1016_v39  ;;  %vm1048_vm7 = vcmp.eq.f32.partialorder %v1016_v39, 0.0 }
  0xa7   : > { %1437 = vrsqrt.f32 %v1024_v40  ;;  %vm1060_vm9 = vcmp.eq.f32.partialorder %v1024_v40, inf  ;;  %v1063_v3 = vand.u32 2147483648, %v1024_v40  ;;  %vm1062_vm11 = vcmp.eq.f32.partialorder %v1024_v40, 0.0 }
  0xa9   : > { %v1020_v60 = vpop.xlane.xlu0 %1019 }
  0xaa   : > { %1439 = vrsqrt.f32 %v1020_v60  ;;  %v1028_v4 = vpop.xlane.xlu1 %1027  ;;  %vm1053_vm8 = vcmp.eq.f32.partialorder %v1020_v60, inf  ;;  %v1056_v26 = vand.u32 2147483648, %v1020_v60  ;;  %vm1055_vm10 = vcmp.eq.f32.partialorder %v1020_v60, 0.0 }
  0xab   : > { %1441 = vrsqrt.f32 %v1028_v4  ;;  %vm1067_vm12 = vcmp.eq.f32.partialorder %v1028_v4, inf  ;;  %v1070_v10 = vand.u32 2147483648, %v1028_v4  ;;  %vm1069_vm13 = vcmp.eq.f32.partialorder %v1028_v4, 0.0 }
  0xad   : > { %v1032_v42 = vpop.xlane.xlu0 %1031 }
  0xae   : > { %1443 = vrsqrt.f32 %v1032_v42  ;;  %v1036_v15 = vpop.xlane.xlu1 %1035  ;;  %vm1074_vm14 = vcmp.eq.f32.partialorder %v1032_v42, inf  ;;  %v1077_v0 = vand.u32 2147483648, %v1032_v42  ;;  %vm1076_vm15 = vcmp.eq.f32.partialorder %v1032_v42, 0.0 }
  0xaf   : > { %1445 = vrsqrt.f32 %v1036_v15  ;;  %vm1081_vm0 = vcmp.eq.f32.partialorder %v1036_v15, inf  ;;  %v1084_v24 = vand.u32 2147483648, %v1036_v15  ;;  %vm1083_vm1 = vcmp.eq.f32.partialorder %v1036_v15, 0.0 }
  0xb0   : > { %v1436_v43 = vpop.eup %1435 }
  0xb1   : > { %v1045_v46 = vmul.f32 %v1436_v43, %v1016_v39  ;;  %v1438_v35 = vpop.eup %1437  ;;  %v1043_v63 = vpop.xlane.xlu0 %1042 }
  0xb2   : > { %v1059_v53 = vmul.f32 %v1438_v35, %v1024_v40  ;;  %1447 = vrsqrt.f32 %v1043_v63  ;;  %vm1088_vm2 = vcmp.eq.f32.partialorder %v1043_v63, inf  ;;  %v1091_v37 = vand.u32 2147483648, %v1043_v63  ;;  %v1995_v18 = vpop.xlane.xlu1 %789 }
  0xb3   : > { %v1047_v49 = vsel %vm1046_vm6, %v1016_v39, %v1045_v46  ;;  %vm1090_vm3 = vcmp.eq.f32.partialorder %v1043_v63, 0.0 }
  0xb4   : > { %v1440_v50 = vpop.eup %1439  ;;  %v1050_v51 = vsel %vm1048_vm7, %v1049_v48, %v1047_v49  ;;  %v1061_v56 = vsel %vm1060_vm9, %v1024_v40, %v1059_v53  ;;  %vm868_vm9 = vcmp.eq.f32.partialorder %v1995_v18, inf }
  0xb5   : > { %1093 = vxpose.xlu0.b32.start [1/7] (short) (narrow) %v1050_v51, 8  ;;  %v1052_v52 = vmul.f32 %v1440_v50, %v1020_v60  ;;  %v1442_v54 = vpop.eup %1441  ;;  %v1064_v9 = vsel %vm1062_vm11, %v1063_v3, %v1061_v56  ;;  %v1997_v32 = vpop.xlane.xlu0 %793 }
  0xb6   : > { %v1066_v7 = vmul.f32 %v1442_v54, %v1028_v4  ;;  %v1999_v27 = vpop.xlane.xlu1 %797  ;;  %1449 = vrsqrt.f32 %v1997_v32  ;;  %vm875_vm5 = vcmp.eq.f32.partialorder %v1997_v32, inf  ;;  %vm877_vm6 = vcmp.eq.f32.partialorder %v1997_v32, 0.0 }
  0xb7   : > { %v1054_v55 = vsel %vm1053_vm8, %v1020_v60, %v1052_v52  ;;  %1451 = vrsqrt.f32 %v1995_v18  ;;  %vm882_vm11 = vcmp.eq.f32.partialorder %v1999_v27, inf }
  0xb8   : > { %v1057_v62 = vsel %vm1055_vm10, %v1056_v26, %v1054_v55  ;;  %v1444_v8 = vpop.eup %1443  ;;  %v1068_v11 = vsel %vm1067_vm12, %v1028_v4, %v1066_v7  ;;  %vm870_vm10 = vcmp.eq.f32.partialorder %v1995_v18, 0.0 }
  0xb9   : > { %1094 = vxpose.xlu0.b32.cont [2/7] (short) (narrow) %v1057_v62, 8  ;;  %v1073_v25 = vmul.f32 %v1444_v8, %v1032_v42  ;;  %v1446_v12 = vpop.eup %1445  ;;  %v1071_v14 = vsel %vm1069_vm13, %v1070_v10, %v1068_v11  ;;  %v2001_v44 = vpop.xlane.xlu0 %801 }
  0xba   : > { %v1080_v22 = vmul.f32 %v1446_v12, %v1036_v15  ;;  %v2003_v58 = vpop.xlane.xlu1 %805  ;;  %1453 = vrsqrt.f32 %v2001_v44  ;;  %vm889_vm7 = vcmp.eq.f32.partialorder %v2001_v44, inf  ;;  %vm891_vm8 = vcmp.eq.f32.partialorder %v2001_v44, 0.0 }
  0xbb   : > { %v1075_v21 = vsel %vm1074_vm14, %v1032_v42, %v1073_v25  ;;  %1455 = vrsqrt.f32 %v1999_v27  ;;  %v892_v12 = vand.u32 2147483648, %v2001_v44  ;;  %vm884_vm14 = vcmp.eq.f32.partialorder %v1999_v27, 0.0 }
  0xbc   : > { %v1448_v16 = vpop.eup %1447  ;;  %v1078_v2 = vsel %vm1076_vm15, %v1077_v0, %v1075_v21  ;;  %v1082_v28 = vsel %vm1081_vm0, %v1036_v15, %v1080_v22  ;;  %vm896_vm15 = vcmp.eq.f32.partialorder %v2003_v58, inf  ;;  %vm898_vm0 = vcmp.eq.f32.partialorder %v2003_v58, 0.0 }
  0xbd   : > { %1095 = vxpose.xlu0.b32.cont [3/7] (short) (narrow) %v1064_v9, 8  ;;  %v1087_v29 = vmul.f32 %v1448_v16, %v1043_v63  ;;  %v1085_v13 = vsel %vm1083_vm1, %v1084_v24, %v1082_v28  ;;  %v2005_v30 = vpop.xlane.xlu0 %809  ;;  %v878_v9 = vand.u32 2147483648, %v1997_v32  ;;  %v871_v16 = vand.u32 2147483648, %v1995_v18 }
  0xbe   : > { %1457 = vrsqrt.f32 %v2005_v30  ;;  %vm903_vm12 = vcmp.eq.f32.partialorder %v2005_v30, inf  ;;  %vm905_vm13 = vcmp.eq.f32.partialorder %v2005_v30, 0.0 }
  0xbf   : > { %v1089_v31 = vsel %vm1088_vm2, %v1043_v63, %v1087_v29  ;;  %1459 = vrsqrt.f32 %v2003_v58  ;;  %v906_v29 = vand.u32 2147483648, %v2005_v30 }
  0xc0   : > { %v1092_v41 = vsel %vm1090_vm3, %v1091_v37, %v1089_v31  ;;  %v2007_v45 = vpop.xlane.xlu1 %813  ;;  %v1450_v3 = vpop.eup %1449  ;;  %v885_v37 = vand.u32 2147483648, %v1999_v27 }
  0xc1   : > { %1096 = vxpose.xlu0.b32.cont [4/7] (short) (narrow) %v1071_v14, 8  ;;  %v2016_v59 = vpop.xlane.xlu0 %817  ;;  %v1452_v8 = vpop.eup %1451  ;;  %v874_v25 = vmul.f32 %v1450_v3, %v1997_v32  ;;  %vm910_vm3 = vcmp.eq.f32.partialorder %v2007_v45, inf }
  0xc2   : > { %1461 = vrsqrt.f32 %v2016_v59  ;;  %v867_v22 = vmul.f32 %v1452_v8, %v1995_v18  ;;  %vm917_vm1 = vcmp.eq.f32.partialorder %v2016_v59, inf  ;;  %vm919_vm2 = vcmp.eq.f32.partialorder %v2016_v59, 0.0 }
  0xc3   : > { %1463 = vrsqrt.f32 %v2007_v45 }
  0xc4   : > { %v2022_v33 = vpop.xlane.xlu1 %821  ;;  %v1454_v11 = vpop.eup %1453 }
  0xc5   : > { %1097 = vxpose.xlu0.b32.cont [5/7] (short) (narrow) %v1078_v2, 8  ;;  %v2028_v23 = vpop.xlane.xlu0 %825  ;;  %v1456_v21 = vpop.eup %1455 }
  0xc6   : > { %1465 = vrsqrt.f32 %v2028_v23 }
  0xc7   : > { %1467 = vrsqrt.f32 %v2022_v33 }
  0xc8   : > { %v2034_v60 = vpop.xlane.xlu1 %829  ;;  %v1458_v28 = vpop.eup %1457 }
  0xc9   : > { %1098 = vxpose.xlu0.b32.cont [6/7] (short) (narrow) %v1085_v13, 8  ;;  %v2041_v46 = vpop.xlane.xlu0 %833  ;;  %v888_v13 = vmul.f32 %v1454_v11, %v2001_v44 }
  0xca   : > { %1469 = vrsqrt.f32 %v2041_v46 }
  0xcb   : > { %1471 = vrsqrt.f32 %v2034_v60 }
  0xcc   : > { %v2050_v51 = vpop.xlane.xlu1 %837 }
  0xcd   : > { %1099 = vxpose.xlu0.b32.end [7/7] (short) (narrow) %v1092_v41, 8  ;;  %v2058_v26 = vpop.xlane.xlu0 %841  ;;  %v1460_v41 = vpop.eup %1459 }
  0xce   : > { %1473 = vrsqrt.f32 %v2058_v26 }
  0xcf   : > { %1475 = vrsqrt.f32 %v2050_v51 }
  0xd0   : > { %v2072_v10 = vpop.xlane.xlu1 %845 }
  0xd1   : > { %v2093_v31 = vpop.xlane.xlu0 %849 }
  0xd2   : > { %1477 = vrsqrt.f32 %v2093_v31 }
  0xd3   : > { %1479 = vrsqrt.f32 %v2072_v10 }
 0x104   : > { %v2018_v19 = vpop.f32.mrb[0].mxu1  ;;  %v438_v47 = vpop.f32.mrb[0].mxu0 }
 0x105   : > { %1168 = vst.msk [vmem:[%s2014_s26] sm:$0xff] %vm1167_vm4, %v438_v47  ;;  %v657_v61 = vpop.f32.mrb[1].mxu1  ;;  %v440_v57 = vpop.f32.mrb[1].mxu0  ;;  %v876_v47 = vsel %vm875_vm5, %v1997_v32, %v874_v25  ;;  %vm931_vm5 = vcmp.eq.f32.partialorder %v2028_v23, inf }
 0x106   : > { %v881_v61 = vmul.f32 %v1456_v21, %v1999_v27 }
 0x108   : > { %v2024_v6 = vpop.f32.mrb[2].mxu1  ;;  %v443_v20 = vpop.f32.mrb[2].mxu0  ;;  %v883_v32 = vsel %vm882_vm11, %v1999_v27, %v881_v61  ;;  %vm926_vm11 = vcmp.eq.f32.partialorder %v2022_v33, 0.0 }
 0x109   : > { %1169 = vst.msk [vmem:[%s2014_s26 + $0x8] sm:$0xff] %vm1167_vm4, %v443_v20  ;;  %v662_v34 = vpop.f32.mrb[3].mxu1  ;;  %v445_v17 = vpop.f32.mrb[3].mxu0  ;;  %v2159_v21 = vsel %vm884_vm14, %v885_v37, %v883_v32  ;;  %vm940_vm14 = vcmp.eq.f32.partialorder %v2034_v60, 0.0 }
 0x10a   : > { %v902_v34 = vmul.f32 %v1458_v28, %v2005_v30  ;;  %v869_v17 = vsel %vm868_vm9, %v1995_v18, %v867_v22  ;;  %vm945_vm9 = vcmp.eq.f32.partialorder %v2041_v46, inf  ;;  %v948_v22 = vand.u32 2147483648, %v2041_v46 }
 0x10c   : > { %v2030_v36 = vpop.f32.mrb[4].mxu1  ;;  %v448_v38 = vpop.f32.mrb[4].mxu0  ;;  %v904_v18 = vsel %vm903_vm12, %v2005_v30, %v902_v34  ;;  %vm947_vm12 = vcmp.eq.f32.partialorder %v2041_v46, 0.0 }
 0x10d   : > { %1170 = vst.msk [vmem:[%s2014_s26 + $0x10] sm:$0xff] %vm1167_vm4, %v448_v38  ;;  %v667_v39 = vpop.f32.mrb[5].mxu1  ;;  %v450_v40 = vpop.f32.mrb[5].mxu0 }
 0x10e   : > { %v1462_v40 = vpop.eup %1461 }
 0x10f   : > { %v916_v3 = vmul.f32 %v1462_v40, %v2016_v59 }
 0x110   : > { %v2036_v4 = vpop.f32.mrb[6].mxu1  ;;  %v453_v42 = vpop.f32.mrb[6].mxu0 }
 0x111   : > { %1171 = vst.msk [vmem:[%s2014_s26 + $0x18] sm:$0xff] %vm1167_vm4, %v453_v42  ;;  %v672_v43 = vpop.f32.mrb[7].mxu1  ;;  %v455_v15 = vpop.f32.mrb[7].mxu0  ;;  %v920_v42 = vand.u32 2147483648, %v2016_v59 }
 0x112   : > { %v899_v43 = vand.u32 2147483648, %v2003_v58  ;;  %v2118_v15 = vsel %vm877_vm6, %v878_v9, %v876_v47  ;;  %vm912_vm6 = vcmp.eq.f32.partialorder %v2007_v45, 0.0 }
 0x114   : > { %v2044_v35 = vpop.f32.mrb[8].mxu1  ;;  %v458_v48 = vpop.f32.mrb[8].mxu0 }
 0x115   : > { %1172 = vst.msk [vmem:[%s2014_s26 + $0x20] sm:$0xff] %vm1167_vm4, %v458_v48  ;;  %v677_v49 = vpop.f32.mrb[9].mxu1  ;;  %v460_v50 = vpop.f32.mrb[9].mxu0  ;;  %v890_v48 = vsel %vm889_vm7, %v2001_v44, %v888_v13  ;;  %vm933_vm7 = vcmp.eq.f32.partialorder %v2028_v23, 0.0 }
 0x116   : > { %v895_v49 = vmul.f32 %v1460_v41, %v2003_v58  ;;  %v2125_v50 = vpop.xlane.xlu1 %853  ;;  %v2152_v25 = vsel %vm891_vm8, %v892_v12, %v890_v48  ;;  %v2166_v12 = vpop.xlane.xlu0 %857  ;;  %vm938_vm8 = vcmp.eq.f32.partialorder %v2034_v60, inf  ;;  %v918_v41 = vsel %vm917_vm1, %v2016_v59, %v916_v3 }
 0x117   : > { %1481 = vrsqrt.f32 %v2166_v12  ;;  %vm952_vm1 = vcmp.eq.f32.partialorder %v2050_v51, inf }
 0x118   : > { %v2053_v63 = vpop.f32.mrb[10].mxu1  ;;  %v463_v52 = vpop.f32.mrb[10].mxu0  ;;  %v897_v44 = vsel %vm896_vm15, %v2003_v58, %v895_v49  ;;  %vm961_vm15 = vcmp.eq.f32.partialorder %v2058_v26, 0.0  ;;  %1483 = vrsqrt.f32 %v2125_v50 }
 0x119   : > { %1173 = vst.msk [vmem:[%s2014_s26 + $0x28] sm:$0xff] %vm1167_vm4, %v463_v52  ;;  %v682_v53 = vpop.f32.mrb[11].mxu1  ;;  %v465_v54 = vpop.f32.mrb[11].mxu0  ;;  %v2129_v52 = vsel %vm870_vm10, %v871_v16, %v869_v17  ;;  %vm924_vm10 = vcmp.eq.f32.partialorder %v2022_v33, inf  ;;  %v2187_v61 = vsel %vm898_vm0, %v899_v43, %v897_v44  ;;  %v2200_v43 = vsel %vm919_vm2, %v920_v42, %v918_v41 }
 0x11a   : > { %v2196_v40 = vpop.xlane.xlu1 %864  ;;  %vm973_vm0 = vcmp.eq.f32.partialorder %v2093_v31, inf  ;;  %vm954_vm2 = vcmp.eq.f32.partialorder %v2050_v51, 0.0 }
 0x11b   : > { %1485 = vrsqrt.f32 %v2196_v40 }
 0x11c   : > { %v2061_v55 = vpop.f32.mrb[12].mxu1  ;;  %v468_v62 = vpop.f32.mrb[12].mxu0 }
 0x11d   : > { %1174 = vst.msk [vmem:[%s2014_s26 + $0x30] sm:$0xff] %vm1167_vm4, %v468_v62  ;;  %v687_v56 = vpop.f32.mrb[13].mxu1  ;;  %v470_v7 = vpop.f32.mrb[13].mxu0 }
 0x11e   : > { %v1464_v62 = vpop.eup %1463  ;;  %v934_v56 = vand.u32 2147483648, %v2028_v23  ;;  %v913_v7 = vand.u32 2147483648, %v2007_v45 }
 0x11f   : > { %v1466_v11 = vpop.eup %1465  ;;  %v909_v27 = vmul.f32 %v1464_v62, %v2007_v45 }
 0x120   : > { %v2078_v14 = vpop.f32.mrb[14].mxu1  ;;  %v473_v0 = vpop.f32.mrb[14].mxu0  ;;  %v930_v47 = vmul.f32 %v1466_v11, %v2028_v23 }
 0x121   : > { %1175 = vst.msk [vmem:[%s2014_s26 + $0x38] sm:$0xff] %vm1167_vm4, %v473_v0  ;;  %v692_v2 = vpop.f32.mrb[15].mxu1  ;;  %v475_v24 = vpop.f32.mrb[15].mxu0  ;;  %v911_v48 = vsel %vm910_vm3, %v2007_v45, %v909_v27  ;;  %vm975_vm3 = vcmp.eq.f32.partialorder %v2093_v31, 0.0 }
 0x122   : > { %v1468_v0 = vpop.eup %1467  ;;  %v2170_v2 = vsel %vm905_vm13, %v906_v29, %v904_v18  ;;  %v927_v24 = vand.u32 2147483648, %v2022_v33  ;;  %vm959_vm13 = vcmp.eq.f32.partialorder %v2058_v26, inf  ;;  %v932_v62 = vsel %vm931_vm5, %v2028_v23, %v930_v47 }
 0x123   : > { %v1470_v16 = vpop.eup %1469  ;;  %v914_v11 = vsel %vm912_vm6, %v913_v7, %v911_v48  ;;  %vm966_vm5 = vcmp.eq.f32.partialorder %v2072_v10, inf  ;;  %vm987_vm6 = vcmp.eq.f32.partialorder %v2166_v12, inf  ;;  %v990_v23 = vand.u32 2147483648, %v2166_v12 }
 0x124   : > { %v2102_v57 = vpop.f32.mrb[16].mxu1  ;;  %v478_v20 = vpop.f32.mrb[16].mxu0  ;;  %v944_v17 = vmul.f32 %v1470_v16, %v2041_v46  ;;  %v935_v16 = vsel %vm933_vm7, %v934_v56, %v932_v62  ;;  %vm968_vm7 = vcmp.eq.f32.partialorder %v2072_v10, 0.0 }
 0x125   : > { %1176 = vst.msk [vmem:[%s2014_s26 + $0x40] sm:$0xff] %vm1167_vm4, %v478_v20  ;;  %v697_v38 = vpop.f32.mrb[17].mxu1  ;;  %v480_v39 = vpop.f32.mrb[17].mxu0  ;;  %v923_v20 = vmul.f32 %v1468_v0, %v2022_v33  ;;  %v976_v0 = vand.u32 2147483648, %v2093_v31 }
 0x126   : > { %v1472_v37 = vpop.eup %1471  ;;  %v962_v38 = vand.u32 2147483648, %v2058_v26  ;;  %v941_v39 = vand.u32 2147483648, %v2034_v60 }
 0x127   : > { %v1474_v34 = vpop.eup %1473  ;;  %v937_v49 = vmul.f32 %v1472_v37, %v2034_v60 }
 0x128   : > { %v2137_v53 = vpop.f32.mrb[18].mxu1  ;;  %v483_v54 = vpop.f32.mrb[18].mxu0  ;;  %v958_v3 = vmul.f32 %v1474_v34, %v2058_v26 }
 0x129   : > { %1177 = vst.msk [vmem:[%s2014_s26 + $0x48] sm:$0xff] %vm1167_vm4, %v483_v54  ;;  %v702_v8 = vpop.f32.mrb[19].mxu1  ;;  %v485_v9 = vpop.f32.mrb[19].mxu0  ;;  %v939_v27 = vsel %vm938_vm8, %v2034_v60, %v937_v49  ;;  %vm996_vm8 = vcmp.eq.f32.partialorder %v2196_v40, 0.0 }
 0x12a   : > { %v1476_v58 = vpop.eup %1475  ;;  %v925_v8 = vsel %vm924_vm10, %v2022_v33, %v923_v20  ;;  %v946_v9 = vsel %vm945_vm9, %v2041_v46, %v944_v17  ;;  %v969_v33 = vand.u32 2147483648, %v2072_v10  ;;  %v942_v17 = vsel %vm940_vm14, %v941_v39, %v939_v27 }
 0x12b   : > { %v1478_v18 = vpop.eup %1477  ;;  %v951_v44 = vmul.f32 %v1476_v58, %v2050_v51  ;;  %v928_v41 = vsel %vm926_vm11, %v927_v24, %v925_v8  ;;  %vm980_vm9 = vcmp.eq.f32.partialorder %v2125_v50, inf  ;;  %vm982_vm10 = vcmp.eq.f32.partialorder %v2125_v50, 0.0 }
 0x12c   : > { %v2175_v28 = vpop.f32.mrb[20].mxu1  ;;  %v488_v13 = vpop.f32.mrb[20].mxu0  ;;  %v972_v7 = vmul.f32 %v1478_v18, %v2093_v31  ;;  %vm994_vm11 = vcmp.eq.f32.partialorder %v2196_v40, inf  ;;  %v997_v18 = vand.u32 2147483648, %v2196_v40  ;;  %vm1186_vm14 = vcmask 406528  }
 0x12d   : > { %1178 = vst.msk [vmem:[%s2014_s26 + $0x50] sm:$0xff] %vm1167_vm4, %v488_v13  ;;  %v707_v30 = vpop.f32.mrb[21].mxu1  ;;  %v490_v29 = vpop.f32.mrb[21].mxu0  ;;  %v955_v13 = vand.u32 2147483648, %v2050_v51  ;;  %v953_v46 = vsel %vm952_vm1, %v2050_v51, %v951_v44 }
 0x12e   : > { %v949_v30 = vsel %vm947_vm12, %v948_v22, %v946_v9  ;;  %v960_v29 = vsel %vm959_vm13, %v2058_v26, %v958_v3  ;;  %v1480_v34 = vpop.eup %1479  ;;  %v983_v22 = vand.u32 2147483648, %v2125_v50  ;;  %vm989_vm12 = vcmp.eq.f32.partialorder %v2166_v12, 0.0 }
 0x12f   : > { %v1482_v49 = vpop.eup %1481 }
 0x130   : > { %v2207_v32 = vpop.f32.mrb[22].mxu1  ;;  %v493_v54 = vpop.f32.mrb[22].mxu0  ;;  %v986_v44 = vmul.f32 %v1482_v49, %v2166_v12 }
 0x131   : > { %1179 = vst.msk [vmem:[%s2014_s26 + $0x58] sm:$0xff] %vm1167_vm4, %v493_v54  ;;  %v712_v59 = vpop.f32.mrb[23].mxu1  ;;  %v495_v42 = vpop.f32.mrb[23].mxu0  ;;  %v974_v54 = vsel %vm973_vm0, %v2093_v31, %v972_v7 }
 0x132   : > { %v1484_v62 = vpop.eup %1483  ;;  %v956_v59 = vsel %vm954_vm2, %v955_v13, %v953_v46  ;;  %v965_v42 = vmul.f32 %v1480_v34, %v2072_v10  ;;  %v977_v13 = vsel %vm975_vm3, %v976_v0, %v974_v54 }
 0x133   : > { %v1486_v9 = vpop.eup %1485 }
 0x134   : > { %v2239_v37 = vpop.f32.mrb[24].mxu1  ;;  %v498_v45 = vpop.f32.mrb[24].mxu0 }
 0x135   : > { %v1109_v56 = vpop.trf.xlu0  ;;  %1180 = vst.msk [vmem:[%s2014_s26 + $0x60] sm:$0xff] %vm1167_vm4, %v498_v45  ;;  %v717_v47 = vpop.f32.mrb[25].mxu1  ;;  %v979_v45 = vmul.f32 %v1484_v62, %v2125_v50 }
 0x136   : > { %v2258_v24 = vrot.slane %v1109_v56, %v247_v5  ;;  %v500_v20 = vpop.f32.mrb[25].mxu0 }
 0x137   : > { %v988_v20 = vsel %vm987_vm6, %v2166_v12, %v986_v44 }
 0x138   : > { %v1129_v1 = vmul.f32 %v2258_v24, %v2129_v52  ;;  %v1130_v5 = vmul.f32 %v2258_v24, %v2118_v15  ;;  %v1131_v60 = vmul.f32 %v2258_v24, %v2159_v21  ;;  %v1132_v39 = vmul.f32 %v2258_v24, %v2152_v25  ;;  %v2276_v58 = vpop.f32.mrb[26].mxu1  ;;  %v503_v48 = vpop.f32.mrb[26].mxu0 }
 0x139   : > { %v1133_v15 = vmul.f32 %v2258_v24, %v2187_v61  ;;  %v963_v52 = vsel %vm961_vm15, %v962_v38, %v960_v29  ;;  %1181 = vst.msk [vmem:[%s2014_s26 + $0x68] sm:$0xff] %vm1167_vm4, %v503_v48  ;;  %v722_v25 = vpop.f32.mrb[27].mxu1  ;;  %v505_v21 = vpop.f32.mrb[27].mxu0  ;;  %v1134_v61 = vmul.f32 %v2258_v24, %v2170_v2  ;;  %v1135_v26 = vmul.f32 %v2258_v24, %v914_v11 }
 0x13a   : > { %v1148_v38 = vadd.f32 1e-06, %v1129_v1  ;;  %v1149_v3 = vadd.f32 1e-06, %v1130_v5  ;;  %v1150_v8 = vadd.f32 1e-06, %v1131_v60  ;;  %v1136_v51 = vmul.f32 %v2258_v24, %v2200_v43 }
 0x13b   : > { %v1151_v27 = vadd.f32 1e-06, %v1132_v39  ;;  %v1137_v2 = vmul.f32 %v2258_v24, %v928_v41  ;;  %v1152_v7 = vadd.f32 1e-06, %v1133_v15  ;;  %v967_v11 = vsel %vm966_vm5, %v2072_v10, %v965_v42 }
 0x13c   : > { %1487 = vrcp.f32 %v1148_v38  ;;  %v1138_v56 = vmul.f32 %v2258_v24, %v935_v16  ;;  %v1153_v47 = vadd.f32 1e-06, %v1134_v61  ;;  %v993_v43 = vmul.f32 %v1486_v9, %v2196_v40  ;;  %v2313_v29 = vpop.f32.mrb[28].mxu1  ;;  %v508_v41 = vpop.f32.mrb[28].mxu0 }
 0x13d   : > { %1489 = vrcp.f32 %v1149_v3  ;;  %v1139_v31 = vmul.f32 %v2258_v24, %v942_v17  ;;  %v1154_v0 = vadd.f32 1e-06, %v1135_v26  ;;  %v1140_v34 = vmul.f32 %v2258_v24, %v949_v30  ;;  %1182 = vst.msk [vmem:[%s2014_s26 + $0x70] sm:$0xff] %vm1167_vm4, %v508_v41  ;;  %v727_v16 = vpop.f32.mrb[29].mxu1  ;;  %v510_v1 = vpop.f32.mrb[29].mxu0 }
 0x13e   : > { %1491 = vrcp.f32 %v1150_v8  ;;  %v1155_v46 = vadd.f32 1e-06, %v1136_v51  ;;  %v981_v17 = vsel %vm980_vm9, %v2125_v50, %v979_v45  ;;  %v1141_v5 = vmul.f32 %v2258_v24, %v956_v59 }
 0x13f   : > { %1493 = vrcp.f32 %v1151_v27  ;;  %v1156_v60 = vadd.f32 1e-06, %v1137_v2  ;;  %v1157_v49 = vadd.f32 1e-06, %v1138_v56  ;;  %v1142_v30 = vmul.f32 %v2258_v24, %v963_v52 }
 0x140   : > { %1495 = vrcp.f32 %v1152_v7  ;;  %v2325_v39 = vpop.f32.mrb[30].mxu1  ;;  %v513_v48 = vpop.f32.mrb[30].mxu0  ;;  %v970_v54 = vsel %vm968_vm7, %v969_v33, %v967_v11  ;;  %v995_v21 = vsel %vm994_vm11, %v2196_v40, %v993_v43  ;;  %v1158_v62 = vadd.f32 1e-06, %v1139_v31 }
 0x141   : > { %1497 = vrcp.f32 %v1153_v47  ;;  %1183 = vst.msk [vmem:[%s2014_s26 + $0x78] sm:$0xff] %vm1167_vm4, %v513_v48  ;;  %v732_v15 = vpop.f32.mrb[31].mxu1  ;;  %v515_v25 = vpop.f32.mrb[31].mxu0  ;;  %v1143_v59 = vmul.f32 %v2258_v24, %v970_v54  ;;  %v1159_v42 = vadd.f32 1e-06, %v1140_v34  ;;  %v1144_v52 = vmul.f32 %v2258_v24, %v977_v13 }
 0x142   : > { %1499 = vrcp.f32 %v1154_v0  ;;  %v984_v10 = vsel %vm982_vm10, %v983_v22, %v981_v17  ;;  %v1160_v26 = vadd.f32 1e-06, %v1141_v5  ;;  %v991_v9 = vsel %vm989_vm12, %v990_v23, %v988_v20 }
 0x143   : > { %1501 = vrcp.f32 %v1155_v46  ;;  %v1145_v38 = vmul.f32 %v2258_v24, %v984_v10  ;;  %v998_v50 = vsel %vm996_vm8, %v997_v18, %v995_v21  ;;  %v1161_v22 = vadd.f32 1e-06, %v1142_v30 }
 0x144   : > { %v2339_v61 = vpop.f32.mrb[32].mxu1  ;;  %v518_v33 = vpop.f32.mrb[32].mxu0  ;;  %1503 = vrcp.f32 %v1156_v60  ;;  %v1146_v44 = vmul.f32 %v2258_v24, %v991_v9  ;;  %v1162_v27 = vadd.f32 1e-06, %v1143_v59  ;;  %v1147_v13 = vmul.f32 %v2258_v24, %v998_v50 }
 0x145   : > { %1184 = vst.msk [vmem:[%s2014_s26 + $0x80] sm:$0xff] %vm1167_vm4, %v518_v33  ;;  %v737_v3 = vpop.f32.mrb[33].mxu1  ;;  %v520_v8 = vpop.f32.mrb[33].mxu0  ;;  %1505 = vrcp.f32 %v1157_v49  ;;  %v1163_v23 = vadd.f32 1e-06, %v1144_v52 }
 0x146   : > { %v1488_v51 = vpop.eup %1487  ;;  %1507 = vrcp.f32 %v1158_v62  ;;  %v1164_v11 = vadd.f32 1e-06, %v1145_v38 }
 0x147   : > { %v1490_v45 = vpop.eup %1489  ;;  %1509 = vrcp.f32 %v1159_v42  ;;  %v1207_v12 = vmul.f32 %v1488_v51, %v2018_v19  ;;  %v1165_v19 = vadd.f32 1e-06, %v1146_v44 }
 0x148   : > { %v2359_v2 = vpop.f32.mrb[34].mxu1  ;;  %v523_v40 = vpop.f32.mrb[34].mxu0  ;;  %1511 = vrcp.f32 %v1160_v26  ;;  %v1208_v7 = vmul.f32 %v1490_v45, %v2024_v6  ;;  %v1166_v6 = vadd.f32 1e-06, %v1147_v13 }
 0x149   : > { %v1492_v18 = vpop.eup %1491  ;;  %1185 = vst.msk [vmem:[%s2014_s26 + $0x88] sm:$0xff] %vm1167_vm4, %v523_v40  ;;  %v742_v56 = vpop.f32.mrb[35].mxu1  ;;  %1373 = vst.msk [vmem:[%s2014_s26 + $0x98] sm:$0xff] %vm1167_vm4, %v1207_v12  ;;  %1513 = vrcp.f32 %v1161_v22 }
 0x14a   : > { %v525_v24 = vpop.f32.mrb[35].mxu0  ;;  %v1494_v47 = vpop.eup %1493  ;;  %v1209_v43 = vmul.f32 %v1492_v18, %v2030_v36  ;;  %1374 = vst.msk [vmem:[%s2014_s26 + $0xa0] sm:$0xff] %vm1167_vm4, %v1208_v7  ;;  %1515 = vrcp.f32 %v1162_v27 }
 0x14b   : > { %v1496_v31 = vpop.eup %1495  ;;  %v1210_v0 = vmul.f32 %v1494_v47, %v2036_v4  ;;  %1517 = vrcp.f32 %v1163_v23 }
 0x14c   : > { %v1498_v41 = vpop.eup %1497  ;;  %v1211_v20 = vmul.f32 %v1496_v31, %v2044_v35  ;;  %1375 = vst.msk [vmem:[%s2014_s26 + $0xa8] sm:$0xff] %vm1167_vm4, %v1209_v43  ;;  %v745_v36 = vpop.f32.mrb[36].mxu1  ;;  %1519 = vrcp.f32 %v1164_v11 }
 0x14d   : > { %v528_v34 = vpop.f32.mrb[36].mxu0  ;;  %v1500_v46 = vpop.eup %1499  ;;  %v1212_v16 = vmul.f32 %v1498_v41, %v2053_v63  ;;  %1376 = vst.msk [vmem:[%s2014_s26 + $0xb0] sm:$0xff] %vm1167_vm4, %v1210_v0  ;;  %1521 = vrcp.f32 %v1165_v19 }
 0x14e   : > { %1187 = vst.msk [vmem:[%s2014_s26 + $0x90] sm:$0x3f] %vm1186_vm14, %v528_v34  ;;  %v747_v4 = vpop.f32.mrb[37].mxu1  ;;  %v530_v1 = vpop.f32.mrb[37].mxu0  ;;  %v1213_v35 = vmul.f32 %v1500_v46, %v2061_v55  ;;  %1523 = vrcp.f32 %v1166_v6 }
 0x14f   : > { %v1502_v17 = vpop.eup %1501  ;;  %1377 = vst.msk [vmem:[%s2014_s26 + $0xb8] sm:$0xff] %vm1167_vm4, %v1211_v20  ;;  %1378 = vst.msk [vmem:[%s2014_s26 + $0xc0] sm:$0xff] %vm1167_vm4, %v1212_v16 }
 0x150   : > { %v1504_v5 = vpop.eup %1503  ;;  %v1214_v63 = vmul.f32 %v1502_v17, %v2078_v14  ;;  %1379 = vst.msk [vmem:[%s2014_s26 + $0xc8] sm:$0xff] %vm1167_vm4, %v1213_v35 }
 0x151   : > { %v1506_v60 = vpop.eup %1505  ;;  %v1215_v48 = vmul.f32 %v1504_v5, %v2102_v57 }
 0x152   : > { %v1508_v49 = vpop.eup %1507  ;;  %v1216_v55 = vmul.f32 %v1506_v60, %v2137_v53  ;;  %1380 = vst.msk [vmem:[%s2014_s26 + $0xd0] sm:$0xff] %vm1167_vm4, %v1214_v63 }
 0x153   : > { %v1510_v30 = vpop.eup %1509  ;;  %v1217_v14 = vmul.f32 %v1508_v49, %v2175_v28  ;;  %1381 = vst.msk [vmem:[%s2014_s26 + $0xd8] sm:$0xff] %vm1167_vm4, %v1215_v48 }
 0x154   : > { %v1512_v54 = vpop.eup %1511  ;;  %v1218_v15 = vmul.f32 %v1510_v30, %v2207_v32  ;;  %1382 = vst.msk [vmem:[%s2014_s26 + $0xe0] sm:$0xff] %vm1167_vm4, %v1216_v55 }
 0x155   : > { %v1514_v57 = vpop.eup %1513  ;;  %v1219_v25 = vmul.f32 %v1512_v54, %v2239_v37  ;;  %1383 = vst.msk [vmem:[%s2014_s26 + $0xe8] sm:$0xff] %vm1167_vm4, %v1217_v14 }
 0x156   : > { %v1516_v53 = vpop.eup %1515  ;;  %1384 = vst.msk [vmem:[%s2014_s26 + $0xf0] sm:$0xff] %vm1167_vm4, %v1218_v15  ;;  %v1220_v28 = vmul.f32 %v1514_v57, %v2276_v58 }
 0x157   : > { %v1518_v21 = vpop.eup %1517  ;;  %1385 = vst.msk [vmem:[%s2014_s26 + $0xf8] sm:$0xff] %vm1167_vm4, %v1219_v25  ;;  %v1221_v32 = vmul.f32 %v1516_v53, %v2313_v29 }
 0x158   : > { %v1520_v62 = vpop.eup %1519  ;;  %1386 = vst.msk [vmem:[%s2014_s26 + $0x100] sm:$0xff] %vm1167_vm4, %v1220_v28  ;;  %v1222_v37 = vmul.f32 %v1518_v21, %v2325_v39 }
 0x159   : > { %v1522_v59 = vpop.eup %1521  ;;  %1387 = vst.msk [vmem:[%s2014_s26 + $0x108] sm:$0xff] %vm1167_vm4, %v1221_v32  ;;  %v1223_v42 = vmul.f32 %v1520_v62, %v2339_v61 }
 0x15a   : > { %v1524_v52 = vpop.eup %1523  ;;  %1388 = vst.msk [vmem:[%s2014_s26 + $0x110] sm:$0xff] %vm1167_vm4, %v1222_v37  ;;  %v1224_v58 = vmul.f32 %v1522_v59, %v2359_v2 }
 0x15b   : > { %1389 = vst.msk [vmem:[%s2014_s26 + $0x118] sm:$0xff] %vm1167_vm4, %v1223_v42  ;;  %v1225_v10 = vmul.f32 %v1524_v52, %v745_v36 }
 0x15c   : > { %1390 = vst.msk [vmem:[%s2014_s26 + $0x120] sm:$0xff] %vm1167_vm4, %v1224_v58 }
 0x15d   : > { %1391 = vst.msk [vmem:[%s2014_s26 + $0x128] sm:$0x3f] %vm1186_vm14, %v1225_v10 }
 0x15e PF: > { %s13_s12 = sadd.s32 1, %s1531_s12  }
 0x15f   : > { %p10_p4 = scmp.ge.s32.totalorder %s13_s12, 4  }
 0x161   :  { %12 = sbr.rel (!%p10_p4) target bundleno = 1 (0x1), region = 66 }

// kernel: forward.12
= control target key start
LH: loop header
LB: loop body
LE: loop exit
PB: predicated region body
PF: predicated region fallthrough
CT: control target
= control target key end

     0   :  { %s5393_s12 = smov 0   ;;  %s6897_s0 = inlined_call_operand.vmem [shape: f32[18,13824], index: 0, kind: input, shape index: {}]   ;;  %s6898_s1 = inlined_call_operand.vmem [shape: f32[16,18], index: 1, kind: input, shape index: {}]   ;;  %s6899_s2 = inlined_call_operand.vmem [shape: f32[16,1], index: 2, kind: input, shape index: {}]   ;;  %s6900_s3 = inlined_call_operand.vmem [shape: f32[16,13824], index: 3, kind: output, shape index: {}]  }
   0x1 LB: > { %s4962_s13 = sadd.s32 4294967295, %s5369_s12   ;;  %p4966_p0 = scmp.ge.s32.totalorder %s5369_s12, 1  ;;  %s5369_s12 = sphi %s5393_s12, %s13_s12  }
   0x2   : > { %p145_p1 = scmp.lt.s32.totalorder %s5369_s12, 3 }
   0x4   : > { %p146_p2 = pnand %p4966_p0, %p145_p1 }
   0x5   : > { %v187_v0 = vld [vmem:[%s6897_s0 + $0x8] sm:$0xff] (!%p146_p2)  ;;  %v189_v2 = vld [vmem:[%s6897_s0 + $0x18] sm:$0xff] (!%p146_p2)  ;;  %p5410_p3 = scmp.lt.s32.totalorder (!%p146_p2), %s4962_s13, 1  ;;  %v186_v5 = vld [vmem:[%s6897_s0] sm:$0xff] (!%p146_p2)  ;;  %v5371_v7 = vmov (!%p146_p2), 0.0   ;;  %vm520_vm0 = vcmask (!%p146_p2), 1041408  }
   0x6   : > { %149 = sbr.rel (%p146_p2) target bundleno = 416 (0x1a0), region = 32  ;;  %v295_v1 = vld [vmem:[%s6897_s0 + $0x368] sm:$0xff] (!%p146_p2)  ;;  %v297_v4 = vld [vmem:[%s6897_s0 + $0x378] sm:$0xff] (!%p146_p2)  ;;  %v294_v6 = vld [vmem:[%s6897_s0 + $0x360] sm:$0xff] (!%p146_p2)  ;;  %909 = vmatprep.mubr.f32.mxu0 (!%p146_p2), %v5371_v7  ;;  %980 = vmatprep.mubr.f32.mxu1 (!%p146_p2), %v5371_v7  ;;  %v5372_v13 = vmov (!%p146_p2), 0   ;;  %vm516_vm1 = vcmask (!%p146_p2), 146432  }
   0x7   : > { %v5134_v3 = vpack.c.bf16 (!%p146_p2), %v295_v1, %v187_v0  ;;  %v5138_v8 = vpack.c.bf16 (!%p146_p2), %v297_v4, %v189_v2  ;;  %v5136_v9 = vpack.c.bf16 (!%p146_p2), %v294_v6, %v186_v5  ;;  %v188_v10 = vld [vmem:[%s6897_s0 + $0x10] sm:$0xff] (!%p146_p2)  ;;  %v403_v12 = vld [vmem:[%s6897_s0 + $0x6c8] sm:$0x3] (!%p146_p2)  ;;  %5361 = vset.pattern.permute.xlu0 (!%p146_p2), %v5372_v13  ;;  %v405_v15 = vld [vmem:[%s6897_s0 + $0x6d8] sm:$0x3] (!%p146_p2) }
   0x8   : > { %v296_v11 = vld [vmem:[%s6897_s0 + $0x370] sm:$0xff] (!%p146_p2)  ;;  %v402_v16 = vld [vmem:[%s6897_s0 + $0x6c0] sm:$0x3] (!%p146_p2)  ;;  %v191_v18 = vld [vmem:[%s6897_s0 + $0x28] sm:$0xff] (!%p146_p2) }
   0x9   : > { %5135 = vmatprep.subr.bf16.mxu0 (!%p146_p2), %v5134_v3  ;;  %v5140_v14 = vpack.c.bf16 (!%p146_p2), %v296_v11, %v188_v10  ;;  %5139 = vmatprep.subr.bf16.mxu1 (!%p146_p2), %v5138_v8  ;;  %v404_v17 = vld [vmem:[%s6897_s0 + $0x6d0] sm:$0x3] (!%p146_p2)  ;;  %v299_v19 = vld [vmem:[%s6897_s0 + $0x388] sm:$0xff] (!%p146_p2)  ;;  %v193_v20 = vld [vmem:[%s6897_s0 + $0x38] sm:$0xff] (!%p146_p2) }
   0xa   : > { %5137 = vmatpush1.bf16.msra.mxu0 (!%p146_p2), %v5136_v9  ;;  %v301_v21 = vld [vmem:[%s6897_s0 + $0x398] sm:$0xff] (!%p146_p2)  ;;  %v190_v22 = vld [vmem:[%s6897_s0 + $0x20] sm:$0xff] (!%p146_p2)  ;;  %v5142_v25 = vpack.c.bf16 (!%p146_p2), %v299_v19, %v191_v18  ;;  %v192_v26 = vld [vmem:[%s6897_s0 + $0x30] sm:$0xff] (!%p146_p2) }
   0xb   : > { %5141 = vmatpush1.bf16.msra.mxu1 (!%p146_p2), %v5140_v14  ;;  %4970 = vmatprep.subr.msk.mxu0 (!%p146_p2), %vm520_vm0, %v403_v12  ;;  %v298_v23 = vld [vmem:[%s6897_s0 + $0x380] sm:$0xff] (!%p146_p2)  ;;  %v300_v27 = vld [vmem:[%s6897_s0 + $0x390] sm:$0xff] (!%p146_p2)  ;;  %v5146_v28 = vpack.c.bf16 (!%p146_p2), %v301_v21, %v193_v20  ;;  %v407_v31 = vld [vmem:[%s6897_s0 + $0x6e8] sm:$0x3] (!%p146_p2) }
   0xc   : > { %4973 = vmatprep.subr.msk.mxu1 (!%p146_p2), %vm520_vm0, %v405_v15  ;;  %v5144_v29 = vpack.c.bf16 (!%p146_p2), %v298_v23, %v190_v22  ;;  %v5148_v30 = vpack.c.bf16 (!%p146_p2), %v300_v27, %v192_v26  ;;  %v409_v32 = vld [vmem:[%s6897_s0 + $0x6f8] sm:$0x3] (!%p146_p2)  ;;  %v195_v33 = vld [vmem:[%s6897_s0 + $0x48] sm:$0xff] (!%p146_p2)  ;;  %v194_v37 = vld [vmem:[%s6897_s0 + $0x40] sm:$0xff] (!%p146_p2) }
   0xd   : > { %s6903_s13 = smov (!%p5410_p3, %s4962_s13), 1  ;;  %v303_v34 = vld [vmem:[%s6897_s0 + $0x3a8] sm:$0xff]  ;;  %v197_v35 = vld [vmem:[%s6897_s0 + $0x58] sm:$0xff]  ;;  %v302_v38 = vld [vmem:[%s6897_s0 + $0x3a0] sm:$0xff] }
   0xe   : > { %s4967_s14 = sshll.u32 %s6903_s13, 3  ;;  %4971 = vmatpush1.msk.msra.mxu0 %vm520_vm0, %v402_v16  ;;  %v305_v36 = vld [vmem:[%s6897_s0 + $0x3b8] sm:$0xff]  ;;  %v406_v39 = vld [vmem:[%s6897_s0 + $0x6e0] sm:$0x3]  ;;  %v196_v40 = vld [vmem:[%s6897_s0 + $0x50] sm:$0xff]  ;;  %v5150_v43 = vpack.c.bf16 %v303_v34, %v195_v33  ;;  %v5152_v45 = vpack.c.bf16 %v302_v38, %v194_v37  ;;  %s5350_s21 = smul.u32 864, %s6903_s13 }
   0xf   : > { %s5463_s23 = scalar_lea.vmem %s6898_s1, %s4967_s14  ;;  %4974 = vmatpush1.msk.msra.mxu1 %vm520_vm0, %v404_v17  ;;  %5143 = vmatprep.subr.bf16.mxu0 %v5142_v25  ;;  %v304_v41 = vld [vmem:[%s6897_s0 + $0x3b0] sm:$0xff]  ;;  %v5154_v44 = vpack.c.bf16 %v305_v36, %v197_v35  ;;  %v411_v47 = vld [vmem:[%s6897_s0 + $0x708] sm:$0x3]  ;;  %v413_v48 = vld [vmem:[%s6897_s0 + $0x718] sm:$0x3]  ;;  %s179_s24 = scalar_lea.vmem %s6899_s2, %s4967_s14 }
  0x10   : > { %v5476_v24 = vld [vmem:[%s5463_s23] sm:$0xff]  ;;  %5147 = vmatprep.subr.bf16.mxu1 %v5146_v28  ;;  %v408_v42 = vld [vmem:[%s6897_s0 + $0x6f0] sm:$0x3]  ;;  %v5156_v46 = vpack.c.bf16 %v304_v41, %v196_v40  ;;  %v199_v49 = vld [vmem:[%s6897_s0 + $0x68] sm:$0xff]  ;;  %s6677_s25 = scalar_lea.vmem %s6900_s3, %s5350_s21 }
  0x11   : > { %4972 = vmatmul.mubr.msk.f32.vlgmr.msra.gmra.mrb[0].mxu0 %vm516_vm1, %v5476_v24  ;;  %4975 = vmatmul.mubr.msk.f32.vlgmr.msra.gmra.mrb[0].mxu1 %vm516_vm1, %v5476_v24  ;;  %v307_v50 = vld [vmem:[%s6897_s0 + $0x3c8] sm:$0xff]  ;;  %v201_v51 = vld [vmem:[%s6897_s0 + $0x78] sm:$0xff]  ;;  %v198_v53 = vld [vmem:[%s6897_s0 + $0x60] sm:$0xff] }
  0x12   : > { %5145 = vmatpush1.bf16.msra.mxu0 %v5144_v29  ;;  %5149 = vmatpush1.bf16.msra.mxu1 %v5148_v30  ;;  %v309_v52 = vld [vmem:[%s6897_s0 + $0x3d8] sm:$0xff]  ;;  %v306_v54 = vld [vmem:[%s6897_s0 + $0x3c0] sm:$0xff]  ;;  %v200_v56 = vld [vmem:[%s6897_s0 + $0x70] sm:$0xff]  ;;  %v5158_v59 = vpack.c.bf16 %v307_v50, %v199_v49 }
  0x13   : > { %4976 = vmatprep.subr.msk.mxu0 %vm520_vm0, %v407_v31  ;;  %4979 = vmatprep.subr.msk.mxu1 %vm520_vm0, %v409_v32  ;;  %v410_v55 = vld [vmem:[%s6897_s0 + $0x700] sm:$0x3]  ;;  %v308_v57 = vld [vmem:[%s6897_s0 + $0x3d0] sm:$0xff]  ;;  %v5162_v60 = vpack.c.bf16 %v309_v52, %v201_v51  ;;  %v5160_v61 = vpack.c.bf16 %v306_v54, %v198_v53  ;;  %v415_v63 = vld [vmem:[%s6897_s0 + $0x728] sm:$0x3] }
  0x14   : > { %1051 = vmatprep.mubr.f32.mxu0 %v5371_v7  ;;  %1122 = vmatprep.mubr.f32.mxu1 %v5371_v7  ;;  %v412_v58 = vld [vmem:[%s6897_s0 + $0x710] sm:$0x3]  ;;  %v5164_v62 = vpack.c.bf16 %v308_v57, %v200_v56  ;;  %v417_v0 = vld [vmem:[%s6897_s0 + $0x738] sm:$0x3]  ;;  %v203_v1 = vld [vmem:[%s6897_s0 + $0x88] sm:$0xff] }
  0x15   : > { %v311_v2 = vld [vmem:[%s6897_s0 + $0x3e8] sm:$0xff]  ;;  %v205_v3 = vld [vmem:[%s6897_s0 + $0x98] sm:$0xff]  ;;  %v202_v5 = vld [vmem:[%s6897_s0 + $0x80] sm:$0xff] }
  0x16   : > { %4977 = vmatpush1.msk.msra.mxu0 %vm520_vm0, %v406_v39  ;;  %4980 = vmatpush1.msk.msra.mxu1 %vm520_vm0, %v408_v42  ;;  %v313_v4 = vld [vmem:[%s6897_s0 + $0x3f8] sm:$0xff]  ;;  %v310_v6 = vld [vmem:[%s6897_s0 + $0x3e0] sm:$0xff]  ;;  %v204_v9 = vld [vmem:[%s6897_s0 + $0x90] sm:$0xff]  ;;  %v5166_v12 = vpack.c.bf16 %v311_v2, %v203_v1 }
  0x17   : > { %4978 = vmatmul.mubr.msk.f32.vlgmr.msra.gmra.mrb[2].mxu0 %vm516_vm1, %v5476_v24  ;;  %4981 = vmatmul.mubr.msk.f32.vlgmr.msra.gmra.mrb[2].mxu1 %vm516_vm1, %v5476_v24  ;;  %v414_v8 = vld [vmem:[%s6897_s0 + $0x720] sm:$0x3]  ;;  %v312_v10 = vld [vmem:[%s6897_s0 + $0x3f0] sm:$0xff]  ;;  %v5170_v13 = vpack.c.bf16 %v313_v4, %v205_v3  ;;  %v5168_v14 = vpack.c.bf16 %v310_v6, %v202_v5  ;;  %v419_v16 = vld [vmem:[%s6897_s0 + $0x748] sm:$0x3] }
  0x18   : > { %5151 = vmatprep.subr.bf16.mxu0 %v5150_v43  ;;  %5155 = vmatprep.subr.bf16.mxu1 %v5154_v44  ;;  %v416_v11 = vld [vmem:[%s6897_s0 + $0x730] sm:$0x3]  ;;  %v5172_v15 = vpack.c.bf16 %v312_v10, %v204_v9  ;;  %v421_v17 = vld [vmem:[%s6897_s0 + $0x758] sm:$0x3]  ;;  %v207_v18 = vld [vmem:[%s6897_s0 + $0xa8] sm:$0xff] }
  0x19   : > { %5153 = vmatpush1.bf16.msra.mxu0 %v5152_v45  ;;  %5157 = vmatpush1.bf16.msra.mxu1 %v5156_v46  ;;  %v315_v19 = vld [vmem:[%s6897_s0 + $0x408] sm:$0xff]  ;;  %v209_v20 = vld [vmem:[%s6897_s0 + $0xb8] sm:$0xff]  ;;  %v206_v22 = vld [vmem:[%s6897_s0 + $0xa0] sm:$0xff] }
  0x1a   : > { %4982 = vmatprep.subr.msk.mxu0 %vm520_vm0, %v411_v47  ;;  %4985 = vmatprep.subr.msk.mxu1 %vm520_vm0, %v413_v48  ;;  %v317_v21 = vld [vmem:[%s6897_s0 + $0x418] sm:$0xff]  ;;  %v314_v23 = vld [vmem:[%s6897_s0 + $0x400] sm:$0xff]  ;;  %v208_v26 = vld [vmem:[%s6897_s0 + $0xb0] sm:$0xff]  ;;  %v5174_v29 = vpack.c.bf16 %v315_v19, %v207_v18 }
  0x1b   : > { %1193 = vmatprep.mubr.f32.mxu0 %v5371_v7  ;;  %1264 = vmatprep.mubr.f32.mxu1 %v5371_v7  ;;  %v418_v25 = vld [vmem:[%s6897_s0 + $0x740] sm:$0x3]  ;;  %v316_v27 = vld [vmem:[%s6897_s0 + $0x410] sm:$0xff]  ;;  %v5178_v30 = vpack.c.bf16 %v317_v21, %v209_v20  ;;  %v5176_v31 = vpack.c.bf16 %v314_v23, %v206_v22  ;;  %v423_v33 = vld [vmem:[%s6897_s0 + $0x768] sm:$0x3] }
  0x1c   : > { %v420_v28 = vld [vmem:[%s6897_s0 + $0x750] sm:$0x3]  ;;  %v5180_v32 = vpack.c.bf16 %v316_v27, %v208_v26  ;;  %v425_v34 = vld [vmem:[%s6897_s0 + $0x778] sm:$0x3]  ;;  %v211_v35 = vld [vmem:[%s6897_s0 + $0xc8] sm:$0xff] }
  0x1d   : > { %4983 = vmatpush1.msk.msra.mxu0 %vm520_vm0, %v410_v55  ;;  %4986 = vmatpush1.msk.msra.mxu1 %vm520_vm0, %v412_v58  ;;  %v319_v36 = vld [vmem:[%s6897_s0 + $0x428] sm:$0xff]  ;;  %v213_v37 = vld [vmem:[%s6897_s0 + $0xd8] sm:$0xff]  ;;  %v210_v39 = vld [vmem:[%s6897_s0 + $0xc0] sm:$0xff] }
  0x1e   : > { %4984 = vmatmul.mubr.msk.f32.vlgmr.msra.gmra.mrb[4].mxu0 %vm516_vm1, %v5476_v24  ;;  %4987 = vmatmul.mubr.msk.f32.vlgmr.msra.gmra.mrb[4].mxu1 %vm516_vm1, %v5476_v24  ;;  %v321_v38 = vld [vmem:[%s6897_s0 + $0x438] sm:$0xff]  ;;  %v318_v40 = vld [vmem:[%s6897_s0 + $0x420] sm:$0xff]  ;;  %v212_v42 = vld [vmem:[%s6897_s0 + $0xd0] sm:$0xff]  ;;  %v5182_v45 = vpack.c.bf16 %v319_v36, %v211_v35 }
  0x1f   : > { %5159 = vmatprep.subr.bf16.mxu0 %v5158_v59  ;;  %5163 = vmatprep.subr.bf16.mxu1 %v5162_v60  ;;  %v422_v41 = vld [vmem:[%s6897_s0 + $0x760] sm:$0x3]  ;;  %v320_v43 = vld [vmem:[%s6897_s0 + $0x430] sm:$0xff]  ;;  %v5186_v46 = vpack.c.bf16 %v321_v38, %v213_v37  ;;  %v5184_v47 = vpack.c.bf16 %v318_v40, %v210_v39  ;;  %v427_v49 = vld [vmem:[%s6897_s0 + $0x788] sm:$0x3] }
  0x20   : > { %5161 = vmatpush1.bf16.msra.mxu0 %v5160_v61  ;;  %5165 = vmatpush1.bf16.msra.mxu1 %v5164_v62  ;;  %v424_v44 = vld [vmem:[%s6897_s0 + $0x770] sm:$0x3]  ;;  %v5188_v48 = vpack.c.bf16 %v320_v43, %v212_v42  ;;  %v429_v50 = vld [vmem:[%s6897_s0 + $0x798] sm:$0x3]  ;;  %v215_v51 = vld [vmem:[%s6897_s0 + $0xe8] sm:$0xff] }
  0x21   : > { %4988 = vmatprep.subr.msk.mxu0 %vm520_vm0, %v415_v63  ;;  %4991 = vmatprep.subr.msk.mxu1 %vm520_vm0, %v417_v0  ;;  %v323_v52 = vld [vmem:[%s6897_s0 + $0x448] sm:$0xff]  ;;  %v217_v53 = vld [vmem:[%s6897_s0 + $0xf8] sm:$0xff]  ;;  %v214_v55 = vld [vmem:[%s6897_s0 + $0xe0] sm:$0xff] }
  0x22   : > { %1335 = vmatprep.mubr.f32.mxu0 %v5371_v7  ;;  %1406 = vmatprep.mubr.f32.mxu1 %v5371_v7  ;;  %v325_v54 = vld [vmem:[%s6897_s0 + $0x458] sm:$0xff]  ;;  %v322_v56 = vld [vmem:[%s6897_s0 + $0x440] sm:$0xff]  ;;  %v216_v58 = vld [vmem:[%s6897_s0 + $0xf0] sm:$0xff]  ;;  %v5190_v61 = vpack.c.bf16 %v323_v52, %v215_v51 }
  0x23   : > { %v426_v57 = vld [vmem:[%s6897_s0 + $0x780] sm:$0x3]  ;;  %v324_v59 = vld [vmem:[%s6897_s0 + $0x450] sm:$0xff]  ;;  %v5194_v62 = vpack.c.bf16 %v325_v54, %v217_v53  ;;  %v5192_v63 = vpack.c.bf16 %v322_v56, %v214_v55  ;;  %v431_v1 = vld [vmem:[%s6897_s0 + $0x7a8] sm:$0x3] }
  0x24   : > { %4989 = vmatpush1.msk.msra.mxu0 %vm520_vm0, %v414_v8  ;;  %4992 = vmatpush1.msk.msra.mxu1 %vm520_vm0, %v416_v11  ;;  %v428_v60 = vld [vmem:[%s6897_s0 + $0x790] sm:$0x3]  ;;  %v5196_v0 = vpack.c.bf16 %v324_v59, %v216_v58  ;;  %v433_v2 = vld [vmem:[%s6897_s0 + $0x7b8] sm:$0x3]  ;;  %v219_v3 = vld [vmem:[%s6897_s0 + $0x108] sm:$0xff] }
  0x25   : > { %4990 = vmatmul.mubr.msk.f32.vlgmr.msra.gmra.mrb[6].mxu0 %vm516_vm1, %v5476_v24  ;;  %4993 = vmatmul.mubr.msk.f32.vlgmr.msra.gmra.mrb[6].mxu1 %vm516_vm1, %v5476_v24  ;;  %v327_v4 = vld [vmem:[%s6897_s0 + $0x468] sm:$0xff]  ;;  %v221_v5 = vld [vmem:[%s6897_s0 + $0x118] sm:$0xff]  ;;  %v218_v8 = vld [vmem:[%s6897_s0 + $0x100] sm:$0xff] }
  0x26   : > { %5167 = vmatprep.subr.bf16.mxu0 %v5166_v12  ;;  %5171 = vmatprep.subr.bf16.mxu1 %v5170_v13  ;;  %v329_v6 = vld [vmem:[%s6897_s0 + $0x478] sm:$0xff]  ;;  %v326_v9 = vld [vmem:[%s6897_s0 + $0x460] sm:$0xff]  ;;  %v220_v11 = vld [vmem:[%s6897_s0 + $0x110] sm:$0xff] }
  0x27   : > { %5169 = vmatpush1.bf16.msra.mxu0 %v5168_v14  ;;  %5173 = vmatpush1.bf16.msra.mxu1 %v5172_v15  ;;  %v430_v10 = vld [vmem:[%s6897_s0 + $0x7a0] sm:$0x3]  ;;  %v328_v12 = vld [vmem:[%s6897_s0 + $0x470] sm:$0xff]  ;;  %v5198_v14 = vpack.c.bf16 %v327_v4, %v219_v3  ;;  %v5202_v15 = vpack.c.bf16 %v329_v6, %v221_v5  ;;  %v435_v18 = vld [vmem:[%s6897_s0 + $0x7c8] sm:$0x3] }
  0x28   : > { %4994 = vmatprep.subr.msk.mxu0 %vm520_vm0, %v419_v16  ;;  %4997 = vmatprep.subr.msk.mxu1 %vm520_vm0, %v421_v17  ;;  %v432_v13 = vld [vmem:[%s6897_s0 + $0x7b0] sm:$0x3]  ;;  %v5200_v16 = vpack.c.bf16 %v326_v9, %v218_v8  ;;  %v5204_v17 = vpack.c.bf16 %v328_v12, %v220_v11  ;;  %v437_v19 = vld [vmem:[%s6897_s0 + $0x7d8] sm:$0x3]  ;;  %v434_v20 = vld [vmem:[%s6897_s0 + $0x7c0] sm:$0x3] }
  0x29   : > { %1477 = vmatprep.mubr.f32.mxu0 %v5371_v7  ;;  %1548 = vmatprep.mubr.f32.mxu1 %v5371_v7  ;;  %v223_v21 = vld [vmem:[%s6897_s0 + $0x128] sm:$0xff]  ;;  %v225_v23 = vld [vmem:[%s6897_s0 + $0x138] sm:$0xff]  ;;  %v222_v26 = vld [vmem:[%s6897_s0 + $0x120] sm:$0xff] }
  0x2a   : > { %v331_v22 = vld [vmem:[%s6897_s0 + $0x488] sm:$0xff]  ;;  %v330_v27 = vld [vmem:[%s6897_s0 + $0x480] sm:$0xff]  ;;  %v441_v37 = vld [vmem:[%s6897_s0 + $0x7f8] sm:$0x3] }
  0x2b   : > { %4995 = vmatpush1.msk.msra.mxu0 %vm520_vm0, %v418_v25  ;;  %4998 = vmatpush1.msk.msra.mxu1 %vm520_vm0, %v420_v28  ;;  %v333_v25 = vld [vmem:[%s6897_s0 + $0x498] sm:$0xff]  ;;  %v224_v28 = vld [vmem:[%s6897_s0 + $0x130] sm:$0xff]  ;;  %v439_v36 = vld [vmem:[%s6897_s0 + $0x7e8] sm:$0x3] }
  0x2c   : > { %4996 = vmatmul.mubr.msk.f32.vlgmr.msra.gmra.mrb[8].mxu0 %vm516_vm1, %v5476_v24  ;;  %4999 = vmatmul.mubr.msk.f32.vlgmr.msra.gmra.mrb[8].mxu1 %vm516_vm1, %v5476_v24  ;;  %v227_v38 = vld [vmem:[%s6897_s0 + $0x148] sm:$0xff]  ;;  %v229_v40 = vld [vmem:[%s6897_s0 + $0x158] sm:$0xff]  ;;  %v226_v42 = vld [vmem:[%s6897_s0 + $0x140] sm:$0xff] }
  0x2d   : > { %5175 = vmatprep.subr.bf16.mxu0 %v5174_v29  ;;  %5179 = vmatprep.subr.bf16.mxu1 %v5178_v30  ;;  %v332_v29 = vld [vmem:[%s6897_s0 + $0x490] sm:$0xff]  ;;  %v510_v30 = vld [vmem:[%s179_s24] sm:$0xff]  ;;  %v335_v39 = vld [vmem:[%s6897_s0 + $0x4a8] sm:$0xff] }
  0x2e   : > { %5177 = vmatpush1.bf16.msra.mxu0 %v5176_v31  ;;  %5181 = vmatpush1.bf16.msra.mxu1 %v5180_v32  ;;  %v436_v31 = vld [vmem:[%s6897_s0 + $0x7d0] sm:$0x3]  ;;  %v5206_v32 = vpack.c.bf16 %v331_v22, %v223_v21  ;;  %v5212_v35 = vpack.c.bf16 %v332_v29, %v224_v28  ;;  %v334_v43 = vld [vmem:[%s6897_s0 + $0x4a0] sm:$0xff]  ;;  %v443_v52 = vld [vmem:[%s6897_s0 + $0x808] sm:$0x3] }
  0x2f   : > { %5000 = vmatprep.subr.msk.mxu0 %vm520_vm0, %v423_v33  ;;  %5003 = vmatprep.subr.msk.mxu1 %vm520_vm0, %v425_v34  ;;  %v5210_v33 = vpack.c.bf16 %v333_v25, %v225_v23  ;;  %v5208_v34 = vpack.c.bf16 %v330_v27, %v222_v26  ;;  %v445_v53 = vld [vmem:[%s6897_s0 + $0x818] sm:$0x3]  ;;  %v231_v54 = vld [vmem:[%s6897_s0 + $0x168] sm:$0xff]  ;;  %v230_v58 = vld [vmem:[%s6897_s0 + $0x160] sm:$0xff] }
  0x30   : > { %1619 = vmatprep.mubr.f32.mxu0 %v5371_v7  ;;  %1690 = vmatprep.mubr.f32.mxu1 %v5371_v7  ;;  %v339_v55 = vld [vmem:[%s6897_s0 + $0x4c8] sm:$0xff]  ;;  %v233_v56 = vld [vmem:[%s6897_s0 + $0x178] sm:$0xff]  ;;  %v338_v59 = vld [vmem:[%s6897_s0 + $0x4c0] sm:$0xff] }
  0x31   : > { %513 = vperm.xlu0 %5361, %v510_v30   ;;  %v447_v4 = vld [vmem:[%s6897_s0 + $0x828] sm:$0x3]  ;;  %v449_v5 = vld [vmem:[%s6897_s0 + $0x838] sm:$0x3]  ;;  %v234_v11 = vld [vmem:[%s6897_s0 + $0x180] sm:$0xff] }
  0x32   : > { %5001 = vmatpush1.msk.msra.mxu0 %vm520_vm0, %v422_v41  ;;  %5004 = vmatpush1.msk.msra.mxu1 %vm520_vm0, %v424_v44  ;;  %v337_v41 = vld [vmem:[%s6897_s0 + $0x4b8] sm:$0xff]  ;;  %v438_v44 = vld [vmem:[%s6897_s0 + $0x7e0] sm:$0x3]  ;;  %v235_v6 = vld [vmem:[%s6897_s0 + $0x188] sm:$0xff] }
  0x33   : > { %5002 = vmatmul.mubr.msk.f32.vlgmr.msra.gmra.mrb[10].mxu0 %vm516_vm1, %v5476_v24  ;;  %5005 = vmatmul.mubr.msk.f32.vlgmr.msra.gmra.mrb[10].mxu1 %vm516_vm1, %v5476_v24  ;;  %v343_v8 = vld [vmem:[%s6897_s0 + $0x4e8] sm:$0xff]  ;;  %v237_v9 = vld [vmem:[%s6897_s0 + $0x198] sm:$0xff]  ;;  %v342_v12 = vld [vmem:[%s6897_s0 + $0x4e0] sm:$0xff] }
  0x34   : > { %5183 = vmatprep.subr.bf16.mxu0 %v5182_v45  ;;  %5187 = vmatprep.subr.bf16.mxu1 %v5186_v46  ;;  %v228_v45 = vld [vmem:[%s6897_s0 + $0x150] sm:$0xff]  ;;  %v451_v21 = vld [vmem:[%s6897_s0 + $0x848] sm:$0x3]  ;;  %v453_v22 = vld [vmem:[%s6897_s0 + $0x858] sm:$0x3] }
  0x35   : > { %5185 = vmatpush1.bf16.msra.mxu0 %v5184_v47  ;;  %5189 = vmatpush1.bf16.msra.mxu1 %v5188_v48  ;;  %v336_v46 = vld [vmem:[%s6897_s0 + $0x4b0] sm:$0xff]  ;;  %v5214_v48 = vpack.c.bf16 %v335_v39, %v227_v38  ;;  %v239_v23 = vld [vmem:[%s6897_s0 + $0x1a8] sm:$0xff]  ;;  %v241_v26 = vld [vmem:[%s6897_s0 + $0x1b8] sm:$0xff] }
  0x36   : > { %5006 = vmatprep.subr.msk.mxu0 %vm520_vm0, %v427_v49  ;;  %5009 = vmatprep.subr.msk.mxu1 %vm520_vm0, %v429_v50  ;;  %v440_v47 = vld [vmem:[%s6897_s0 + $0x7f0] sm:$0x3]  ;;  %v5218_v49 = vpack.c.bf16 %v337_v41, %v229_v40  ;;  %v5216_v50 = vpack.c.bf16 %v334_v43, %v226_v42  ;;  %v5220_v51 = vpack.c.bf16 %v336_v46, %v228_v45  ;;  %v347_v25 = vld [vmem:[%s6897_s0 + $0x508] sm:$0xff]  ;;  %v349_v27 = vld [vmem:[%s6897_s0 + $0x518] sm:$0xff] }
  0x37   : > { %1761 = vmatprep.mubr.f32.mxu0 %v5371_v7  ;;  %1832 = vmatprep.mubr.f32.mxu1 %v5371_v7  ;;  %v238_v28 = vld [vmem:[%s6897_s0 + $0x1a0] sm:$0xff]  ;;  %v455_v38 = vld [vmem:[%s6897_s0 + $0x868] sm:$0x3]  ;;  %v457_v39 = vld [vmem:[%s6897_s0 + $0x878] sm:$0x3] }
  0x38   : > { %v346_v29 = vld [vmem:[%s6897_s0 + $0x500] sm:$0xff]  ;;  %v243_v40 = vld [vmem:[%s6897_s0 + $0x1c8] sm:$0xff]  ;;  %v245_v42 = vld [vmem:[%s6897_s0 + $0x1d8] sm:$0xff] }
  0x39   : > { %5007 = vmatpush1.msk.msra.mxu0 %vm520_vm0, %v426_v57  ;;  %5010 = vmatpush1.msk.msra.mxu1 %vm520_vm0, %v428_v60  ;;  %v341_v57 = vld [vmem:[%s6897_s0 + $0x4d8] sm:$0xff]  ;;  %v442_v60 = vld [vmem:[%s6897_s0 + $0x800] sm:$0x3]  ;;  %v351_v41 = vld [vmem:[%s6897_s0 + $0x528] sm:$0xff] }
  0x3a   : > { %5008 = vmatmul.mubr.msk.f32.vlgmr.msra.gmra.mrb[12].mxu0 %vm516_vm1, %v5476_v24  ;;  %5011 = vmatmul.mubr.msk.f32.vlgmr.msra.gmra.mrb[12].mxu1 %vm516_vm1, %v5476_v24  ;;  %v450_v30 = vld [vmem:[%s6897_s0 + $0x840] sm:$0x3]  ;;  %v353_v43 = vld [vmem:[%s6897_s0 + $0x538] sm:$0xff] }
  0x3b   : > { %5191 = vmatprep.subr.bf16.mxu0 %v5190_v61  ;;  %5195 = vmatprep.subr.bf16.mxu1 %v5194_v62  ;;  %v232_v61 = vld [vmem:[%s6897_s0 + $0x170] sm:$0xff]  ;;  %v350_v45 = vld [vmem:[%s6897_s0 + $0x520] sm:$0xff] }
  0x3c   : > { %5193 = vmatpush1.bf16.msra.mxu0 %v5192_v63  ;;  %5197 = vmatpush1.bf16.msra.mxu1 %v5196_v0  ;;  %v340_v62 = vld [vmem:[%s6897_s0 + $0x4d0] sm:$0xff]  ;;  %v5222_v0 = vpack.c.bf16 %v339_v55, %v231_v54  ;;  %v454_v46 = vld [vmem:[%s6897_s0 + $0x860] sm:$0x3]  ;;  %v459_v54 = vld [vmem:[%s6897_s0 + $0x888] sm:$0x3] }
  0x3d   : > { %5012 = vmatprep.subr.msk.mxu0 %vm520_vm0, %v431_v1  ;;  %5015 = vmatprep.subr.msk.mxu1 %vm520_vm0, %v433_v2  ;;  %v444_v63 = vld [vmem:[%s6897_s0 + $0x810] sm:$0x3]  ;;  %v5226_v1 = vpack.c.bf16 %v341_v57, %v233_v56  ;;  %v5224_v2 = vpack.c.bf16 %v338_v59, %v230_v58  ;;  %v5228_v3 = vpack.c.bf16 %v340_v62, %v232_v61  ;;  %v461_v55 = vld [vmem:[%s6897_s0 + $0x898] sm:$0x3]  ;;  %v247_v56 = vld [vmem:[%s6897_s0 + $0x1e8] sm:$0xff] }
  0x3e   : > { %1903 = vmatprep.mubr.f32.mxu0 %v5371_v7  ;;  %1974 = vmatprep.mubr.f32.mxu1 %v5371_v7  ;;  %v355_v57 = vld [vmem:[%s6897_s0 + $0x548] sm:$0xff]  ;;  %v249_v58 = vld [vmem:[%s6897_s0 + $0x1f8] sm:$0xff]  ;;  %v354_v61 = vld [vmem:[%s6897_s0 + $0x540] sm:$0xff] }
  0x3f   : > { %v357_v59 = vld [vmem:[%s6897_s0 + $0x558] sm:$0xff]  ;;  %v458_v62 = vld [vmem:[%s6897_s0 + $0x880] sm:$0x3] }
  0x40   : > { %5013 = vmatpush1.msk.msra.mxu0 %vm520_vm0, %v430_v10  ;;  %5016 = vmatpush1.msk.msra.mxu1 %vm520_vm0, %v432_v13  ;;  %v345_v10 = vld [vmem:[%s6897_s0 + $0x4f8] sm:$0xff]  ;;  %v446_v13 = vld [vmem:[%s6897_s0 + $0x820] sm:$0x3] }
  0x41   : > { %5014 = vmatmul.mubr.msk.f32.vlgmr.msra.gmra.mrb[14].mxu0 %vm516_vm1, %v5476_v24  ;;  %5017 = vmatmul.mubr.msk.f32.vlgmr.msra.gmra.mrb[14].mxu1 %vm516_vm1, %v5476_v24 }
  0x42   : > { %5199 = vmatprep.subr.bf16.mxu0 %v5198_v14  ;;  %5203 = vmatprep.subr.bf16.mxu1 %v5202_v15  ;;  %v236_v14 = vld [vmem:[%s6897_s0 + $0x190] sm:$0xff] }
  0x43   : > { %5201 = vmatpush1.bf16.msra.mxu0 %v5200_v16  ;;  %5205 = vmatpush1.bf16.msra.mxu1 %v5204_v17  ;;  %v344_v15 = vld [vmem:[%s6897_s0 + $0x4f0] sm:$0xff]  ;;  %v5230_v17 = vpack.c.bf16 %v343_v8, %v235_v6  ;;  %v463_v6 = vld [vmem:[%s6897_s0 + $0x8a8] sm:$0x3]  ;;  %v465_v8 = vld [vmem:[%s6897_s0 + $0x8b8] sm:$0x3] }
  0x44   : > { %5018 = vmatprep.subr.msk.mxu0 %vm520_vm0, %v435_v18  ;;  %5021 = vmatprep.subr.msk.mxu1 %vm520_vm0, %v437_v19  ;;  %v448_v16 = vld [vmem:[%s6897_s0 + $0x830] sm:$0x3]  ;;  %v5234_v18 = vpack.c.bf16 %v345_v10, %v237_v9  ;;  %v5232_v19 = vpack.c.bf16 %v342_v12, %v234_v11  ;;  %v251_v9 = vld [vmem:[%s6897_s0 + $0x208] sm:$0xff]  ;;  %v253_v11 = vld [vmem:[%s6897_s0 + $0x218] sm:$0xff] }
  0x45   : > { %2045 = vmatprep.mubr.f32.mxu0 %v5371_v7  ;;  %2116 = vmatprep.mubr.f32.mxu1 %v5371_v7  ;;  %v359_v10 = vld [vmem:[%s6897_s0 + $0x568] sm:$0xff]  ;;  %v361_v12 = vld [vmem:[%s6897_s0 + $0x578] sm:$0xff] }
  0x47   : > { %5019 = vmatpush1.msk.msra.mxu0 %vm520_vm0, %v434_v20  ;;  %5022 = vmatpush1.msk.msra.mxu1 %vm520_vm0, %v436_v31  ;;  %v5236_v20 = vpack.c.bf16 %v344_v15, %v236_v14  ;;  %v240_v31 = vld [vmem:[%s6897_s0 + $0x1b0] sm:$0xff]  ;;  %v358_v14 = vld [vmem:[%s6897_s0 + $0x560] sm:$0xff] }
  0x48   : > { %5020 = vmatmul.mubr.msk.f32.vlgmr.msra.gmra.mrb[16].mxu0 %vm516_vm1, %v5476_v24  ;;  %5023 = vmatmul.mubr.msk.f32.vlgmr.msra.gmra.mrb[16].mxu1 %vm516_vm1, %v5476_v24  ;;  %v462_v15 = vld [vmem:[%s6897_s0 + $0x8a0] sm:$0x3] }
  0x49   : > { %5207 = vmatprep.subr.bf16.mxu0 %v5206_v32  ;;  %5211 = vmatprep.subr.bf16.mxu1 %v5210_v33  ;;  %v348_v32 = vld [vmem:[%s6897_s0 + $0x510] sm:$0xff] }
  0x4a   : > { %5209 = vmatpush1.bf16.msra.mxu0 %v5208_v34  ;;  %5213 = vmatpush1.bf16.msra.mxu1 %v5212_v35  ;;  %v452_v33 = vld [vmem:[%s6897_s0 + $0x850] sm:$0x3]  ;;  %v5238_v34 = vpack.c.bf16 %v347_v25, %v239_v23  ;;  %v5242_v35 = vpack.c.bf16 %v349_v27, %v241_v26  ;;  %v467_v23 = vld [vmem:[%s6897_s0 + $0x8c8] sm:$0x3]  ;;  %v469_v25 = vld [vmem:[%s6897_s0 + $0x8d8] sm:$0x3] }
  0x4b   : > { %5024 = vmatprep.subr.msk.mxu0 %vm520_vm0, %v439_v36  ;;  %5027 = vmatprep.subr.msk.mxu1 %vm520_vm0, %v441_v37  ;;  %v5240_v36 = vpack.c.bf16 %v346_v29, %v238_v28  ;;  %v5244_v37 = vpack.c.bf16 %v348_v32, %v240_v31  ;;  %v255_v26 = vld [vmem:[%s6897_s0 + $0x228] sm:$0xff]  ;;  %v257_v28 = vld [vmem:[%s6897_s0 + $0x238] sm:$0xff]  ;;  %v362_v31 = vld [vmem:[%s6897_s0 + $0x580] sm:$0xff] }
  0x4c   : > { %2187 = vmatprep.mubr.f32.mxu0 %v5371_v7  ;;  %2258 = vmatprep.mubr.f32.mxu1 %v5371_v7  ;;  %v363_v27 = vld [vmem:[%s6897_s0 + $0x588] sm:$0xff]  ;;  %v365_v29 = vld [vmem:[%s6897_s0 + $0x598] sm:$0xff]  ;;  %v466_v32 = vld [vmem:[%s6897_s0 + $0x8c0] sm:$0x3] }
  0x4e   : > { %5025 = vmatpush1.msk.msra.mxu0 %vm520_vm0, %v438_v44  ;;  %5028 = vmatpush1.msk.msra.mxu1 %vm520_vm0, %v440_v47  ;;  %v242_v44 = vld [vmem:[%s6897_s0 + $0x1c0] sm:$0xff]  ;;  %v244_v47 = vld [vmem:[%s6897_s0 + $0x1d0] sm:$0xff] }
  0x4f   : > { %5026 = vmatmul.mubr.msk.f32.vlgmr.msra.gmra.mrb[18].mxu0 %vm516_vm1, %v5476_v24  ;;  %5029 = vmatmul.mubr.msk.f32.vlgmr.msra.gmra.mrb[18].mxu1 %vm516_vm1, %v5476_v24 }
  0x50   : > { %5215 = vmatprep.subr.bf16.mxu0 %v5214_v48  ;;  %5219 = vmatprep.subr.bf16.mxu1 %v5218_v49  ;;  %v352_v48 = vld [vmem:[%s6897_s0 + $0x530] sm:$0xff] }
  0x51   : > { %5217 = vmatpush1.bf16.msra.mxu0 %v5216_v50  ;;  %5221 = vmatpush1.bf16.msra.mxu1 %v5220_v51  ;;  %v456_v49 = vld [vmem:[%s6897_s0 + $0x870] sm:$0x3]  ;;  %v5246_v50 = vpack.c.bf16 %v351_v41, %v243_v40  ;;  %v5250_v51 = vpack.c.bf16 %v353_v43, %v245_v42  ;;  %v471_v40 = vld [vmem:[%s6897_s0 + $0x8e8] sm:$0x3]  ;;  %v473_v41 = vld [vmem:[%s6897_s0 + $0x8f8] sm:$0x3] }
  0x52   : > { %5030 = vmatprep.subr.msk.mxu0 %vm520_vm0, %v443_v52  ;;  %5033 = vmatprep.subr.msk.mxu1 %vm520_vm0, %v445_v53  ;;  %v5248_v52 = vpack.c.bf16 %v350_v45, %v242_v44  ;;  %v5252_v53 = vpack.c.bf16 %v352_v48, %v244_v47  ;;  %v259_v42 = vld [vmem:[%s6897_s0 + $0x248] sm:$0xff]  ;;  %v261_v44 = vld [vmem:[%s6897_s0 + $0x258] sm:$0xff]  ;;  %v366_v47 = vld [vmem:[%s6897_s0 + $0x5a0] sm:$0xff] }
  0x53   : > { %2329 = vmatprep.mubr.f32.mxu0 %v5371_v7  ;;  %2400 = vmatprep.mubr.f32.mxu1 %v5371_v7  ;;  %v367_v43 = vld [vmem:[%s6897_s0 + $0x5a8] sm:$0xff]  ;;  %v369_v45 = vld [vmem:[%s6897_s0 + $0x5b8] sm:$0xff]  ;;  %v470_v48 = vld [vmem:[%s6897_s0 + $0x8e0] sm:$0x3] }
  0x55   : > { %5031 = vmatpush1.msk.msra.mxu0 %vm520_vm0, %v442_v60  ;;  %5034 = vmatpush1.msk.msra.mxu1 %vm520_vm0, %v444_v63  ;;  %v246_v60 = vld [vmem:[%s6897_s0 + $0x1e0] sm:$0xff]  ;;  %v248_v63 = vld [vmem:[%s6897_s0 + $0x1f0] sm:$0xff] }
  0x56   : > { %5032 = vmatmul.mubr.msk.f32.vlgmr.msra.gmra.mrb[20].mxu0 %vm516_vm1, %v5476_v24  ;;  %5035 = vmatmul.mubr.msk.f32.vlgmr.msra.gmra.mrb[20].mxu1 %vm516_vm1, %v5476_v24 }
  0x57   : > { %5223 = vmatprep.subr.bf16.mxu0 %v5222_v0  ;;  %5227 = vmatprep.subr.bf16.mxu1 %v5226_v1  ;;  %v356_v0 = vld [vmem:[%s6897_s0 + $0x550] sm:$0xff] }
  0x58   : > { %5225 = vmatpush1.bf16.msra.mxu0 %v5224_v2  ;;  %5229 = vmatpush1.bf16.msra.mxu1 %v5228_v3  ;;  %v460_v1 = vld [vmem:[%s6897_s0 + $0x890] sm:$0x3]  ;;  %v5254_v2 = vpack.c.bf16 %v355_v57, %v247_v56  ;;  %v5258_v3 = vpack.c.bf16 %v357_v59, %v249_v58  ;;  %v475_v56 = vld [vmem:[%s6897_s0 + $0x908] sm:$0x3]  ;;  %v477_v57 = vld [vmem:[%s6897_s0 + $0x918] sm:$0x3] }
  0x59   : > { %5036 = vmatprep.subr.msk.mxu0 %vm520_vm0, %v447_v4  ;;  %5039 = vmatprep.subr.msk.mxu1 %vm520_vm0, %v449_v5  ;;  %v5256_v4 = vpack.c.bf16 %v354_v61, %v246_v60  ;;  %v5260_v5 = vpack.c.bf16 %v356_v0, %v248_v63  ;;  %v263_v58 = vld [vmem:[%s6897_s0 + $0x268] sm:$0xff]  ;;  %v265_v60 = vld [vmem:[%s6897_s0 + $0x278] sm:$0xff]  ;;  %v474_v63 = vld [vmem:[%s6897_s0 + $0x900] sm:$0x3] }
  0x5a   : > { %2471 = vmatprep.mubr.f32.mxu0 %v5371_v7  ;;  %2542 = vmatprep.mubr.f32.mxu1 %v5371_v7  ;;  %v371_v59 = vld [vmem:[%s6897_s0 + $0x5c8] sm:$0xff]  ;;  %v373_v61 = vld [vmem:[%s6897_s0 + $0x5d8] sm:$0xff]  ;;  %v264_v0 = vld [vmem:[%s6897_s0 + $0x270] sm:$0xff] }
  0x5c   : > { %5037 = vmatpush1.msk.msra.mxu0 %vm520_vm0, %v446_v13  ;;  %5040 = vmatpush1.msk.msra.mxu1 %vm520_vm0, %v448_v16  ;;  %v250_v13 = vld [vmem:[%s6897_s0 + $0x200] sm:$0xff]  ;;  %v252_v16 = vld [vmem:[%s6897_s0 + $0x210] sm:$0xff] }
  0x5d   : > { %5038 = vmatmul.mubr.msk.f32.vlgmr.msra.gmra.mrb[22].mxu0 %vm516_vm1, %v5476_v24  ;;  %5041 = vmatmul.mubr.msk.f32.vlgmr.msra.gmra.mrb[22].mxu1 %vm516_vm1, %v5476_v24 }
  0x5e   : > { %5231 = vmatprep.subr.bf16.mxu0 %v5230_v17  ;;  %5235 = vmatprep.subr.bf16.mxu1 %v5234_v18  ;;  %v360_v17 = vld [vmem:[%s6897_s0 + $0x570] sm:$0xff] }
  0x5f   : > { %5233 = vmatpush1.bf16.msra.mxu0 %v5232_v19  ;;  %5237 = vmatpush1.bf16.msra.mxu1 %v5236_v20  ;;  %v464_v18 = vld [vmem:[%s6897_s0 + $0x8b0] sm:$0x3]  ;;  %v5262_v19 = vpack.c.bf16 %v359_v10, %v251_v9  ;;  %v5266_v20 = vpack.c.bf16 %v361_v12, %v253_v11  ;;  %v479_v9 = vld [vmem:[%s6897_s0 + $0x928] sm:$0x3]  ;;  %v481_v10 = vld [vmem:[%s6897_s0 + $0x938] sm:$0x3] }
  0x60   : > { %5042 = vmatprep.subr.msk.mxu0 %vm520_vm0, %v451_v21  ;;  %5045 = vmatprep.subr.msk.mxu1 %vm520_vm0, %v453_v22  ;;  %v5264_v21 = vpack.c.bf16 %v358_v14, %v250_v13  ;;  %v5268_v22 = vpack.c.bf16 %v360_v17, %v252_v16  ;;  %v267_v11 = vld [vmem:[%s6897_s0 + $0x288] sm:$0xff]  ;;  %v269_v13 = vld [vmem:[%s6897_s0 + $0x298] sm:$0xff]  ;;  %v374_v16 = vld [vmem:[%s6897_s0 + $0x5e0] sm:$0xff] }
  0x61   : > { %2613 = vmatprep.mubr.f32.mxu0 %v5371_v7  ;;  %2684 = vmatprep.mubr.f32.mxu1 %v5371_v7  ;;  %v375_v12 = vld [vmem:[%s6897_s0 + $0x5e8] sm:$0xff]  ;;  %v377_v14 = vld [vmem:[%s6897_s0 + $0x5f8] sm:$0xff]  ;;  %v478_v17 = vld [vmem:[%s6897_s0 + $0x920] sm:$0x3] }
  0x63   : > { %5043 = vmatpush1.msk.msra.mxu0 %vm520_vm0, %v450_v30  ;;  %5046 = vmatpush1.msk.msra.mxu1 %vm520_vm0, %v452_v33  ;;  %v254_v30 = vld [vmem:[%s6897_s0 + $0x220] sm:$0xff]  ;;  %v256_v33 = vld [vmem:[%s6897_s0 + $0x230] sm:$0xff] }
  0x64   : > { %5044 = vmatmul.mubr.msk.f32.vlgmr.msra.gmra.mrb[24].mxu0 %vm516_vm1, %v5476_v24  ;;  %5047 = vmatmul.mubr.msk.f32.vlgmr.msra.gmra.mrb[24].mxu1 %vm516_vm1, %v5476_v24 }
  0x65   : > { %5239 = vmatprep.subr.bf16.mxu0 %v5238_v34  ;;  %5243 = vmatprep.subr.bf16.mxu1 %v5242_v35  ;;  %v364_v34 = vld [vmem:[%s6897_s0 + $0x590] sm:$0xff] }
  0x66   : > { %5241 = vmatpush1.bf16.msra.mxu0 %v5240_v36  ;;  %5245 = vmatpush1.bf16.msra.mxu1 %v5244_v37  ;;  %v468_v35 = vld [vmem:[%s6897_s0 + $0x8d0] sm:$0x3]  ;;  %v5270_v36 = vpack.c.bf16 %v363_v27, %v255_v26  ;;  %v5274_v37 = vpack.c.bf16 %v365_v29, %v257_v28  ;;  %v483_v26 = vld [vmem:[%s6897_s0 + $0x948] sm:$0x3]  ;;  %v485_v27 = vld [vmem:[%s6897_s0 + $0x958] sm:$0x3] }
  0x67   : > { %5048 = vmatprep.subr.msk.mxu0 %vm520_vm0, %v455_v38  ;;  %5051 = vmatprep.subr.msk.mxu1 %vm520_vm0, %v457_v39  ;;  %v5272_v38 = vpack.c.bf16 %v362_v31, %v254_v30  ;;  %v5276_v39 = vpack.c.bf16 %v364_v34, %v256_v33  ;;  %v271_v28 = vld [vmem:[%s6897_s0 + $0x2a8] sm:$0xff]  ;;  %v273_v30 = vld [vmem:[%s6897_s0 + $0x2b8] sm:$0xff]  ;;  %v378_v33 = vld [vmem:[%s6897_s0 + $0x600] sm:$0xff] }
  0x68   : > { %2755 = vmatprep.mubr.f32.mxu0 %v5371_v7  ;;  %2826 = vmatprep.mubr.f32.mxu1 %v5371_v7  ;;  %v379_v29 = vld [vmem:[%s6897_s0 + $0x608] sm:$0xff]  ;;  %v381_v31 = vld [vmem:[%s6897_s0 + $0x618] sm:$0xff]  ;;  %v482_v34 = vld [vmem:[%s6897_s0 + $0x940] sm:$0x3] }
  0x6a   : > { %5049 = vmatpush1.msk.msra.mxu0 %vm520_vm0, %v454_v46  ;;  %5052 = vmatpush1.msk.msra.mxu1 %vm520_vm0, %v456_v49  ;;  %v258_v46 = vld [vmem:[%s6897_s0 + $0x240] sm:$0xff]  ;;  %v260_v49 = vld [vmem:[%s6897_s0 + $0x250] sm:$0xff] }
  0x6b   : > { %5050 = vmatmul.mubr.msk.f32.vlgmr.msra.gmra.mrb[26].mxu0 %vm516_vm1, %v5476_v24  ;;  %5053 = vmatmul.mubr.msk.f32.vlgmr.msra.gmra.mrb[26].mxu1 %vm516_vm1, %v5476_v24 }
  0x6c   : > { %5247 = vmatprep.subr.bf16.mxu0 %v5246_v50  ;;  %5251 = vmatprep.subr.bf16.mxu1 %v5250_v51  ;;  %v368_v50 = vld [vmem:[%s6897_s0 + $0x5b0] sm:$0xff] }
  0x6d   : > { %5249 = vmatpush1.bf16.msra.mxu0 %v5248_v52  ;;  %5253 = vmatpush1.bf16.msra.mxu1 %v5252_v53  ;;  %v472_v51 = vld [vmem:[%s6897_s0 + $0x8f0] sm:$0x3]  ;;  %v5278_v52 = vpack.c.bf16 %v367_v43, %v259_v42  ;;  %v5282_v53 = vpack.c.bf16 %v369_v45, %v261_v44  ;;  %v487_v42 = vld [vmem:[%s6897_s0 + $0x968] sm:$0x3]  ;;  %v489_v43 = vld [vmem:[%s6897_s0 + $0x978] sm:$0x3] }
  0x6e   : > { %5054 = vmatprep.subr.msk.mxu0 %vm520_vm0, %v459_v54  ;;  %5057 = vmatprep.subr.msk.mxu1 %vm520_vm0, %v461_v55  ;;  %v5280_v54 = vpack.c.bf16 %v366_v47, %v258_v46  ;;  %v5284_v55 = vpack.c.bf16 %v368_v50, %v260_v49  ;;  %v275_v44 = vld [vmem:[%s6897_s0 + $0x2c8] sm:$0xff]  ;;  %v277_v46 = vld [vmem:[%s6897_s0 + $0x2d8] sm:$0xff]  ;;  %v382_v49 = vld [vmem:[%s6897_s0 + $0x620] sm:$0xff] }
  0x6f   : > { %2897 = vmatprep.mubr.f32.mxu0 %v5371_v7  ;;  %2968 = vmatprep.mubr.f32.mxu1 %v5371_v7  ;;  %v383_v45 = vld [vmem:[%s6897_s0 + $0x628] sm:$0xff]  ;;  %v385_v47 = vld [vmem:[%s6897_s0 + $0x638] sm:$0xff]  ;;  %v486_v50 = vld [vmem:[%s6897_s0 + $0x960] sm:$0x3] }
  0x71   : > { %5055 = vmatpush1.msk.msra.mxu0 %vm520_vm0, %v458_v62  ;;  %5058 = vmatpush1.msk.msra.mxu1 %vm520_vm0, %v460_v1  ;;  %v370_v62 = vld [vmem:[%s6897_s0 + $0x5c0] sm:$0xff]  ;;  %v372_v1 = vld [vmem:[%s6897_s0 + $0x5d0] sm:$0xff] }
  0x72   : > { %5056 = vmatmul.mubr.msk.f32.vlgmr.msra.gmra.mrb[28].mxu0 %vm516_vm1, %v5476_v24  ;;  %5059 = vmatmul.mubr.msk.f32.vlgmr.msra.gmra.mrb[28].mxu1 %vm516_vm1, %v5476_v24 }
  0x73   : > { %5255 = vmatprep.subr.bf16.mxu0 %v5254_v2  ;;  %5259 = vmatprep.subr.bf16.mxu1 %v5258_v3  ;;  %v476_v2 = vld [vmem:[%s6897_s0 + $0x910] sm:$0x3]  ;;  %v5286_v3 = vpack.c.bf16 %v371_v59, %v263_v58  ;;  %v491_v58 = vld [vmem:[%s6897_s0 + $0x988] sm:$0x3]  ;;  %v493_v59 = vld [vmem:[%s6897_s0 + $0x998] sm:$0x3] }
  0x74   : > { %5257 = vmatpush1.bf16.msra.mxu0 %v5256_v4  ;;  %5261 = vmatpush1.bf16.msra.mxu1 %v5260_v5  ;;  %v5290_v4 = vpack.c.bf16 %v373_v61, %v265_v60  ;;  %v279_v60 = vld [vmem:[%s6897_s0 + $0x2e8] sm:$0xff] }
  0x75   : > { %5060 = vmatprep.subr.msk.mxu0 %vm520_vm0, %v463_v6  ;;  %5063 = vmatprep.subr.msk.mxu1 %vm520_vm0, %v465_v8  ;;  %v5292_v6 = vpack.c.bf16 %v372_v1, %v264_v0  ;;  %v6320_v8 = vld [vmem:[%s5463_s23] sm:$0xff]  ;;  %v387_v61 = vld [vmem:[%s6897_s0 + $0x648] sm:$0xff] }
  0x76   : > { %3039 = vmatprep.mubr.f32.mxu0 %v5371_v7  ;;  %3110 = vmatprep.mubr.f32.mxu1 %v5371_v7  ;;  %v386_v0 = vld [vmem:[%s6897_s0 + $0x640] sm:$0xff] }
  0x77   : > { %v490_v1 = vld [vmem:[%s6897_s0 + $0x980] sm:$0x3] }
  0x78   : > { %5061 = vmatpush1.msk.msra.mxu0 %vm520_vm0, %v462_v15  ;;  %5064 = vmatpush1.msk.msra.mxu1 %vm520_vm0, %v464_v18  ;;  %v266_v15 = vld [vmem:[%s6897_s0 + $0x280] sm:$0xff]  ;;  %v268_v18 = vld [vmem:[%s6897_s0 + $0x290] sm:$0xff] }
  0x79   : > { %5062 = vmatmul.mubr.msk.f32.vlgmr.msra.gmra.mrb[30].mxu0 %vm516_vm1, %v5476_v24  ;;  %5065 = vmatmul.mubr.msk.f32.vlgmr.msra.gmra.mrb[30].mxu1 %vm516_vm1, %v5476_v24 }
  0x7a   : > { %5263 = vmatprep.subr.bf16.mxu0 %v5262_v19  ;;  %5267 = vmatprep.subr.bf16.mxu1 %v5266_v20  ;;  %v376_v19 = vld [vmem:[%s6897_s0 + $0x5f0] sm:$0xff] }
  0x7b   : > { %5265 = vmatpush1.bf16.msra.mxu0 %v5264_v21  ;;  %5269 = vmatpush1.bf16.msra.mxu1 %v5268_v22  ;;  %v480_v20 = vld [vmem:[%s6897_s0 + $0x930] sm:$0x3]  ;;  %v5294_v21 = vpack.c.bf16 %v375_v12, %v267_v11  ;;  %v5298_v22 = vpack.c.bf16 %v377_v14, %v269_v13  ;;  %v495_v11 = vld [vmem:[%s6897_s0 + $0x9a8] sm:$0x3]  ;;  %v497_v12 = vld [vmem:[%s6897_s0 + $0x9b8] sm:$0x3] }
  0x7c   : > { %5066 = vmatprep.subr.msk.mxu0 %vm520_vm0, %v467_v23  ;;  %5069 = vmatprep.subr.msk.mxu1 %vm520_vm0, %v469_v25  ;;  %v5296_v23 = vpack.c.bf16 %v374_v16, %v266_v15  ;;  %v5300_v25 = vpack.c.bf16 %v376_v19, %v268_v18  ;;  %v283_v13 = vld [vmem:[%s6897_s0 + $0x308] sm:$0xff]  ;;  %v285_v15 = vld [vmem:[%s6897_s0 + $0x318] sm:$0xff]  ;;  %v390_v18 = vld [vmem:[%s6897_s0 + $0x660] sm:$0xff] }
  0x7d   : > { %3181 = vmatprep.mubr.f32.mxu0 %v5371_v7  ;;  %3252 = vmatprep.mubr.f32.mxu1 %v5371_v7  ;;  %v391_v14 = vld [vmem:[%s6897_s0 + $0x668] sm:$0xff]  ;;  %v393_v16 = vld [vmem:[%s6897_s0 + $0x678] sm:$0xff]  ;;  %v494_v19 = vld [vmem:[%s6897_s0 + $0x9a0] sm:$0x3] }
  0x7f   : > { %5067 = vmatpush1.msk.msra.mxu0 %vm520_vm0, %v466_v32  ;;  %5070 = vmatpush1.msk.msra.mxu1 %vm520_vm0, %v468_v35  ;;  %v270_v32 = vld [vmem:[%s6897_s0 + $0x2a0] sm:$0xff]  ;;  %v272_v35 = vld [vmem:[%s6897_s0 + $0x2b0] sm:$0xff] }
  0x80   : > { %5068 = vmatmul.mubr.msk.f32.vlgmr.msra.gmra.mrb[32].mxu0 %vm516_vm1, %v5476_v24  ;;  %5071 = vmatmul.mubr.msk.f32.vlgmr.msra.gmra.mrb[32].mxu1 %vm516_vm1, %v5476_v24 }
  0x81   : > { %5271 = vmatprep.subr.bf16.mxu0 %v5270_v36  ;;  %5275 = vmatprep.subr.bf16.mxu1 %v5274_v37  ;;  %v380_v36 = vld [vmem:[%s6897_s0 + $0x610] sm:$0xff] }
  0x82   : > { %5273 = vmatpush1.bf16.msra.mxu0 %v5272_v38  ;;  %5277 = vmatpush1.bf16.msra.mxu1 %v5276_v39  ;;  %v484_v37 = vld [vmem:[%s6897_s0 + $0x950] sm:$0x3]  ;;  %v5302_v38 = vpack.c.bf16 %v379_v29, %v271_v28  ;;  %v5306_v39 = vpack.c.bf16 %v381_v31, %v273_v30  ;;  %v499_v28 = vld [vmem:[%s6897_s0 + $0x9c8] sm:$0x3]  ;;  %v501_v29 = vld [vmem:[%s6897_s0 + $0x9d8] sm:$0x3] }
  0x83   : > { %5072 = vmatprep.subr.msk.mxu0 %vm520_vm0, %v471_v40  ;;  %5075 = vmatprep.subr.msk.mxu1 %vm520_vm0, %v473_v41  ;;  %v5304_v40 = vpack.c.bf16 %v378_v33, %v270_v32  ;;  %v5308_v41 = vpack.c.bf16 %v380_v36, %v272_v35  ;;  %v287_v30 = vld [vmem:[%s6897_s0 + $0x328] sm:$0xff]  ;;  %v289_v32 = vld [vmem:[%s6897_s0 + $0x338] sm:$0xff]  ;;  %v394_v35 = vld [vmem:[%s6897_s0 + $0x680] sm:$0xff] }
  0x84   : > { %3323 = vmatprep.mubr.f32.mxu0 %v5371_v7  ;;  %3394 = vmatprep.mubr.f32.mxu1 %v5371_v7  ;;  %v395_v31 = vld [vmem:[%s6897_s0 + $0x688] sm:$0xff]  ;;  %v397_v33 = vld [vmem:[%s6897_s0 + $0x698] sm:$0xff]  ;;  %v498_v36 = vld [vmem:[%s6897_s0 + $0x9c0] sm:$0x3] }
  0x86   : > { %5073 = vmatpush1.msk.msra.mxu0 %vm520_vm0, %v470_v48  ;;  %5076 = vmatpush1.msk.msra.mxu1 %vm520_vm0, %v472_v51  ;;  %v274_v48 = vld [vmem:[%s6897_s0 + $0x2c0] sm:$0xff]  ;;  %v276_v51 = vld [vmem:[%s6897_s0 + $0x2d0] sm:$0xff] }
  0x87   : > { %5074 = vmatmul.mubr.msk.f32.vlgmr.msra.gmra.mrb[34].mxu0 %vm516_vm1, %v5476_v24  ;;  %5077 = vmatmul.mubr.msk.f32.vlgmr.msra.gmra.mrb[34].mxu1 %vm516_vm1, %v5476_v24  ;;  %v262_v24 = vld [vmem:[%s6897_s0 + $0x260] sm:$0xff] }
  0x88   : > { %5279 = vmatprep.subr.bf16.mxu0 %v5278_v52  ;;  %5283 = vmatprep.subr.bf16.mxu1 %v5282_v53  ;;  %v5288_v5 = vpack.c.bf16 %v370_v62, %v262_v24  ;;  %v384_v52 = vld [vmem:[%s6897_s0 + $0x630] sm:$0xff]  ;;  %v281_v24 = vld [vmem:[%s6897_s0 + $0x2f8] sm:$0xff] }
  0x89   : > { %5281 = vmatpush1.bf16.msra.mxu0 %v5280_v54  ;;  %5285 = vmatpush1.bf16.msra.mxu1 %v5284_v55  ;;  %v488_v53 = vld [vmem:[%s6897_s0 + $0x970] sm:$0x3]  ;;  %v5310_v54 = vpack.c.bf16 %v383_v45, %v275_v44  ;;  %v5314_v55 = vpack.c.bf16 %v385_v47, %v277_v46  ;;  %v389_v62 = vld [vmem:[%s6897_s0 + $0x658] sm:$0xff]  ;;  %v503_v44 = vld [vmem:[%s6897_s0 + $0x9e8] sm:$0x3] }
  0x8a   : > { %5078 = vmatprep.subr.msk.mxu0 %vm520_vm0, %v475_v56  ;;  %5081 = vmatprep.subr.msk.mxu1 %vm520_vm0, %v477_v57  ;;  %v5312_v56 = vpack.c.bf16 %v382_v49, %v274_v48  ;;  %v5316_v57 = vpack.c.bf16 %v384_v52, %v276_v51  ;;  %v505_v45 = vld [vmem:[%s6897_s0 + $0x9f8] sm:$0x3]  ;;  %v291_v46 = vld [vmem:[%s6897_s0 + $0x348] sm:$0xff]  ;;  %v398_v51 = vld [vmem:[%s6897_s0 + $0x6a0] sm:$0xff] }
  0x8b   : > { %3465 = vmatprep.mubr.f32.mxu0 %v5371_v7  ;;  %3536 = vmatprep.mubr.f32.mxu1 %v5371_v7  ;;  %v399_v47 = vld [vmem:[%s6897_s0 + $0x6a8] sm:$0xff]  ;;  %v293_v48 = vld [vmem:[%s6897_s0 + $0x358] sm:$0xff]  ;;  %v502_v52 = vld [vmem:[%s6897_s0 + $0x9e0] sm:$0x3] }
  0x8c   : > { %v401_v49 = vld [vmem:[%s6897_s0 + $0x6b8] sm:$0xff] }
  0x8d   : > { %5079 = vmatpush1.msk.msra.mxu0 %vm520_vm0, %v474_v63  ;;  %5082 = vmatpush1.msk.msra.mxu1 %vm520_vm0, %v476_v2  ;;  %v278_v63 = vld [vmem:[%s6897_s0 + $0x2e0] sm:$0xff]  ;;  %v280_v2 = vld [vmem:[%s6897_s0 + $0x2f0] sm:$0xff] }
  0x8e   : > { %5080 = vmatmul.mubr.msk.f32.vlgmr.msra.gmra.mrb[36].mxu0 %vm516_vm1, %v6320_v8  ;;  %5083 = vmatmul.mubr.msk.f32.vlgmr.msra.gmra.mrb[36].mxu1 %vm516_vm1, %v6320_v8 }
  0x8f   : > { %5287 = vmatprep.subr.bf16.mxu0 %v5286_v3  ;;  %5291 = vmatprep.subr.bf16.mxu1 %v5290_v4  ;;  %v388_v3 = vld [vmem:[%s6897_s0 + $0x650] sm:$0xff] }
  0x90   : > { %5289 = vmatpush1.bf16.msra.mxu0 %v5288_v5  ;;  %5293 = vmatpush1.bf16.msra.mxu1 %v5292_v6  ;;  %v492_v4 = vld [vmem:[%s6897_s0 + $0x990] sm:$0x3]  ;;  %v5318_v5 = vpack.c.bf16 %v387_v61, %v279_v60  ;;  %v5322_v6 = vpack.c.bf16 %v389_v62, %v281_v24  ;;  %v507_v60 = vld [vmem:[%s6897_s0 + $0xa08] sm:$0x3]  ;;  %v509_v61 = vld [vmem:[%s6897_s0 + $0xa18] sm:$0x3] }
  0x91   : > { %5084 = vmatprep.subr.msk.mxu0 %vm520_vm0, %v479_v9  ;;  %5087 = vmatprep.subr.msk.mxu1 %vm520_vm0, %v481_v10  ;;  %v5320_v9 = vpack.c.bf16 %v386_v0, %v278_v63  ;;  %v5324_v10 = vpack.c.bf16 %v388_v3, %v280_v2  ;;  %v506_v24 = vld [vmem:[%s6897_s0 + $0xa00] sm:$0x3]  ;;  %v508_v62 = vld [vmem:[%s6897_s0 + $0xa10] sm:$0x3] }
  0x92   : > { %3607 = vmatprep.mubr.f32.mxu0 %v5371_v7  ;;  %3678 = vmatprep.mubr.f32.mxu1 %v5371_v7 }
  0x94   : > { %5085 = vmatpush1.msk.msra.mxu0 %vm520_vm0, %v478_v17  ;;  %5088 = vmatpush1.msk.msra.mxu1 %vm520_vm0, %v480_v20  ;;  %v282_v17 = vld [vmem:[%s6897_s0 + $0x300] sm:$0xff]  ;;  %v284_v20 = vld [vmem:[%s6897_s0 + $0x310] sm:$0xff] }
  0x95   : > { %5086 = vmatmul.mubr.msk.f32.vlgmr.msra.gmra.mrb[38].mxu0 %vm516_vm1, %v6320_v8  ;;  %5089 = vmatmul.mubr.msk.f32.vlgmr.msra.gmra.mrb[38].mxu1 %vm516_vm1, %v6320_v8 }
  0x96   : > { %5295 = vmatprep.subr.bf16.mxu0 %v5294_v21  ;;  %5299 = vmatprep.subr.bf16.mxu1 %v5298_v22  ;;  %v392_v21 = vld [vmem:[%s6897_s0 + $0x670] sm:$0xff] }
  0x97   : > { %5297 = vmatpush1.bf16.msra.mxu0 %v5296_v23  ;;  %5301 = vmatpush1.bf16.msra.mxu1 %v5300_v25  ;;  %v496_v22 = vld [vmem:[%s6897_s0 + $0x9b0] sm:$0x3]  ;;  %v5326_v23 = vpack.c.bf16 %v391_v14, %v283_v13  ;;  %v5330_v25 = vpack.c.bf16 %v393_v16, %v285_v15 }
  0x98   : > { %5090 = vmatprep.subr.msk.mxu0 %vm520_vm0, %v483_v26  ;;  %5093 = vmatprep.subr.msk.mxu1 %vm520_vm0, %v485_v27  ;;  %v5328_v26 = vpack.c.bf16 %v390_v18, %v282_v17  ;;  %v5332_v27 = vpack.c.bf16 %v392_v21, %v284_v20 }
  0x99   : > { %3749 = vmatprep.mubr.f32.mxu0 %v5371_v7  ;;  %3820 = vmatprep.mubr.f32.mxu1 %v5371_v7 }
  0x9b   : > { %5091 = vmatpush1.msk.msra.mxu0 %vm520_vm0, %v482_v34  ;;  %5094 = vmatpush1.msk.msra.mxu1 %vm520_vm0, %v484_v37  ;;  %v286_v34 = vld [vmem:[%s6897_s0 + $0x320] sm:$0xff]  ;;  %v288_v37 = vld [vmem:[%s6897_s0 + $0x330] sm:$0xff] }
  0x9c   : > { %5092 = vmatmul.mubr.msk.f32.vlgmr.msra.gmra.mrb[40].mxu0 %vm516_vm1, %v6320_v8  ;;  %5095 = vmatmul.mubr.msk.f32.vlgmr.msra.gmra.mrb[40].mxu1 %vm516_vm1, %v6320_v8 }
  0x9d   : > { %5303 = vmatprep.subr.bf16.mxu0 %v5302_v38  ;;  %5307 = vmatprep.subr.bf16.mxu1 %v5306_v39  ;;  %v396_v38 = vld [vmem:[%s6897_s0 + $0x690] sm:$0xff] }
  0x9e   : > { %5305 = vmatpush1.bf16.msra.mxu0 %v5304_v40  ;;  %5309 = vmatpush1.bf16.msra.mxu1 %v5308_v41  ;;  %v500_v39 = vld [vmem:[%s6897_s0 + $0x9d0] sm:$0x3]  ;;  %v5334_v40 = vpack.c.bf16 %v395_v31, %v287_v30  ;;  %v5338_v41 = vpack.c.bf16 %v397_v33, %v289_v32 }
  0x9f   : > { %5096 = vmatprep.subr.msk.mxu0 %vm520_vm0, %v487_v42  ;;  %5099 = vmatprep.subr.msk.mxu1 %vm520_vm0, %v489_v43  ;;  %v5336_v42 = vpack.c.bf16 %v394_v35, %v286_v34  ;;  %v5340_v43 = vpack.c.bf16 %v396_v38, %v288_v37 }
  0xa0   : > { %3891 = vmatprep.mubr.f32.mxu0 %v5371_v7  ;;  %3962 = vmatprep.mubr.f32.mxu1 %v5371_v7 }
  0xa2   : > { %5097 = vmatpush1.msk.msra.mxu0 %vm520_vm0, %v486_v50  ;;  %5100 = vmatpush1.msk.msra.mxu1 %vm520_vm0, %v488_v53  ;;  %v290_v50 = vld [vmem:[%s6897_s0 + $0x340] sm:$0xff]  ;;  %v292_v53 = vld [vmem:[%s6897_s0 + $0x350] sm:$0xff] }
  0xa3   : > { %5098 = vmatmul.mubr.msk.f32.vlgmr.msra.gmra.mrb[42].mxu0 %vm516_vm1, %v6320_v8  ;;  %5101 = vmatmul.mubr.msk.f32.vlgmr.msra.gmra.mrb[42].mxu1 %vm516_vm1, %v6320_v8 }
  0xa4   : > { %5311 = vmatprep.subr.bf16.mxu0 %v5310_v54  ;;  %5315 = vmatprep.subr.bf16.mxu1 %v5314_v55  ;;  %v400_v54 = vld [vmem:[%s6897_s0 + $0x6b0] sm:$0xff] }
  0xa5   : > { %5313 = vmatpush1.bf16.msra.mxu0 %v5312_v56  ;;  %5317 = vmatpush1.bf16.msra.mxu1 %v5316_v57  ;;  %v504_v55 = vld [vmem:[%s6897_s0 + $0x9f0] sm:$0x3]  ;;  %v5342_v56 = vpack.c.bf16 %v399_v47, %v291_v46  ;;  %v5346_v57 = vpack.c.bf16 %v401_v49, %v293_v48 }
  0xa6   : > { %5102 = vmatprep.subr.msk.mxu0 %vm520_vm0, %v491_v58  ;;  %5105 = vmatprep.subr.msk.mxu1 %vm520_vm0, %v493_v59  ;;  %v5344_v58 = vpack.c.bf16 %v398_v51, %v290_v50  ;;  %v5348_v59 = vpack.c.bf16 %v400_v54, %v292_v53 }
  0xa7   : > { %4033 = vmatprep.mubr.f32.mxu0 %v5371_v7  ;;  %4104 = vmatprep.mubr.f32.mxu1 %v5371_v7 }
  0xa9   : > { %5103 = vmatpush1.msk.msra.mxu0 %vm520_vm0, %v490_v1  ;;  %5106 = vmatpush1.msk.msra.mxu1 %vm520_vm0, %v492_v4 }
  0xaa   : > { %5104 = vmatmul.mubr.msk.f32.vlgmr.msra.gmra.mrb[44].mxu0 %vm516_vm1, %v6320_v8  ;;  %5107 = vmatmul.mubr.msk.f32.vlgmr.msra.gmra.mrb[44].mxu1 %vm516_vm1, %v6320_v8 }
  0xab   : > { %5319 = vmatprep.subr.bf16.mxu0 %v5318_v5  ;;  %5323 = vmatprep.subr.bf16.mxu1 %v5322_v6 }
  0xac   : > { %5321 = vmatpush1.bf16.msra.mxu0 %v5320_v9  ;;  %5325 = vmatpush1.bf16.msra.mxu1 %v5324_v10 }
  0xad   : > { %5108 = vmatprep.subr.msk.mxu0 %vm520_vm0, %v495_v11  ;;  %5111 = vmatprep.subr.msk.mxu1 %vm520_vm0, %v497_v12 }
  0xae   : > { %4175 = vmatprep.mubr.f32.mxu0 %v5371_v7  ;;  %4246 = vmatprep.mubr.f32.mxu1 %v5371_v7 }
  0xb0   : > { %5109 = vmatpush1.msk.msra.mxu0 %vm520_vm0, %v494_v19  ;;  %5112 = vmatpush1.msk.msra.mxu1 %vm520_vm0, %v496_v22  ;;  %v6671_v63 = vpop.permute.xlu0 %513 }
  0xb1   : > { %5110 = vmatmul.mubr.msk.f32.vlgmr.msra.gmra.mrb[46].mxu0 %vm516_vm1, %v6320_v8  ;;  %5113 = vmatmul.mubr.msk.f32.vlgmr.msra.gmra.mrb[46].mxu1 %vm516_vm1, %v6320_v8 }
  0xb2   : > { %5327 = vmatprep.subr.bf16.mxu0 %v5326_v23  ;;  %5331 = vmatprep.subr.bf16.mxu1 %v5330_v25 }
  0xb3   : > { %5329 = vmatpush1.bf16.msra.mxu0 %v5328_v26  ;;  %5333 = vmatpush1.bf16.msra.mxu1 %v5332_v27 }
  0xb4   : > { %5114 = vmatprep.subr.msk.mxu0 %vm520_vm0, %v499_v28  ;;  %5117 = vmatprep.subr.msk.mxu1 %vm520_vm0, %v501_v29 }
  0xb5   : > { %4317 = vmatprep.mubr.f32.mxu0 %v5371_v7  ;;  %4388 = vmatprep.mubr.f32.mxu1 %v5371_v7 }
  0xb7   : > { %5115 = vmatpush1.msk.msra.mxu0 %vm520_vm0, %v498_v36  ;;  %5118 = vmatpush1.msk.msra.mxu1 %vm520_vm0, %v500_v39 }
  0xb8   : > { %5116 = vmatmul.mubr.msk.f32.vlgmr.msra.gmra.mrb[48].mxu0 %vm516_vm1, %v6320_v8  ;;  %5119 = vmatmul.mubr.msk.f32.vlgmr.msra.gmra.mrb[48].mxu1 %vm516_vm1, %v6320_v8 }
  0xb9   : > { %5335 = vmatprep.subr.bf16.mxu0 %v5334_v40  ;;  %5339 = vmatprep.subr.bf16.mxu1 %v5338_v41 }
  0xba   : > { %5337 = vmatpush1.bf16.msra.mxu0 %v5336_v42  ;;  %5341 = vmatpush1.bf16.msra.mxu1 %v5340_v43 }
  0xbb   : > { %5120 = vmatprep.subr.msk.mxu0 %vm520_vm0, %v503_v44  ;;  %5123 = vmatprep.subr.msk.mxu1 %vm520_vm0, %v505_v45 }
  0xbc   : > { %4459 = vmatprep.mubr.f32.mxu0 %v5371_v7  ;;  %4530 = vmatprep.mubr.f32.mxu1 %v5371_v7 }
  0xbe   : > { %5121 = vmatpush1.msk.msra.mxu0 %vm520_vm0, %v502_v52  ;;  %5124 = vmatpush1.msk.msra.mxu1 %vm520_vm0, %v504_v55 }
  0xbf   : > { %5122 = vmatmul.mubr.msk.f32.vlgmr.msra.gmra.mrb[50].mxu0 %vm516_vm1, %v6320_v8  ;;  %5125 = vmatmul.mubr.msk.f32.vlgmr.msra.gmra.mrb[50].mxu1 %vm516_vm1, %v6320_v8 }
  0xc0   : > { %5343 = vmatprep.subr.bf16.mxu0 %v5342_v56  ;;  %5347 = vmatprep.subr.bf16.mxu1 %v5346_v57 }
  0xc1   : > { %5345 = vmatpush1.bf16.msra.mxu0 %v5344_v58  ;;  %5349 = vmatpush1.bf16.msra.mxu1 %v5348_v59 }
  0xc2   : > { %5126 = vmatprep.subr.msk.mxu0 %vm520_vm0, %v507_v60  ;;  %5129 = vmatprep.subr.msk.mxu1 %vm520_vm0, %v509_v61 }
  0xc3   : > { %4601 = vmatprep.mubr.f32.mxu0 %v5371_v7  ;;  %4672 = vmatprep.mubr.f32.mxu1 %v5371_v7 }
  0xc5   : > { %5127 = vmatpush1.msk.msra.mxu0 %vm520_vm0, %v506_v24  ;;  %5130 = vmatpush1.msk.msra.mxu1 %vm520_vm0, %v508_v62 }
  0xc6   : > { %5128 = vmatmul.mubr.msk.f32.vlgmr.msra.gmra.mrb[52].mxu0 %vm516_vm1, %v6320_v8  ;;  %5131 = vmatmul.mubr.msk.f32.vlgmr.msra.gmra.mrb[52].mxu1 %vm516_vm1, %v6320_v8 }
  0xe4   : > { %v911_v0 = vpop.f32.mrb[0].mxu0  ;;  %v982_v1 = vpop.f32.mrb[0].mxu1 }
  0xe5   : > { %v912_v2 = vadd.f32 %v911_v0, %v6671_v63  ;;  %v913_v3 = vpop.f32.mrb[1].mxu0  ;;  %v983_v7 = vadd.f32 %v982_v1, %v6671_v63  ;;  %v984_v4 = vpop.f32.mrb[1].mxu1 }
  0xe6   : > { %v914_v8 = vadd.f32 %v913_v3, %v6671_v63  ;;  %v985_v6 = vadd.f32 %v984_v4, %v6671_v63 }
  0xe7   : > { %v4679_v5 = vmax.f32 %v912_v2, 0.0  ;;  %v4681_v9 = vmax.f32 %v983_v7, 0.0 }
  0xe8   : > { %v4680_v10 = vmax.f32 %v914_v8, 0.0  ;;  %v4682_v11 = vmax.f32 %v985_v6, 0.0 }
  0xe9   : > { %4787 = vst [vmem:[%s6677_s25] sm:$0xff] %v4679_v5  ;;  %4789 = vst [vmem:[%s6677_s25 + $0x10] sm:$0xff] %v4681_v9 }
  0xea   : > { %4788 = vst [vmem:[%s6677_s25 + $0x8] sm:$0xff] %v4680_v10  ;;  %4790 = vst [vmem:[%s6677_s25 + $0x18] sm:$0xff] %v4682_v11  ;;  %v1053_v12 = vpop.f32.mrb[2].mxu0  ;;  %v1124_v14 = vpop.f32.mrb[2].mxu1 }
  0xeb   : > { %v1054_v13 = vadd.f32 %v1053_v12, %v6671_v63  ;;  %v1055_v15 = vpop.f32.mrb[3].mxu0  ;;  %v1125_v16 = vadd.f32 %v1124_v14, %v6671_v63  ;;  %v1126_v18 = vpop.f32.mrb[3].mxu1 }
  0xec   : > { %v1056_v17 = vadd.f32 %v1055_v15, %v6671_v63  ;;  %v1127_v20 = vadd.f32 %v1126_v18, %v6671_v63 }
  0xed   : > { %v4683_v19 = vmax.f32 %v1054_v13, 0.0  ;;  %v4685_v21 = vmax.f32 %v1125_v16, 0.0 }
  0xee   : > { %v4684_v22 = vmax.f32 %v1056_v17, 0.0  ;;  %v4686_v23 = vmax.f32 %v1127_v20, 0.0 }
  0xef   : > { %4791 = vst [vmem:[%s6677_s25 + $0x20] sm:$0xff] %v4683_v19  ;;  %4793 = vst [vmem:[%s6677_s25 + $0x30] sm:$0xff] %v4685_v21 }
  0xf0   : > { %4792 = vst [vmem:[%s6677_s25 + $0x28] sm:$0xff] %v4684_v22  ;;  %4794 = vst [vmem:[%s6677_s25 + $0x38] sm:$0xff] %v4686_v23 }
  0xf1   : > { %v1195_v25 = vpop.f32.mrb[4].mxu0  ;;  %v1266_v27 = vpop.f32.mrb[4].mxu1 }
  0xf2   : > { %v1196_v26 = vadd.f32 %v1195_v25, %v6671_v63  ;;  %v1197_v28 = vpop.f32.mrb[5].mxu0  ;;  %v1267_v29 = vadd.f32 %v1266_v27, %v6671_v63  ;;  %v1268_v31 = vpop.f32.mrb[5].mxu1 }
  0xf3   : > { %v1198_v30 = vadd.f32 %v1197_v28, %v6671_v63  ;;  %v1269_v33 = vadd.f32 %v1268_v31, %v6671_v63 }
  0xf4   : > { %v4687_v32 = vmax.f32 %v1196_v26, 0.0  ;;  %v4689_v34 = vmax.f32 %v1267_v29, 0.0 }
  0xf5   : > { %v4688_v35 = vmax.f32 %v1198_v30, 0.0  ;;  %v4690_v36 = vmax.f32 %v1269_v33, 0.0 }
  0xf6   : > { %4795 = vst [vmem:[%s6677_s25 + $0x40] sm:$0xff] %v4687_v32  ;;  %4797 = vst [vmem:[%s6677_s25 + $0x50] sm:$0xff] %v4689_v34 }
  0xf7   : > { %4796 = vst [vmem:[%s6677_s25 + $0x48] sm:$0xff] %v4688_v35  ;;  %4798 = vst [vmem:[%s6677_s25 + $0x58] sm:$0xff] %v4690_v36 }
  0xf8   : > { %v1337_v37 = vpop.f32.mrb[6].mxu0  ;;  %v1408_v39 = vpop.f32.mrb[6].mxu1 }
  0xf9   : > { %v1338_v38 = vadd.f32 %v1337_v37, %v6671_v63  ;;  %v1339_v40 = vpop.f32.mrb[7].mxu0  ;;  %v1409_v41 = vadd.f32 %v1408_v39, %v6671_v63  ;;  %v1410_v43 = vpop.f32.mrb[7].mxu1 }
  0xfa   : > { %v1340_v42 = vadd.f32 %v1339_v40, %v6671_v63  ;;  %v1411_v45 = vadd.f32 %v1410_v43, %v6671_v63 }
  0xfb   : > { %v4691_v44 = vmax.f32 %v1338_v38, 0.0  ;;  %v4693_v46 = vmax.f32 %v1409_v41, 0.0 }
  0xfc   : > { %v4692_v47 = vmax.f32 %v1340_v42, 0.0  ;;  %v4694_v48 = vmax.f32 %v1411_v45, 0.0 }
  0xfd   : > { %4799 = vst [vmem:[%s6677_s25 + $0x60] sm:$0xff] %v4691_v44  ;;  %4801 = vst [vmem:[%s6677_s25 + $0x70] sm:$0xff] %v4693_v46 }
  0xfe   : > { %4800 = vst [vmem:[%s6677_s25 + $0x68] sm:$0xff] %v4692_v47  ;;  %4802 = vst [vmem:[%s6677_s25 + $0x78] sm:$0xff] %v4694_v48 }
  0xff   : > { %v1479_v49 = vpop.f32.mrb[8].mxu0  ;;  %v1550_v51 = vpop.f32.mrb[8].mxu1 }
 0x100   : > { %v1480_v50 = vadd.f32 %v1479_v49, %v6671_v63  ;;  %v1481_v52 = vpop.f32.mrb[9].mxu0  ;;  %v1551_v53 = vadd.f32 %v1550_v51, %v6671_v63  ;;  %v1552_v55 = vpop.f32.mrb[9].mxu1 }
 0x101   : > { %v1482_v54 = vadd.f32 %v1481_v52, %v6671_v63  ;;  %v1553_v57 = vadd.f32 %v1552_v55, %v6671_v63 }
 0x102   : > { %v4695_v56 = vmax.f32 %v1480_v50, 0.0  ;;  %v4697_v58 = vmax.f32 %v1551_v53, 0.0 }
 0x103   : > { %v4696_v59 = vmax.f32 %v1482_v54, 0.0  ;;  %v4698_v60 = vmax.f32 %v1553_v57, 0.0 }
 0x104   : > { %4803 = vst [vmem:[%s6677_s25 + $0x80] sm:$0xff] %v4695_v56  ;;  %4805 = vst [vmem:[%s6677_s25 + $0x90] sm:$0xff] %v4697_v58 }
 0x105   : > { %4804 = vst [vmem:[%s6677_s25 + $0x88] sm:$0xff] %v4696_v59  ;;  %4806 = vst [vmem:[%s6677_s25 + $0x98] sm:$0xff] %v4698_v60 }
 0x106   : > { %v1621_v61 = vpop.f32.mrb[10].mxu0  ;;  %v1692_v62 = vpop.f32.mrb[10].mxu1 }
 0x107   : > { %v1622_v24 = vadd.f32 %v1621_v61, %v6671_v63  ;;  %v1623_v0 = vpop.f32.mrb[11].mxu0  ;;  %v1693_v1 = vadd.f32 %v1692_v62, %v6671_v63  ;;  %v1694_v3 = vpop.f32.mrb[11].mxu1 }
 0x108   : > { %v1624_v2 = vadd.f32 %v1623_v0, %v6671_v63  ;;  %v1695_v8 = vadd.f32 %v1694_v3, %v6671_v63 }
 0x109   : > { %v4699_v7 = vmax.f32 %v1622_v24, 0.0  ;;  %v4701_v4 = vmax.f32 %v1693_v1, 0.0 }
 0x10a   : > { %v4700_v5 = vmax.f32 %v1624_v2, 0.0  ;;  %v4702_v6 = vmax.f32 %v1695_v8, 0.0 }
 0x10b   : > { %4807 = vst [vmem:[%s6677_s25 + $0xa0] sm:$0xff] %v4699_v7  ;;  %4809 = vst [vmem:[%s6677_s25 + $0xb0] sm:$0xff] %v4701_v4 }
 0x10c   : > { %4808 = vst [vmem:[%s6677_s25 + $0xa8] sm:$0xff] %v4700_v5  ;;  %4810 = vst [vmem:[%s6677_s25 + $0xb8] sm:$0xff] %v4702_v6 }
 0x10d   : > { %v1763_v9 = vpop.f32.mrb[12].mxu0  ;;  %v1834_v11 = vpop.f32.mrb[12].mxu1 }
 0x10e   : > { %v1764_v10 = vadd.f32 %v1763_v9, %v6671_v63  ;;  %v1765_v12 = vpop.f32.mrb[13].mxu0  ;;  %v1835_v13 = vadd.f32 %v1834_v11, %v6671_v63  ;;  %v1836_v15 = vpop.f32.mrb[13].mxu1 }
 0x10f   : > { %v1766_v14 = vadd.f32 %v1765_v12, %v6671_v63  ;;  %v1837_v17 = vadd.f32 %v1836_v15, %v6671_v63 }
 0x110   : > { %v4703_v16 = vmax.f32 %v1764_v10, 0.0  ;;  %v4705_v18 = vmax.f32 %v1835_v13, 0.0 }
 0x111   : > { %v4704_v19 = vmax.f32 %v1766_v14, 0.0  ;;  %v4706_v20 = vmax.f32 %v1837_v17, 0.0 }
 0x112   : > { %4811 = vst [vmem:[%s6677_s25 + $0xc0] sm:$0xff] %v4703_v16  ;;  %4813 = vst [vmem:[%s6677_s25 + $0xd0] sm:$0xff] %v4705_v18 }
 0x113   : > { %4812 = vst [vmem:[%s6677_s25 + $0xc8] sm:$0xff] %v4704_v19  ;;  %4814 = vst [vmem:[%s6677_s25 + $0xd8] sm:$0xff] %v4706_v20 }
 0x114   : > { %v1905_v21 = vpop.f32.mrb[14].mxu0  ;;  %v1976_v23 = vpop.f32.mrb[14].mxu1 }
 0x115   : > { %v1906_v22 = vadd.f32 %v1905_v21, %v6671_v63  ;;  %v1907_v25 = vpop.f32.mrb[15].mxu0  ;;  %v1977_v26 = vadd.f32 %v1976_v23, %v6671_v63  ;;  %v1978_v28 = vpop.f32.mrb[15].mxu1 }
 0x116   : > { %v1908_v27 = vadd.f32 %v1907_v25, %v6671_v63  ;;  %v1979_v30 = vadd.f32 %v1978_v28, %v6671_v63 }
 0x117   : > { %v4707_v29 = vmax.f32 %v1906_v22, 0.0  ;;  %v4709_v31 = vmax.f32 %v1977_v26, 0.0 }
 0x118   : > { %v4708_v32 = vmax.f32 %v1908_v27, 0.0  ;;  %v4710_v33 = vmax.f32 %v1979_v30, 0.0 }
 0x119   : > { %4815 = vst [vmem:[%s6677_s25 + $0xe0] sm:$0xff] %v4707_v29  ;;  %4817 = vst [vmem:[%s6677_s25 + $0xf0] sm:$0xff] %v4709_v31 }
 0x11a   : > { %4816 = vst [vmem:[%s6677_s25 + $0xe8] sm:$0xff] %v4708_v32  ;;  %4818 = vst [vmem:[%s6677_s25 + $0xf8] sm:$0xff] %v4710_v33 }
 0x11b   : > { %v2047_v34 = vpop.f32.mrb[16].mxu0  ;;  %v2118_v36 = vpop.f32.mrb[16].mxu1 }
 0x11c   : > { %v2048_v35 = vadd.f32 %v2047_v34, %v6671_v63  ;;  %v2049_v37 = vpop.f32.mrb[17].mxu0  ;;  %v2119_v38 = vadd.f32 %v2118_v36, %v6671_v63  ;;  %v2120_v40 = vpop.f32.mrb[17].mxu1 }
 0x11d   : > { %v2050_v39 = vadd.f32 %v2049_v37, %v6671_v63  ;;  %v2121_v42 = vadd.f32 %v2120_v40, %v6671_v63 }
 0x11e   : > { %v4711_v41 = vmax.f32 %v2048_v35, 0.0  ;;  %v4713_v43 = vmax.f32 %v2119_v38, 0.0 }
 0x11f   : > { %v4712_v44 = vmax.f32 %v2050_v39, 0.0  ;;  %v4714_v45 = vmax.f32 %v2121_v42, 0.0 }
 0x120   : > { %4819 = vst [vmem:[%s6677_s25 + $0x100] sm:$0xff] %v4711_v41  ;;  %4821 = vst [vmem:[%s6677_s25 + $0x110] sm:$0xff] %v4713_v43 }
 0x121   : > { %4820 = vst [vmem:[%s6677_s25 + $0x108] sm:$0xff] %v4712_v44  ;;  %4822 = vst [vmem:[%s6677_s25 + $0x118] sm:$0xff] %v4714_v45 }
 0x122   : > { %v2189_v46 = vpop.f32.mrb[18].mxu0  ;;  %v2260_v48 = vpop.f32.mrb[18].mxu1 }
 0x123   : > { %v2190_v47 = vadd.f32 %v2189_v46, %v6671_v63  ;;  %v2191_v49 = vpop.f32.mrb[19].mxu0  ;;  %v2261_v50 = vadd.f32 %v2260_v48, %v6671_v63  ;;  %v2262_v52 = vpop.f32.mrb[19].mxu1 }
 0x124   : > { %v2192_v51 = vadd.f32 %v2191_v49, %v6671_v63  ;;  %v2263_v54 = vadd.f32 %v2262_v52, %v6671_v63 }
 0x125   : > { %v4715_v53 = vmax.f32 %v2190_v47, 0.0  ;;  %v4717_v55 = vmax.f32 %v2261_v50, 0.0 }
 0x126   : > { %v4716_v56 = vmax.f32 %v2192_v51, 0.0  ;;  %v4718_v57 = vmax.f32 %v2263_v54, 0.0 }
 0x127   : > { %4823 = vst [vmem:[%s6677_s25 + $0x120] sm:$0xff] %v4715_v53  ;;  %4825 = vst [vmem:[%s6677_s25 + $0x130] sm:$0xff] %v4717_v55 }
 0x128   : > { %4824 = vst [vmem:[%s6677_s25 + $0x128] sm:$0xff] %v4716_v56  ;;  %4826 = vst [vmem:[%s6677_s25 + $0x138] sm:$0xff] %v4718_v57 }
 0x129   : > { %v2331_v58 = vpop.f32.mrb[20].mxu0  ;;  %v2402_v60 = vpop.f32.mrb[20].mxu1 }
 0x12a   : > { %v2332_v59 = vadd.f32 %v2331_v58, %v6671_v63  ;;  %v2333_v61 = vpop.f32.mrb[21].mxu0  ;;  %v2403_v24 = vadd.f32 %v2402_v60, %v6671_v63  ;;  %v2404_v0 = vpop.f32.mrb[21].mxu1 }
 0x12b   : > { %v2334_v62 = vadd.f32 %v2333_v61, %v6671_v63  ;;  %v2405_v2 = vadd.f32 %v2404_v0, %v6671_v63 }
 0x12c   : > { %v4719_v1 = vmax.f32 %v2332_v59, 0.0  ;;  %v4721_v3 = vmax.f32 %v2403_v24, 0.0 }
 0x12d   : > { %v4720_v7 = vmax.f32 %v2334_v62, 0.0  ;;  %v4722_v8 = vmax.f32 %v2405_v2, 0.0 }
 0x12e   : > { %4827 = vst [vmem:[%s6677_s25 + $0x140] sm:$0xff] %v4719_v1  ;;  %4829 = vst [vmem:[%s6677_s25 + $0x150] sm:$0xff] %v4721_v3 }
 0x12f   : > { %4828 = vst [vmem:[%s6677_s25 + $0x148] sm:$0xff] %v4720_v7  ;;  %4830 = vst [vmem:[%s6677_s25 + $0x158] sm:$0xff] %v4722_v8 }
 0x130   : > { %v2473_v4 = vpop.f32.mrb[22].mxu0  ;;  %v2544_v6 = vpop.f32.mrb[22].mxu1 }
 0x131   : > { %v2474_v5 = vadd.f32 %v2473_v4, %v6671_v63  ;;  %v2475_v9 = vpop.f32.mrb[23].mxu0  ;;  %v2545_v10 = vadd.f32 %v2544_v6, %v6671_v63  ;;  %v2546_v12 = vpop.f32.mrb[23].mxu1 }
 0x132   : > { %v2476_v11 = vadd.f32 %v2475_v9, %v6671_v63  ;;  %v2547_v14 = vadd.f32 %v2546_v12, %v6671_v63 }
 0x133   : > { %v4723_v13 = vmax.f32 %v2474_v5, 0.0  ;;  %v4725_v15 = vmax.f32 %v2545_v10, 0.0 }
 0x134   : > { %v4724_v16 = vmax.f32 %v2476_v11, 0.0  ;;  %v4726_v17 = vmax.f32 %v2547_v14, 0.0 }
 0x135   : > { %4831 = vst [vmem:[%s6677_s25 + $0x160] sm:$0xff] %v4723_v13  ;;  %4833 = vst [vmem:[%s6677_s25 + $0x170] sm:$0xff] %v4725_v15 }
 0x136   : > { %4832 = vst [vmem:[%s6677_s25 + $0x168] sm:$0xff] %v4724_v16  ;;  %4834 = vst [vmem:[%s6677_s25 + $0x178] sm:$0xff] %v4726_v17 }
 0x137   : > { %v2615_v18 = vpop.f32.mrb[24].mxu0  ;;  %v2686_v20 = vpop.f32.mrb[24].mxu1 }
 0x138   : > { %v2616_v19 = vadd.f32 %v2615_v18, %v6671_v63  ;;  %v2617_v21 = vpop.f32.mrb[25].mxu0  ;;  %v2687_v22 = vadd.f32 %v2686_v20, %v6671_v63  ;;  %v2688_v25 = vpop.f32.mrb[25].mxu1 }
 0x139   : > { %v2618_v23 = vadd.f32 %v2617_v21, %v6671_v63  ;;  %v2689_v27 = vadd.f32 %v2688_v25, %v6671_v63 }
 0x13a   : > { %v4727_v26 = vmax.f32 %v2616_v19, 0.0  ;;  %v4729_v28 = vmax.f32 %v2687_v22, 0.0 }
 0x13b   : > { %v4728_v29 = vmax.f32 %v2618_v23, 0.0  ;;  %v4730_v30 = vmax.f32 %v2689_v27, 0.0 }
 0x13c   : > { %4835 = vst [vmem:[%s6677_s25 + $0x180] sm:$0xff] %v4727_v26  ;;  %4837 = vst [vmem:[%s6677_s25 + $0x190] sm:$0xff] %v4729_v28 }
 0x13d   : > { %4836 = vst [vmem:[%s6677_s25 + $0x188] sm:$0xff] %v4728_v29  ;;  %4838 = vst [vmem:[%s6677_s25 + $0x198] sm:$0xff] %v4730_v30 }
 0x13e   : > { %v2757_v31 = vpop.f32.mrb[26].mxu0  ;;  %v2828_v33 = vpop.f32.mrb[26].mxu1 }
 0x13f   : > { %v2758_v32 = vadd.f32 %v2757_v31, %v6671_v63  ;;  %v2759_v34 = vpop.f32.mrb[27].mxu0  ;;  %v2829_v35 = vadd.f32 %v2828_v33, %v6671_v63  ;;  %v2830_v37 = vpop.f32.mrb[27].mxu1 }
 0x140   : > { %v2760_v36 = vadd.f32 %v2759_v34, %v6671_v63  ;;  %v2831_v39 = vadd.f32 %v2830_v37, %v6671_v63 }
 0x141   : > { %v4731_v38 = vmax.f32 %v2758_v32, 0.0  ;;  %v4733_v40 = vmax.f32 %v2829_v35, 0.0 }
 0x142   : > { %v4732_v41 = vmax.f32 %v2760_v36, 0.0  ;;  %v4734_v42 = vmax.f32 %v2831_v39, 0.0 }
 0x143   : > { %4839 = vst [vmem:[%s6677_s25 + $0x1a0] sm:$0xff] %v4731_v38  ;;  %4841 = vst [vmem:[%s6677_s25 + $0x1b0] sm:$0xff] %v4733_v40 }
 0x144   : > { %4840 = vst [vmem:[%s6677_s25 + $0x1a8] sm:$0xff] %v4732_v41  ;;  %4842 = vst [vmem:[%s6677_s25 + $0x1b8] sm:$0xff] %v4734_v42 }
 0x145   : > { %v2899_v43 = vpop.f32.mrb[28].mxu0  ;;  %v2970_v45 = vpop.f32.mrb[28].mxu1 }
 0x146   : > { %v2900_v44 = vadd.f32 %v2899_v43, %v6671_v63  ;;  %v2901_v46 = vpop.f32.mrb[29].mxu0  ;;  %v2971_v47 = vadd.f32 %v2970_v45, %v6671_v63  ;;  %v2972_v49 = vpop.f32.mrb[29].mxu1 }
 0x147   : > { %v2902_v48 = vadd.f32 %v2901_v46, %v6671_v63  ;;  %v2973_v51 = vadd.f32 %v2972_v49, %v6671_v63 }
 0x148   : > { %v4735_v50 = vmax.f32 %v2900_v44, 0.0  ;;  %v4737_v52 = vmax.f32 %v2971_v47, 0.0 }
 0x149   : > { %v4736_v53 = vmax.f32 %v2902_v48, 0.0  ;;  %v4738_v54 = vmax.f32 %v2973_v51, 0.0 }
 0x14a   : > { %4843 = vst [vmem:[%s6677_s25 + $0x1c0] sm:$0xff] %v4735_v50  ;;  %4845 = vst [vmem:[%s6677_s25 + $0x1d0] sm:$0xff] %v4737_v52 }
 0x14b   : > { %4844 = vst [vmem:[%s6677_s25 + $0x1c8] sm:$0xff] %v4736_v53  ;;  %4846 = vst [vmem:[%s6677_s25 + $0x1d8] sm:$0xff] %v4738_v54 }
 0x14c   : > { %v3041_v55 = vpop.f32.mrb[30].mxu0  ;;  %v3112_v57 = vpop.f32.mrb[30].mxu1 }
 0x14d   : > { %v3042_v56 = vadd.f32 %v3041_v55, %v6671_v63  ;;  %v3043_v58 = vpop.f32.mrb[31].mxu0  ;;  %v3113_v59 = vadd.f32 %v3112_v57, %v6671_v63  ;;  %v3114_v61 = vpop.f32.mrb[31].mxu1 }
 0x14e   : > { %v3044_v60 = vadd.f32 %v3043_v58, %v6671_v63  ;;  %v3115_v62 = vadd.f32 %v3114_v61, %v6671_v63 }
 0x14f   : > { %v4739_v24 = vmax.f32 %v3042_v56, 0.0  ;;  %v4741_v0 = vmax.f32 %v3113_v59, 0.0 }
 0x150   : > { %v4740_v1 = vmax.f32 %v3044_v60, 0.0  ;;  %v4742_v2 = vmax.f32 %v3115_v62, 0.0 }
 0x151   : > { %4847 = vst [vmem:[%s6677_s25 + $0x1e0] sm:$0xff] %v4739_v24  ;;  %4849 = vst [vmem:[%s6677_s25 + $0x1f0] sm:$0xff] %v4741_v0 }
 0x152   : > { %4848 = vst [vmem:[%s6677_s25 + $0x1e8] sm:$0xff] %v4740_v1  ;;  %4850 = vst [vmem:[%s6677_s25 + $0x1f8] sm:$0xff] %v4742_v2 }
 0x153   : > { %v3183_v3 = vpop.f32.mrb[32].mxu0  ;;  %v3254_v8 = vpop.f32.mrb[32].mxu1 }
 0x154   : > { %v3184_v7 = vadd.f32 %v3183_v3, %v6671_v63  ;;  %v3185_v4 = vpop.f32.mrb[33].mxu0  ;;  %v3255_v5 = vadd.f32 %v3254_v8, %v6671_v63  ;;  %v3256_v9 = vpop.f32.mrb[33].mxu1 }
 0x155   : > { %v3186_v6 = vadd.f32 %v3185_v4, %v6671_v63  ;;  %v3257_v11 = vadd.f32 %v3256_v9, %v6671_v63 }
 0x156   : > { %v4743_v10 = vmax.f32 %v3184_v7, 0.0  ;;  %v4745_v12 = vmax.f32 %v3255_v5, 0.0 }
 0x157   : > { %v4744_v13 = vmax.f32 %v3186_v6, 0.0  ;;  %v4746_v14 = vmax.f32 %v3257_v11, 0.0 }
 0x158   : > { %4851 = vst [vmem:[%s6677_s25 + $0x200] sm:$0xff] %v4743_v10  ;;  %4853 = vst [vmem:[%s6677_s25 + $0x210] sm:$0xff] %v4745_v12 }
 0x159   : > { %4852 = vst [vmem:[%s6677_s25 + $0x208] sm:$0xff] %v4744_v13  ;;  %4854 = vst [vmem:[%s6677_s25 + $0x218] sm:$0xff] %v4746_v14 }
 0x15a   : > { %v3325_v15 = vpop.f32.mrb[34].mxu0  ;;  %v3396_v17 = vpop.f32.mrb[34].mxu1 }
 0x15b   : > { %v3326_v16 = vadd.f32 %v3325_v15, %v6671_v63  ;;  %v3327_v18 = vpop.f32.mrb[35].mxu0  ;;  %v3397_v19 = vadd.f32 %v3396_v17, %v6671_v63  ;;  %v3398_v21 = vpop.f32.mrb[35].mxu1 }
 0x15c   : > { %v3328_v20 = vadd.f32 %v3327_v18, %v6671_v63  ;;  %v3399_v23 = vadd.f32 %v3398_v21, %v6671_v63 }
 0x15d   : > { %v4747_v22 = vmax.f32 %v3326_v16, 0.0  ;;  %v4749_v25 = vmax.f32 %v3397_v19, 0.0 }
 0x15e   : > { %v4748_v26 = vmax.f32 %v3328_v20, 0.0  ;;  %v4750_v27 = vmax.f32 %v3399_v23, 0.0 }
 0x15f   : > { %4855 = vst [vmem:[%s6677_s25 + $0x220] sm:$0xff] %v4747_v22  ;;  %4857 = vst [vmem:[%s6677_s25 + $0x230] sm:$0xff] %v4749_v25 }
 0x160   : > { %4856 = vst [vmem:[%s6677_s25 + $0x228] sm:$0xff] %v4748_v26  ;;  %4858 = vst [vmem:[%s6677_s25 + $0x238] sm:$0xff] %v4750_v27 }
 0x161   : > { %v3467_v28 = vpop.f32.mrb[36].mxu0  ;;  %v3538_v30 = vpop.f32.mrb[36].mxu1 }
 0x162   : > { %v3468_v29 = vadd.f32 %v3467_v28, %v6671_v63  ;;  %v3469_v31 = vpop.f32.mrb[37].mxu0  ;;  %v3539_v32 = vadd.f32 %v3538_v30, %v6671_v63  ;;  %v3540_v34 = vpop.f32.mrb[37].mxu1 }
 0x163   : > { %v3470_v33 = vadd.f32 %v3469_v31, %v6671_v63  ;;  %v3541_v36 = vadd.f32 %v3540_v34, %v6671_v63 }
 0x164   : > { %v4751_v35 = vmax.f32 %v3468_v29, 0.0  ;;  %v4753_v37 = vmax.f32 %v3539_v32, 0.0 }
 0x165   : > { %v4752_v38 = vmax.f32 %v3470_v33, 0.0  ;;  %v4754_v39 = vmax.f32 %v3541_v36, 0.0 }
 0x166   : > { %4859 = vst [vmem:[%s6677_s25 + $0x240] sm:$0xff] %v4751_v35  ;;  %4861 = vst [vmem:[%s6677_s25 + $0x250] sm:$0xff] %v4753_v37 }
 0x167   : > { %4860 = vst [vmem:[%s6677_s25 + $0x248] sm:$0xff] %v4752_v38  ;;  %4862 = vst [vmem:[%s6677_s25 + $0x258] sm:$0xff] %v4754_v39 }
 0x168   : > { %v3609_v40 = vpop.f32.mrb[38].mxu0  ;;  %v3680_v42 = vpop.f32.mrb[38].mxu1 }
 0x169   : > { %v3610_v41 = vadd.f32 %v3609_v40, %v6671_v63  ;;  %v3611_v43 = vpop.f32.mrb[39].mxu0  ;;  %v3681_v44 = vadd.f32 %v3680_v42, %v6671_v63  ;;  %v3682_v46 = vpop.f32.mrb[39].mxu1 }
 0x16a   : > { %v3612_v45 = vadd.f32 %v3611_v43, %v6671_v63  ;;  %v3683_v48 = vadd.f32 %v3682_v46, %v6671_v63 }
 0x16b   : > { %v4755_v47 = vmax.f32 %v3610_v41, 0.0  ;;  %v4757_v49 = vmax.f32 %v3681_v44, 0.0 }
 0x16c   : > { %v4756_v50 = vmax.f32 %v3612_v45, 0.0  ;;  %v4758_v51 = vmax.f32 %v3683_v48, 0.0 }
 0x16d   : > { %4863 = vst [vmem:[%s6677_s25 + $0x260] sm:$0xff] %v4755_v47  ;;  %4865 = vst [vmem:[%s6677_s25 + $0x270] sm:$0xff] %v4757_v49 }
 0x16e   : > { %4864 = vst [vmem:[%s6677_s25 + $0x268] sm:$0xff] %v4756_v50  ;;  %4866 = vst [vmem:[%s6677_s25 + $0x278] sm:$0xff] %v4758_v51 }
 0x16f   : > { %v3751_v52 = vpop.f32.mrb[40].mxu0  ;;  %v3822_v54 = vpop.f32.mrb[40].mxu1 }
 0x170   : > { %v3752_v53 = vadd.f32 %v3751_v52, %v6671_v63  ;;  %v3753_v55 = vpop.f32.mrb[41].mxu0  ;;  %v3823_v56 = vadd.f32 %v3822_v54, %v6671_v63  ;;  %v3824_v58 = vpop.f32.mrb[41].mxu1 }
 0x171   : > { %v3754_v57 = vadd.f32 %v3753_v55, %v6671_v63  ;;  %v3825_v60 = vadd.f32 %v3824_v58, %v6671_v63 }
 0x172   : > { %v4759_v59 = vmax.f32 %v3752_v53, 0.0  ;;  %v4761_v61 = vmax.f32 %v3823_v56, 0.0 }
 0x173   : > { %v4760_v24 = vmax.f32 %v3754_v57, 0.0  ;;  %v4762_v62 = vmax.f32 %v3825_v60, 0.0 }
 0x174   : > { %4867 = vst [vmem:[%s6677_s25 + $0x280] sm:$0xff] %v4759_v59  ;;  %4869 = vst [vmem:[%s6677_s25 + $0x290] sm:$0xff] %v4761_v61 }
 0x175   : > { %4868 = vst [vmem:[%s6677_s25 + $0x288] sm:$0xff] %v4760_v24  ;;  %4870 = vst [vmem:[%s6677_s25 + $0x298] sm:$0xff] %v4762_v62 }
 0x176   : > { %v3893_v0 = vpop.f32.mrb[42].mxu0  ;;  %v3964_v2 = vpop.f32.mrb[42].mxu1 }
 0x177   : > { %v3894_v1 = vadd.f32 %v3893_v0, %v6671_v63  ;;  %v3895_v3 = vpop.f32.mrb[43].mxu0  ;;  %v3965_v7 = vadd.f32 %v3964_v2, %v6671_v63  ;;  %v3966_v4 = vpop.f32.mrb[43].mxu1 }
 0x178   : > { %v3896_v8 = vadd.f32 %v3895_v3, %v6671_v63  ;;  %v3967_v6 = vadd.f32 %v3966_v4, %v6671_v63 }
 0x179   : > { %v4763_v5 = vmax.f32 %v3894_v1, 0.0  ;;  %v4765_v9 = vmax.f32 %v3965_v7, 0.0 }
 0x17a   : > { %v4764_v10 = vmax.f32 %v3896_v8, 0.0  ;;  %v4766_v11 = vmax.f32 %v3967_v6, 0.0 }
 0x17b   : > { %4871 = vst [vmem:[%s6677_s25 + $0x2a0] sm:$0xff] %v4763_v5  ;;  %4873 = vst [vmem:[%s6677_s25 + $0x2b0] sm:$0xff] %v4765_v9 }
 0x17c   : > { %4872 = vst [vmem:[%s6677_s25 + $0x2a8] sm:$0xff] %v4764_v10  ;;  %4874 = vst [vmem:[%s6677_s25 + $0x2b8] sm:$0xff] %v4766_v11 }
 0x17d   : > { %v4035_v12 = vpop.f32.mrb[44].mxu0  ;;  %v4106_v14 = vpop.f32.mrb[44].mxu1 }
 0x17e   : > { %v4036_v13 = vadd.f32 %v4035_v12, %v6671_v63  ;;  %v4037_v15 = vpop.f32.mrb[45].mxu0  ;;  %v4107_v16 = vadd.f32 %v4106_v14, %v6671_v63  ;;  %v4108_v18 = vpop.f32.mrb[45].mxu1 }
 0x17f   : > { %v4038_v17 = vadd.f32 %v4037_v15, %v6671_v63  ;;  %v4109_v20 = vadd.f32 %v4108_v18, %v6671_v63 }
 0x180   : > { %v4767_v19 = vmax.f32 %v4036_v13, 0.0  ;;  %v4769_v21 = vmax.f32 %v4107_v16, 0.0 }
 0x181   : > { %v4768_v22 = vmax.f32 %v4038_v17, 0.0  ;;  %v4770_v23 = vmax.f32 %v4109_v20, 0.0 }
 0x182   : > { %4875 = vst [vmem:[%s6677_s25 + $0x2c0] sm:$0xff] %v4767_v19  ;;  %4877 = vst [vmem:[%s6677_s25 + $0x2d0] sm:$0xff] %v4769_v21 }
 0x183   : > { %4876 = vst [vmem:[%s6677_s25 + $0x2c8] sm:$0xff] %v4768_v22  ;;  %4878 = vst [vmem:[%s6677_s25 + $0x2d8] sm:$0xff] %v4770_v23 }
 0x184   : > { %v4177_v25 = vpop.f32.mrb[46].mxu0  ;;  %v4248_v27 = vpop.f32.mrb[46].mxu1 }
 0x185   : > { %v4178_v26 = vadd.f32 %v4177_v25, %v6671_v63  ;;  %v4179_v28 = vpop.f32.mrb[47].mxu0  ;;  %v4249_v29 = vadd.f32 %v4248_v27, %v6671_v63  ;;  %v4250_v31 = vpop.f32.mrb[47].mxu1 }
 0x186   : > { %v4180_v30 = vadd.f32 %v4179_v28, %v6671_v63  ;;  %v4251_v33 = vadd.f32 %v4250_v31, %v6671_v63 }
 0x187   : > { %v4771_v32 = vmax.f32 %v4178_v26, 0.0  ;;  %v4773_v34 = vmax.f32 %v4249_v29, 0.0 }
 0x188   : > { %v4772_v35 = vmax.f32 %v4180_v30, 0.0  ;;  %v4774_v36 = vmax.f32 %v4251_v33, 0.0 }
 0x189   : > { %4879 = vst [vmem:[%s6677_s25 + $0x2e0] sm:$0xff] %v4771_v32  ;;  %4881 = vst [vmem:[%s6677_s25 + $0x2f0] sm:$0xff] %v4773_v34 }
 0x18a   : > { %4880 = vst [vmem:[%s6677_s25 + $0x2e8] sm:$0xff] %v4772_v35  ;;  %4882 = vst [vmem:[%s6677_s25 + $0x2f8] sm:$0xff] %v4774_v36 }
 0x18b   : > { %v4319_v37 = vpop.f32.mrb[48].mxu0  ;;  %v4390_v39 = vpop.f32.mrb[48].mxu1 }
 0x18c   : > { %v4320_v38 = vadd.f32 %v4319_v37, %v6671_v63  ;;  %v4321_v40 = vpop.f32.mrb[49].mxu0  ;;  %v4391_v41 = vadd.f32 %v4390_v39, %v6671_v63  ;;  %v4392_v43 = vpop.f32.mrb[49].mxu1 }
 0x18d   : > { %v4322_v42 = vadd.f32 %v4321_v40, %v6671_v63  ;;  %v4393_v45 = vadd.f32 %v4392_v43, %v6671_v63 }
 0x18e   : > { %v4775_v44 = vmax.f32 %v4320_v38, 0.0  ;;  %v4777_v46 = vmax.f32 %v4391_v41, 0.0 }
 0x18f   : > { %v4776_v47 = vmax.f32 %v4322_v42, 0.0  ;;  %v4778_v48 = vmax.f32 %v4393_v45, 0.0 }
 0x190   : > { %4883 = vst [vmem:[%s6677_s25 + $0x300] sm:$0xff] %v4775_v44  ;;  %4885 = vst [vmem:[%s6677_s25 + $0x310] sm:$0xff] %v4777_v46 }
 0x191   : > { %4884 = vst [vmem:[%s6677_s25 + $0x308] sm:$0xff] %v4776_v47  ;;  %4886 = vst [vmem:[%s6677_s25 + $0x318] sm:$0xff] %v4778_v48 }
 0x192   : > { %v4461_v49 = vpop.f32.mrb[50].mxu0  ;;  %v4532_v51 = vpop.f32.mrb[50].mxu1 }
 0x193   : > { %v4462_v50 = vadd.f32 %v4461_v49, %v6671_v63  ;;  %v4463_v52 = vpop.f32.mrb[51].mxu0  ;;  %v4533_v53 = vadd.f32 %v4532_v51, %v6671_v63  ;;  %v4534_v55 = vpop.f32.mrb[51].mxu1 }
 0x194   : > { %v4464_v54 = vadd.f32 %v4463_v52, %v6671_v63  ;;  %v4535_v57 = vadd.f32 %v4534_v55, %v6671_v63 }
 0x195   : > { %v4779_v56 = vmax.f32 %v4462_v50, 0.0  ;;  %v4781_v58 = vmax.f32 %v4533_v53, 0.0 }
 0x196   : > { %v4780_v59 = vmax.f32 %v4464_v54, 0.0  ;;  %v4782_v60 = vmax.f32 %v4535_v57, 0.0 }
 0x197   : > { %4887 = vst [vmem:[%s6677_s25 + $0x320] sm:$0xff] %v4779_v56  ;;  %4889 = vst [vmem:[%s6677_s25 + $0x330] sm:$0xff] %v4781_v58 }
 0x198   : > { %4888 = vst [vmem:[%s6677_s25 + $0x328] sm:$0xff] %v4780_v59  ;;  %4890 = vst [vmem:[%s6677_s25 + $0x338] sm:$0xff] %v4782_v60 }
 0x199   : > { %v4603_v61 = vpop.f32.mrb[52].mxu0  ;;  %v4674_v62 = vpop.f32.mrb[52].mxu1 }
 0x19a   : > { %v4604_v24 = vadd.f32 %v4603_v61, %v6671_v63  ;;  %v4605_v0 = vpop.f32.mrb[53].mxu0  ;;  %v4675_v1 = vadd.f32 %v4674_v62, %v6671_v63  ;;  %v4676_v3 = vpop.f32.mrb[53].mxu1 }
 0x19b   : > { %v4606_v2 = vadd.f32 %v4605_v0, %v6671_v63  ;;  %v4677_v8 = vadd.f32 %v4676_v3, %v6671_v63 }
 0x19c   : > { %v4783_v7 = vmax.f32 %v4604_v24, 0.0  ;;  %v4785_v4 = vmax.f32 %v4675_v1, 0.0 }
 0x19d   : > { %v4784_v5 = vmax.f32 %v4606_v2, 0.0  ;;  %v4786_v6 = vmax.f32 %v4677_v8, 0.0 }
 0x19e   : > { %4891 = vst [vmem:[%s6677_s25 + $0x340] sm:$0xff] %v4783_v7  ;;  %4893 = vst [vmem:[%s6677_s25 + $0x350] sm:$0xff] %v4785_v4 }
 0x19f   : > { %4892 = vst [vmem:[%s6677_s25 + $0x348] sm:$0xff] %v4784_v5  ;;  %4894 = vst [vmem:[%s6677_s25 + $0x358] sm:$0xff] %v4786_v6 }
 0x1a0 PF: > { %s13_s12 = sadd.s32 1, %s5369_s12  }
 0x1a1   : > { %p10_p4 = scmp.ge.s32.totalorder %s13_s12, 4  }
 0x1a3   :  { %12 = sbr.rel (!%p10_p4) target bundleno = 1 (0x1), region = 65 }

// kernel: forward.13
= control target key start
LH: loop header
LB: loop body
LE: loop exit
PB: predicated region body
PF: predicated region fallthrough
CT: control target
= control target key end

     0   :  { %s2231_s12 = smov 0   ;;  %s3717_s0 = inlined_call_operand.vmem [shape: f32[144,2904], index: 0, kind: input, shape index: {}]   ;;  %s3718_s1 = inlined_call_operand.vmem [shape: f32[32,144], index: 1, kind: input, shape index: {}]   ;;  %s3719_s2 = inlined_call_operand.vmem [shape: f32[32,1], index: 2, kind: input, shape index: {}]   ;;  %s3720_s3 = inlined_call_operand.vmem [shape: f32[32,2904], index: 3, kind: output, shape index: {}]  }
   0x1 LB: > { %s1723_s13 = sadd.s32 4294967295, %s2207_s12   ;;  %p1727_p0 = scmp.ge.s32.totalorder %s2207_s12, 1  ;;  %s2207_s12 = sphi %s2231_s12, %s13_s12  }
   0x2   : > { %p150_p1 = scmp.lt.s32.totalorder %s2207_s12, 3 }
   0x4   : > { %p151_p2 = pnand %p1727_p0, %p150_p1 }
   0x5   : > { %v206_v0 = vld [vmem:[%s3717_s0 + $0x8] sm:$0xff] (!%p151_p2)  ;;  %v229_v1 = vld [vmem:[%s3717_s0 + $0xc0] sm:$0xff] (!%p151_p2)  ;;  %v208_v2 = vld [vmem:[%s3717_s0 + $0x18] sm:$0xff] (!%p151_p2)  ;;  %v2209_v7 = vmov (!%p151_p2), 0   ;;  %s2313_s10 = sshll.u32 (!%p151_p2), %s1723_s13, 1  ;;  %vm631_vm0 = vcmask (!%p151_p2), 130048  }
   0x6   : > { %154 = sbr.rel (%p151_p2) target bundleno = 446 (0x1be), region = 32  ;;  %v1762_v3 = vpack.c.bf16 (!%p151_p2), %v229_v1, %v206_v0  ;;  %v231_v4 = vld [vmem:[%s3717_s0 + $0xd0] sm:$0xff] (!%p151_p2)  ;;  %v205_v5 = vld [vmem:[%s3717_s0] sm:$0xff] (!%p151_p2)  ;;  %v228_v6 = vld [vmem:[%s3717_s0 + $0xb8] sm:$0xff] (!%p151_p2)  ;;  %2196 = vset.pattern.permute.xlu0 (!%p151_p2), %v2209_v7  ;;  %p182_p3 = scmp.lt.s32.totalorder (!%p151_p2), %s2313_s10, 3  ;;  %vm1628_vm1 = vcmask (!%p151_p2), 719872  }
   0x7   : > { %v1798_v8 = vpack.c.bf16 (!%p151_p2), %v231_v4, %v208_v2  ;;  %v1764_v9 = vpack.c.bf16 (!%p151_p2), %v228_v6, %v205_v5  ;;  %v207_v10 = vld [vmem:[%s3717_s0 + $0x10] sm:$0xff] (!%p151_p2)  ;;  %v230_v11 = vld [vmem:[%s3717_s0 + $0xc8] sm:$0xff] (!%p151_p2)  ;;  %v252_v12 = vld [vmem:[%s3717_s0 + $0x178] sm:$0xff] (!%p151_p2) }
   0x8   : > { %1763 = vmatprep.subr.bf16.mxu0 (!%p151_p2), %v1762_v3  ;;  %v1800_v13 = vpack.c.bf16 (!%p151_p2), %v230_v11, %v207_v10  ;;  %v275_v14 = vld [vmem:[%s3717_s0 + $0x230] sm:$0xff] (!%p151_p2)  ;;  %v254_v15 = vld [vmem:[%s3717_s0 + $0x188] sm:$0xff] (!%p151_p2)  ;;  %v277_v16 = vld [vmem:[%s3717_s0 + $0x240] sm:$0xff] (!%p151_p2) }
   0x9   : > { %1799 = vmatprep.subr.bf16.mxu1 (!%p151_p2), %v1798_v8  ;;  %1765 = vmatpush1.bf16.msra.mxu0 (!%p151_p2), %v1764_v9  ;;  %v1766_v17 = vpack.c.bf16 (!%p151_p2), %v275_v14, %v252_v12  ;;  %v1802_v18 = vpack.c.bf16 (!%p151_p2), %v277_v16, %v254_v15  ;;  %v251_v19 = vld [vmem:[%s3717_s0 + $0x170] sm:$0xff] (!%p151_p2)  ;;  %v274_v20 = vld [vmem:[%s3717_s0 + $0x228] sm:$0xff] (!%p151_p2)  ;;  %v253_v21 = vld [vmem:[%s3717_s0 + $0x180] sm:$0xff] (!%p151_p2) }
   0xa   : > { %1801 = vmatpush1.bf16.msra.mxu1 (!%p151_p2), %v1800_v13  ;;  %v1768_v22 = vpack.c.bf16 (!%p151_p2), %v274_v20, %v251_v19  ;;  %v276_v23 = vld [vmem:[%s3717_s0 + $0x238] sm:$0xff] (!%p151_p2)  ;;  %v298_v24 = vld [vmem:[%s3717_s0 + $0x2e8] sm:$0xff] (!%p151_p2)  ;;  %v321_v25 = vld [vmem:[%s3717_s0 + $0x3a0] sm:$0xff] (!%p151_p2) }
   0xb   : > { %1767 = vmatprep.subr.bf16.mxu0 (!%p151_p2), %v1766_v17  ;;  %1803 = vmatprep.subr.bf16.mxu1 (!%p151_p2), %v1802_v18  ;;  %v1804_v26 = vpack.c.bf16 (!%p151_p2), %v276_v23, %v253_v21  ;;  %v1770_v27 = vpack.c.bf16 (!%p151_p2), %v321_v25, %v298_v24  ;;  %v300_v28 = vld [vmem:[%s3717_s0 + $0x2f8] sm:$0xff] (!%p151_p2)  ;;  %v323_v29 = vld [vmem:[%s3717_s0 + $0x3b0] sm:$0xff] (!%p151_p2)  ;;  %v297_v30 = vld [vmem:[%s3717_s0 + $0x2e0] sm:$0xff] (!%p151_p2) }
   0xc   : > { %v1806_v31 = vpack.c.bf16 (!%p151_p2), %v323_v29, %v300_v28  ;;  %v320_v32 = vld [vmem:[%s3717_s0 + $0x398] sm:$0xff] (!%p151_p2)  ;;  %v299_v33 = vld [vmem:[%s3717_s0 + $0x2f0] sm:$0xff] (!%p151_p2)  ;;  %v322_v34 = vld [vmem:[%s3717_s0 + $0x3a8] sm:$0xff] (!%p151_p2) }
   0xd   : > { %1769 = vmatpush1.bf16.msra.mxu0 %v1768_v22  ;;  %v1772_v35 = vpack.c.bf16 %v320_v32, %v297_v30  ;;  %v344_v36 = vld [vmem:[%s3717_s0 + $0x458] sm:$0xff]  ;;  %v367_v37 = vld [vmem:[%s3717_s0 + $0x510] sm:$0xff]  ;;  %v346_v38 = vld [vmem:[%s3717_s0 + $0x468] sm:$0xff]  ;;  %v1808_v39 = vpack.c.bf16 %v322_v34, %v299_v33  ;;  %s3722_s10 = smov (!%p182_p3, %s2313_s10), 3 }
   0xe   : > { %1805 = vmatpush1.bf16.msra.mxu1 %v1804_v26  ;;  %1771 = vmatprep.subr.bf16.mxu0 %v1770_v27  ;;  %v1774_v40 = vpack.c.bf16 %v367_v37, %v344_v36  ;;  %v369_v41 = vld [vmem:[%s3717_s0 + $0x520] sm:$0xff]  ;;  %v343_v42 = vld [vmem:[%s3717_s0 + $0x450] sm:$0xff]  ;;  %v366_v43 = vld [vmem:[%s3717_s0 + $0x508] sm:$0xff]  ;;  %s1761_s15 = sshll.u32 %s3722_s10, 4  ;;  %s1732_s30 = sshll.u32 %s3722_s10, 3 }
   0xf   : > { %1807 = vmatprep.subr.bf16.mxu1 %v1806_v31  ;;  %v1810_v44 = vpack.c.bf16 %v369_v41, %v346_v38  ;;  %v345_v45 = vld [vmem:[%s3717_s0 + $0x460] sm:$0xff]  ;;  %v368_v46 = vld [vmem:[%s3717_s0 + $0x518] sm:$0xff]  ;;  %v390_v47 = vld [vmem:[%s3717_s0 + $0x5c8] sm:$0xff]  ;;  %v1776_v51 = vpack.c.bf16 %v366_v43, %v343_v42  ;;  %s2418_s27 = scalar_lea.vmem %s3718_s1, %s1761_s15  ;;  %s2810_s24 = scalar_lea.vmem %s3719_s2, %s1732_s30 }
  0x10   : > { %v413_v48 = vld [vmem:[%s3717_s0 + $0x680] sm:$0xff]  ;;  %v392_v49 = vld [vmem:[%s3717_s0 + $0x5d8] sm:$0xff]  ;;  %v415_v50 = vld [vmem:[%s3717_s0 + $0x690] sm:$0xff]  ;;  %v1812_v52 = vpack.c.bf16 %v368_v46, %v345_v45  ;;  %s2185_s30 = smul.u32 184, %s3722_s10 }
  0x11   : > { %1773 = vmatpush1.bf16.msra.mxu0 %v1772_v35  ;;  %v1778_v53 = vpack.c.bf16 %v413_v48, %v390_v47  ;;  %v389_v54 = vld [vmem:[%s3717_s0 + $0x5c0] sm:$0xff]  ;;  %v412_v55 = vld [vmem:[%s3717_s0 + $0x678] sm:$0xff]  ;;  %v391_v56 = vld [vmem:[%s3717_s0 + $0x5d0] sm:$0xff]  ;;  %v1814_v57 = vpack.c.bf16 %v415_v50, %v392_v49 }
  0x12   : > { %1809 = vmatpush1.bf16.msra.mxu1 %v1808_v39  ;;  %1775 = vmatprep.subr.bf16.mxu0 %v1774_v40  ;;  %v414_v58 = vld [vmem:[%s3717_s0 + $0x688] sm:$0xff]  ;;  %v436_v59 = vld [vmem:[%s3717_s0 + $0x738] sm:$0xff]  ;;  %v459_v60 = vld [vmem:[%s3717_s0 + $0x7f0] sm:$0xff]  ;;  %v1780_v63 = vpack.c.bf16 %v412_v55, %v389_v54  ;;  %s3617_s7 = scalar_lea.vmem %s3720_s3, %s2185_s30 }
  0x13   : > { %1811 = vmatprep.subr.bf16.mxu1 %v1810_v44  ;;  %v438_v61 = vld [vmem:[%s3717_s0 + $0x748] sm:$0xff]  ;;  %v461_v62 = vld [vmem:[%s3717_s0 + $0x800] sm:$0xff]  ;;  %v1816_v0 = vpack.c.bf16 %v414_v58, %v391_v56  ;;  %v1782_v1 = vpack.c.bf16 %v459_v60, %v436_v59  ;;  %v435_v2 = vld [vmem:[%s3717_s0 + $0x730] sm:$0xff] }
  0x14   : > { %v458_v3 = vld [vmem:[%s3717_s0 + $0x7e8] sm:$0xff]  ;;  %v437_v4 = vld [vmem:[%s3717_s0 + $0x740] sm:$0xff]  ;;  %v1818_v5 = vpack.c.bf16 %v461_v62, %v438_v61  ;;  %v460_v6 = vld [vmem:[%s3717_s0 + $0x7f8] sm:$0xff] }
  0x15   : > { %1777 = vmatpush1.bf16.msra.mxu0 %v1776_v51  ;;  %v482_v7 = vld [vmem:[%s3717_s0 + $0x8a8] sm:$0xff]  ;;  %v505_v8 = vld [vmem:[%s3717_s0 + $0x960] sm:$0xff]  ;;  %v484_v9 = vld [vmem:[%s3717_s0 + $0x8b8] sm:$0xff]  ;;  %v1784_v11 = vpack.c.bf16 %v458_v3, %v435_v2  ;;  %v1820_v12 = vpack.c.bf16 %v460_v6, %v437_v4 }
  0x16   : > { %1813 = vmatpush1.bf16.msra.mxu1 %v1812_v52  ;;  %1779 = vmatprep.subr.bf16.mxu0 %v1778_v53  ;;  %v507_v10 = vld [vmem:[%s3717_s0 + $0x970] sm:$0xff]  ;;  %v1786_v13 = vpack.c.bf16 %v505_v8, %v482_v7  ;;  %v481_v14 = vld [vmem:[%s3717_s0 + $0x8a0] sm:$0xff]  ;;  %v504_v15 = vld [vmem:[%s3717_s0 + $0x958] sm:$0xff] }
  0x17   : > { %1815 = vmatprep.subr.bf16.mxu1 %v1814_v57  ;;  %v483_v16 = vld [vmem:[%s3717_s0 + $0x8b0] sm:$0xff]  ;;  %v1822_v17 = vpack.c.bf16 %v507_v10, %v484_v9  ;;  %v506_v18 = vld [vmem:[%s3717_s0 + $0x968] sm:$0xff]  ;;  %v528_v19 = vld [vmem:[%s3717_s0 + $0xa18] sm:$0xff]  ;;  %v1788_v23 = vpack.c.bf16 %v504_v15, %v481_v14 }
  0x18   : > { %v551_v20 = vld [vmem:[%s3717_s0 + $0xad0] sm:$0xff]  ;;  %v530_v21 = vld [vmem:[%s3717_s0 + $0xa28] sm:$0xff]  ;;  %v553_v22 = vld [vmem:[%s3717_s0 + $0xae0] sm:$0xff]  ;;  %v1824_v25 = vpack.c.bf16 %v506_v18, %v483_v16 }
  0x19   : > { %1781 = vmatpush1.bf16.msra.mxu0 %v1780_v63  ;;  %v2436_v24 = vld [vmem:[%s2418_s27 + $0x8] sm:$0xff]  ;;  %v1790_v26 = vpack.c.bf16 %v551_v20, %v528_v19  ;;  %v527_v27 = vld [vmem:[%s3717_s0 + $0xa10] sm:$0xff]  ;;  %v529_v29 = vld [vmem:[%s3717_s0 + $0xa20] sm:$0xff]  ;;  %v1826_v30 = vpack.c.bf16 %v553_v22, %v530_v21 }
  0x1a   : > { %1817 = vmatpush1.bf16.msra.mxu1 %v1816_v0  ;;  %1783 = vmatprep.subr.bf16.mxu0 %v1782_v1  ;;  %v550_v28 = vld [vmem:[%s3717_s0 + $0xac8] sm:$0xff]  ;;  %v552_v31 = vld [vmem:[%s3717_s0 + $0xad8] sm:$0xff]  ;;  %v597_v33 = vld [vmem:[%s3717_s0 + $0xc40] sm:$0xff] }
  0x1b   : > { %1819 = vmatprep.subr.bf16.mxu1 %v1818_v5  ;;  %v574_v32 = vld [vmem:[%s3717_s0 + $0xb88] sm:$0xff]  ;;  %1735 = vmatprep.mubr.msk.f32.mxu0 %vm631_vm0, %v2436_v24  ;;  %v576_v34 = vld [vmem:[%s3717_s0 + $0xb98] sm:$0xff]  ;;  %v599_v35 = vld [vmem:[%s3717_s0 + $0xc50] sm:$0xff]  ;;  %v1792_v36 = vpack.c.bf16 %v550_v28, %v527_v27  ;;  %v1828_v37 = vpack.c.bf16 %v552_v31, %v529_v29 }
  0x1c   : > { %1737 = vmatprep.mubr.msk.f32.mxu1 %vm631_vm0, %v2436_v24  ;;  %v1794_v38 = vpack.c.bf16 %v597_v33, %v574_v32  ;;  %v573_v39 = vld [vmem:[%s3717_s0 + $0xb80] sm:$0xff]  ;;  %v596_v40 = vld [vmem:[%s3717_s0 + $0xc38] sm:$0xff]  ;;  %v575_v41 = vld [vmem:[%s3717_s0 + $0xb90] sm:$0xff]  ;;  %v1830_v42 = vpack.c.bf16 %v599_v35, %v576_v34 }
  0x1d   : > { %1785 = vmatpush1.bf16.msra.mxu0 %v1784_v11  ;;  %v598_v43 = vld [vmem:[%s3717_s0 + $0xc48] sm:$0xff]  ;;  %v233_v45 = vld [vmem:[%s3717_s0 + $0xe0] sm:$0xff]  ;;  %v212_v46 = vld [vmem:[%s3717_s0 + $0x38] sm:$0xff]  ;;  %v1796_v48 = vpack.c.bf16 %v596_v40, %v573_v39 }
  0x1e   : > { %1821 = vmatpush1.bf16.msra.mxu1 %v1820_v12  ;;  %1787 = vmatprep.subr.bf16.mxu0 %v1786_v13  ;;  %v210_v44 = vld [vmem:[%s3717_s0 + $0x28] sm:$0xff]  ;;  %v235_v47 = vld [vmem:[%s3717_s0 + $0xf0] sm:$0xff]  ;;  %v1832_v49 = vpack.c.bf16 %v598_v43, %v575_v41  ;;  %v209_v51 = vld [vmem:[%s3717_s0 + $0x20] sm:$0xff] }
  0x1f   : > { %1823 = vmatprep.subr.bf16.mxu1 %v1822_v17  ;;  %v1834_v50 = vpack.c.bf16 %v233_v45, %v210_v44  ;;  %v232_v52 = vld [vmem:[%s3717_s0 + $0xd8] sm:$0xff]  ;;  %v211_v53 = vld [vmem:[%s3717_s0 + $0x30] sm:$0xff]  ;;  %v1870_v54 = vpack.c.bf16 %v235_v47, %v212_v46  ;;  %v234_v55 = vld [vmem:[%s3717_s0 + $0xe8] sm:$0xff] }
  0x20   : > { %v256_v56 = vld [vmem:[%s3717_s0 + $0x198] sm:$0xff]  ;;  %v279_v57 = vld [vmem:[%s3717_s0 + $0x250] sm:$0xff]  ;;  %v258_v58 = vld [vmem:[%s3717_s0 + $0x1a8] sm:$0xff]  ;;  %v1836_v61 = vpack.c.bf16 %v232_v52, %v209_v51  ;;  %v1872_v62 = vpack.c.bf16 %v234_v55, %v211_v53 }
  0x21   : > { %1789 = vmatpush1.bf16.msra.mxu0 %v1788_v23  ;;  %v281_v59 = vld [vmem:[%s3717_s0 + $0x260] sm:$0xff]  ;;  %v1838_v63 = vpack.c.bf16 %v279_v57, %v256_v56  ;;  %v255_v0 = vld [vmem:[%s3717_s0 + $0x190] sm:$0xff]  ;;  %v278_v1 = vld [vmem:[%s3717_s0 + $0x248] sm:$0xff] }
  0x22   : > { %1825 = vmatpush1.bf16.msra.mxu1 %v1824_v25  ;;  %1791 = vmatprep.subr.bf16.mxu0 %v1790_v26  ;;  %v2515_v60 = vld [vmem:[%s2418_s27] sm:$0xff]  ;;  %v1874_v3 = vpack.c.bf16 %v281_v59, %v258_v58  ;;  %v280_v4 = vld [vmem:[%s3717_s0 + $0x258] sm:$0xff]  ;;  %v302_v5 = vld [vmem:[%s3717_s0 + $0x308] sm:$0xff]  ;;  %v1840_v9 = vpack.c.bf16 %v278_v1, %v255_v0 }
  0x23   : > { %1827 = vmatprep.subr.bf16.mxu1 %v1826_v30  ;;  %v257_v2 = vld [vmem:[%s3717_s0 + $0x1a0] sm:$0xff]  ;;  %v304_v7 = vld [vmem:[%s3717_s0 + $0x318] sm:$0xff]  ;;  %v327_v8 = vld [vmem:[%s3717_s0 + $0x3d0] sm:$0xff] }
  0x24   : > { %v325_v6 = vld [vmem:[%s3717_s0 + $0x3c0] sm:$0xff]  ;;  %v1876_v10 = vpack.c.bf16 %v280_v4, %v257_v2  ;;  %v324_v13 = vld [vmem:[%s3717_s0 + $0x3b8] sm:$0xff]  ;;  %v303_v14 = vld [vmem:[%s3717_s0 + $0x310] sm:$0xff]  ;;  %v1878_v15 = vpack.c.bf16 %v327_v8, %v304_v7 }
  0x25   : > { %1793 = vmatpush1.bf16.msra.mxu0 %v1792_v36  ;;  %v1842_v11 = vpack.c.bf16 %v325_v6, %v302_v5  ;;  %v301_v12 = vld [vmem:[%s3717_s0 + $0x300] sm:$0xff]  ;;  %v326_v16 = vld [vmem:[%s3717_s0 + $0x3c8] sm:$0xff]  ;;  %v348_v17 = vld [vmem:[%s3717_s0 + $0x478] sm:$0xff] }
  0x26   : > { %1829 = vmatpush1.bf16.msra.mxu1 %v1828_v37  ;;  %1795 = vmatprep.subr.bf16.mxu0 %v1794_v38  ;;  %v371_v18 = vld [vmem:[%s3717_s0 + $0x530] sm:$0xff]  ;;  %v350_v19 = vld [vmem:[%s3717_s0 + $0x488] sm:$0xff]  ;;  %v373_v20 = vld [vmem:[%s3717_s0 + $0x540] sm:$0xff]  ;;  %v1844_v21 = vpack.c.bf16 %v324_v13, %v301_v12  ;;  %v1880_v25 = vpack.c.bf16 %v326_v16, %v303_v14 }
  0x27   : > { %1831 = vmatprep.subr.bf16.mxu1 %v1830_v42  ;;  %v347_v22 = vld [vmem:[%s3717_s0 + $0x470] sm:$0xff]  ;;  %v370_v23 = vld [vmem:[%s3717_s0 + $0x528] sm:$0xff]  ;;  %v1846_v26 = vpack.c.bf16 %v371_v18, %v348_v17  ;;  %v349_v27 = vld [vmem:[%s3717_s0 + $0x480] sm:$0xff]  ;;  %v1882_v30 = vpack.c.bf16 %v373_v20, %v350_v19 }
  0x28   : > { %v372_v28 = vld [vmem:[%s3717_s0 + $0x538] sm:$0xff]  ;;  %v394_v29 = vld [vmem:[%s3717_s0 + $0x5e8] sm:$0xff]  ;;  %v417_v31 = vld [vmem:[%s3717_s0 + $0x6a0] sm:$0xff]  ;;  %v1848_v36 = vpack.c.bf16 %v370_v23, %v347_v22 }
  0x29   : > { %1797 = vmatpush1.bf16.msra.mxu0 %v1796_v48  ;;  %v2586_v32 = vld [vmem:[%s2418_s27 + $0x18] sm:$0xff]  ;;  %v2589_v33 = vld [vmem:[%s2418_s27 + $0x10] sm:$0xff]  ;;  %v1884_v37 = vpack.c.bf16 %v372_v28, %v349_v27  ;;  %v1850_v38 = vpack.c.bf16 %v417_v31, %v394_v29  ;;  %v393_v39 = vld [vmem:[%s3717_s0 + $0x5e0] sm:$0xff] }
  0x2a   : > { %1833 = vmatpush1.bf16.msra.mxu1 %v1832_v49  ;;  %1835 = vmatprep.subr.bf16.mxu0 %v1834_v50  ;;  %v396_v34 = vld [vmem:[%s3717_s0 + $0x5f8] sm:$0xff]  ;;  %v419_v35 = vld [vmem:[%s3717_s0 + $0x6b0] sm:$0xff]  ;;  %v418_v43 = vld [vmem:[%s3717_s0 + $0x6a8] sm:$0xff] }
  0x2b   : > { %1871 = vmatprep.subr.bf16.mxu1 %v1870_v54  ;;  %v416_v40 = vld [vmem:[%s3717_s0 + $0x698] sm:$0xff]  ;;  %v395_v41 = vld [vmem:[%s3717_s0 + $0x5f0] sm:$0xff]  ;;  %v1886_v42 = vpack.c.bf16 %v419_v35, %v396_v34  ;;  %v442_v46 = vld [vmem:[%s3717_s0 + $0x768] sm:$0xff] }
  0x2c   : > { %703 = vmatmul.mubr.f32.vlgmr.msra.gmra.mrb[0].mxu0 %v2515_v60  ;;  %v440_v44 = vld [vmem:[%s3717_s0 + $0x758] sm:$0xff]  ;;  %v463_v45 = vld [vmem:[%s3717_s0 + $0x810] sm:$0xff]  ;;  %v465_v47 = vld [vmem:[%s3717_s0 + $0x820] sm:$0xff]  ;;  %v1852_v48 = vpack.c.bf16 %v416_v40, %v393_v39  ;;  %v1888_v49 = vpack.c.bf16 %v418_v43, %v395_v41 }
  0x2d   : > { %780 = vmatmul.mubr.f32.vlgmr.msra.gmra.mrb[0].mxu1 %v2515_v60  ;;  %1837 = vmatpush1.bf16.msra.mxu0 %v1836_v61  ;;  %v1854_v50 = vpack.c.bf16 %v463_v45, %v440_v44  ;;  %v439_v51 = vld [vmem:[%s3717_s0 + $0x750] sm:$0xff]  ;;  %v462_v52 = vld [vmem:[%s3717_s0 + $0x808] sm:$0xff]  ;;  %v441_v53 = vld [vmem:[%s3717_s0 + $0x760] sm:$0xff]  ;;  %v1890_v54 = vpack.c.bf16 %v465_v47, %v442_v46 }
  0x2e   : > { %1873 = vmatpush1.bf16.msra.mxu1 %v1872_v62  ;;  %1839 = vmatprep.subr.bf16.mxu0 %v1838_v63  ;;  %v464_v55 = vld [vmem:[%s3717_s0 + $0x818] sm:$0xff]  ;;  %v486_v56 = vld [vmem:[%s3717_s0 + $0x8c8] sm:$0xff]  ;;  %v509_v57 = vld [vmem:[%s3717_s0 + $0x980] sm:$0xff]  ;;  %v1856_v61 = vpack.c.bf16 %v462_v52, %v439_v51 }
  0x2f   : > { %1875 = vmatprep.subr.bf16.mxu1 %v1874_v3  ;;  %1736 = vmatprep.mubr.msk.f32.mxu0 %vm631_vm0, %v2586_v32  ;;  %v488_v58 = vld [vmem:[%s3717_s0 + $0x8d8] sm:$0xff]  ;;  %v511_v59 = vld [vmem:[%s3717_s0 + $0x990] sm:$0xff]  ;;  %v1892_v62 = vpack.c.bf16 %v464_v55, %v441_v53  ;;  %v1858_v63 = vpack.c.bf16 %v509_v57, %v486_v56  ;;  %v485_v0 = vld [vmem:[%s3717_s0 + $0x8c0] sm:$0xff] }
  0x30   : > { %1738 = vmatprep.mubr.msk.f32.mxu1 %vm631_vm0, %v2586_v32  ;;  %709 = vmatmul.mubr.f32.gmra.mrb[2].mxu0 %v2589_v33  ;;  %v508_v1 = vld [vmem:[%s3717_s0 + $0x978] sm:$0xff]  ;;  %v487_v2 = vld [vmem:[%s3717_s0 + $0x8d0] sm:$0xff]  ;;  %v1894_v3 = vpack.c.bf16 %v511_v59, %v488_v58  ;;  %v510_v4 = vld [vmem:[%s3717_s0 + $0x988] sm:$0xff] }
  0x31   : > { %1841 = vmatpush1.bf16.msra.mxu0 %v1840_v9  ;;  %786 = vmatmul.mubr.f32.gmra.mrb[2].mxu1 %v2589_v33  ;;  %v532_v5 = vld [vmem:[%s3717_s0 + $0xa38] sm:$0xff]  ;;  %v555_v6 = vld [vmem:[%s3717_s0 + $0xaf0] sm:$0xff]  ;;  %v534_v7 = vld [vmem:[%s3717_s0 + $0xa48] sm:$0xff]  ;;  %v1860_v9 = vpack.c.bf16 %v508_v1, %v485_v0 }
  0x32   : > { %1877 = vmatpush1.bf16.msra.mxu1 %v1876_v10  ;;  %1843 = vmatprep.subr.bf16.mxu0 %v1842_v11  ;;  %v557_v8 = vld [vmem:[%s3717_s0 + $0xb00] sm:$0xff]  ;;  %v1896_v10 = vpack.c.bf16 %v510_v4, %v487_v2  ;;  %v1862_v11 = vpack.c.bf16 %v555_v6, %v532_v5  ;;  %v531_v12 = vld [vmem:[%s3717_s0 + $0xa30] sm:$0xff]  ;;  %v554_v13 = vld [vmem:[%s3717_s0 + $0xae8] sm:$0xff] }
  0x33   : > { %1879 = vmatprep.subr.bf16.mxu1 %v1878_v15  ;;  %1739 = vmatprep.mubr.msk.f32.mxu0 %vm631_vm0, %v2436_v24  ;;  %v533_v14 = vld [vmem:[%s3717_s0 + $0xa40] sm:$0xff]  ;;  %v1898_v15 = vpack.c.bf16 %v557_v8, %v534_v7  ;;  %v556_v16 = vld [vmem:[%s3717_s0 + $0xaf8] sm:$0xff]  ;;  %v578_v17 = vld [vmem:[%s3717_s0 + $0xba8] sm:$0xff] }
  0x34   : > { %1741 = vmatprep.mubr.msk.f32.mxu1 %vm631_vm0, %v2436_v24  ;;  %v601_v18 = vld [vmem:[%s3717_s0 + $0xc60] sm:$0xff]  ;;  %v580_v19 = vld [vmem:[%s3717_s0 + $0xbb8] sm:$0xff]  ;;  %v603_v20 = vld [vmem:[%s3717_s0 + $0xc70] sm:$0xff]  ;;  %v1900_v22 = vpack.c.bf16 %v556_v16, %v533_v14 }
  0x35   : > { %1845 = vmatpush1.bf16.msra.mxu0 %v1844_v21  ;;  %v1864_v21 = vpack.c.bf16 %v554_v13, %v531_v12  ;;  %v1866_v23 = vpack.c.bf16 %v601_v18, %v578_v17  ;;  %v579_v27 = vld [vmem:[%s3717_s0 + $0xbb0] sm:$0xff]  ;;  %v1902_v28 = vpack.c.bf16 %v603_v20, %v580_v19  ;;  %v602_v29 = vld [vmem:[%s3717_s0 + $0xc68] sm:$0xff]  ;;  %v237_v31 = vld [vmem:[%s3717_s0 + $0x100] sm:$0xff] }
  0x36   : > { %1881 = vmatpush1.bf16.msra.mxu1 %v1880_v25  ;;  %1847 = vmatprep.subr.bf16.mxu0 %v1846_v26  ;;  %v577_v25 = vld [vmem:[%s3717_s0 + $0xba0] sm:$0xff]  ;;  %v600_v26 = vld [vmem:[%s3717_s0 + $0xc58] sm:$0xff]  ;;  %v239_v35 = vld [vmem:[%s3717_s0 + $0x110] sm:$0xff] }
  0x37   : > { %1883 = vmatprep.subr.bf16.mxu1 %v1882_v30  ;;  %v214_v30 = vld [vmem:[%s3717_s0 + $0x48] sm:$0xff]  ;;  %v216_v34 = vld [vmem:[%s3717_s0 + $0x58] sm:$0xff]  ;;  %v213_v39 = vld [vmem:[%s3717_s0 + $0x40] sm:$0xff] }
  0x38   : > { %v236_v40 = vld [vmem:[%s3717_s0 + $0xf8] sm:$0xff]  ;;  %v215_v41 = vld [vmem:[%s3717_s0 + $0x50] sm:$0xff]  ;;  %v238_v43 = vld [vmem:[%s3717_s0 + $0x108] sm:$0xff] }
  0x39   : > { %1849 = vmatpush1.bf16.msra.mxu0 %v1848_v36  ;;  %v1868_v36 = vpack.c.bf16 %v600_v26, %v577_v25  ;;  %v260_v44 = vld [vmem:[%s3717_s0 + $0x1b8] sm:$0xff]  ;;  %v283_v45 = vld [vmem:[%s3717_s0 + $0x270] sm:$0xff]  ;;  %v262_v46 = vld [vmem:[%s3717_s0 + $0x1c8] sm:$0xff] }
  0x3a   : > { %1885 = vmatpush1.bf16.msra.mxu1 %v1884_v37  ;;  %1851 = vmatprep.subr.bf16.mxu0 %v1850_v38  ;;  %v1904_v37 = vpack.c.bf16 %v602_v29, %v579_v27  ;;  %v1906_v38 = vpack.c.bf16 %v237_v31, %v214_v30  ;;  %v285_v47 = vld [vmem:[%s3717_s0 + $0x280] sm:$0xff]  ;;  %v259_v51 = vld [vmem:[%s3717_s0 + $0x1b0] sm:$0xff]  ;;  %v282_v52 = vld [vmem:[%s3717_s0 + $0x268] sm:$0xff] }
  0x3b   : > { %1887 = vmatprep.subr.bf16.mxu1 %v1886_v42  ;;  %v1942_v42 = vpack.c.bf16 %v239_v35, %v216_v34  ;;  %v261_v53 = vld [vmem:[%s3717_s0 + $0x1c0] sm:$0xff]  ;;  %v284_v55 = vld [vmem:[%s3717_s0 + $0x278] sm:$0xff]  ;;  %v306_v56 = vld [vmem:[%s3717_s0 + $0x328] sm:$0xff] }
  0x3c   : > { %v329_v57 = vld [vmem:[%s3717_s0 + $0x3e0] sm:$0xff]  ;;  %v308_v58 = vld [vmem:[%s3717_s0 + $0x338] sm:$0xff]  ;;  %v331_v59 = vld [vmem:[%s3717_s0 + $0x3f0] sm:$0xff] }
  0x3d   : > { %1853 = vmatpush1.bf16.msra.mxu0 %v1852_v48  ;;  %v1908_v48 = vpack.c.bf16 %v236_v40, %v213_v39  ;;  %v305_v0 = vld [vmem:[%s3717_s0 + $0x320] sm:$0xff]  ;;  %v328_v1 = vld [vmem:[%s3717_s0 + $0x3d8] sm:$0xff]  ;;  %v307_v2 = vld [vmem:[%s3717_s0 + $0x330] sm:$0xff] }
  0x3e   : > { %1889 = vmatpush1.bf16.msra.mxu1 %v1888_v49  ;;  %1855 = vmatprep.subr.bf16.mxu0 %v1854_v50  ;;  %v1944_v49 = vpack.c.bf16 %v238_v43, %v215_v41  ;;  %v1910_v50 = vpack.c.bf16 %v283_v45, %v260_v44  ;;  %v330_v4 = vld [vmem:[%s3717_s0 + $0x3e8] sm:$0xff]  ;;  %v352_v5 = vld [vmem:[%s3717_s0 + $0x498] sm:$0xff]  ;;  %v375_v6 = vld [vmem:[%s3717_s0 + $0x550] sm:$0xff] }
  0x3f   : > { %1891 = vmatprep.subr.bf16.mxu1 %v1890_v54  ;;  %v1946_v54 = vpack.c.bf16 %v285_v47, %v262_v46  ;;  %v354_v7 = vld [vmem:[%s3717_s0 + $0x4a8] sm:$0xff]  ;;  %v377_v8 = vld [vmem:[%s3717_s0 + $0x560] sm:$0xff]  ;;  %v1918_v12 = vpack.c.bf16 %v375_v6, %v352_v5  ;;  %v400_v20 = vld [vmem:[%s3717_s0 + $0x618] sm:$0xff] }
  0x40   : > { %v374_v13 = vld [vmem:[%s3717_s0 + $0x548] sm:$0xff]  ;;  %v353_v14 = vld [vmem:[%s3717_s0 + $0x4a0] sm:$0xff]  ;;  %v1954_v16 = vpack.c.bf16 %v377_v8, %v354_v7  ;;  %v420_v27 = vld [vmem:[%s3717_s0 + $0x6b8] sm:$0xff] }
  0x41   : > { %1857 = vmatpush1.bf16.msra.mxu0 %v1856_v61  ;;  %v1912_v61 = vpack.c.bf16 %v282_v52, %v259_v51  ;;  %v398_v17 = vld [vmem:[%s3717_s0 + $0x608] sm:$0xff]  ;;  %v421_v18 = vld [vmem:[%s3717_s0 + $0x6c0] sm:$0xff]  ;;  %v444_v31 = vld [vmem:[%s3717_s0 + $0x778] sm:$0xff] }
  0x42   : > { %1893 = vmatpush1.bf16.msra.mxu1 %v1892_v62  ;;  %1859 = vmatprep.subr.bf16.mxu0 %v1858_v63  ;;  %v1948_v62 = vpack.c.bf16 %v284_v55, %v261_v53  ;;  %v1914_v63 = vpack.c.bf16 %v329_v57, %v306_v56  ;;  %v619_v19 = vld [vmem:[%s2810_s24] sm:$0xff]  ;;  %v1922_v25 = vpack.c.bf16 %v421_v18, %v398_v17  ;;  %v422_v30 = vld [vmem:[%s3717_s0 + $0x6c8] sm:$0xff]  ;;  %v467_v34 = vld [vmem:[%s3717_s0 + $0x830] sm:$0xff] }
  0x43   : > { %1895 = vmatprep.subr.bf16.mxu1 %v1894_v3  ;;  %v1950_v3 = vpack.c.bf16 %v331_v59, %v308_v58  ;;  %623 = vperm.xlu0 %2196, %v619_v19   ;;  %v397_v26 = vld [vmem:[%s3717_s0 + $0x600] sm:$0xff]  ;;  %v446_v35 = vld [vmem:[%s3717_s0 + $0x788] sm:$0xff]  ;;  %v1926_v39 = vpack.c.bf16 %v467_v34, %v444_v31  ;;  %v443_v40 = vld [vmem:[%s3717_s0 + $0x770] sm:$0xff] }
  0x44   : > { %v466_v41 = vld [vmem:[%s3717_s0 + $0x828] sm:$0xff]  ;;  %v468_v44 = vld [vmem:[%s3717_s0 + $0x838] sm:$0xff]  ;;  %v513_v46 = vld [vmem:[%s3717_s0 + $0x9a0] sm:$0xff] }
  0x45   : > { %1861 = vmatpush1.bf16.msra.mxu0 %v1860_v9  ;;  %v1916_v9 = vpack.c.bf16 %v328_v1, %v305_v0  ;;  %v490_v45 = vld [vmem:[%s3717_s0 + $0x8e8] sm:$0xff]  ;;  %v492_v47 = vld [vmem:[%s3717_s0 + $0x8f8] sm:$0xff]  ;;  %v489_v52 = vld [vmem:[%s3717_s0 + $0x8e0] sm:$0xff] }
  0x46   : > { %1897 = vmatpush1.bf16.msra.mxu1 %v1896_v10  ;;  %1863 = vmatprep.subr.bf16.mxu0 %v1862_v11  ;;  %v351_v10 = vld [vmem:[%s3717_s0 + $0x490] sm:$0xff]  ;;  %v1952_v11 = vpack.c.bf16 %v330_v4, %v307_v2  ;;  %v1930_v51 = vpack.c.bf16 %v513_v46, %v490_v45  ;;  %v512_v53 = vld [vmem:[%s3717_s0 + $0x998] sm:$0xff]  ;;  %v514_v56 = vld [vmem:[%s3717_s0 + $0x9a8] sm:$0xff] }
  0x47   : > { %1899 = vmatprep.subr.bf16.mxu1 %v1898_v15  ;;  %v376_v15 = vld [vmem:[%s3717_s0 + $0x558] sm:$0xff]  ;;  %v559_v58 = vld [vmem:[%s3717_s0 + $0xb10] sm:$0xff]  ;;  %v538_v59 = vld [vmem:[%s3717_s0 + $0xa68] sm:$0xff] }
  0x48   : > { %v536_v57 = vld [vmem:[%s3717_s0 + $0xa58] sm:$0xff]  ;;  %v535_v1 = vld [vmem:[%s3717_s0 + $0xa50] sm:$0xff]  ;;  %v558_v2 = vld [vmem:[%s3717_s0 + $0xb08] sm:$0xff] }
  0x49   : > { %1865 = vmatpush1.bf16.msra.mxu0 %v1864_v21  ;;  %v423_v21 = vld [vmem:[%s3717_s0 + $0x6d0] sm:$0xff]  ;;  %v1934_v0 = vpack.c.bf16 %v559_v58, %v536_v57  ;;  %v560_v5 = vld [vmem:[%s3717_s0 + $0xb18] sm:$0xff]  ;;  %v582_v6 = vld [vmem:[%s3717_s0 + $0xbc8] sm:$0xff] }
  0x4a   : > { %1901 = vmatpush1.bf16.msra.mxu1 %v1900_v22  ;;  %1867 = vmatprep.subr.bf16.mxu0 %v1866_v23  ;;  %v1920_v22 = vpack.c.bf16 %v374_v13, %v351_v10  ;;  %v1956_v23 = vpack.c.bf16 %v376_v15, %v353_v14  ;;  %v1958_v29 = vpack.c.bf16 %v423_v21, %v400_v20  ;;  %v605_v7 = vld [vmem:[%s3717_s0 + $0xc80] sm:$0xff]  ;;  %v584_v8 = vld [vmem:[%s3717_s0 + $0xbd8] sm:$0xff]  ;;  %v583_v15 = vld [vmem:[%s3717_s0 + $0xbd0] sm:$0xff] }
  0x4b   : > { %1903 = vmatprep.subr.bf16.mxu1 %v1902_v28  ;;  %v399_v28 = vld [vmem:[%s3717_s0 + $0x610] sm:$0xff]  ;;  %v1936_v10 = vpack.c.bf16 %v558_v2, %v535_v1  ;;  %v581_v13 = vld [vmem:[%s3717_s0 + $0xbc0] sm:$0xff]  ;;  %v604_v14 = vld [vmem:[%s3717_s0 + $0xc78] sm:$0xff] }
  0x4c   : > { %v606_v17 = vld [vmem:[%s3717_s0 + $0xc88] sm:$0xff]  ;;  %v241_v19 = vld [vmem:[%s3717_s0 + $0x120] sm:$0xff]  ;;  %v220_v20 = vld [vmem:[%s3717_s0 + $0x78] sm:$0xff] }
  0x4d   : > { %1869 = vmatpush1.bf16.msra.mxu0 %v1868_v36  ;;  %v469_v36 = vld [vmem:[%s3717_s0 + $0x840] sm:$0xff]  ;;  %v218_v18 = vld [vmem:[%s3717_s0 + $0x68] sm:$0xff]  ;;  %v243_v21 = vld [vmem:[%s3717_s0 + $0x130] sm:$0xff] }
  0x4e   : > { %1905 = vmatpush1.bf16.msra.mxu1 %v1904_v37  ;;  %1907 = vmatprep.subr.bf16.mxu0 %v1906_v38  ;;  %v1924_v37 = vpack.c.bf16 %v420_v27, %v397_v26  ;;  %v1960_v38 = vpack.c.bf16 %v422_v30, %v399_v28  ;;  %v1962_v43 = vpack.c.bf16 %v469_v36, %v446_v35  ;;  %v217_v27 = vld [vmem:[%s3717_s0 + $0x60] sm:$0xff]  ;;  %v240_v28 = vld [vmem:[%s3717_s0 + $0x118] sm:$0xff]  ;;  %v242_v31 = vld [vmem:[%s3717_s0 + $0x128] sm:$0xff] }
  0x4f   : > { %1943 = vmatprep.subr.bf16.mxu1 %v1942_v42  ;;  %v445_v42 = vld [vmem:[%s3717_s0 + $0x780] sm:$0xff]  ;;  %v1978_v26 = vpack.c.bf16 %v241_v19, %v218_v18  ;;  %v2014_v30 = vpack.c.bf16 %v243_v21, %v220_v20  ;;  %v264_v34 = vld [vmem:[%s3717_s0 + $0x1d8] sm:$0xff]  ;;  %v287_v35 = vld [vmem:[%s3717_s0 + $0x290] sm:$0xff] }
  0x50   : > { %857 = vmatmul.mubr.f32.vlgmr.msra.gmra.mrb[4].mxu0 %v2515_v60  ;;  %v266_v36 = vld [vmem:[%s3717_s0 + $0x1e8] sm:$0xff]  ;;  %v288_v45 = vld [vmem:[%s3717_s0 + $0x298] sm:$0xff]  ;;  %v355_v2 = vld [vmem:[%s3717_s0 + $0x4b0] sm:$0xff] }
  0x51   : > { %934 = vmatmul.mubr.f32.vlgmr.msra.gmra.mrb[4].mxu1 %v2515_v60  ;;  %1909 = vmatpush1.bf16.msra.mxu0 %v1908_v48  ;;  %v515_v48 = vld [vmem:[%s3717_s0 + $0x9b0] sm:$0xff]  ;;  %v310_v46 = vld [vmem:[%s3717_s0 + $0x348] sm:$0xff]  ;;  %v356_v58 = vld [vmem:[%s3717_s0 + $0x4b8] sm:$0xff] }
  0x52   : > { %1945 = vmatpush1.bf16.msra.mxu1 %v1944_v49  ;;  %1911 = vmatprep.subr.bf16.mxu0 %v1910_v50  ;;  %v1928_v49 = vpack.c.bf16 %v466_v41, %v443_v40  ;;  %v1964_v50 = vpack.c.bf16 %v468_v44, %v445_v42  ;;  %v1966_v55 = vpack.c.bf16 %v515_v48, %v492_v47  ;;  %v263_v41 = vld [vmem:[%s3717_s0 + $0x1d0] sm:$0xff]  ;;  %v286_v42 = vld [vmem:[%s3717_s0 + $0x288] sm:$0xff]  ;;  %v333_v47 = vld [vmem:[%s3717_s0 + $0x400] sm:$0xff] }
  0x53   : > { %1947 = vmatprep.subr.bf16.mxu1 %v1946_v54  ;;  %1740 = vmatprep.mubr.msk.f32.mxu0 %vm631_vm0, %v2586_v32  ;;  %v491_v54 = vld [vmem:[%s3717_s0 + $0x8f0] sm:$0xff]  ;;  %v1982_v40 = vpack.c.bf16 %v287_v35, %v264_v34  ;;  %v312_v48 = vld [vmem:[%s3717_s0 + $0x358] sm:$0xff]  ;;  %v334_v57 = vld [vmem:[%s3717_s0 + $0x408] sm:$0xff] }
  0x54   : > { %863 = vmatmul.mubr.f32.gmra.mrb[6].mxu0 %v2589_v33  ;;  %1742 = vmatprep.mubr.msk.f32.mxu1 %vm631_vm0, %v2586_v32  ;;  %v448_v18 = vld [vmem:[%s3717_s0 + $0x798] sm:$0xff]  ;;  %v471_v19 = vld [vmem:[%s3717_s0 + $0x850] sm:$0xff]  ;;  %v450_v20 = vld [vmem:[%s3717_s0 + $0x7a8] sm:$0xff] }
  0x55   : > { %1913 = vmatpush1.bf16.msra.mxu0 %v1912_v61  ;;  %940 = vmatmul.mubr.f32.gmra.mrb[6].mxu1 %v2589_v33  ;;  %v561_v61 = vld [vmem:[%s3717_s0 + $0xb20] sm:$0xff]  ;;  %v496_v35 = vld [vmem:[%s3717_s0 + $0x918] sm:$0xff] }
  0x56   : > { %1949 = vmatpush1.bf16.msra.mxu1 %v1948_v62  ;;  %1915 = vmatprep.subr.bf16.mxu0 %v1914_v63  ;;  %v1932_v62 = vpack.c.bf16 %v512_v53, %v489_v52  ;;  %v1968_v63 = vpack.c.bf16 %v514_v56, %v491_v54  ;;  %v1970_v4 = vpack.c.bf16 %v561_v61, %v538_v59  ;;  %v309_v53 = vld [vmem:[%s3717_s0 + $0x340] sm:$0xff]  ;;  %v332_v54 = vld [vmem:[%s3717_s0 + $0x3f8] sm:$0xff]  ;;  %v379_v59 = vld [vmem:[%s3717_s0 + $0x570] sm:$0xff] }
  0x57   : > { %1951 = vmatprep.subr.bf16.mxu1 %v1950_v3  ;;  %1743 = vmatprep.mubr.msk.f32.mxu0 %vm631_vm0, %v2436_v24  ;;  %v537_v3 = vld [vmem:[%s3717_s0 + $0xa60] sm:$0xff]  ;;  %v1986_v52 = vpack.c.bf16 %v333_v47, %v310_v46  ;;  %v358_v61 = vld [vmem:[%s3717_s0 + $0x4c8] sm:$0xff]  ;;  %v1990_v1 = vpack.c.bf16 %v379_v59, %v356_v58  ;;  %v563_v46 = vld [vmem:[%s3717_s0 + $0xb30] sm:$0xff] }
  0x58   : > { %1745 = vmatprep.mubr.msk.f32.mxu1 %vm631_vm0, %v2436_v24  ;;  %v473_v21 = vld [vmem:[%s3717_s0 + $0x860] sm:$0xff]  ;;  %v542_v47 = vld [vmem:[%s3717_s0 + $0xa88] sm:$0xff]  ;;  %v588_v59 = vld [vmem:[%s3717_s0 + $0xbf8] sm:$0xff] }
  0x59   : > { %1917 = vmatpush1.bf16.msra.mxu0 %v1916_v9  ;;  %v607_v9 = vld [vmem:[%s3717_s0 + $0xc90] sm:$0xff]  ;;  %v517_v34 = vld [vmem:[%s3717_s0 + $0x9c0] sm:$0xff] }
  0x5a   : > { %1953 = vmatpush1.bf16.msra.mxu1 %v1952_v11  ;;  %1919 = vmatprep.subr.bf16.mxu0 %v1918_v12  ;;  %v1972_v11 = vpack.c.bf16 %v560_v5, %v537_v3  ;;  %v1938_v12 = vpack.c.bf16 %v605_v7, %v582_v6  ;;  %v378_v3 = vld [vmem:[%s3717_s0 + $0x568] sm:$0xff]  ;;  %v380_v6 = vld [vmem:[%s3717_s0 + $0x578] sm:$0xff]  ;;  %v609_v58 = vld [vmem:[%s3717_s0 + $0xca0] sm:$0xff] }
  0x5b   : > { %1955 = vmatprep.subr.bf16.mxu1 %v1954_v16  ;;  %v1974_v16 = vpack.c.bf16 %v607_v9, %v584_v8  ;;  %v402_v7 = vld [vmem:[%s3717_s0 + $0x628] sm:$0xff]  ;;  %v425_v8 = vld [vmem:[%s3717_s0 + $0x6e0] sm:$0xff]  ;;  %v404_v9 = vld [vmem:[%s3717_s0 + $0x638] sm:$0xff] }
  0x5d   : > { %1921 = vmatpush1.bf16.msra.mxu0 %v1920_v22  ;;  %v1940_v22 = vpack.c.bf16 %v604_v14, %v581_v13  ;;  %v1994_v13 = vpack.c.bf16 %v425_v8, %v402_v7  ;;  %v401_v14 = vld [vmem:[%s3717_s0 + $0x620] sm:$0xff]  ;;  %v224_v8 = vld [vmem:[%s3717_s0 + $0x98] sm:$0xff] }
  0x5e   : > { %1957 = vmatpush1.bf16.msra.mxu1 %v1956_v23  ;;  %1923 = vmatprep.subr.bf16.mxu0 %v1922_v25  ;;  %v620_v23 = vld [vmem:[%s2810_s24 + $0x8] sm:$0xff]  ;;  %v1976_v25 = vpack.c.bf16 %v606_v17, %v583_v15  ;;  %v424_v15 = vld [vmem:[%s3717_s0 + $0x6d8] sm:$0xff]  ;;  %v245_v7 = vld [vmem:[%s3717_s0 + $0x140] sm:$0xff] }
  0x5f   : > { %1959 = vmatprep.subr.bf16.mxu1 %v1958_v29  ;;  %v219_v29 = vld [vmem:[%s3717_s0 + $0x70] sm:$0xff]  ;;  %628 = vperm.xlu0 %2196, %v620_v23   ;;  %v426_v17 = vld [vmem:[%s3717_s0 + $0x6e8] sm:$0xff] }
  0x61   : > { %1925 = vmatpush1.bf16.msra.mxu0 %v1924_v37  ;;  %v289_v37 = vld [vmem:[%s3717_s0 + $0x2a0] sm:$0xff] }
  0x62   : > { %1961 = vmatpush1.bf16.msra.mxu1 %v1960_v38  ;;  %1927 = vmatprep.subr.bf16.mxu0 %v1926_v39  ;;  %v1980_v38 = vpack.c.bf16 %v240_v28, %v217_v27  ;;  %v2016_v39 = vpack.c.bf16 %v242_v31, %v219_v29  ;;  %v2018_v44 = vpack.c.bf16 %v289_v37, %v266_v36  ;;  %v470_v27 = vld [vmem:[%s3717_s0 + $0x848] sm:$0xff]  ;;  %v449_v28 = vld [vmem:[%s3717_s0 + $0x7a0] sm:$0xff]  ;;  %v519_v36 = vld [vmem:[%s3717_s0 + $0x9d0] sm:$0xff] }
  0x63   : > { %1963 = vmatprep.subr.bf16.mxu1 %v1962_v43  ;;  %v265_v43 = vld [vmem:[%s3717_s0 + $0x1e0] sm:$0xff]  ;;  %v2034_v29 = vpack.c.bf16 %v473_v21, %v450_v20  ;;  %v494_v31 = vld [vmem:[%s3717_s0 + $0x908] sm:$0xff] }
  0x64   : > { %v293_v20 = vld [vmem:[%s3717_s0 + $0x2c0] sm:$0xff] }
  0x65   : > { %1929 = vmatpush1.bf16.msra.mxu0 %v1928_v49  ;;  %v335_v49 = vld [vmem:[%s3717_s0 + $0x410] sm:$0xff] }
  0x66   : > { %1965 = vmatpush1.bf16.msra.mxu1 %v1964_v50  ;;  %1931 = vmatprep.subr.bf16.mxu0 %v1930_v51  ;;  %v1984_v50 = vpack.c.bf16 %v286_v42, %v263_v41  ;;  %v2020_v51 = vpack.c.bf16 %v288_v45, %v265_v43  ;;  %v2022_v56 = vpack.c.bf16 %v335_v49, %v312_v48  ;;  %v516_v41 = vld [vmem:[%s3717_s0 + $0x9b8] sm:$0xff]  ;;  %v495_v42 = vld [vmem:[%s3717_s0 + $0x910] sm:$0xff]  ;;  %v565_v48 = vld [vmem:[%s3717_s0 + $0xb40] sm:$0xff] }
  0x67   : > { %1967 = vmatprep.subr.bf16.mxu1 %v1966_v55  ;;  %v311_v55 = vld [vmem:[%s3717_s0 + $0x350] sm:$0xff]  ;;  %v2038_v43 = vpack.c.bf16 %v519_v36, %v496_v35  ;;  %v540_v45 = vld [vmem:[%s3717_s0 + $0xa78] sm:$0xff] }
  0x68   : > { %v339_v35 = vld [vmem:[%s3717_s0 + $0x430] sm:$0xff] }
  0x69   : > { %1933 = vmatpush1.bf16.msra.mxu0 %v1932_v62  ;;  %v381_v62 = vld [vmem:[%s3717_s0 + $0x580] sm:$0xff] }
  0x6a   : > { %1969 = vmatpush1.bf16.msra.mxu1 %v1968_v63  ;;  %1935 = vmatprep.subr.bf16.mxu0 %v1934_v0  ;;  %v1988_v63 = vpack.c.bf16 %v332_v54, %v309_v53  ;;  %v2024_v0 = vpack.c.bf16 %v334_v57, %v311_v55  ;;  %v2026_v5 = vpack.c.bf16 %v381_v62, %v358_v61  ;;  %v562_v53 = vld [vmem:[%s3717_s0 + $0xb28] sm:$0xff]  ;;  %v541_v54 = vld [vmem:[%s3717_s0 + $0xa80] sm:$0xff]  ;;  %v611_v61 = vld [vmem:[%s3717_s0 + $0xcb0] sm:$0xff] }
  0x6b   : > { %1971 = vmatprep.subr.bf16.mxu1 %v1970_v4  ;;  %v357_v4 = vld [vmem:[%s3717_s0 + $0x4c0] sm:$0xff]  ;;  %v2042_v55 = vpack.c.bf16 %v565_v48, %v542_v47  ;;  %v586_v57 = vld [vmem:[%s3717_s0 + $0xbe8] sm:$0xff] }
  0x6d   : > { %1937 = vmatpush1.bf16.msra.mxu0 %v1936_v10  ;;  %v427_v10 = vld [vmem:[%s3717_s0 + $0x6f0] sm:$0xff] }
  0x6e   : > { %1973 = vmatpush1.bf16.msra.mxu1 %v1972_v11  ;;  %1939 = vmatprep.subr.bf16.mxu0 %v1938_v12  ;;  %v1992_v11 = vpack.c.bf16 %v378_v3, %v355_v2  ;;  %v2028_v12 = vpack.c.bf16 %v380_v6, %v357_v4  ;;  %v608_v2 = vld [vmem:[%s3717_s0 + $0xc98] sm:$0xff]  ;;  %v587_v3 = vld [vmem:[%s3717_s0 + $0xbf0] sm:$0xff]  ;;  %v2046_v4 = vpack.c.bf16 %v611_v61, %v588_v59  ;;  %v222_v6 = vld [vmem:[%s3717_s0 + $0x88] sm:$0xff] }
  0x6f   : > { %1975 = vmatprep.subr.bf16.mxu1 %v1974_v16  ;;  %v403_v16 = vld [vmem:[%s3717_s0 + $0x630] sm:$0xff] }
  0x70   : > { %v2032_v23 = vpack.c.bf16 %v426_v17, %v403_v16  ;;  %v268_v17 = vld [vmem:[%s3717_s0 + $0x1f8] sm:$0xff] }
  0x71   : > { %1941 = vmatpush1.bf16.msra.mxu0 %v1940_v22  ;;  %v1996_v22 = vpack.c.bf16 %v424_v15, %v401_v14  ;;  %v244_v14 = vld [vmem:[%s3717_s0 + $0x138] sm:$0xff]  ;;  %v223_v15 = vld [vmem:[%s3717_s0 + $0x90] sm:$0xff] }
  0x72   : > { %1977 = vmatpush1.bf16.msra.mxu1 %v1976_v25  ;;  %1979 = vmatprep.subr.bf16.mxu0 %v1978_v26  ;;  %v1998_v25 = vpack.c.bf16 %v471_v19, %v448_v18  ;;  %v447_v26 = vld [vmem:[%s3717_s0 + $0x790] sm:$0xff]  ;;  %v270_v19 = vld [vmem:[%s3717_s0 + $0x208] sm:$0xff] }
  0x73   : > { %2015 = vmatprep.subr.bf16.mxu1 %v2014_v30  ;;  %v472_v30 = vld [vmem:[%s3717_s0 + $0x858] sm:$0xff]  ;;  %v2000_v37 = vpack.c.bf16 %v470_v27, %v447_v26  ;;  %v291_v18 = vld [vmem:[%s3717_s0 + $0x2b0] sm:$0xff]  ;;  %v290_v26 = vld [vmem:[%s3717_s0 + $0x2a8] sm:$0xff] }
  0x74   : > { %1011 = vmatmul.mubr.f32.vlgmr.msra.gmra.mrb[8].mxu0 %v2515_v60  ;;  %v269_v27 = vld [vmem:[%s3717_s0 + $0x200] sm:$0xff] }
  0x75   : > { %1088 = vmatmul.mubr.f32.vlgmr.msra.gmra.mrb[8].mxu1 %v2515_v60  ;;  %1981 = vmatpush1.bf16.msra.mxu0 %v1980_v38  ;;  %v2036_v38 = vpack.c.bf16 %v472_v30, %v449_v28  ;;  %v2090_v28 = vpack.c.bf16 %v293_v20, %v270_v19  ;;  %v314_v30 = vld [vmem:[%s3717_s0 + $0x368] sm:$0xff] }
  0x76   : > { %2017 = vmatpush1.bf16.msra.mxu1 %v2016_v39  ;;  %1983 = vmatprep.subr.bf16.mxu0 %v1982_v40  ;;  %v2002_v39 = vpack.c.bf16 %v517_v34, %v494_v31  ;;  %v493_v40 = vld [vmem:[%s3717_s0 + $0x900] sm:$0xff]  ;;  %v316_v34 = vld [vmem:[%s3717_s0 + $0x378] sm:$0xff] }
  0x77   : > { %2019 = vmatprep.subr.bf16.mxu1 %v2018_v44  ;;  %1744 = vmatprep.mubr.msk.f32.mxu0 %vm631_vm0, %v2586_v32  ;;  %v518_v44 = vld [vmem:[%s3717_s0 + $0x9c8] sm:$0xff]  ;;  %v2004_v49 = vpack.c.bf16 %v516_v41, %v493_v40  ;;  %v337_v31 = vld [vmem:[%s3717_s0 + $0x420] sm:$0xff]  ;;  %v336_v40 = vld [vmem:[%s3717_s0 + $0x418] sm:$0xff] }
  0x78   : > { %1017 = vmatmul.mubr.f32.gmra.mrb[10].mxu0 %v2589_v33  ;;  %1746 = vmatprep.mubr.msk.f32.mxu1 %vm631_vm0, %v2586_v32  ;;  %v315_v41 = vld [vmem:[%s3717_s0 + $0x370] sm:$0xff] }
  0x79   : > { %1985 = vmatpush1.bf16.msra.mxu0 %v1984_v50  ;;  %1094 = vmatmul.mubr.f32.gmra.mrb[10].mxu1 %v2589_v33  ;;  %v2040_v50 = vpack.c.bf16 %v518_v44, %v495_v42  ;;  %v338_v42 = vld [vmem:[%s3717_s0 + $0x428] sm:$0xff]  ;;  %v383_v44 = vld [vmem:[%s3717_s0 + $0x590] sm:$0xff] }
  0x7a   : > { %2021 = vmatpush1.bf16.msra.mxu1 %v2020_v51  ;;  %1987 = vmatprep.subr.bf16.mxu0 %v1986_v52  ;;  %v2006_v51 = vpack.c.bf16 %v563_v46, %v540_v45  ;;  %v539_v52 = vld [vmem:[%s3717_s0 + $0xa70] sm:$0xff]  ;;  %v362_v45 = vld [vmem:[%s3717_s0 + $0x4e8] sm:$0xff]  ;;  %v385_v46 = vld [vmem:[%s3717_s0 + $0x5a0] sm:$0xff]  ;;  %v2096_v48 = vpack.c.bf16 %v338_v42, %v315_v41 }
  0x7b   : > { %2023 = vmatprep.subr.bf16.mxu1 %v2022_v56  ;;  %1747 = vmatprep.mubr.msk.f32.mxu0 %vm631_vm0, %v2436_v24  ;;  %v564_v56 = vld [vmem:[%s3717_s0 + $0xb38] sm:$0xff]  ;;  %v2008_v62 = vpack.c.bf16 %v562_v53, %v539_v52  ;;  %v2098_v52 = vpack.c.bf16 %v385_v46, %v362_v45  ;;  %v406_v53 = vld [vmem:[%s3717_s0 + $0x648] sm:$0xff] }
  0x7c   : > { %1749 = vmatprep.mubr.msk.f32.mxu1 %vm631_vm0, %v2436_v24  ;;  %v2030_v24 = vpack.c.bf16 %v427_v10, %v404_v9  ;;  %v247_v9 = vld [vmem:[%s3717_s0 + $0x150] sm:$0xff]  ;;  %v590_v41 = vld [vmem:[%s3717_s0 + $0xc08] sm:$0xff]  ;;  %v592_v42 = vld [vmem:[%s3717_s0 + $0xc18] sm:$0xff] }
  0x7d   : > { %1989 = vmatpush1.bf16.msra.mxu0 %v1988_v63  ;;  %v2044_v63 = vpack.c.bf16 %v564_v56, %v541_v54  ;;  %v2086_v16 = vpack.c.bf16 %v247_v9, %v224_v8  ;;  %v429_v54 = vld [vmem:[%s3717_s0 + $0x700] sm:$0xff]  ;;  %v408_v56 = vld [vmem:[%s3717_s0 + $0x658] sm:$0xff] }
  0x7e   : > { %2025 = vmatpush1.bf16.msra.mxu1 %v2024_v0  ;;  %1991 = vmatprep.subr.bf16.mxu0 %v1990_v1  ;;  %v2010_v0 = vpack.c.bf16 %v609_v58, %v586_v57  ;;  %v585_v1 = vld [vmem:[%s3717_s0 + $0xbe0] sm:$0xff]  ;;  %v431_v57 = vld [vmem:[%s3717_s0 + $0x710] sm:$0xff]  ;;  %v2066_v61 = vpack.c.bf16 %v429_v54, %v406_v53 }
  0x7f   : > { %2027 = vmatprep.subr.bf16.mxu1 %v2026_v5  ;;  %v610_v5 = vld [vmem:[%s3717_s0 + $0xca8] sm:$0xff]  ;;  %v2012_v10 = vpack.c.bf16 %v608_v2, %v585_v1  ;;  %v2102_v1 = vpack.c.bf16 %v431_v57, %v408_v56  ;;  %v225_v56 = vld [vmem:[%s3717_s0 + $0xa0] sm:$0xff]  ;;  %v248_v57 = vld [vmem:[%s3717_s0 + $0x158] sm:$0xff] }
  0x80   : > { %v430_v2 = vld [vmem:[%s3717_s0 + $0x708] sm:$0xff] }
  0x81   : > { %1993 = vmatpush1.bf16.msra.mxu0 %v1992_v11  ;;  %v2048_v11 = vpack.c.bf16 %v610_v5, %v587_v3  ;;  %v452_v3 = vld [vmem:[%s3717_s0 + $0x7b8] sm:$0xff]  ;;  %v454_v5 = vld [vmem:[%s3717_s0 + $0x7c8] sm:$0xff] }
  0x82   : > { %2029 = vmatpush1.bf16.msra.mxu1 %v2028_v12  ;;  %1995 = vmatprep.subr.bf16.mxu0 %v1994_v13  ;;  %v2050_v12 = vpack.c.bf16 %v245_v7, %v222_v6  ;;  %v221_v13 = vld [vmem:[%s3717_s0 + $0x80] sm:$0xff] }
  0x83   : > { %2031 = vmatprep.subr.bf16.mxu1 %v2030_v24  ;;  %v246_v24 = vld [vmem:[%s3717_s0 + $0x148] sm:$0xff]  ;;  %v2052_v21 = vpack.c.bf16 %v244_v14, %v221_v13  ;;  %v477_v6 = vld [vmem:[%s3717_s0 + $0x880] sm:$0xff]  ;;  %v476_v14 = vld [vmem:[%s3717_s0 + $0x878] sm:$0xff] }
  0x84   : > { %v2106_v13 = vpack.c.bf16 %v477_v6, %v454_v5  ;;  %v2210_v5 = vmov 0.0|0.0   ;;  %v296_v6 = vld [vmem:[%s3717_s0 + $0x2d8] sm:$0xff] }
  0x85   : > { %1997 = vmatpush1.bf16.msra.mxu0 %v1996_v22  ;;  %v2088_v22 = vpack.c.bf16 %v246_v24, %v223_v15  ;;  %v498_v15 = vld [vmem:[%s3717_s0 + $0x928] sm:$0xff]  ;;  %v500_v24 = vld [vmem:[%s3717_s0 + $0x938] sm:$0xff] }
  0x86   : > { %2033 = vmatpush1.bf16.msra.mxu1 %v2032_v23  ;;  %1999 = vmatprep.subr.bf16.mxu0 %v1998_v25  ;;  %v2054_v23 = vpack.c.bf16 %v291_v18, %v268_v17  ;;  %v267_v25 = vld [vmem:[%s3717_s0 + $0x1f0] sm:$0xff] }
  0x87   : > { %2035 = vmatprep.subr.bf16.mxu1 %v2034_v29  ;;  %v292_v29 = vld [vmem:[%s3717_s0 + $0x2b8] sm:$0xff]  ;;  %v2056_v36 = vpack.c.bf16 %v290_v26, %v267_v25  ;;  %v523_v17 = vld [vmem:[%s3717_s0 + $0x9f0] sm:$0xff]  ;;  %v522_v26 = vld [vmem:[%s3717_s0 + $0x9e8] sm:$0xff] }
  0x88   : > { %v2110_v25 = vpack.c.bf16 %v523_v17, %v500_v24  ;;  %v364_v24 = vld [vmem:[%s3717_s0 + $0x4f8] sm:$0xff]  ;;  %v387_v17 = vld [vmem:[%s3717_s0 + $0x5b0] sm:$0xff] }
  0x89   : > { %2001 = vmatpush1.bf16.msra.mxu0 %v2000_v37  ;;  %v2092_v37 = vpack.c.bf16 %v292_v29, %v269_v27  ;;  %v544_v27 = vld [vmem:[%s3717_s0 + $0xa98] sm:$0xff]  ;;  %v546_v29 = vld [vmem:[%s3717_s0 + $0xaa8] sm:$0xff] }
  0x8a   : > { %2037 = vmatpush1.bf16.msra.mxu1 %v2036_v38  ;;  %2003 = vmatprep.subr.bf16.mxu0 %v2002_v39  ;;  %v2058_v38 = vpack.c.bf16 %v337_v31, %v314_v30  ;;  %v313_v39 = vld [vmem:[%s3717_s0 + $0x360] sm:$0xff] }
  0x8b   : > { %2039 = vmatprep.subr.bf16.mxu1 %v2038_v43  ;;  %v360_v43 = vld [vmem:[%s3717_s0 + $0x4d8] sm:$0xff]  ;;  %v2060_v47 = vpack.c.bf16 %v336_v40, %v313_v39  ;;  %v569_v30 = vld [vmem:[%s3717_s0 + $0xb60] sm:$0xff] }
  0x8c   : > { %v2114_v39 = vpack.c.bf16 %v569_v30, %v546_v29  ;;  %v568_v40 = vld [vmem:[%s3717_s0 + $0xb58] sm:$0xff]  ;;  %v433_v29 = vld [vmem:[%s3717_s0 + $0x720] sm:$0xff] }
  0x8d   : > { %2005 = vmatpush1.bf16.msra.mxu0 %v2004_v49  ;;  %v2062_v49 = vpack.c.bf16 %v383_v44, %v360_v43  ;;  %v615_v43 = vld [vmem:[%s3717_s0 + $0xcd0] sm:$0xff] }
  0x8e   : > { %2041 = vmatpush1.bf16.msra.mxu1 %v2040_v50  ;;  %2007 = vmatprep.subr.bf16.mxu0 %v2006_v51  ;;  %v359_v50 = vld [vmem:[%s3717_s0 + $0x4d0] sm:$0xff]  ;;  %v382_v51 = vld [vmem:[%s3717_s0 + $0x588] sm:$0xff] }
  0x8f   : > { %2043 = vmatprep.subr.bf16.mxu1 %v2042_v55  ;;  %v3290_v55 = vld [vmem:[%s2418_s27 + $0x8] sm:$0xff]  ;;  %v2064_v58 = vpack.c.bf16 %v382_v51, %v359_v50  ;;  %v2118_v50 = vpack.c.bf16 %v615_v43, %v592_v42  ;;  %v455_v42 = vld [vmem:[%s3717_s0 + $0x7d0] sm:$0xff] }
  0x90   : > { %v614_v51 = vld [vmem:[%s3717_s0 + $0xcc8] sm:$0xff] }
  0x91   : > { %2009 = vmatpush1.bf16.msra.mxu0 %v2008_v62  ;;  %v405_v62 = vld [vmem:[%s3717_s0 + $0x640] sm:$0xff]  ;;  %v478_v43 = vld [vmem:[%s3717_s0 + $0x888] sm:$0xff] }
  0x92   : > { %2045 = vmatpush1.bf16.msra.mxu1 %v2044_v63  ;;  %2011 = vmatprep.subr.bf16.mxu0 %v2010_v0  ;;  %v428_v63 = vld [vmem:[%s3717_s0 + $0x6f8] sm:$0xff]  ;;  %v407_v0 = vld [vmem:[%s3717_s0 + $0x650] sm:$0xff] }
  0x93   : > { %2047 = vmatprep.subr.bf16.mxu1 %v2046_v4  ;;  %v475_v4 = vld [vmem:[%s3717_s0 + $0x870] sm:$0xff]  ;;  %v2068_v7 = vpack.c.bf16 %v428_v63, %v405_v62  ;;  %v2104_v8 = vpack.c.bf16 %v430_v2, %v407_v0  ;;  %v2124_v63 = vpack.c.bf16 %v248_v57, %v225_v56 }
  0x94   : > { %v2070_v9 = vpack.c.bf16 %v475_v4, %v452_v3  ;;  %v295_v62 = vld [vmem:[%s3717_s0 + $0x2d0] sm:$0xff]  ;;  %v294_v3 = vld [vmem:[%s3717_s0 + $0x2c8] sm:$0xff]  ;;  %v273_v4 = vld [vmem:[%s3717_s0 + $0x220] sm:$0xff] }
  0x95   : > { %2013 = vmatpush1.bf16.msra.mxu0 %v2012_v10  ;;  %v451_v10 = vld [vmem:[%s3717_s0 + $0x7b0] sm:$0xff] }
  0x96   : > { %2049 = vmatpush1.bf16.msra.mxu1 %v2048_v11  ;;  %2051 = vmatprep.subr.bf16.mxu0 %v2050_v12  ;;  %v474_v11 = vld [vmem:[%s3717_s0 + $0x868] sm:$0xff]  ;;  %v453_v12 = vld [vmem:[%s3717_s0 + $0x7c0] sm:$0xff]  ;;  %v271_v2 = vld [vmem:[%s3717_s0 + $0x210] sm:$0xff] }
  0x97   : > { %2087 = vmatprep.subr.bf16.mxu1 %v2086_v16  ;;  %v521_v16 = vld [vmem:[%s3717_s0 + $0x9e0] sm:$0xff]  ;;  %v2072_v18 = vpack.c.bf16 %v474_v11, %v451_v10  ;;  %v2108_v19 = vpack.c.bf16 %v476_v14, %v453_v12  ;;  %v2128_v10 = vpack.c.bf16 %v294_v3, %v271_v2  ;;  %v2162_v11 = vpack.c.bf16 %v296_v6, %v273_v4  ;;  %v340_v14 = vld [vmem:[%s3717_s0 + $0x438] sm:$0xff] }
  0x98   : > { %1165 = vmatmul.mubr.f32.vlgmr.msra.gmra.mrb[12].mxu0 %v2515_v60  ;;  %v2074_v20 = vpack.c.bf16 %v521_v16, %v498_v15  ;;  %v319_v15 = vld [vmem:[%s3717_s0 + $0x390] sm:$0xff]  ;;  %v342_v16 = vld [vmem:[%s3717_s0 + $0x448] sm:$0xff]  ;;  %v593_v6 = vld [vmem:[%s3717_s0 + $0xc20] sm:$0xff] }
  0x99   : > { %1242 = vmatmul.mubr.f32.vlgmr.msra.gmra.mrb[12].mxu1 %v2515_v60  ;;  %2053 = vmatpush1.bf16.msra.mxu0 %v2052_v21  ;;  %v2094_v60 = vpack.c.bf16 %v339_v35, %v316_v34  ;;  %v497_v21 = vld [vmem:[%s3717_s0 + $0x920] sm:$0xff] }
  0x9a   : > { %2089 = vmatpush1.bf16.msra.mxu1 %v2088_v22  ;;  %2055 = vmatprep.subr.bf16.mxu0 %v2054_v23  ;;  %v520_v22 = vld [vmem:[%s3717_s0 + $0x9d8] sm:$0xff]  ;;  %v499_v23 = vld [vmem:[%s3717_s0 + $0x930] sm:$0xff] }
  0x9b   : > { %2091 = vmatprep.subr.bf16.mxu1 %v2090_v28  ;;  %1748 = vmatprep.mubr.msk.f32.mxu0 %vm631_vm0, %v2586_v32  ;;  %v567_v28 = vld [vmem:[%s3717_s0 + $0xb50] sm:$0xff]  ;;  %v2076_v31 = vpack.c.bf16 %v520_v22, %v497_v21  ;;  %v2112_v34 = vpack.c.bf16 %v522_v26, %v499_v23  ;;  %v2165_v21 = vpack.c.bf16 %v342_v16, %v319_v15  ;;  %v365_v26 = vld [vmem:[%s3717_s0 + $0x500] sm:$0xff] }
  0x9c   : > { %1171 = vmatmul.mubr.f32.gmra.mrb[14].mxu0 %v2589_v33  ;;  %1750 = vmatprep.mubr.msk.f32.mxu1 %vm631_vm0, %v2586_v32  ;;  %v361_v32 = vld [vmem:[%s3717_s0 + $0x4e0] sm:$0xff]  ;;  %v2078_v35 = vpack.c.bf16 %v567_v28, %v544_v27  ;;  %v2134_v22 = vpack.c.bf16 %v387_v17, %v364_v24  ;;  %v363_v23 = vld [vmem:[%s3717_s0 + $0x4f0] sm:$0xff]  ;;  %v388_v27 = vld [vmem:[%s3717_s0 + $0x5b8] sm:$0xff] }
  0x9d   : > { %2057 = vmatpush1.bf16.msra.mxu0 %v2056_v36  ;;  %1248 = vmatmul.mubr.f32.gmra.mrb[14].mxu1 %v2589_v33  ;;  %v384_v33 = vld [vmem:[%s3717_s0 + $0x598] sm:$0xff]  ;;  %v543_v36 = vld [vmem:[%s3717_s0 + $0xa90] sm:$0xff]  ;;  %v410_v28 = vld [vmem:[%s3717_s0 + $0x668] sm:$0xff] }
  0x9e   : > { %2093 = vmatpush1.bf16.msra.mxu1 %v2092_v37  ;;  %2059 = vmatprep.subr.bf16.mxu0 %v2058_v38  ;;  %v2100_v59 = vpack.c.bf16 %v384_v33, %v361_v32  ;;  %v566_v37 = vld [vmem:[%s3717_s0 + $0xb48] sm:$0xff]  ;;  %v545_v38 = vld [vmem:[%s3717_s0 + $0xaa0] sm:$0xff] }
  0x9f   : > { %2095 = vmatprep.subr.bf16.mxu1 %v2094_v60  ;;  %1751 = vmatprep.mubr.msk.f32.mxu0 %vm631_vm0, %v3290_v55  ;;  %v613_v60 = vld [vmem:[%s3717_s0 + $0xcc0] sm:$0xff]  ;;  %v2080_v44 = vpack.c.bf16 %v566_v37, %v543_v36  ;;  %v2116_v45 = vpack.c.bf16 %v568_v40, %v545_v38  ;;  %v226_v32 = vld [vmem:[%s3717_s0 + $0xa8] sm:$0xff]  ;;  %v432_v36 = vld [vmem:[%s3717_s0 + $0x718] sm:$0xff] }
  0xa0   : > { %1753 = vmatprep.mubr.msk.f32.mxu1 %vm631_vm0, %v3290_v55  ;;  %v2082_v46 = vpack.c.bf16 %v613_v60, %v590_v41  ;;  %v411_v37 = vld [vmem:[%s3717_s0 + $0x670] sm:$0xff]  ;;  %v456_v38 = vld [vmem:[%s3717_s0 + $0x7d8] sm:$0xff] }
  0xa1   : > { %2061 = vmatpush1.bf16.msra.mxu0 %v2060_v47  ;;  %v589_v47 = vld [vmem:[%s3717_s0 + $0xc00] sm:$0xff] }
  0xa2   : > { %2097 = vmatpush1.bf16.msra.mxu1 %v2096_v48  ;;  %2063 = vmatprep.subr.bf16.mxu0 %v2062_v49  ;;  %v612_v48 = vld [vmem:[%s3717_s0 + $0xcb8] sm:$0xff]  ;;  %v591_v49 = vld [vmem:[%s3717_s0 + $0xc10] sm:$0xff] }
  0xa3   : > { %2099 = vmatprep.subr.bf16.mxu1 %v2098_v52  ;;  %v249_v52 = vld [vmem:[%s3717_s0 + $0x160] sm:$0xff]  ;;  %v2084_v33 = vpack.c.bf16 %v612_v48, %v589_v47  ;;  %v2120_v53 = vpack.c.bf16 %v614_v51, %v591_v49  ;;  %v2144_v48 = vpack.c.bf16 %v478_v43, %v455_v42 }
  0xa4   : > { %v2122_v54 = vpack.c.bf16 %v249_v52, %v226_v32  ;;  %v525_v47 = vld [vmem:[%s3717_s0 + $0xa00] sm:$0xff]  ;;  %v524_v32 = vld [vmem:[%s3717_s0 + $0x9f8] sm:$0xff]  ;;  %v503_v52 = vld [vmem:[%s3717_s0 + $0x950] sm:$0xff] }
  0xa5   : > { %2065 = vmatpush1.bf16.msra.mxu0 %v2064_v58  ;;  %v227_v58 = vld [vmem:[%s3717_s0 + $0xb0] sm:$0xff]  ;;  %v501_v51 = vld [vmem:[%s3717_s0 + $0x940] sm:$0xff] }
  0xa6   : > { %2101 = vmatpush1.bf16.msra.mxu1 %v2100_v59  ;;  %2067 = vmatprep.subr.bf16.mxu0 %v2066_v61  ;;  %v250_v59 = vld [vmem:[%s3717_s0 + $0x168] sm:$0xff]  ;;  %v272_v61 = vld [vmem:[%s3717_s0 + $0x218] sm:$0xff]  ;;  %v2148_v56 = vpack.c.bf16 %v524_v32, %v501_v51 }
  0xa7   : > { %2103 = vmatprep.subr.bf16.mxu1 %v2102_v1  ;;  %v2159_v0 = vpack.c.bf16 %v250_v59, %v227_v58  ;;  %v2126_v1 = vpack.c.bf16 %v295_v62, %v272_v61  ;;  %v547_v59 = vld [vmem:[%s3717_s0 + $0xab0] sm:$0xff]  ;;  %v570_v61 = vld [vmem:[%s3717_s0 + $0xb68] sm:$0xff]  ;;  %v549_v62 = vld [vmem:[%s3717_s0 + $0xac0] sm:$0xff] }
  0xa8   : > { %v2152_v2 = vpack.c.bf16 %v570_v61, %v547_v59 }
  0xa9   : > { %2069 = vmatpush1.bf16.msra.mxu0 %v2068_v7  ;;  %v318_v7 = vld [vmem:[%s3717_s0 + $0x388] sm:$0xff] }
  0xaa   : > { %2105 = vmatpush1.bf16.msra.mxu1 %v2104_v8  ;;  %2071 = vmatprep.subr.bf16.mxu0 %v2070_v9  ;;  %v341_v8 = vld [vmem:[%s3717_s0 + $0x440] sm:$0xff] }
  0xab   : > { %2107 = vmatprep.subr.bf16.mxu1 %v2106_v13  ;;  %v3454_v9 = vld [vmem:[%s2418_s27] sm:$0xff]  ;;  %v2130_v12 = vpack.c.bf16 %v341_v8, %v318_v7  ;;  %v616_v7 = vld [vmem:[%s3717_s0 + $0xcd8] sm:$0xff]  ;;  %v595_v8 = vld [vmem:[%s3717_s0 + $0xc30] sm:$0xff] }
  0xac   : > { %v317_v13 = vld [vmem:[%s3717_s0 + $0x380] sm:$0xff] }
  0xad   : > { %2073 = vmatpush1.bf16.msra.mxu0 %v2072_v18  ;;  %v3478_v18 = vld [vmem:[%s2418_s27 + $0x18] sm:$0xff] }
  0xae   : > { %2109 = vmatpush1.bf16.msra.mxu1 %v2108_v19  ;;  %2075 = vmatprep.subr.bf16.mxu0 %v2074_v20  ;;  %v3483_v19 = vld [vmem:[%s2418_s27 + $0x10] sm:$0xff]  ;;  %v2132_v20 = vpack.c.bf16 %v340_v14, %v317_v13 }
  0xaf   : > { %2111 = vmatprep.subr.bf16.mxu1 %v2110_v25  ;;  %v386_v25 = vld [vmem:[%s3717_s0 + $0x5a8] sm:$0xff] }
  0xb0   : > { %v2136_v30 = vpack.c.bf16 %v386_v25, %v363_v23 }
  0xb1   : > { %2077 = vmatpush1.bf16.msra.mxu0 %v2076_v31  ;;  %v2168_v31 = vpack.c.bf16 %v388_v27, %v365_v26 }
  0xb2   : > { %2113 = vmatpush1.bf16.msra.mxu1 %v2112_v34  ;;  %2079 = vmatprep.subr.bf16.mxu0 %v2078_v35  ;;  %v2138_v34 = vpack.c.bf16 %v433_v29, %v410_v28  ;;  %v409_v35 = vld [vmem:[%s3717_s0 + $0x660] sm:$0xff] }
  0xb3   : > { %2115 = vmatprep.subr.bf16.mxu1 %v2114_v39  ;;  %v479_v39 = vld [vmem:[%s3717_s0 + $0x890] sm:$0xff]  ;;  %v2140_v40 = vpack.c.bf16 %v432_v36, %v409_v35 }
  0xb4   : > { %v2142_v60 = vpack.c.bf16 %v479_v39, %v456_v38 }
  0xb5   : > { %2081 = vmatpush1.bf16.msra.mxu0 %v2080_v44  ;;  %v457_v44 = vld [vmem:[%s3717_s0 + $0x7e0] sm:$0xff] }
  0xb6   : > { %2117 = vmatpush1.bf16.msra.mxu1 %v2116_v45  ;;  %2083 = vmatprep.subr.bf16.mxu0 %v2082_v46  ;;  %v480_v45 = vld [vmem:[%s3717_s0 + $0x898] sm:$0xff]  ;;  %v502_v46 = vld [vmem:[%s3717_s0 + $0x948] sm:$0xff] }
  0xb7   : > { %2119 = vmatprep.subr.bf16.mxu1 %v2118_v50  ;;  %v2174_v49 = vpack.c.bf16 %v480_v45, %v457_v44  ;;  %v2146_v50 = vpack.c.bf16 %v525_v47, %v502_v46 }
  0xb9   : > { %2085 = vmatpush1.bf16.msra.mxu0 %v2084_v33  ;;  %v526_v33 = vld [vmem:[%s3717_s0 + $0xa08] sm:$0xff] }
  0xba   : > { %2121 = vmatpush1.bf16.msra.mxu1 %v2120_v53  ;;  %2123 = vmatprep.subr.bf16.mxu0 %v2122_v54  ;;  %v548_v53 = vld [vmem:[%s3717_s0 + $0xab8] sm:$0xff]  ;;  %v571_v54 = vld [vmem:[%s3717_s0 + $0xb70] sm:$0xff]  ;;  %v2177_v57 = vpack.c.bf16 %v526_v33, %v503_v52 }
  0xbb   : > { %2158 = vmatprep.subr.bf16.mxu1 %v2210_v5  ;;  %v2150_v58 = vpack.c.bf16 %v571_v54, %v548_v53 }
  0xbc   : > { %1319 = vmatmul.mubr.f32.vlgmr.msra.gmra.mrb[16].mxu0 %v3454_v9 }
  0xbd   : > { %1396 = vmatmul.mubr.f32.vlgmr.msra.gmra.mrb[16].mxu1 %v3454_v9  ;;  %2125 = vmatpush1.bf16.msra.mxu0 %v2124_v63  ;;  %v572_v63 = vld [vmem:[%s3717_s0 + $0xb78] sm:$0xff] }
  0xbe   : > { %2160 = vmatpush1.bf16.msra.mxu1 %v2159_v0  ;;  %2127 = vmatprep.subr.bf16.mxu0 %v2126_v1  ;;  %v594_v0 = vld [vmem:[%s3717_s0 + $0xc28] sm:$0xff]  ;;  %v617_v1 = vld [vmem:[%s3717_s0 + $0xce0] sm:$0xff]  ;;  %v2180_v3 = vpack.c.bf16 %v572_v63, %v549_v62 }
  0xbf   : > { %2161 = vmatprep.subr.bf16.mxu1 %v2210_v5  ;;  %1752 = vmatprep.mubr.msk.f32.mxu0 %vm631_vm0, %v3478_v18  ;;  %v2154_v4 = vpack.c.bf16 %v617_v1, %v594_v0 }
  0xc0   : > { %1325 = vmatmul.mubr.f32.gmra.mrb[18].mxu0 %v3483_v19  ;;  %1754 = vmatprep.mubr.msk.f32.mxu1 %vm631_vm0, %v3478_v18 }
  0xc1   : > { %2129 = vmatpush1.bf16.msra.mxu0 %v2128_v10  ;;  %1402 = vmatmul.mubr.f32.gmra.mrb[18].mxu1 %v3483_v19  ;;  %v618_v10 = vld [vmem:[%s3717_s0 + $0xce8] sm:$0xff] }
  0xc2   : > { %2163 = vmatpush1.bf16.msra.mxu1 %v2162_v11  ;;  %2131 = vmatprep.subr.bf16.mxu0 %v2130_v12  ;;  %v2156_v11 = vpack.c.bf16 %v616_v7, %v593_v6  ;;  %v2183_v12 = vpack.c.bf16 %v618_v10, %v595_v8  ;;  %v3611_v13 = vpop.permute.xlu0 %623 }
  0xc3   : > { %2164 = vmatprep.subr.bf16.mxu1 %v2210_v5  ;;  %1755 = vmatprep.mubr.msk.f32.mxu0 %vm631_vm0, %v3290_v55 }
  0xc4   : > { %1757 = vmatprep.mubr.msk.f32.mxu1 %vm631_vm0, %v3290_v55  ;;  %v434_v55 = vld [vmem:[%s3717_s0 + $0x728] sm:$0xff] }
  0xc5   : > { %2133 = vmatpush1.bf16.msra.mxu0 %v2132_v20  ;;  %v2171_v41 = vpack.c.bf16 %v434_v55, %v411_v37 }
  0xc6   : > { %2166 = vmatpush1.bf16.msra.mxu1 %v2165_v21  ;;  %2135 = vmatprep.subr.bf16.mxu0 %v2134_v22 }
  0xc7   : > { %2167 = vmatprep.subr.bf16.mxu1 %v2210_v5 }
  0xc9   : > { %2137 = vmatpush1.bf16.msra.mxu0 %v2136_v30 }
  0xca   : > { %2169 = vmatpush1.bf16.msra.mxu1 %v2168_v31  ;;  %2139 = vmatprep.subr.bf16.mxu0 %v2138_v34 }
  0xcb   : > { %2170 = vmatprep.subr.bf16.mxu1 %v2210_v5 }
  0xcd   : > { %2141 = vmatpush1.bf16.msra.mxu0 %v2140_v40 }
  0xce   : > { %2172 = vmatpush1.bf16.msra.mxu1 %v2171_v41  ;;  %2143 = vmatprep.subr.bf16.mxu0 %v2142_v60 }
  0xcf   : > { %2173 = vmatprep.subr.bf16.mxu1 %v2210_v5 }
  0xd1   : > { %2145 = vmatpush1.bf16.msra.mxu0 %v2144_v48 }
  0xd2   : > { %2175 = vmatpush1.bf16.msra.mxu1 %v2174_v49  ;;  %2147 = vmatprep.subr.bf16.mxu0 %v2146_v50 }
  0xd3   : > { %2176 = vmatprep.subr.bf16.mxu1 %v2210_v5 }
  0xd5   : > { %2149 = vmatpush1.bf16.msra.mxu0 %v2148_v56 }
  0xd6   : > { %2178 = vmatpush1.bf16.msra.mxu1 %v2177_v57  ;;  %2151 = vmatprep.subr.bf16.mxu0 %v2150_v58 }
  0xd7   : > { %2179 = vmatprep.subr.bf16.mxu1 %v2210_v5 }
  0xd9   : > { %2153 = vmatpush1.bf16.msra.mxu0 %v2152_v2 }
  0xda   : > { %2181 = vmatpush1.bf16.msra.mxu1 %v2180_v3  ;;  %2155 = vmatprep.subr.bf16.mxu0 %v2154_v4 }
  0xdb   : > { %2182 = vmatprep.subr.bf16.mxu1 %v2210_v5 }
  0xdd   : > { %2157 = vmatpush1.bf16.msra.mxu0 %v2156_v11 }
  0xde   : > { %2184 = vmatpush1.bf16.msra.mxu1 %v2183_v12  ;;  %v3626_v23 = vpop.permute.xlu0 %628 }
  0xe0   : > { %1473 = vmatmul.mubr.f32.vlgmr.msra.gmra.mrb[20].mxu0 %v3454_v9 }
  0xe1   : > { %1550 = vmatmul.mubr.f32.vlgmr.msra.gmra.mrb[20].mxu1 %v3454_v9  ;;  %1756 = vmatprep.mubr.msk.f32.mxu0 %vm631_vm0, %v3478_v18 }
  0xe2   : > { %1758 = vmatprep.mubr.msk.f32.mxu1 %vm631_vm0, %v3478_v18 }
  0xe4   : > { %1479 = vmatmul.mubr.f32.gmra.mrb[22].mxu0 %v3483_v19 }
  0xe5   : > { %1555 = vmatmul.mubr.f32.gmra.mrb[22].mxu1 %v3483_v19 }
  0xff   : > { %v704_v5 = vpop.f32.mrb[0].mxu0 }
 0x100   : > { %v706_v14 = vpop.f32.mrb[1].mxu0  ;;  %v781_v15 = vpop.f32.mrb[0].mxu1  ;;  %v705_v16 = vadd.f32 %v704_v5, %v3611_v13 }
 0x101   : > { %v707_v9 = vadd.f32 %v706_v14, %v3611_v13  ;;  %v782_v24 = vadd.f32 %v781_v15, %v3611_v13  ;;  %v783_v17 = vpop.f32.mrb[1].mxu1 }
 0x102   : > { %v784_v18 = vadd.f32 %v783_v17, %v3611_v13  ;;  %v1560_v19 = vmax.f32 %v705_v16, 0.0 }
 0x103   : > { %v1561_v20 = vmax.f32 %v707_v9, 0.0  ;;  %v1562_v21 = vmax.f32 %v782_v24, 0.0  ;;  %v710_v28 = vpop.f32.mrb[2].mxu0 }
 0x104   : > { %v1563_v22 = vmax.f32 %v784_v18, 0.0  ;;  %1606 = vst [vmem:[%s3617_s7] sm:$0xff] %v1560_v19  ;;  %v787_v25 = vpop.f32.mrb[2].mxu1  ;;  %v711_v30 = vadd.f32 %v710_v28, %v3626_v23  ;;  %v712_v31 = vpop.f32.mrb[3].mxu0 }
 0x105   : > { %1607 = vst [vmem:[%s3617_s7 + $0x8] sm:$0xff] %v1561_v20  ;;  %1608 = vst [vmem:[%s3617_s7 + $0x10] sm:$0xff] %v1562_v21  ;;  %v788_v26 = vadd.f32 %v787_v25, %v3626_v23  ;;  %v789_v27 = vpop.f32.mrb[3].mxu1  ;;  %v713_v35 = vadd.f32 %v712_v31, %v3626_v23 }
 0x106   : > { %1609 = vst [vmem:[%s3617_s7 + $0x18] sm:$0xff] %v1563_v22  ;;  %v790_v29 = vadd.f32 %v789_v27, %v3626_v23  ;;  %v1583_v37 = vmax.f32 %v711_v30, 0.0 }
 0x107   : > { %v1585_v34 = vmax.f32 %v788_v26, 0.0  ;;  %v1584_v55 = vmax.f32 %v713_v35, 0.0 }
 0x108   : > { %v1586_v36 = vmax.f32 %v790_v29, 0.0  ;;  %1630 = vst [vmem:[%s3617_s7 + $0xb8] sm:$0xff] %v1583_v37 }
 0x109   : > { %1632 = vst [vmem:[%s3617_s7 + $0xc8] sm:$0xff] %v1585_v34  ;;  %1631 = vst [vmem:[%s3617_s7 + $0xc0] sm:$0xff] %v1584_v55 }
 0x10a   : > { %1633 = vst [vmem:[%s3617_s7 + $0xd0] sm:$0xff] %v1586_v36 }
 0x123   : > { %v858_v38 = vpop.f32.mrb[4].mxu0 }
 0x124   : > { %v859_v39 = vadd.f32 %v858_v38, %v3611_v13  ;;  %v860_v40 = vpop.f32.mrb[5].mxu0  ;;  %v935_v41 = vpop.f32.mrb[4].mxu1 }
 0x125   : > { %v861_v60 = vadd.f32 %v860_v40, %v3611_v13  ;;  %v936_v42 = vadd.f32 %v935_v41, %v3611_v13  ;;  %v937_v43 = vpop.f32.mrb[5].mxu1 }
 0x126   : > { %v1564_v44 = vmax.f32 %v859_v39, 0.0  ;;  %v938_v45 = vadd.f32 %v937_v43, %v3611_v13 }
 0x127   : > { %v1565_v46 = vmax.f32 %v861_v60, 0.0  ;;  %v1566_v47 = vmax.f32 %v936_v42, 0.0  ;;  %v864_v48 = vpop.f32.mrb[6].mxu0 }
 0x128   : > { %1610 = vst [vmem:[%s3617_s7 + $0x20] sm:$0xff] %v1564_v44  ;;  %v1567_v49 = vmax.f32 %v938_v45, 0.0  ;;  %v865_v50 = vadd.f32 %v864_v48, %v3626_v23  ;;  %v866_v51 = vpop.f32.mrb[7].mxu0  ;;  %v941_v32 = vpop.f32.mrb[6].mxu1 }
 0x129   : > { %1611 = vst [vmem:[%s3617_s7 + $0x28] sm:$0xff] %v1565_v46  ;;  %1612 = vst [vmem:[%s3617_s7 + $0x30] sm:$0xff] %v1566_v47  ;;  %v867_v52 = vadd.f32 %v866_v51, %v3626_v23  ;;  %v942_v33 = vadd.f32 %v941_v32, %v3626_v23  ;;  %v943_v53 = vpop.f32.mrb[7].mxu1 }
 0x12a   : > { %1613 = vst [vmem:[%s3617_s7 + $0x38] sm:$0xff] %v1567_v49  ;;  %v1587_v54 = vmax.f32 %v865_v50, 0.0  ;;  %v944_v56 = vadd.f32 %v943_v53, %v3626_v23 }
 0x12b   : > { %v1588_v57 = vmax.f32 %v867_v52, 0.0  ;;  %v1589_v58 = vmax.f32 %v942_v33, 0.0 }
 0x12c   : > { %1634 = vst [vmem:[%s3617_s7 + $0xd8] sm:$0xff] %v1587_v54  ;;  %v1590_v59 = vmax.f32 %v944_v56, 0.0 }
 0x12d   : > { %1635 = vst [vmem:[%s3617_s7 + $0xe0] sm:$0xff] %v1588_v57  ;;  %1636 = vst [vmem:[%s3617_s7 + $0xe8] sm:$0xff] %v1589_v58 }
 0x12e   : > { %1637 = vst [vmem:[%s3617_s7 + $0xf0] sm:$0xff] %v1590_v59 }
 0x147   : > { %v1012_v61 = vpop.f32.mrb[8].mxu0 }
 0x148   : > { %v1013_v62 = vadd.f32 %v1012_v61, %v3611_v13  ;;  %v1014_v63 = vpop.f32.mrb[9].mxu0  ;;  %v1089_v0 = vpop.f32.mrb[8].mxu1 }
 0x149   : > { %v1015_v1 = vadd.f32 %v1014_v63, %v3611_v13  ;;  %v1090_v2 = vadd.f32 %v1089_v0, %v3611_v13  ;;  %v1091_v3 = vpop.f32.mrb[9].mxu1 }
 0x14a   : > { %v1568_v4 = vmax.f32 %v1013_v62, 0.0  ;;  %v1092_v6 = vadd.f32 %v1091_v3, %v3611_v13 }
 0x14b   : > { %v1569_v7 = vmax.f32 %v1015_v1, 0.0  ;;  %v1570_v8 = vmax.f32 %v1090_v2, 0.0  ;;  %v1018_v10 = vpop.f32.mrb[10].mxu0 }
 0x14c   : > { %1614 = vst [vmem:[%s3617_s7 + $0x40] sm:$0xff] %v1568_v4  ;;  %v1571_v11 = vmax.f32 %v1092_v6, 0.0  ;;  %v1019_v12 = vadd.f32 %v1018_v10, %v3626_v23  ;;  %v1020_v5 = vpop.f32.mrb[11].mxu0  ;;  %v1095_v14 = vpop.f32.mrb[10].mxu1 }
 0x14d   : > { %1615 = vst [vmem:[%s3617_s7 + $0x48] sm:$0xff] %v1569_v7  ;;  %1616 = vst [vmem:[%s3617_s7 + $0x50] sm:$0xff] %v1570_v8  ;;  %v1021_v15 = vadd.f32 %v1020_v5, %v3626_v23  ;;  %v1096_v16 = vadd.f32 %v1095_v14, %v3626_v23  ;;  %v1097_v9 = vpop.f32.mrb[11].mxu1 }
 0x14e   : > { %1617 = vst [vmem:[%s3617_s7 + $0x58] sm:$0xff] %v1571_v11  ;;  %v1591_v24 = vmax.f32 %v1019_v12, 0.0  ;;  %v1098_v17 = vadd.f32 %v1097_v9, %v3626_v23 }
 0x14f   : > { %v1592_v18 = vmax.f32 %v1021_v15, 0.0  ;;  %v1593_v19 = vmax.f32 %v1096_v16, 0.0 }
 0x150   : > { %1638 = vst [vmem:[%s3617_s7 + $0xf8] sm:$0xff] %v1591_v24  ;;  %v1594_v20 = vmax.f32 %v1098_v17, 0.0 }
 0x151   : > { %1639 = vst [vmem:[%s3617_s7 + $0x100] sm:$0xff] %v1592_v18  ;;  %1640 = vst [vmem:[%s3617_s7 + $0x108] sm:$0xff] %v1593_v19 }
 0x152   : > { %1641 = vst [vmem:[%s3617_s7 + $0x110] sm:$0xff] %v1594_v20 }
 0x16b   : > { %v1166_v21 = vpop.f32.mrb[12].mxu0 }
 0x16c   : > { %v1167_v22 = vadd.f32 %v1166_v21, %v3611_v13  ;;  %v1168_v25 = vpop.f32.mrb[13].mxu0  ;;  %v1243_v26 = vpop.f32.mrb[12].mxu1 }
 0x16d   : > { %v1169_v27 = vadd.f32 %v1168_v25, %v3611_v13  ;;  %v1244_v28 = vadd.f32 %v1243_v26, %v3611_v13  ;;  %v1245_v29 = vpop.f32.mrb[13].mxu1 }
 0x16e   : > { %v1572_v30 = vmax.f32 %v1167_v22, 0.0  ;;  %v1246_v31 = vadd.f32 %v1245_v29, %v3611_v13 }
 0x16f   : > { %v1573_v34 = vmax.f32 %v1169_v27, 0.0  ;;  %v1574_v35 = vmax.f32 %v1244_v28, 0.0  ;;  %v1172_v36 = vpop.f32.mrb[14].mxu0 }
 0x170   : > { %1618 = vst [vmem:[%s3617_s7 + $0x60] sm:$0xff] %v1572_v30  ;;  %v1575_v37 = vmax.f32 %v1246_v31, 0.0  ;;  %v1173_v55 = vadd.f32 %v1172_v36, %v3626_v23  ;;  %v1174_v38 = vpop.f32.mrb[15].mxu0  ;;  %v1249_v39 = vpop.f32.mrb[14].mxu1 }
 0x171   : > { %1619 = vst [vmem:[%s3617_s7 + $0x68] sm:$0xff] %v1573_v34  ;;  %1620 = vst [vmem:[%s3617_s7 + $0x70] sm:$0xff] %v1574_v35  ;;  %v1175_v40 = vadd.f32 %v1174_v38, %v3626_v23  ;;  %v1250_v41 = vadd.f32 %v1249_v39, %v3626_v23  ;;  %v1251_v60 = vpop.f32.mrb[15].mxu1 }
 0x172   : > { %1621 = vst [vmem:[%s3617_s7 + $0x78] sm:$0xff] %v1575_v37  ;;  %v1595_v42 = vmax.f32 %v1173_v55, 0.0  ;;  %v1252_v43 = vadd.f32 %v1251_v60, %v3626_v23 }
 0x173   : > { %v1596_v44 = vmax.f32 %v1175_v40, 0.0  ;;  %v1597_v45 = vmax.f32 %v1250_v41, 0.0 }
 0x174   : > { %1642 = vst [vmem:[%s3617_s7 + $0x118] sm:$0xff] %v1595_v42  ;;  %v1598_v46 = vmax.f32 %v1252_v43, 0.0 }
 0x175   : > { %1643 = vst [vmem:[%s3617_s7 + $0x120] sm:$0xff] %v1596_v44  ;;  %1644 = vst [vmem:[%s3617_s7 + $0x128] sm:$0xff] %v1597_v45 }
 0x176   : > { %1645 = vst [vmem:[%s3617_s7 + $0x130] sm:$0xff] %v1598_v46 }
 0x18f   : > { %v1320_v47 = vpop.f32.mrb[16].mxu0 }
 0x190   : > { %v1321_v48 = vadd.f32 %v1320_v47, %v3611_v13  ;;  %v1322_v49 = vpop.f32.mrb[17].mxu0  ;;  %v1397_v50 = vpop.f32.mrb[16].mxu1 }
 0x191   : > { %v1323_v51 = vadd.f32 %v1322_v49, %v3611_v13  ;;  %v1398_v32 = vadd.f32 %v1397_v50, %v3611_v13  ;;  %v1399_v52 = vpop.f32.mrb[17].mxu1 }
 0x192   : > { %v1576_v33 = vmax.f32 %v1321_v48, 0.0  ;;  %v1400_v53 = vadd.f32 %v1399_v52, %v3611_v13 }
 0x193   : > { %v1577_v54 = vmax.f32 %v1323_v51, 0.0  ;;  %v1578_v56 = vmax.f32 %v1398_v32, 0.0  ;;  %v1326_v57 = vpop.f32.mrb[18].mxu0 }
 0x194   : > { %1622 = vst [vmem:[%s3617_s7 + $0x80] sm:$0xff] %v1576_v33  ;;  %v1579_v58 = vmax.f32 %v1400_v53, 0.0  ;;  %v1327_v59 = vadd.f32 %v1326_v57, %v3626_v23  ;;  %v1328_v61 = vpop.f32.mrb[19].mxu0  ;;  %v1403_v62 = vpop.f32.mrb[18].mxu1 }
 0x195   : > { %1623 = vst [vmem:[%s3617_s7 + $0x88] sm:$0xff] %v1577_v54  ;;  %1624 = vst [vmem:[%s3617_s7 + $0x90] sm:$0xff] %v1578_v56  ;;  %v1329_v63 = vadd.f32 %v1328_v61, %v3626_v23  ;;  %v1404_v0 = vadd.f32 %v1403_v62, %v3626_v23  ;;  %v1405_v1 = vpop.f32.mrb[19].mxu1 }
 0x196   : > { %1625 = vst [vmem:[%s3617_s7 + $0x98] sm:$0xff] %v1579_v58  ;;  %v1599_v2 = vmax.f32 %v1327_v59, 0.0  ;;  %v1406_v3 = vadd.f32 %v1405_v1, %v3626_v23 }
 0x197   : > { %v1600_v4 = vmax.f32 %v1329_v63, 0.0  ;;  %v1601_v6 = vmax.f32 %v1404_v0, 0.0 }
 0x198   : > { %1646 = vst [vmem:[%s3617_s7 + $0x138] sm:$0xff] %v1599_v2  ;;  %v1602_v7 = vmax.f32 %v1406_v3, 0.0 }
 0x199   : > { %1647 = vst [vmem:[%s3617_s7 + $0x140] sm:$0xff] %v1600_v4  ;;  %1648 = vst [vmem:[%s3617_s7 + $0x148] sm:$0xff] %v1601_v6 }
 0x19a   : > { %1649 = vst [vmem:[%s3617_s7 + $0x150] sm:$0xff] %v1602_v7 }
 0x1b3   : > { %v1474_v8 = vpop.f32.mrb[20].mxu0 }
 0x1b4   : > { %v1475_v10 = vadd.f32 %v1474_v8, %v3611_v13  ;;  %v1551_v11 = vpop.f32.mrb[20].mxu1  ;;  %v1476_v12 = vpop.f32.mrb[21].mxu0 }
 0x1b5   : > { %v1552_v5 = vadd.f32 %v1551_v11, %v3611_v13  ;;  %v1477_v14 = vadd.f32 %v1476_v12, %v3611_v13  ;;  %v1553_v15 = vpop.f32.mrb[21].mxu1 }
 0x1b6   : > { %v1580_v16 = vmax.f32 %v1475_v10, 0.0 }
 0x1b7   : > { %v1582_v9 = vmax.f32 %v1552_v5, 0.0  ;;  %v1581_v24 = vmax.f32 %v1477_v14, 0.0  ;;  %v1480_v17 = vpop.f32.mrb[22].mxu0 }
 0x1b8   : > { %1626 = vst [vmem:[%s3617_s7 + $0xa0] sm:$0xff] %v1580_v16  ;;  %v1481_v18 = vadd.f32 %v1480_v17, %v3626_v23  ;;  %v1556_v19 = vpop.f32.mrb[22].mxu1  ;;  %v1482_v20 = vpop.f32.mrb[23].mxu0 }
 0x1b9   : > { %1629 = vst.msk [vmem:[%s3617_s7 + $0xb0] sm:$0xff] %vm1628_vm1, %v1582_v9  ;;  %1627 = vst [vmem:[%s3617_s7 + $0xa8] sm:$0xff] %v1581_v24  ;;  %v1557_v21 = vadd.f32 %v1556_v19, %v3626_v23  ;;  %v1483_v13 = vadd.f32 %v1482_v20, %v3626_v23  ;;  %v1558_v22 = vpop.f32.mrb[23].mxu1 }
 0x1ba   : > { %v1603_v25 = vmax.f32 %v1481_v18, 0.0 }
 0x1bb   : > { %v1605_v26 = vmax.f32 %v1557_v21, 0.0  ;;  %v1604_v27 = vmax.f32 %v1483_v13, 0.0 }
 0x1bc   : > { %1650 = vst [vmem:[%s3617_s7 + $0x158] sm:$0xff] %v1603_v25 }
 0x1bd   : > { %1652 = vst.msk [vmem:[%s3617_s7 + $0x168] sm:$0xff] %vm1628_vm1, %v1605_v26  ;;  %1651 = vst [vmem:[%s3617_s7 + $0x160] sm:$0xff] %v1604_v27 }
 0x1be PF: > { %s13_s12 = sadd.s32 1, %s2207_s12  }
 0x1bf   : > { %p10_p4 = scmp.ge.s32.totalorder %s13_s12, 4  }
 0x1c1   :  { %12 = sbr.rel (!%p10_p4) target bundleno = 1 (0x1), region = 65 }

// kernel: forward.14
= control target key start
LH: loop header
LB: loop body
LE: loop exit
PB: predicated region body
PF: predicated region fallthrough
CT: control target
= control target key end

     0   :  { %s1095_s12 = smov 0   ;;  %s1610_s0 = inlined_call_operand.vmem [shape: f32[288,486], index: 0, kind: input, shape index: {}]   ;;  %s1611_s1 = inlined_call_operand.vmem [shape: f32[64,288], index: 1, kind: input, shape index: {}]   ;;  %s1612_s2 = inlined_call_operand.vmem [shape: f32[64,1], index: 2, kind: input, shape index: {}]   ;;  %s1613_s3 = inlined_call_operand.vmem [shape: f32[64,486], index: 3, kind: output, shape index: {}]  }
   0x1 LB: > { %s853_s13 = sadd.s32 4294967295, %s1071_s12   ;;  %p857_p0 = scmp.ge.s32.totalorder %s1071_s12, 1  ;;  %s1071_s12 = sphi %s1095_s12, %s13_s12  }
   0x2   : > { %p150_p1 = scmp.lt.s32.totalorder %s1071_s12, 3 }
   0x4   : > { %p151_p2 = pnand %p857_p0, %p150_p1 }
   0x5   : > { %v214_v0 = vld [vmem:[%s1610_s0 + $0x8] sm:$0xff] (!%p151_p2)  ;;  %v216_v2 = vld [vmem:[%s1610_s0 + $0x18] sm:$0xff] (!%p151_p2)  ;;  %v213_v5 = vld [vmem:[%s1610_s0] sm:$0xff] (!%p151_p2)  ;;  %v1073_v12 = vmov (!%p151_p2), 0   ;;  %s1285_s7 = sshll.u32 (!%p151_p2), %s853_s13, 2  ;;  %vm381_vm0 = vcmask (!%p151_p2), 261120  }
   0x6   : > { %154 = sbr.rel (%p151_p2) target bundleno = 320 (0x140), region = 32  ;;  %v218_v1 = vld [vmem:[%s1610_s0 + $0x28] sm:$0xff] (!%p151_p2)  ;;  %v220_v4 = vld [vmem:[%s1610_s0 + $0x38] sm:$0xff] (!%p151_p2)  ;;  %v217_v6 = vld [vmem:[%s1610_s0 + $0x20] sm:$0xff] (!%p151_p2)  ;;  %1063 = vset.pattern.permute.xlu0 (!%p151_p2), %v1073_v12  ;;  %1064 = vset.pattern.permute.xlu1 (!%p151_p2), %v1073_v12  ;;  %p182_p3 = scmp.lt.s32.totalorder (!%p151_p2), %s1285_s7, 7  ;;  %vm769_vm1 = vcmask (!%p151_p2), 834560  }
   0x7   : > { %v876_v3 = vpack.c.bf16 (!%p151_p2), %v218_v1, %v214_v0  ;;  %v948_v7 = vpack.c.bf16 (!%p151_p2), %v220_v4, %v216_v2  ;;  %v878_v8 = vpack.c.bf16 (!%p151_p2), %v217_v6, %v213_v5  ;;  %v215_v9 = vld [vmem:[%s1610_s0 + $0x10] sm:$0xff] (!%p151_p2)  ;;  %v222_v11 = vld [vmem:[%s1610_s0 + $0x48] sm:$0xff] (!%p151_p2)  ;;  %v224_v15 = vld [vmem:[%s1610_s0 + $0x58] sm:$0xff] (!%p151_p2) }
   0x8   : > { %v219_v10 = vld [vmem:[%s1610_s0 + $0x30] sm:$0xff] (!%p151_p2)  ;;  %v226_v14 = vld [vmem:[%s1610_s0 + $0x68] sm:$0xff] (!%p151_p2)  ;;  %v228_v16 = vld [vmem:[%s1610_s0 + $0x78] sm:$0xff] (!%p151_p2) }
   0x9   : > { %877 = vmatprep.subr.bf16.mxu0 (!%p151_p2), %v876_v3  ;;  %v950_v13 = vpack.c.bf16 (!%p151_p2), %v219_v10, %v215_v9  ;;  %949 = vmatprep.subr.bf16.mxu1 (!%p151_p2), %v948_v7  ;;  %v880_v17 = vpack.c.bf16 (!%p151_p2), %v226_v14, %v222_v11  ;;  %v952_v18 = vpack.c.bf16 (!%p151_p2), %v228_v16, %v224_v15  ;;  %v221_v19 = vld [vmem:[%s1610_s0 + $0x40] sm:$0xff] (!%p151_p2)  ;;  %v223_v21 = vld [vmem:[%s1610_s0 + $0x50] sm:$0xff] (!%p151_p2)  ;;  %v230_v24 = vld [vmem:[%s1610_s0 + $0x88] sm:$0xff] (!%p151_p2) }
   0xa   : > { %879 = vmatpush1.bf16.msra.mxu0 (!%p151_p2), %v878_v8  ;;  %v225_v20 = vld [vmem:[%s1610_s0 + $0x60] sm:$0xff] (!%p151_p2)  ;;  %v227_v23 = vld [vmem:[%s1610_s0 + $0x70] sm:$0xff] (!%p151_p2)  ;;  %v234_v25 = vld [vmem:[%s1610_s0 + $0xa8] sm:$0xff] (!%p151_p2) }
   0xb   : > { %951 = vmatpush1.bf16.msra.mxu1 (!%p151_p2), %v950_v13  ;;  %v882_v22 = vpack.c.bf16 (!%p151_p2), %v225_v20, %v221_v19  ;;  %881 = vmatprep.subr.bf16.mxu0 (!%p151_p2), %v880_v17  ;;  %v954_v26 = vpack.c.bf16 (!%p151_p2), %v227_v23, %v223_v21  ;;  %v884_v27 = vpack.c.bf16 (!%p151_p2), %v234_v25, %v230_v24  ;;  %v232_v28 = vld [vmem:[%s1610_s0 + $0x98] sm:$0xff] (!%p151_p2)  ;;  %v229_v30 = vld [vmem:[%s1610_s0 + $0x80] sm:$0xff] (!%p151_p2)  ;;  %v231_v33 = vld [vmem:[%s1610_s0 + $0x90] sm:$0xff] (!%p151_p2) }
   0xc   : > { %953 = vmatprep.subr.bf16.mxu1 (!%p151_p2), %v952_v18  ;;  %v236_v29 = vld [vmem:[%s1610_s0 + $0xb8] sm:$0xff] (!%p151_p2)  ;;  %v233_v32 = vld [vmem:[%s1610_s0 + $0xa0] sm:$0xff] (!%p151_p2)  ;;  %v235_v34 = vld [vmem:[%s1610_s0 + $0xb0] sm:$0xff] (!%p151_p2) }
   0xd   : > { %v956_v31 = vpack.c.bf16 %v236_v29, %v232_v28  ;;  %v886_v35 = vpack.c.bf16 %v233_v32, %v229_v30  ;;  %v238_v36 = vld [vmem:[%s1610_s0 + $0xc8] sm:$0xff]  ;;  %v240_v38 = vld [vmem:[%s1610_s0 + $0xd8] sm:$0xff]  ;;  %v958_v39 = vpack.c.bf16 %v235_v34, %v231_v33  ;;  %v237_v42 = vld [vmem:[%s1610_s0 + $0xc0] sm:$0xff]  ;;  %s1615_s7 = smov (!%p182_p3, %s1285_s7), 7 }
   0xe   : > { %883 = vmatpush1.bf16.msra.mxu0 %v882_v22  ;;  %v242_v37 = vld [vmem:[%s1610_s0 + $0xe8] sm:$0xff]  ;;  %v244_v41 = vld [vmem:[%s1610_s0 + $0xf8] sm:$0xff]  ;;  %v241_v43 = vld [vmem:[%s1610_s0 + $0xe0] sm:$0xff]  ;;  %s1052_s5 = smul.u32 24, %s1615_s7  ;;  %s861_s4 = sshll.u32 %s1615_s7, 3 }
   0xf   : > { %955 = vmatpush1.bf16.msra.mxu1 %v954_v26  ;;  %885 = vmatprep.subr.bf16.mxu0 %v884_v27  ;;  %v888_v40 = vpack.c.bf16 %v242_v37, %v238_v36  ;;  %v960_v44 = vpack.c.bf16 %v244_v41, %v240_v38  ;;  %v239_v45 = vld [vmem:[%s1610_s0 + $0xd0] sm:$0xff]  ;;  %v246_v47 = vld [vmem:[%s1610_s0 + $0x108] sm:$0xff]  ;;  %v248_v49 = vld [vmem:[%s1610_s0 + $0x118] sm:$0xff]  ;;  %v890_v51 = vpack.c.bf16 %v241_v43, %v237_v42  ;;  %s1457_s19 = scalar_lea.vmem %s1612_s2, %s861_s4  ;;  %s875_s15 = sshll.u32 %s1615_s7, 5 }
  0x10   : > { %957 = vmatprep.subr.bf16.mxu1 %v956_v31  ;;  %v243_v46 = vld [vmem:[%s1610_s0 + $0xf0] sm:$0xff]  ;;  %v250_v48 = vld [vmem:[%s1610_s0 + $0x128] sm:$0xff]  ;;  %v252_v50 = vld [vmem:[%s1610_s0 + $0x138] sm:$0xff]  ;;  %s1393_s26 = scalar_lea.vmem %s1611_s1, %s1052_s5  ;;  %s1585_s17 = scalar_lea.vmem %s1613_s3, %s875_s15 }
  0x11   : > { %v962_v52 = vpack.c.bf16 %v243_v46, %v239_v45  ;;  %v892_v53 = vpack.c.bf16 %v250_v48, %v246_v47  ;;  %v245_v54 = vld [vmem:[%s1610_s0 + $0x100] sm:$0xff]  ;;  %v247_v56 = vld [vmem:[%s1610_s0 + $0x110] sm:$0xff]  ;;  %v964_v57 = vpack.c.bf16 %v252_v50, %v248_v49  ;;  %v254_v59 = vld [vmem:[%s1610_s0 + $0x148] sm:$0xff] }
  0x12   : > { %887 = vmatpush1.bf16.msra.mxu0 %v886_v35  ;;  %v249_v55 = vld [vmem:[%s1610_s0 + $0x120] sm:$0xff]  ;;  %v251_v58 = vld [vmem:[%s1610_s0 + $0x130] sm:$0xff]  ;;  %v258_v60 = vld [vmem:[%s1610_s0 + $0x168] sm:$0xff] }
  0x13   : > { %959 = vmatpush1.bf16.msra.mxu1 %v958_v39  ;;  %889 = vmatprep.subr.bf16.mxu0 %v888_v40  ;;  %v256_v61 = vld [vmem:[%s1610_s0 + $0x158] sm:$0xff]  ;;  %v894_v63 = vpack.c.bf16 %v249_v55, %v245_v54  ;;  %v966_v0 = vpack.c.bf16 %v251_v58, %v247_v56  ;;  %v896_v1 = vpack.c.bf16 %v258_v60, %v254_v59  ;;  %v253_v2 = vld [vmem:[%s1610_s0 + $0x140] sm:$0xff]  ;;  %v255_v4 = vld [vmem:[%s1610_s0 + $0x150] sm:$0xff] }
  0x14   : > { %961 = vmatprep.subr.bf16.mxu1 %v960_v44  ;;  %v260_v62 = vld [vmem:[%s1610_s0 + $0x178] sm:$0xff]  ;;  %v257_v3 = vld [vmem:[%s1610_s0 + $0x160] sm:$0xff]  ;;  %v259_v6 = vld [vmem:[%s1610_s0 + $0x170] sm:$0xff] }
  0x15   : > { %v968_v5 = vpack.c.bf16 %v260_v62, %v256_v61  ;;  %v262_v7 = vld [vmem:[%s1610_s0 + $0x188] sm:$0xff]  ;;  %v264_v9 = vld [vmem:[%s1610_s0 + $0x198] sm:$0xff]  ;;  %v898_v11 = vpack.c.bf16 %v257_v3, %v253_v2  ;;  %v970_v12 = vpack.c.bf16 %v259_v6, %v255_v4  ;;  %v261_v14 = vld [vmem:[%s1610_s0 + $0x180] sm:$0xff] }
  0x16   : > { %891 = vmatpush1.bf16.msra.mxu0 %v890_v51  ;;  %v266_v8 = vld [vmem:[%s1610_s0 + $0x1a8] sm:$0xff]  ;;  %v268_v10 = vld [vmem:[%s1610_s0 + $0x1b8] sm:$0xff]  ;;  %v265_v15 = vld [vmem:[%s1610_s0 + $0x1a0] sm:$0xff] }
  0x17   : > { %963 = vmatpush1.bf16.msra.mxu1 %v962_v52  ;;  %893 = vmatprep.subr.bf16.mxu0 %v892_v53  ;;  %v900_v13 = vpack.c.bf16 %v266_v8, %v262_v7  ;;  %v263_v16 = vld [vmem:[%s1610_s0 + $0x190] sm:$0xff]  ;;  %v972_v17 = vpack.c.bf16 %v268_v10, %v264_v9  ;;  %v270_v19 = vld [vmem:[%s1610_s0 + $0x1c8] sm:$0xff]  ;;  %v272_v21 = vld [vmem:[%s1610_s0 + $0x1d8] sm:$0xff]  ;;  %v902_v23 = vpack.c.bf16 %v265_v15, %v261_v14 }
  0x18   : > { %965 = vmatprep.subr.bf16.mxu1 %v964_v57  ;;  %v267_v18 = vld [vmem:[%s1610_s0 + $0x1b0] sm:$0xff]  ;;  %v274_v20 = vld [vmem:[%s1610_s0 + $0x1e8] sm:$0xff]  ;;  %v276_v22 = vld [vmem:[%s1610_s0 + $0x1f8] sm:$0xff] }
  0x19   : > { %v974_v24 = vpack.c.bf16 %v267_v18, %v263_v16  ;;  %v904_v25 = vpack.c.bf16 %v274_v20, %v270_v19  ;;  %v269_v26 = vld [vmem:[%s1610_s0 + $0x1c0] sm:$0xff]  ;;  %v271_v28 = vld [vmem:[%s1610_s0 + $0x1d0] sm:$0xff]  ;;  %v976_v29 = vpack.c.bf16 %v276_v22, %v272_v21  ;;  %v278_v31 = vld [vmem:[%s1610_s0 + $0x208] sm:$0xff] }
  0x1a   : > { %895 = vmatpush1.bf16.msra.mxu0 %v894_v63  ;;  %v273_v27 = vld [vmem:[%s1610_s0 + $0x1e0] sm:$0xff]  ;;  %v275_v30 = vld [vmem:[%s1610_s0 + $0x1f0] sm:$0xff]  ;;  %v282_v32 = vld [vmem:[%s1610_s0 + $0x228] sm:$0xff] }
  0x1b   : > { %967 = vmatpush1.bf16.msra.mxu1 %v966_v0  ;;  %897 = vmatprep.subr.bf16.mxu0 %v896_v1  ;;  %v280_v33 = vld [vmem:[%s1610_s0 + $0x218] sm:$0xff]  ;;  %v906_v35 = vpack.c.bf16 %v273_v27, %v269_v26  ;;  %v978_v36 = vpack.c.bf16 %v275_v30, %v271_v28  ;;  %v908_v37 = vpack.c.bf16 %v282_v32, %v278_v31  ;;  %v277_v38 = vld [vmem:[%s1610_s0 + $0x200] sm:$0xff]  ;;  %v279_v40 = vld [vmem:[%s1610_s0 + $0x210] sm:$0xff] }
  0x1c   : > { %969 = vmatprep.subr.bf16.mxu1 %v968_v5  ;;  %v284_v34 = vld [vmem:[%s1610_s0 + $0x238] sm:$0xff]  ;;  %v281_v39 = vld [vmem:[%s1610_s0 + $0x220] sm:$0xff]  ;;  %v283_v42 = vld [vmem:[%s1610_s0 + $0x230] sm:$0xff] }
  0x1d   : > { %v980_v41 = vpack.c.bf16 %v284_v34, %v280_v33  ;;  %v286_v43 = vld [vmem:[%s1610_s0 + $0x248] sm:$0xff]  ;;  %v288_v45 = vld [vmem:[%s1610_s0 + $0x258] sm:$0xff]  ;;  %v910_v47 = vpack.c.bf16 %v281_v39, %v277_v38  ;;  %v982_v48 = vpack.c.bf16 %v283_v42, %v279_v40  ;;  %v285_v50 = vld [vmem:[%s1610_s0 + $0x240] sm:$0xff] }
  0x1e   : > { %899 = vmatpush1.bf16.msra.mxu0 %v898_v11  ;;  %v290_v44 = vld [vmem:[%s1610_s0 + $0x268] sm:$0xff]  ;;  %v292_v46 = vld [vmem:[%s1610_s0 + $0x278] sm:$0xff]  ;;  %v289_v51 = vld [vmem:[%s1610_s0 + $0x260] sm:$0xff] }
  0x1f   : > { %971 = vmatpush1.bf16.msra.mxu1 %v970_v12  ;;  %901 = vmatprep.subr.bf16.mxu0 %v900_v13  ;;  %v912_v49 = vpack.c.bf16 %v290_v44, %v286_v43  ;;  %v287_v52 = vld [vmem:[%s1610_s0 + $0x250] sm:$0xff]  ;;  %v984_v53 = vpack.c.bf16 %v292_v46, %v288_v45  ;;  %v294_v55 = vld [vmem:[%s1610_s0 + $0x288] sm:$0xff]  ;;  %v296_v57 = vld [vmem:[%s1610_s0 + $0x298] sm:$0xff]  ;;  %v914_v59 = vpack.c.bf16 %v289_v51, %v285_v50 }
  0x20   : > { %973 = vmatprep.subr.bf16.mxu1 %v972_v17  ;;  %v291_v54 = vld [vmem:[%s1610_s0 + $0x270] sm:$0xff]  ;;  %v298_v56 = vld [vmem:[%s1610_s0 + $0x2a8] sm:$0xff]  ;;  %v300_v58 = vld [vmem:[%s1610_s0 + $0x2b8] sm:$0xff] }
  0x21   : > { %v986_v60 = vpack.c.bf16 %v291_v54, %v287_v52  ;;  %v916_v61 = vpack.c.bf16 %v298_v56, %v294_v55  ;;  %v293_v62 = vld [vmem:[%s1610_s0 + $0x280] sm:$0xff]  ;;  %v295_v0 = vld [vmem:[%s1610_s0 + $0x290] sm:$0xff]  ;;  %v988_v1 = vpack.c.bf16 %v300_v58, %v296_v57  ;;  %v302_v3 = vld [vmem:[%s1610_s0 + $0x2c8] sm:$0xff] }
  0x22   : > { %903 = vmatpush1.bf16.msra.mxu0 %v902_v23  ;;  %v297_v63 = vld [vmem:[%s1610_s0 + $0x2a0] sm:$0xff]  ;;  %v299_v2 = vld [vmem:[%s1610_s0 + $0x2b0] sm:$0xff]  ;;  %v306_v4 = vld [vmem:[%s1610_s0 + $0x2e8] sm:$0xff] }
  0x23   : > { %975 = vmatpush1.bf16.msra.mxu1 %v974_v24  ;;  %905 = vmatprep.subr.bf16.mxu0 %v904_v25  ;;  %v304_v5 = vld [vmem:[%s1610_s0 + $0x2d8] sm:$0xff]  ;;  %v918_v7 = vpack.c.bf16 %v297_v63, %v293_v62  ;;  %v301_v8 = vld [vmem:[%s1610_s0 + $0x2c0] sm:$0xff]  ;;  %v990_v9 = vpack.c.bf16 %v299_v2, %v295_v0  ;;  %v920_v10 = vpack.c.bf16 %v306_v4, %v302_v3  ;;  %v303_v12 = vld [vmem:[%s1610_s0 + $0x2d0] sm:$0xff] }
  0x24   : > { %977 = vmatprep.subr.bf16.mxu1 %v976_v29  ;;  %v308_v6 = vld [vmem:[%s1610_s0 + $0x2f8] sm:$0xff]  ;;  %v305_v11 = vld [vmem:[%s1610_s0 + $0x2e0] sm:$0xff]  ;;  %v307_v13 = vld [vmem:[%s1610_s0 + $0x2f0] sm:$0xff] }
  0x25   : > { %v992_v14 = vpack.c.bf16 %v308_v6, %v304_v5  ;;  %v310_v15 = vld [vmem:[%s1610_s0 + $0x308] sm:$0xff]  ;;  %v312_v18 = vld [vmem:[%s1610_s0 + $0x318] sm:$0xff]  ;;  %v922_v20 = vpack.c.bf16 %v305_v11, %v301_v8  ;;  %v994_v21 = vpack.c.bf16 %v307_v13, %v303_v12  ;;  %v309_v23 = vld [vmem:[%s1610_s0 + $0x300] sm:$0xff] }
  0x26   : > { %907 = vmatpush1.bf16.msra.mxu0 %v906_v35  ;;  %v314_v16 = vld [vmem:[%s1610_s0 + $0x328] sm:$0xff]  ;;  %v316_v19 = vld [vmem:[%s1610_s0 + $0x338] sm:$0xff]  ;;  %v313_v24 = vld [vmem:[%s1610_s0 + $0x320] sm:$0xff] }
  0x27   : > { %979 = vmatpush1.bf16.msra.mxu1 %v978_v36  ;;  %909 = vmatprep.subr.bf16.mxu0 %v908_v37  ;;  %v202_v17 = vld [vmem:[%s1393_s26 + $0x8] sm:$0xff]  ;;  %v924_v22 = vpack.c.bf16 %v314_v16, %v310_v15  ;;  %v311_v25 = vld [vmem:[%s1610_s0 + $0x310] sm:$0xff]  ;;  %v996_v26 = vpack.c.bf16 %v316_v19, %v312_v18  ;;  %v320_v30 = vld [vmem:[%s1610_s0 + $0x358] sm:$0xff]  ;;  %v926_v32 = vpack.c.bf16 %v313_v24, %v309_v23 }
  0x28   : > { %981 = vmatprep.subr.bf16.mxu1 %v980_v41  ;;  %458 = vmatprep.mubr.f32.mxu0 %v202_v17  ;;  %v315_v27 = vld [vmem:[%s1610_s0 + $0x330] sm:$0xff]  ;;  %v318_v28 = vld [vmem:[%s1610_s0 + $0x348] sm:$0xff]  ;;  %v324_v31 = vld [vmem:[%s1610_s0 + $0x378] sm:$0xff] }
  0x29   : > { %636 = vmatprep.mubr.f32.mxu1 %v202_v17  ;;  %v322_v29 = vld [vmem:[%s1610_s0 + $0x368] sm:$0xff]  ;;  %v998_v33 = vpack.c.bf16 %v315_v27, %v311_v25  ;;  %v317_v35 = vld [vmem:[%s1610_s0 + $0x340] sm:$0xff]  ;;  %v319_v37 = vld [vmem:[%s1610_s0 + $0x350] sm:$0xff]  ;;  %v1000_v38 = vpack.c.bf16 %v324_v31, %v320_v30 }
  0x2a   : > { %911 = vmatpush1.bf16.msra.mxu0 %v910_v47  ;;  %v928_v34 = vpack.c.bf16 %v322_v29, %v318_v28  ;;  %v321_v36 = vld [vmem:[%s1610_s0 + $0x360] sm:$0xff]  ;;  %v323_v39 = vld [vmem:[%s1610_s0 + $0x370] sm:$0xff]  ;;  %v326_v40 = vld [vmem:[%s1610_s0 + $0x388] sm:$0xff] }
  0x2b   : > { %983 = vmatpush1.bf16.msra.mxu1 %v982_v48  ;;  %913 = vmatprep.subr.bf16.mxu0 %v912_v49  ;;  %v330_v41 = vld [vmem:[%s1610_s0 + $0x3a8] sm:$0xff]  ;;  %v328_v42 = vld [vmem:[%s1610_s0 + $0x398] sm:$0xff]  ;;  %v930_v44 = vpack.c.bf16 %v321_v36, %v317_v35  ;;  %v357_v45 = vld [vmem:[%s1457_s19] sm:$0xff]  ;;  %v1002_v47 = vpack.c.bf16 %v323_v39, %v319_v37  ;;  %v1074_v37 = vmov 0.0  }
  0x2c   : > { %985 = vmatprep.subr.bf16.mxu1 %v984_v53  ;;  %v332_v43 = vld [vmem:[%s1610_s0 + $0x3b8] sm:$0xff]  ;;  %v359_v46 = vld [vmem:[%s1457_s19 + $0x10] sm:$0xff]  ;;  %v932_v48 = vpack.c.bf16 %v330_v41, %v326_v40  ;;  %v325_v49 = vld [vmem:[%s1610_s0 + $0x380] sm:$0xff]  ;;  %363 = vperm.xlu0 %1063, %v357_v45  }
  0x2d   : > { %v329_v50 = vld [vmem:[%s1610_s0 + $0x3a0] sm:$0xff]  ;;  %v327_v51 = vld [vmem:[%s1610_s0 + $0x390] sm:$0xff]  ;;  %v1004_v52 = vpack.c.bf16 %v332_v43, %v328_v42  ;;  %v334_v54 = vld [vmem:[%s1610_s0 + $0x3c8] sm:$0xff]  ;;  %373 = vperm.xlu1 %1064, %v359_v46  }
  0x2e   : > { %915 = vmatpush1.bf16.msra.mxu0 %v914_v59  ;;  %v331_v53 = vld [vmem:[%s1610_s0 + $0x3b0] sm:$0xff]  ;;  %v338_v55 = vld [vmem:[%s1610_s0 + $0x3e8] sm:$0xff]  ;;  %v336_v56 = vld [vmem:[%s1610_s0 + $0x3d8] sm:$0xff]  ;;  %v934_v59 = vpack.c.bf16 %v329_v50, %v325_v49 }
  0x2f   : > { %987 = vmatpush1.bf16.msra.mxu1 %v986_v60  ;;  %917 = vmatprep.subr.bf16.mxu0 %v916_v61  ;;  %v340_v57 = vld [vmem:[%s1610_s0 + $0x3f8] sm:$0xff]  ;;  %v358_v58 = vld [vmem:[%s1457_s19 + $0x8] sm:$0xff]  ;;  %v1006_v61 = vpack.c.bf16 %v331_v53, %v327_v51  ;;  %v936_v62 = vpack.c.bf16 %v338_v55, %v334_v54  ;;  %v333_v63 = vld [vmem:[%s1610_s0 + $0x3c0] sm:$0xff] }
  0x30   : > { %989 = vmatprep.subr.bf16.mxu1 %v988_v1  ;;  %v360_v60 = vld [vmem:[%s1457_s19 + $0x18] sm:$0xff]  ;;  %v337_v0 = vld [vmem:[%s1610_s0 + $0x3e0] sm:$0xff]  ;;  %v335_v1 = vld [vmem:[%s1610_s0 + $0x3d0] sm:$0xff]  ;;  %v1008_v2 = vpack.c.bf16 %v340_v57, %v336_v56  ;;  %368 = vperm.xlu0 %1063, %v358_v58  }
  0x31   : > { %v339_v3 = vld [vmem:[%s1610_s0 + $0x3f0] sm:$0xff]  ;;  %v342_v4 = vld [vmem:[%s1610_s0 + $0x408] sm:$0xff]  ;;  %v344_v6 = vld [vmem:[%s1610_s0 + $0x418] sm:$0xff]  ;;  %378 = vperm.xlu1 %1064, %v360_v60   ;;  %v938_v8 = vpack.c.bf16 %v337_v0, %v333_v63 }
  0x32   : > { %919 = vmatpush1.bf16.msra.mxu0 %v918_v7  ;;  %v346_v5 = vld [vmem:[%s1610_s0 + $0x428] sm:$0xff]  ;;  %v348_v7 = vld [vmem:[%s1610_s0 + $0x438] sm:$0xff]  ;;  %v341_v11 = vld [vmem:[%s1610_s0 + $0x400] sm:$0xff] }
  0x33   : > { %991 = vmatpush1.bf16.msra.mxu1 %v990_v9  ;;  %921 = vmatprep.subr.bf16.mxu0 %v920_v10  ;;  %v1010_v9 = vpack.c.bf16 %v339_v3, %v335_v1  ;;  %v940_v10 = vpack.c.bf16 %v346_v5, %v342_v4  ;;  %v345_v12 = vld [vmem:[%s1610_s0 + $0x420] sm:$0xff]  ;;  %v1012_v13 = vpack.c.bf16 %v348_v7, %v344_v6  ;;  %v347_v15 = vld [vmem:[%s1610_s0 + $0x430] sm:$0xff]  ;;  %v350_v16 = vld [vmem:[%s1610_s0 + $0x448] sm:$0xff] }
  0x34   : > { %993 = vmatprep.subr.bf16.mxu1 %v992_v14  ;;  %v343_v14 = vld [vmem:[%s1610_s0 + $0x410] sm:$0xff]  ;;  %v354_v17 = vld [vmem:[%s1610_s0 + $0x468] sm:$0xff]  ;;  %v201_v18 = vld [vmem:[%s1393_s26] sm:$0xff]  ;;  %v942_v19 = vpack.c.bf16 %v345_v12, %v341_v11 }
  0x35   : > { %v205_v23 = vld [vmem:[%s1393_s26 + $0x20] sm:$0xff]  ;;  %v944_v24 = vpack.c.bf16 %v354_v17, %v350_v16  ;;  %v351_v28 = vld [vmem:[%s1610_s0 + $0x450] sm:$0xff]  ;;  %v204_v30 = vld [vmem:[%s1393_s26 + $0x18] sm:$0xff] }
  0x36   : > { %923 = vmatpush1.bf16.msra.mxu0 %v922_v20  ;;  %v352_v20 = vld [vmem:[%s1610_s0 + $0x458] sm:$0xff]  ;;  %v349_v25 = vld [vmem:[%s1610_s0 + $0x440] sm:$0xff]  ;;  %v355_v29 = vld [vmem:[%s1610_s0 + $0x470] sm:$0xff] }
  0x37   : > { %995 = vmatpush1.bf16.msra.mxu1 %v994_v21  ;;  %925 = vmatprep.subr.bf16.mxu0 %v924_v22  ;;  %v356_v21 = vld [vmem:[%s1610_s0 + $0x478] sm:$0xff]  ;;  %v1014_v22 = vpack.c.bf16 %v347_v15, %v343_v14  ;;  %v211_v35 = vld [vmem:[%s1393_s26 + $0x50] sm:$0xff]  ;;  %v210_v36 = vld [vmem:[%s1393_s26 + $0x48] sm:$0xff] }
  0x38   : > { %997 = vmatprep.subr.bf16.mxu1 %v996_v26  ;;  %v353_v26 = vld [vmem:[%s1610_s0 + $0x460] sm:$0xff]  ;;  %v1016_v27 = vpack.c.bf16 %v356_v21, %v352_v20  ;;  %v208_v31 = vld [vmem:[%s1393_s26 + $0x38] sm:$0xff]  ;;  %v206_v39 = vld [vmem:[%s1393_s26 + $0x28] sm:$0xff] }
  0x39   : > { %v209_v40 = vld [vmem:[%s1393_s26 + $0x40] sm:$0xff]  ;;  %v212_v41 = vld [vmem:[%s1393_s26 + $0x58] sm:$0xff] }
  0x3a   : > { %927 = vmatpush1.bf16.msra.mxu0 %v926_v32  ;;  %v946_v32 = vpack.c.bf16 %v353_v26, %v349_v25 }
  0x3b   : > { %999 = vmatpush1.bf16.msra.mxu1 %v998_v33  ;;  %929 = vmatprep.subr.bf16.mxu0 %v928_v34  ;;  %v1018_v33 = vpack.c.bf16 %v355_v29, %v351_v28  ;;  %v207_v34 = vld [vmem:[%s1393_s26 + $0x30] sm:$0xff] }
  0x3c   : > { %1001 = vmatprep.subr.bf16.mxu1 %v1000_v38  ;;  %v203_v38 = vld [vmem:[%s1393_s26 + $0x10] sm:$0xff] }
  0x3e   : > { %931 = vmatpush1.bf16.msra.mxu0 %v930_v44 }
  0x3f   : > { %1003 = vmatpush1.bf16.msra.mxu1 %v1002_v47  ;;  %933 = vmatprep.subr.bf16.mxu0 %v932_v48 }
  0x40   : > { %1005 = vmatprep.subr.bf16.mxu1 %v1004_v52 }
  0x42   : > { %935 = vmatpush1.bf16.msra.mxu0 %v934_v59 }
  0x43   : > { %1007 = vmatpush1.bf16.msra.mxu1 %v1006_v61  ;;  %937 = vmatprep.subr.bf16.mxu0 %v936_v62 }
  0x44   : > { %1009 = vmatprep.subr.bf16.mxu1 %v1008_v2 }
  0x46   : > { %939 = vmatpush1.bf16.msra.mxu0 %v938_v8 }
  0x47   : > { %1011 = vmatpush1.bf16.msra.mxu1 %v1010_v9  ;;  %941 = vmatprep.subr.bf16.mxu0 %v940_v10 }
  0x48   : > { %1013 = vmatprep.subr.bf16.mxu1 %v1012_v13 }
  0x49   : > { %459 = vmatmul.mubr.f32.vlgmr.msra.gmra.mrb[0].mxu0 %v201_v18 }
  0x4a   : > { %637 = vmatmul.mubr.f32.vlgmr.msra.gmra.mrb[0].mxu1 %v201_v18  ;;  %943 = vmatpush1.bf16.msra.mxu0 %v942_v19 }
  0x4b   : > { %1015 = vmatpush1.bf16.msra.mxu1 %v1014_v22  ;;  %464 = vmatprep.mubr.f32.mxu0 %v205_v23 }
  0x4c   : > { %642 = vmatprep.mubr.f32.mxu1 %v205_v23  ;;  %945 = vmatprep.subr.bf16.mxu0 %v944_v24 }
  0x4d   : > { %465 = vmatmul.mubr.f32.gmra.mrb[2].mxu0 %v204_v30  ;;  %1017 = vmatprep.subr.bf16.mxu1 %v1016_v27 }
  0x4e   : > { %643 = vmatmul.mubr.f32.gmra.mrb[2].mxu1 %v204_v30  ;;  %470 = vmatprep.mubr.f32.mxu0 %v208_v31 }
  0x4f   : > { %648 = vmatprep.mubr.f32.mxu1 %v208_v31  ;;  %947 = vmatpush1.bf16.msra.mxu0 %v946_v32 }
  0x50   : > { %1019 = vmatpush1.bf16.msra.mxu1 %v1018_v33 }
  0x51   : > { %471 = vmatmul.mubr.f32.gmra.mrb[4].mxu0 %v207_v34 }
  0x52   : > { %649 = vmatmul.mubr.f32.gmra.mrb[4].mxu1 %v207_v34  ;;  %476 = vmatprep.mubr.f32.mxu0 %v211_v35 }
  0x53   : > { %654 = vmatprep.mubr.f32.mxu1 %v211_v35 }
  0x55   : > { %477 = vmatmul.mubr.f32.gmra.mrb[6].mxu0 %v210_v36 }
  0x56   : > { %655 = vmatmul.mubr.f32.gmra.mrb[6].mxu1 %v210_v36  ;;  %547 = vmatprep.mubr.f32.mxu0 %v1074_v37 }
  0x57   : > { %725 = vmatprep.mubr.f32.mxu1 %v1074_v37 }
  0x59   : > { %865 = vmatmul.mubr.msk.f32.vlgmr.msra.gmra.mrb[0].mxu0 %vm381_vm0, %v203_v38 }
  0x5a   : > { %869 = vmatmul.mubr.msk.f32.vlgmr.msra.gmra.mrb[0].mxu1 %vm381_vm0, %v203_v38  ;;  %553 = vmatprep.mubr.f32.mxu0 %v1074_v37 }
  0x5b   : > { %731 = vmatprep.mubr.f32.mxu1 %v1074_v37 }
  0x5d   : > { %866 = vmatmul.mubr.msk.f32.gmra.mrb[2].mxu0 %vm381_vm0, %v206_v39 }
  0x5e   : > { %870 = vmatmul.mubr.msk.f32.gmra.mrb[2].mxu1 %vm381_vm0, %v206_v39  ;;  %559 = vmatprep.mubr.f32.mxu0 %v1074_v37 }
  0x5f   : > { %737 = vmatprep.mubr.f32.mxu1 %v1074_v37 }
  0x61   : > { %867 = vmatmul.mubr.msk.f32.gmra.mrb[4].mxu0 %vm381_vm0, %v209_v40 }
  0x62   : > { %871 = vmatmul.mubr.msk.f32.gmra.mrb[4].mxu1 %vm381_vm0, %v209_v40  ;;  %565 = vmatprep.mubr.f32.mxu0 %v1074_v37 }
  0x63   : > { %743 = vmatprep.mubr.f32.mxu1 %v1074_v37 }
  0x65   : > { %868 = vmatmul.mubr.msk.f32.gmra.mrb[6].mxu0 %vm381_vm0, %v212_v41 }
  0x66   : > { %872 = vmatmul.mubr.msk.f32.gmra.mrb[6].mxu1 %vm381_vm0, %v212_v41 }
  0xab   : > { %v364_v42 = vpop.permute.xlu0 %363 }
  0xac   : > { %v374_v63 = vpop.permute.xlu1 %373 }
  0xaf   : > { %v369_v50 = vpop.permute.xlu0 %368 }
  0xb0   : > { %v379_v16 = vpop.permute.xlu1 %378 }
 0x12c   : > { %v549_v43 = vpop.f32.mrb[0].mxu0 }
 0x12d   : > { %v1020_v44 = vadd.f32 %v549_v43, %v364_v42  ;;  %v727_v45 = vpop.f32.mrb[0].mxu1  ;;  %v551_v46 = vpop.f32.mrb[1].mxu0 }
 0x12e   : > { %v1028_v47 = vadd.f32 %v727_v45, %v364_v42  ;;  %v1021_v48 = vadd.f32 %v551_v46, %v364_v42  ;;  %v729_v49 = vpop.f32.mrb[1].mxu1 }
 0x12f   : > { %v750_v51 = vmax.f32 %v1020_v44, 0.0  ;;  %v1029_v52 = vadd.f32 %v729_v49, %v364_v42 }
 0x130   : > { %v752_v53 = vmax.f32 %v1028_v47, 0.0  ;;  %v751_v54 = vmax.f32 %v1021_v48, 0.0  ;;  %v555_v55 = vpop.f32.mrb[2].mxu0 }
 0x131   : > { %766 = vst [vmem:[%s1585_s17] sm:$0xff] %v750_v51  ;;  %v753_v56 = vmax.f32 %v1029_v52, 0.0  ;;  %v1022_v57 = vadd.f32 %v555_v55, %v369_v50  ;;  %v733_v58 = vpop.f32.mrb[2].mxu1  ;;  %v557_v59 = vpop.f32.mrb[3].mxu0 }
 0x132   : > { %768 = vst [vmem:[%s1585_s17 + $0x10] sm:$0xff] %v752_v53  ;;  %767 = vst [vmem:[%s1585_s17 + $0x8] sm:$0xff] %v751_v54  ;;  %v1030_v60 = vadd.f32 %v733_v58, %v369_v50  ;;  %v1023_v61 = vadd.f32 %v557_v59, %v369_v50  ;;  %v735_v62 = vpop.f32.mrb[3].mxu1 }
 0x133   : > { %770 = vst.msk [vmem:[%s1585_s17 + $0x18] sm:$0xff] %vm769_vm1, %v753_v56  ;;  %v754_v0 = vmax.f32 %v1022_v57, 0.0  ;;  %v1031_v1 = vadd.f32 %v735_v62, %v369_v50 }
 0x134   : > { %v756_v2 = vmax.f32 %v1030_v60, 0.0  ;;  %v755_v3 = vmax.f32 %v1023_v61, 0.0  ;;  %v561_v4 = vpop.f32.mrb[4].mxu0 }
 0x135   : > { %771 = vst [vmem:[%s1585_s17 + $0x20] sm:$0xff] %v754_v0  ;;  %v757_v5 = vmax.f32 %v1031_v1, 0.0  ;;  %v1024_v6 = vadd.f32 %v561_v4, %v374_v63  ;;  %v739_v7 = vpop.f32.mrb[4].mxu1  ;;  %v563_v8 = vpop.f32.mrb[5].mxu0 }
 0x136   : > { %773 = vst [vmem:[%s1585_s17 + $0x30] sm:$0xff] %v756_v2  ;;  %772 = vst [vmem:[%s1585_s17 + $0x28] sm:$0xff] %v755_v3  ;;  %v1032_v9 = vadd.f32 %v739_v7, %v374_v63  ;;  %v1025_v10 = vadd.f32 %v563_v8, %v374_v63  ;;  %v741_v11 = vpop.f32.mrb[5].mxu1 }
 0x137   : > { %774 = vst.msk [vmem:[%s1585_s17 + $0x38] sm:$0xff] %vm769_vm1, %v757_v5  ;;  %v758_v12 = vmax.f32 %v1024_v6, 0.0  ;;  %v1033_v13 = vadd.f32 %v741_v11, %v374_v63 }
 0x138   : > { %v760_v14 = vmax.f32 %v1032_v9, 0.0  ;;  %v759_v15 = vmax.f32 %v1025_v10, 0.0  ;;  %v567_v17 = vpop.f32.mrb[6].mxu0 }
 0x139   : > { %775 = vst [vmem:[%s1585_s17 + $0x40] sm:$0xff] %v758_v12  ;;  %v761_v18 = vmax.f32 %v1033_v13, 0.0  ;;  %v1026_v19 = vadd.f32 %v567_v17, %v379_v16  ;;  %v745_v20 = vpop.f32.mrb[6].mxu1  ;;  %v569_v21 = vpop.f32.mrb[7].mxu0 }
 0x13a   : > { %777 = vst [vmem:[%s1585_s17 + $0x50] sm:$0xff] %v760_v14  ;;  %776 = vst [vmem:[%s1585_s17 + $0x48] sm:$0xff] %v759_v15  ;;  %v1034_v22 = vadd.f32 %v745_v20, %v379_v16  ;;  %v1027_v23 = vadd.f32 %v569_v21, %v379_v16  ;;  %v747_v24 = vpop.f32.mrb[7].mxu1 }
 0x13b   : > { %778 = vst.msk [vmem:[%s1585_s17 + $0x58] sm:$0xff] %vm769_vm1, %v761_v18  ;;  %v762_v25 = vmax.f32 %v1026_v19, 0.0  ;;  %v1035_v26 = vadd.f32 %v747_v24, %v379_v16 }
 0x13c   : > { %v764_v27 = vmax.f32 %v1034_v22, 0.0  ;;  %v763_v28 = vmax.f32 %v1027_v23, 0.0 }
 0x13d   : > { %779 = vst [vmem:[%s1585_s17 + $0x60] sm:$0xff] %v762_v25  ;;  %v765_v29 = vmax.f32 %v1035_v26, 0.0 }
 0x13e   : > { %781 = vst [vmem:[%s1585_s17 + $0x70] sm:$0xff] %v764_v27  ;;  %780 = vst [vmem:[%s1585_s17 + $0x68] sm:$0xff] %v763_v28 }
 0x13f   : > { %782 = vst.msk [vmem:[%s1585_s17 + $0x78] sm:$0xff] %vm769_vm1, %v765_v29 }
 0x140 PF: > { %s13_s12 = sadd.s32 1, %s1071_s12  }
 0x141   : > { %p10_p4 = scmp.ge.s32.totalorder %s13_s12, 4  }
 0x143   :  { %12 = sbr.rel (!%p10_p4) target bundleno = 1 (0x1), region = 65 }

// kernel: forward.15
= control target key start
LH: loop header
LB: loop body
LE: loop exit
PB: predicated region body
PF: predicated region fallthrough
CT: control target
= control target key end

     0   :  { %vm175_vm0 = vcmask 523264   ;;  %vm395_vm1 = vcmask 586752   ;;  %s1034_s1 = inlined_call_operand.vmem [shape: f32[576,200], index: 1, kind: input, shape index: {}]   ;;  %s1035_s0 = inlined_call_operand.vmem [shape: f32[6,576], index: 0, kind: input, shape index: {}]   ;;  %s1036_s2 = inlined_call_operand.vmem [shape: f32[1,200], index: 2, kind: input, shape index: {}]   ;;  %s1037_s3 = inlined_call_operand.vmem [shape: f32[6,200], index: 3, kind: output, shape index: {}]  }
   0x1   :  { %v84_v0 = vld [vmem:[%s1034_s1 + $0x208] sm:$0xff]  ;;  %v86_v1 = vld [vmem:[%s1034_s1 + $0x218] sm:$0xff]  ;;  %v83_v2 = vld [vmem:[%s1034_s1 + $0x200] sm:$0xff] }
   0x2   :  { %v466_v3 = vpack.c.bf16 %v86_v1, %v84_v0  ;;  %v85_v4 = vld [vmem:[%s1034_s1 + $0x210] sm:$0xff]  ;;  %v88_v5 = vld [vmem:[%s1034_s1 + $0x228] sm:$0xff]  ;;  %v90_v6 = vld [vmem:[%s1034_s1 + $0x238] sm:$0xff] }
   0x3   :  { %v468_v7 = vpack.c.bf16 %v85_v4, %v83_v2  ;;  %v470_v8 = vpack.c.bf16 %v90_v6, %v88_v5  ;;  %v87_v9 = vld [vmem:[%s1034_s1 + $0x220] sm:$0xff]  ;;  %v89_v10 = vld [vmem:[%s1034_s1 + $0x230] sm:$0xff]  ;;  %v92_v11 = vld [vmem:[%s1034_s1 + $0x248] sm:$0xff] }
   0x4   :  { %467 = vmatprep.subr.bf16.mxu0 %v466_v3  ;;  %v94_v12 = vld [vmem:[%s1034_s1 + $0x258] sm:$0xff]  ;;  %v472_v13 = vpack.c.bf16 %v89_v10, %v87_v9  ;;  %v91_v14 = vld [vmem:[%s1034_s1 + $0x240] sm:$0xff]  ;;  %v20_v15 = vld [vmem:[%s1034_s1 + $0x8] sm:$0xff] }
   0x5   :  { %469 = vmatpush1.bf16.msra.mxu0 %v468_v7  ;;  %v474_v16 = vpack.c.bf16 %v94_v12, %v92_v11  ;;  %v93_v17 = vld [vmem:[%s1034_s1 + $0x250] sm:$0xff]  ;;  %v96_v18 = vld [vmem:[%s1034_s1 + $0x268] sm:$0xff]  ;;  %v22_v19 = vld [vmem:[%s1034_s1 + $0x18] sm:$0xff] }
   0x6   :  { %471 = vmatprep.subr.bf16.mxu0 %v470_v8  ;;  %v98_v20 = vld [vmem:[%s1034_s1 + $0x278] sm:$0xff]  ;;  %v402_v21 = vpack.c.bf16 %v22_v19, %v20_v15  ;;  %v19_v22 = vld [vmem:[%s1034_s1] sm:$0xff]  ;;  %v21_v23 = vld [vmem:[%s1034_s1 + $0x10] sm:$0xff]  ;;  %v476_v27 = vpack.c.bf16 %v93_v17, %v91_v14 }
   0x7   :  { %v404_v24 = vpack.c.bf16 %v21_v23, %v19_v22  ;;  %v24_v25 = vld [vmem:[%s1034_s1 + $0x28] sm:$0xff]  ;;  %v26_v26 = vld [vmem:[%s1034_s1 + $0x38] sm:$0xff]  ;;  %v95_v28 = vld [vmem:[%s1034_s1 + $0x260] sm:$0xff]  ;;  %v478_v31 = vpack.c.bf16 %v98_v20, %v96_v18 }
   0x8   :  { %403 = vmatprep.subr.bf16.mxu1 %v402_v21  ;;  %v406_v29 = vpack.c.bf16 %v26_v26, %v24_v25  ;;  %v23_v30 = vld [vmem:[%s1034_s1 + $0x20] sm:$0xff]  ;;  %v97_v32 = vld [vmem:[%s1034_s1 + $0x270] sm:$0xff]  ;;  %v100_v33 = vld [vmem:[%s1034_s1 + $0x288] sm:$0xff] }
   0x9   :  { %473 = vmatpush1.bf16.msra.mxu0 %v472_v13  ;;  %405 = vmatpush1.bf16.msra.mxu1 %v404_v24  ;;  %v25_v34 = vld [vmem:[%s1034_s1 + $0x30] sm:$0xff]  ;;  %v102_v35 = vld [vmem:[%s1034_s1 + $0x298] sm:$0xff]  ;;  %v28_v37 = vld [vmem:[%s1034_s1 + $0x48] sm:$0xff]  ;;  %v480_v42 = vpack.c.bf16 %v97_v32, %v95_v28 }
   0xa   :  { %475 = vmatprep.subr.bf16.mxu0 %v474_v16  ;;  %407 = vmatprep.subr.bf16.mxu1 %v406_v29  ;;  %v408_v36 = vpack.c.bf16 %v25_v34, %v23_v30  ;;  %v30_v38 = vld [vmem:[%s1034_s1 + $0x58] sm:$0xff]  ;;  %v27_v40 = vld [vmem:[%s1034_s1 + $0x40] sm:$0xff]  ;;  %v29_v41 = vld [vmem:[%s1034_s1 + $0x50] sm:$0xff]  ;;  %v482_v45 = vpack.c.bf16 %v102_v35, %v100_v33 }
   0xb   :  { %v410_v39 = vpack.c.bf16 %v30_v38, %v28_v37  ;;  %v99_v43 = vld [vmem:[%s1034_s1 + $0x280] sm:$0xff]  ;;  %v32_v44 = vld [vmem:[%s1034_s1 + $0x68] sm:$0xff]  ;;  %v101_v46 = vld [vmem:[%s1034_s1 + $0x290] sm:$0xff]  ;;  %v412_v48 = vpack.c.bf16 %v29_v41, %v27_v40 }
   0xc   :  { %v104_v47 = vld [vmem:[%s1034_s1 + $0x2a8] sm:$0xff]  ;;  %v34_v49 = vld [vmem:[%s1034_s1 + $0x78] sm:$0xff]  ;;  %v31_v52 = vld [vmem:[%s1034_s1 + $0x60] sm:$0xff]  ;;  %v484_v56 = vpack.c.bf16 %v101_v46, %v99_v43 }
   0xd   :  { %477 = vmatpush1.bf16.msra.mxu0 %v476_v27  ;;  %409 = vmatpush1.bf16.msra.mxu1 %v408_v36  ;;  %v106_v50 = vld [vmem:[%s1034_s1 + $0x2b8] sm:$0xff]  ;;  %v414_v51 = vpack.c.bf16 %v34_v49, %v32_v44  ;;  %v33_v53 = vld [vmem:[%s1034_s1 + $0x70] sm:$0xff]  ;;  %v36_v54 = vld [vmem:[%s1034_s1 + $0x88] sm:$0xff] }
   0xe   :  { %479 = vmatprep.subr.bf16.mxu0 %v478_v31  ;;  %411 = vmatprep.subr.bf16.mxu1 %v410_v39  ;;  %v38_v55 = vld [vmem:[%s1034_s1 + $0x98] sm:$0xff]  ;;  %v486_v57 = vpack.c.bf16 %v106_v50, %v104_v47  ;;  %v103_v58 = vld [vmem:[%s1034_s1 + $0x2a0] sm:$0xff]  ;;  %v105_v59 = vld [vmem:[%s1034_s1 + $0x2b0] sm:$0xff]  ;;  %v416_v61 = vpack.c.bf16 %v33_v53, %v31_v52 }
   0xf   :  { %v108_v60 = vld [vmem:[%s1034_s1 + $0x2c8] sm:$0xff]  ;;  %v110_v62 = vld [vmem:[%s1034_s1 + $0x2d8] sm:$0xff]  ;;  %v418_v63 = vpack.c.bf16 %v38_v55, %v36_v54  ;;  %v35_v0 = vld [vmem:[%s1034_s1 + $0x80] sm:$0xff]  ;;  %v488_v4 = vpack.c.bf16 %v105_v59, %v103_v58 }
  0x10   :  { %v37_v1 = vld [vmem:[%s1034_s1 + $0x90] sm:$0xff]  ;;  %v40_v2 = vld [vmem:[%s1034_s1 + $0xa8] sm:$0xff]  ;;  %v42_v3 = vld [vmem:[%s1034_s1 + $0xb8] sm:$0xff]  ;;  %v490_v5 = vpack.c.bf16 %v110_v62, %v108_v60 }
  0x11   :  { %481 = vmatpush1.bf16.msra.mxu0 %v480_v42  ;;  %413 = vmatpush1.bf16.msra.mxu1 %v412_v48  ;;  %v107_v6 = vld [vmem:[%s1034_s1 + $0x2c0] sm:$0xff]  ;;  %v109_v7 = vld [vmem:[%s1034_s1 + $0x2d0] sm:$0xff]  ;;  %v112_v8 = vld [vmem:[%s1034_s1 + $0x2e8] sm:$0xff]  ;;  %v420_v9 = vpack.c.bf16 %v37_v1, %v35_v0  ;;  %v422_v11 = vpack.c.bf16 %v42_v3, %v40_v2 }
  0x12   :  { %483 = vmatprep.subr.bf16.mxu0 %v482_v45  ;;  %415 = vmatprep.subr.bf16.mxu1 %v414_v51  ;;  %v114_v10 = vld [vmem:[%s1034_s1 + $0x2f8] sm:$0xff]  ;;  %v39_v12 = vld [vmem:[%s1034_s1 + $0xa0] sm:$0xff]  ;;  %v41_v13 = vld [vmem:[%s1034_s1 + $0xb0] sm:$0xff]  ;;  %v492_v16 = vpack.c.bf16 %v109_v7, %v107_v6 }
  0x13   :  { %v44_v14 = vld [vmem:[%s1034_s1 + $0xc8] sm:$0xff]  ;;  %v46_v15 = vld [vmem:[%s1034_s1 + $0xd8] sm:$0xff]  ;;  %v494_v17 = vpack.c.bf16 %v114_v10, %v112_v8  ;;  %v111_v18 = vld [vmem:[%s1034_s1 + $0x2e0] sm:$0xff]  ;;  %v424_v21 = vpack.c.bf16 %v41_v13, %v39_v12 }
  0x14   :  { %v113_v19 = vld [vmem:[%s1034_s1 + $0x2f0] sm:$0xff]  ;;  %v116_v20 = vld [vmem:[%s1034_s1 + $0x308] sm:$0xff]  ;;  %v118_v22 = vld [vmem:[%s1034_s1 + $0x318] sm:$0xff]  ;;  %v426_v23 = vpack.c.bf16 %v46_v15, %v44_v14 }
  0x15   :  { %485 = vmatpush1.bf16.msra.mxu0 %v484_v56  ;;  %417 = vmatpush1.bf16.msra.mxu1 %v416_v61  ;;  %v43_v24 = vld [vmem:[%s1034_s1 + $0xc0] sm:$0xff]  ;;  %v45_v25 = vld [vmem:[%s1034_s1 + $0xd0] sm:$0xff]  ;;  %v48_v26 = vld [vmem:[%s1034_s1 + $0xe8] sm:$0xff]  ;;  %v496_v28 = vpack.c.bf16 %v113_v19, %v111_v18  ;;  %v498_v29 = vpack.c.bf16 %v118_v22, %v116_v20 }
  0x16   :  { %487 = vmatprep.subr.bf16.mxu0 %v486_v57  ;;  %419 = vmatprep.subr.bf16.mxu1 %v418_v63  ;;  %v50_v27 = vld [vmem:[%s1034_s1 + $0xf8] sm:$0xff]  ;;  %v115_v30 = vld [vmem:[%s1034_s1 + $0x300] sm:$0xff]  ;;  %v117_v31 = vld [vmem:[%s1034_s1 + $0x310] sm:$0xff]  ;;  %v428_v33 = vpack.c.bf16 %v45_v25, %v43_v24 }
  0x17   :  { %v120_v32 = vld [vmem:[%s1034_s1 + $0x328] sm:$0xff]  ;;  %v122_v34 = vld [vmem:[%s1034_s1 + $0x338] sm:$0xff]  ;;  %v430_v35 = vpack.c.bf16 %v50_v27, %v48_v26  ;;  %v47_v36 = vld [vmem:[%s1034_s1 + $0xe0] sm:$0xff]  ;;  %v500_v40 = vpack.c.bf16 %v117_v31, %v115_v30 }
  0x18   :  { %v49_v37 = vld [vmem:[%s1034_s1 + $0xf0] sm:$0xff]  ;;  %v52_v38 = vld [vmem:[%s1034_s1 + $0x108] sm:$0xff]  ;;  %v54_v39 = vld [vmem:[%s1034_s1 + $0x118] sm:$0xff]  ;;  %v502_v41 = vpack.c.bf16 %v122_v34, %v120_v32 }
  0x19   :  { %489 = vmatpush1.bf16.msra.mxu0 %v488_v4  ;;  %421 = vmatpush1.bf16.msra.mxu1 %v420_v9  ;;  %v119_v42 = vld [vmem:[%s1034_s1 + $0x320] sm:$0xff]  ;;  %v121_v43 = vld [vmem:[%s1034_s1 + $0x330] sm:$0xff]  ;;  %v124_v44 = vld [vmem:[%s1034_s1 + $0x348] sm:$0xff]  ;;  %v432_v45 = vpack.c.bf16 %v49_v37, %v47_v36  ;;  %v434_v47 = vpack.c.bf16 %v54_v39, %v52_v38 }
  0x1a   :  { %491 = vmatprep.subr.bf16.mxu0 %v490_v5  ;;  %423 = vmatprep.subr.bf16.mxu1 %v422_v11  ;;  %v126_v46 = vld [vmem:[%s1034_s1 + $0x358] sm:$0xff]  ;;  %v51_v48 = vld [vmem:[%s1034_s1 + $0x100] sm:$0xff]  ;;  %v53_v49 = vld [vmem:[%s1034_s1 + $0x110] sm:$0xff]  ;;  %v504_v52 = vpack.c.bf16 %v121_v43, %v119_v42 }
  0x1b   :  { %v56_v50 = vld [vmem:[%s1034_s1 + $0x128] sm:$0xff]  ;;  %v58_v51 = vld [vmem:[%s1034_s1 + $0x138] sm:$0xff]  ;;  %v123_v53 = vld [vmem:[%s1034_s1 + $0x340] sm:$0xff]  ;;  %v506_v54 = vpack.c.bf16 %v126_v46, %v124_v44  ;;  %v436_v58 = vpack.c.bf16 %v53_v49, %v51_v48 }
  0x1c   :  { %v125_v55 = vld [vmem:[%s1034_s1 + $0x350] sm:$0xff]  ;;  %v128_v56 = vld [vmem:[%s1034_s1 + $0x368] sm:$0xff]  ;;  %v130_v57 = vld [vmem:[%s1034_s1 + $0x378] sm:$0xff]  ;;  %v438_v59 = vpack.c.bf16 %v58_v51, %v56_v50 }
  0x1d   :  { %493 = vmatpush1.bf16.msra.mxu0 %v492_v16  ;;  %425 = vmatpush1.bf16.msra.mxu1 %v424_v21  ;;  %v55_v60 = vld [vmem:[%s1034_s1 + $0x120] sm:$0xff]  ;;  %v57_v61 = vld [vmem:[%s1034_s1 + $0x130] sm:$0xff]  ;;  %v17_v62 = vld [vmem:[%s1035_s0 + $0x18] sm:$0x3f]  ;;  %v508_v1 = vpack.c.bf16 %v125_v55, %v123_v53  ;;  %v510_v2 = vpack.c.bf16 %v130_v57, %v128_v56 }
  0x1e   :  { %495 = vmatprep.subr.bf16.mxu0 %v494_v17  ;;  %427 = vmatprep.subr.bf16.mxu1 %v426_v23  ;;  %v60_v63 = vld [vmem:[%s1034_s1 + $0x148] sm:$0xff]  ;;  %v62_v0 = vld [vmem:[%s1034_s1 + $0x158] sm:$0xff]  ;;  %v127_v3 = vld [vmem:[%s1034_s1 + $0x360] sm:$0xff]  ;;  %v440_v6 = vpack.c.bf16 %v57_v61, %v55_v60 }
  0x1f   :  { %314 = vmatprep.mubr.f32.mxu0 %v17_v62  ;;  %v129_v4 = vld [vmem:[%s1034_s1 + $0x370] sm:$0xff]  ;;  %v132_v5 = vld [vmem:[%s1034_s1 + $0x388] sm:$0xff]  ;;  %v134_v7 = vld [vmem:[%s1034_s1 + $0x398] sm:$0xff]  ;;  %v442_v8 = vpack.c.bf16 %v62_v0, %v60_v63 }
  0x20   :  { %v59_v9 = vld [vmem:[%s1034_s1 + $0x140] sm:$0xff]  ;;  %v61_v10 = vld [vmem:[%s1034_s1 + $0x150] sm:$0xff]  ;;  %v64_v11 = vld [vmem:[%s1034_s1 + $0x168] sm:$0xff]  ;;  %v512_v13 = vpack.c.bf16 %v129_v4, %v127_v3  ;;  %v514_v14 = vpack.c.bf16 %v134_v7, %v132_v5 }
  0x21   :  { %497 = vmatpush1.bf16.msra.mxu0 %v496_v28  ;;  %429 = vmatpush1.bf16.msra.mxu1 %v428_v33  ;;  %v66_v12 = vld [vmem:[%s1034_s1 + $0x178] sm:$0xff]  ;;  %v131_v15 = vld [vmem:[%s1034_s1 + $0x380] sm:$0xff]  ;;  %v133_v16 = vld [vmem:[%s1034_s1 + $0x390] sm:$0xff]  ;;  %v444_v18 = vpack.c.bf16 %v61_v10, %v59_v9 }
  0x22   :  { %499 = vmatprep.subr.bf16.mxu0 %v498_v29  ;;  %431 = vmatprep.subr.bf16.mxu1 %v430_v35  ;;  %v136_v17 = vld [vmem:[%s1034_s1 + $0x3a8] sm:$0xff]  ;;  %v138_v19 = vld [vmem:[%s1034_s1 + $0x3b8] sm:$0xff]  ;;  %v446_v20 = vpack.c.bf16 %v66_v12, %v64_v11  ;;  %v63_v21 = vld [vmem:[%s1034_s1 + $0x160] sm:$0xff]  ;;  %v516_v26 = vpack.c.bf16 %v133_v16, %v131_v15 }
  0x23   :  { %v65_v22 = vld [vmem:[%s1034_s1 + $0x170] sm:$0xff]  ;;  %v68_v23 = vld [vmem:[%s1034_s1 + $0x188] sm:$0xff]  ;;  %v70_v24 = vld [vmem:[%s1034_s1 + $0x198] sm:$0xff]  ;;  %v518_v27 = vpack.c.bf16 %v138_v19, %v136_v17  ;;  %v557_v17 = vmov 0.0  }
  0x24   :  { %v15_v25 = vld [vmem:[%s1035_s0 + $0x8] sm:$0x3f]  ;;  %v135_v28 = vld [vmem:[%s1034_s1 + $0x3a0] sm:$0xff]  ;;  %v137_v29 = vld [vmem:[%s1034_s1 + $0x3b0] sm:$0xff]  ;;  %v448_v31 = vpack.c.bf16 %v65_v22, %v63_v21  ;;  %v450_v33 = vpack.c.bf16 %v70_v24, %v68_v23 }
  0x25   :  { %501 = vmatpush1.bf16.msra.mxu0 %v500_v40  ;;  %433 = vmatpush1.bf16.msra.mxu1 %v432_v45  ;;  %v140_v30 = vld [vmem:[%s1034_s1 + $0x3c8] sm:$0xff]  ;;  %v142_v32 = vld [vmem:[%s1034_s1 + $0x3d8] sm:$0xff]  ;;  %v67_v34 = vld [vmem:[%s1034_s1 + $0x180] sm:$0xff]  ;;  %v520_v38 = vpack.c.bf16 %v137_v29, %v135_v28 }
  0x26   :  { %503 = vmatprep.subr.bf16.mxu0 %v502_v41  ;;  %435 = vmatprep.subr.bf16.mxu1 %v434_v47  ;;  %v69_v35 = vld [vmem:[%s1034_s1 + $0x190] sm:$0xff]  ;;  %v72_v36 = vld [vmem:[%s1034_s1 + $0x1a8] sm:$0xff]  ;;  %v74_v37 = vld [vmem:[%s1034_s1 + $0x1b8] sm:$0xff]  ;;  %v522_v39 = vpack.c.bf16 %v142_v32, %v140_v30  ;;  %v165_v30 = vlaneseq }
  0x27   :  { %243 = vmatprep.mubr.f32.mxu1 %v15_v25  ;;  %v139_v40 = vld [vmem:[%s1034_s1 + $0x3c0] sm:$0xff]  ;;  %v141_v41 = vld [vmem:[%s1034_s1 + $0x3d0] sm:$0xff]  ;;  %v144_v42 = vld [vmem:[%s1034_s1 + $0x3e8] sm:$0xff]  ;;  %v452_v43 = vpack.c.bf16 %v69_v35, %v67_v34  ;;  %v454_v45 = vpack.c.bf16 %v74_v37, %v72_v36 }
  0x28   :  { %v146_v44 = vld [vmem:[%s1034_s1 + $0x3f8] sm:$0xff]  ;;  %v71_v46 = vld [vmem:[%s1034_s1 + $0x1a0] sm:$0xff]  ;;  %v73_v47 = vld [vmem:[%s1034_s1 + $0x1b0] sm:$0xff]  ;;  %v524_v50 = vpack.c.bf16 %v141_v41, %v139_v40 }
  0x29   :  { %505 = vmatpush1.bf16.msra.mxu0 %v504_v52  ;;  %437 = vmatpush1.bf16.msra.mxu1 %v436_v58  ;;  %v76_v48 = vld [vmem:[%s1034_s1 + $0x1c8] sm:$0xff]  ;;  %v78_v49 = vld [vmem:[%s1034_s1 + $0x1d8] sm:$0xff]  ;;  %v526_v51 = vpack.c.bf16 %v146_v44, %v144_v42  ;;  %v143_v52 = vld [vmem:[%s1034_s1 + $0x3e0] sm:$0xff]  ;;  %v456_v55 = vpack.c.bf16 %v73_v47, %v71_v46 }
  0x2a   :  { %507 = vmatprep.subr.bf16.mxu0 %v506_v54  ;;  %439 = vmatprep.subr.bf16.mxu1 %v438_v59  ;;  %v145_v53 = vld [vmem:[%s1034_s1 + $0x3f0] sm:$0xff]  ;;  %v148_v54 = vld [vmem:[%s1034_s1 + $0x408] sm:$0xff]  ;;  %v150_v56 = vld [vmem:[%s1034_s1 + $0x418] sm:$0xff]  ;;  %v458_v57 = vpack.c.bf16 %v78_v49, %v76_v48 }
  0x2b   :  { %v75_v58 = vld [vmem:[%s1034_s1 + $0x1c0] sm:$0xff]  ;;  %v77_v59 = vld [vmem:[%s1034_s1 + $0x1d0] sm:$0xff]  ;;  %v80_v60 = vld [vmem:[%s1034_s1 + $0x1e8] sm:$0xff]  ;;  %v528_v62 = vpack.c.bf16 %v145_v53, %v143_v52  ;;  %v530_v63 = vpack.c.bf16 %v150_v56, %v148_v54 }
  0x2c   :  { %v82_v61 = vld [vmem:[%s1034_s1 + $0x1f8] sm:$0xff]  ;;  %v147_v0 = vld [vmem:[%s1034_s1 + $0x400] sm:$0xff]  ;;  %v460_v3 = vpack.c.bf16 %v77_v59, %v75_v58  ;;  %v81_v7 = vld [vmem:[%s1034_s1 + $0x1f0] sm:$0xff] }
  0x2d   :  { %509 = vmatpush1.bf16.msra.mxu0 %v508_v1  ;;  %441 = vmatpush1.bf16.msra.mxu1 %v440_v6  ;;  %v149_v1 = vld [vmem:[%s1034_s1 + $0x410] sm:$0xff]  ;;  %v154_v4 = vld [vmem:[%s1034_s1 + $0x438] sm:$0xff]  ;;  %v462_v5 = vpack.c.bf16 %v82_v61, %v80_v60  ;;  %v79_v6 = vld [vmem:[%s1034_s1 + $0x1e0] sm:$0xff] }
  0x2e   :  { %511 = vmatprep.subr.bf16.mxu0 %v510_v2  ;;  %443 = vmatprep.subr.bf16.mxu1 %v442_v8  ;;  %v152_v2 = vld [vmem:[%s1034_s1 + $0x428] sm:$0xff]  ;;  %v16_v8 = vld [vmem:[%s1035_s0 + $0x10] sm:$0x3f]  ;;  %v532_v9 = vpack.c.bf16 %v149_v1, %v147_v0  ;;  %v151_v11 = vld [vmem:[%s1034_s1 + $0x420] sm:$0xff] }
  0x2f   :  { %v534_v10 = vpack.c.bf16 %v154_v4, %v152_v2  ;;  %v153_v12 = vld [vmem:[%s1034_s1 + $0x430] sm:$0xff]  ;;  %v158_v15 = vld [vmem:[%s1034_s1 + $0x458] sm:$0xff]  ;;  %v155_v19 = vld [vmem:[%s1034_s1 + $0x440] sm:$0xff] }
  0x30   :  { %v536_v16 = vpack.c.bf16 %v153_v12, %v151_v11  ;;  %v14_v21 = vld [vmem:[%s1035_s0] sm:$0x3f]  ;;  %v160_v22 = vld [vmem:[%s1034_s1 + $0x468] sm:$0xff]  ;;  %v162_v23 = vld [vmem:[%s1034_s1 + $0x478] sm:$0xff] }
  0x31   :  { %513 = vmatpush1.bf16.msra.mxu0 %v512_v13  ;;  %445 = vmatpush1.bf16.msra.mxu1 %v444_v18  ;;  %v464_v13 = vpack.c.bf16 %v81_v7, %v79_v6  ;;  %v542_v25 = vpack.c.bf16 %v162_v23, %v160_v22  ;;  %v18_v29 = vld [vmem:[%s1035_s0 + $0x20] sm:$0x3f] }
  0x32   :  { %515 = vmatprep.subr.bf16.mxu0 %v514_v14  ;;  %447 = vmatprep.subr.bf16.mxu1 %v446_v20  ;;  %v156_v14 = vld [vmem:[%s1034_s1 + $0x448] sm:$0xff]  ;;  %v157_v20 = vld [vmem:[%s1034_s1 + $0x450] sm:$0xff]  ;;  %v163_v34 = vld [vmem:[%s1036_s2] sm:$0x3] }
  0x33   :  { %v538_v18 = vpack.c.bf16 %v158_v15, %v156_v14  ;;  %v540_v24 = vpack.c.bf16 %v157_v20, %v155_v19 }
  0x35   :  { %517 = vmatpush1.bf16.msra.mxu0 %v516_v26  ;;  %449 = vmatpush1.bf16.msra.mxu1 %v448_v31  ;;  %v159_v26 = vld [vmem:[%s1034_s1 + $0x460] sm:$0xff]  ;;  %v166_v31 = vshrl.u32 %v165_v30, 7 }
  0x36   :  { %519 = vmatprep.subr.bf16.mxu0 %v518_v27  ;;  %451 = vmatprep.subr.bf16.mxu1 %v450_v33  ;;  %v161_v27 = vld [vmem:[%s1034_s1 + $0x470] sm:$0xff] }
  0x37   :  { %v544_v28 = vpack.c.bf16 %v161_v27, %v159_v26  ;;  %v167_v32 = vsub.s32 0, %v166_v31  ;;  %v171_v35 = vsub.s32 1, %v166_v31 }
  0x39   :  { %521 = vmatpush1.bf16.msra.mxu0 %v520_v38  ;;  %453 = vmatpush1.bf16.msra.mxu1 %v452_v43  ;;  %v168_v37 = vrot.slane %v163_v34, %v167_v32  ;;  %v172_v38 = vrot.slane %v163_v34, %v171_v35 }
  0x3a   :  { %523 = vmatprep.subr.bf16.mxu0 %v522_v39  ;;  %455 = vmatprep.subr.bf16.mxu1 %v454_v45 }
  0x3d   :  { %525 = vmatpush1.bf16.msra.mxu0 %v524_v50  ;;  %457 = vmatpush1.bf16.msra.mxu1 %v456_v55 }
  0x3e   :  { %527 = vmatprep.subr.bf16.mxu0 %v526_v51  ;;  %459 = vmatprep.subr.bf16.mxu1 %v458_v57 }
  0x41   :  { %529 = vmatpush1.bf16.msra.mxu0 %v528_v62  ;;  %461 = vmatpush1.bf16.msra.mxu1 %v460_v3 }
  0x42   :  { %531 = vmatprep.subr.bf16.mxu0 %v530_v63  ;;  %463 = vmatprep.subr.bf16.mxu1 %v462_v5 }
  0x44   :  { %315 = vmatmul.mubr.f32.vlgmr.msra.gmra.mrb[0].mxu0 %v16_v8 }
  0x45   :  { %533 = vmatpush1.bf16.msra.mxu0 %v532_v9  ;;  %385 = vmatprep.mubr.f32.mxu0 %v557_v17 }
  0x46   :  { %535 = vmatprep.subr.bf16.mxu0 %v534_v10  ;;  %465 = vmatpush1.bf16.msra.mxu1 %v464_v13 }
  0x49   :  { %537 = vmatpush1.bf16.msra.mxu0 %v536_v16  ;;  %244 = vmatmul.mubr.f32.vlgmr.msra.gmra.mrb[0].mxu1 %v14_v21 }
  0x4a   :  { %539 = vmatprep.subr.bf16.mxu0 %v538_v18 }
  0x4d   :  { %541 = vmatpush1.bf16.msra.mxu0 %v540_v24 }
  0x4e   :  { %543 = vmatprep.subr.bf16.mxu0 %v542_v25 }
  0x51   :  { %545 = vmatpush1.bf16.msra.mxu0 %v544_v28 }
  0x54   :  { %401 = vmatmul.mubr.msk.f32.vlgmr.msra.gmra.mrb[0].mxu0 %vm175_vm0, %v18_v29 }
 0x11c   :  { %v245_v33 = vpop.f32.mrb[0].mxu1 }
 0x11d   :  { %v247_v36 = vpop.f32.mrb[1].mxu1  ;;  %v246_v39 = vadd.f32 %v245_v33, %v168_v37 }
 0x11e   :  { %v248_v40 = vadd.f32 %v247_v36, %v172_v38 }
 0x127   :  { %v387_v41 = vpop.f32.mrb[0].mxu0 }
 0x128   :  { %v547_v42 = vadd.f32 %v387_v41, %v246_v39  ;;  %v389_v43 = vpop.f32.mrb[1].mxu0 }
 0x129   :  { %v549_v44 = vadd.f32 %v389_v43, %v248_v40 }
 0x12a   :  { %553 = vtanh.f32 %v547_v42 }
 0x12b   :  { %555 = vtanh.f32 %v549_v44 }
 0x134   :  { %v554_v45 = vpop.eup %553 }
 0x135   :  { %v556_v46 = vpop.eup %555  ;;  %394 = vst [vmem:[%s1037_s3] sm:$0x3f] %v554_v45 }
 0x136   :  { %396 = vst.msk [vmem:[%s1037_s3 + $0x8] sm:$0x3f] %vm395_vm1, %v556_v46 }

// kernel: forward.16
= control target key start
LH: loop header
LB: loop body
LE: loop exit
PB: predicated region body
PF: predicated region fallthrough
CT: control target
= control target key end

     0   :  { %vm168_vm0 = vcmask 588800   ;;  %vm388_vm1 = vcmask 717824   ;;  %s977_s1 = inlined_call_operand.vmem [shape: f32[200,600], index: 1, kind: input, shape index: {}]   ;;  %s978_s0 = inlined_call_operand.vmem [shape: f32[6,200], index: 0, kind: input, shape index: {}]   ;;  %s979_s2 = inlined_call_operand.vmem [shape: f32[1,600], index: 2, kind: input, shape index: {}]   ;;  %s980_s3 = inlined_call_operand.vmem [shape: f32[6,600], index: 3, kind: output, shape index: {}]  }
   0x1   :  { %v17_v0 = vld [vmem:[%s977_s1 + $0x8] sm:$0xff]  ;;  %v22_v1 = vld [vmem:[%s977_s1 + $0x30] sm:$0xff]  ;;  %v16_v2 = vld [vmem:[%s977_s1] sm:$0xff] }
   0x2   :  { %v397_v3 = vpack.c.bf16 %v22_v1, %v17_v0  ;;  %v21_v4 = vld [vmem:[%s977_s1 + $0x28] sm:$0xff]  ;;  %v27_v5 = vld [vmem:[%s977_s1 + $0x58] sm:$0xff]  ;;  %v32_v6 = vld [vmem:[%s977_s1 + $0x80] sm:$0xff] }
   0x3   :  { %v399_v7 = vpack.c.bf16 %v21_v4, %v16_v2  ;;  %v401_v8 = vpack.c.bf16 %v32_v6, %v27_v5  ;;  %v26_v9 = vld [vmem:[%s977_s1 + $0x50] sm:$0xff]  ;;  %v31_v10 = vld [vmem:[%s977_s1 + $0x78] sm:$0xff]  ;;  %v37_v11 = vld [vmem:[%s977_s1 + $0xa8] sm:$0xff] }
   0x4   :  { %398 = vmatprep.subr.bf16.mxu0 %v397_v3  ;;  %v42_v12 = vld [vmem:[%s977_s1 + $0xd0] sm:$0xff]  ;;  %v403_v13 = vpack.c.bf16 %v31_v10, %v26_v9  ;;  %v36_v15 = vld [vmem:[%s977_s1 + $0xa0] sm:$0xff]  ;;  %v41_v16 = vld [vmem:[%s977_s1 + $0xc8] sm:$0xff] }
   0x5   :  { %400 = vmatpush1.bf16.msra.mxu0 %v399_v7  ;;  %v405_v14 = vpack.c.bf16 %v42_v12, %v37_v11  ;;  %v47_v17 = vld [vmem:[%s977_s1 + $0xf8] sm:$0xff]  ;;  %v52_v18 = vld [vmem:[%s977_s1 + $0x120] sm:$0xff]  ;;  %v407_v19 = vpack.c.bf16 %v41_v16, %v36_v15  ;;  %v46_v21 = vld [vmem:[%s977_s1 + $0xf0] sm:$0xff] }
   0x6   :  { %402 = vmatprep.subr.bf16.mxu0 %v401_v8  ;;  %v409_v20 = vpack.c.bf16 %v52_v18, %v47_v17  ;;  %v51_v22 = vld [vmem:[%s977_s1 + $0x118] sm:$0xff]  ;;  %v57_v23 = vld [vmem:[%s977_s1 + $0x148] sm:$0xff]  ;;  %v62_v24 = vld [vmem:[%s977_s1 + $0x170] sm:$0xff] }
   0x7   :  { %v411_v25 = vpack.c.bf16 %v51_v22, %v46_v21  ;;  %v413_v26 = vpack.c.bf16 %v62_v24, %v57_v23  ;;  %v56_v27 = vld [vmem:[%s977_s1 + $0x140] sm:$0xff]  ;;  %v61_v28 = vld [vmem:[%s977_s1 + $0x168] sm:$0xff]  ;;  %v67_v29 = vld [vmem:[%s977_s1 + $0x198] sm:$0xff] }
   0x8   :  { %v72_v30 = vld [vmem:[%s977_s1 + $0x1c0] sm:$0xff]  ;;  %v415_v31 = vpack.c.bf16 %v61_v28, %v56_v27  ;;  %v66_v32 = vld [vmem:[%s977_s1 + $0x190] sm:$0xff]  ;;  %v19_v33 = vld [vmem:[%s977_s1 + $0x18] sm:$0xff] }
   0x9   :  { %404 = vmatpush1.bf16.msra.mxu0 %v403_v13  ;;  %v24_v34 = vld [vmem:[%s977_s1 + $0x40] sm:$0xff]  ;;  %v417_v35 = vpack.c.bf16 %v72_v30, %v67_v29  ;;  %v71_v36 = vld [vmem:[%s977_s1 + $0x1b8] sm:$0xff]  ;;  %v634_v38 = vld [vmem:[%s978_s0 + $0x8] sm:$0x3f] }
   0xa   :  { %406 = vmatprep.subr.bf16.mxu0 %v405_v14  ;;  %v445_v37 = vpack.c.bf16 %v24_v34, %v19_v33  ;;  %v18_v39 = vld [vmem:[%s977_s1 + $0x10] sm:$0xff]  ;;  %v77_v40 = vld [vmem:[%s977_s1 + $0x1e8] sm:$0xff]  ;;  %394 = vmatprep.mubr.msk.f32.mxu0 %vm168_vm0, %v634_v38  ;;  %v23_v42 = vld [vmem:[%s977_s1 + $0x38] sm:$0xff]  ;;  %v419_v47 = vpack.c.bf16 %v71_v36, %v66_v32 }
   0xb   :  { %v82_v41 = vld [vmem:[%s977_s1 + $0x210] sm:$0xff]  ;;  %395 = vmatprep.mubr.msk.f32.mxu1 %vm168_vm0, %v634_v38  ;;  %v76_v43 = vld [vmem:[%s977_s1 + $0x1e0] sm:$0xff]  ;;  %v447_v44 = vpack.c.bf16 %v23_v42, %v18_v39  ;;  %v29_v45 = vld [vmem:[%s977_s1 + $0x68] sm:$0xff] }
   0xc   :  { %446 = vmatprep.subr.bf16.mxu1 %v445_v37  ;;  %v34_v46 = vld [vmem:[%s977_s1 + $0x90] sm:$0xff]  ;;  %v81_v48 = vld [vmem:[%s977_s1 + $0x208] sm:$0xff]  ;;  %v28_v50 = vld [vmem:[%s977_s1 + $0x60] sm:$0xff]  ;;  %v421_v52 = vpack.c.bf16 %v82_v41, %v77_v40 }
   0xd   :  { %408 = vmatpush1.bf16.msra.mxu0 %v407_v19  ;;  %v449_v49 = vpack.c.bf16 %v34_v46, %v29_v45  ;;  %v33_v51 = vld [vmem:[%s977_s1 + $0x88] sm:$0xff]  ;;  %v87_v53 = vld [vmem:[%s977_s1 + $0x238] sm:$0xff]  ;;  %448 = vmatpush1.bf16.msra.mxu1 %v447_v44  ;;  %v44_v56 = vld [vmem:[%s977_s1 + $0xe0] sm:$0xff]  ;;  %v423_v63 = vpack.c.bf16 %v81_v48, %v76_v43 }
   0xe   :  { %410 = vmatprep.subr.bf16.mxu0 %v409_v20  ;;  %v451_v54 = vpack.c.bf16 %v33_v51, %v28_v50  ;;  %v39_v55 = vld [vmem:[%s977_s1 + $0xb8] sm:$0xff]  ;;  %v92_v57 = vld [vmem:[%s977_s1 + $0x260] sm:$0xff]  ;;  %v38_v59 = vld [vmem:[%s977_s1 + $0xb0] sm:$0xff] }
   0xf   :  { %450 = vmatprep.subr.bf16.mxu1 %v449_v49  ;;  %v453_v58 = vpack.c.bf16 %v44_v56, %v39_v55  ;;  %v43_v60 = vld [vmem:[%s977_s1 + $0xd8] sm:$0xff]  ;;  %v49_v61 = vld [vmem:[%s977_s1 + $0x108] sm:$0xff]  ;;  %v54_v62 = vld [vmem:[%s977_s1 + $0x130] sm:$0xff]  ;;  %v425_v0 = vpack.c.bf16 %v92_v57, %v87_v53 }
  0x10   :  { %v86_v1 = vld [vmem:[%s977_s1 + $0x230] sm:$0xff]  ;;  %v91_v2 = vld [vmem:[%s977_s1 + $0x258] sm:$0xff]  ;;  %v97_v3 = vld [vmem:[%s977_s1 + $0x288] sm:$0xff]  ;;  %v455_v4 = vpack.c.bf16 %v43_v60, %v38_v59  ;;  %v457_v6 = vpack.c.bf16 %v54_v62, %v49_v61 }
  0x11   :  { %412 = vmatpush1.bf16.msra.mxu0 %v411_v25  ;;  %452 = vmatpush1.bf16.msra.mxu1 %v451_v54  ;;  %v102_v5 = vld [vmem:[%s977_s1 + $0x2b0] sm:$0xff]  ;;  %v48_v7 = vld [vmem:[%s977_s1 + $0x100] sm:$0xff]  ;;  %v53_v8 = vld [vmem:[%s977_s1 + $0x128] sm:$0xff]  ;;  %v427_v11 = vpack.c.bf16 %v91_v2, %v86_v1 }
  0x12   :  { %414 = vmatprep.subr.bf16.mxu0 %v413_v26  ;;  %454 = vmatprep.subr.bf16.mxu1 %v453_v58  ;;  %v59_v9 = vld [vmem:[%s977_s1 + $0x158] sm:$0xff]  ;;  %v64_v10 = vld [vmem:[%s977_s1 + $0x180] sm:$0xff]  ;;  %v429_v12 = vpack.c.bf16 %v102_v5, %v97_v3  ;;  %v101_v14 = vld [vmem:[%s977_s1 + $0x2a8] sm:$0xff]  ;;  %v459_v16 = vpack.c.bf16 %v53_v8, %v48_v7 }
  0x13   :  { %v96_v13 = vld [vmem:[%s977_s1 + $0x280] sm:$0xff]  ;;  %v107_v15 = vld [vmem:[%s977_s1 + $0x2d8] sm:$0xff]  ;;  %v461_v18 = vpack.c.bf16 %v64_v10, %v59_v9  ;;  %v58_v19 = vld [vmem:[%s977_s1 + $0x150] sm:$0xff] }
  0x14   :  { %v112_v17 = vld [vmem:[%s977_s1 + $0x300] sm:$0xff]  ;;  %v63_v20 = vld [vmem:[%s977_s1 + $0x178] sm:$0xff]  ;;  %v69_v21 = vld [vmem:[%s977_s1 + $0x1a8] sm:$0xff]  ;;  %v431_v23 = vpack.c.bf16 %v101_v14, %v96_v13 }
  0x15   :  { %416 = vmatpush1.bf16.msra.mxu0 %v415_v31  ;;  %456 = vmatpush1.bf16.msra.mxu1 %v455_v4  ;;  %v74_v22 = vld [vmem:[%s977_s1 + $0x1d0] sm:$0xff]  ;;  %v433_v24 = vpack.c.bf16 %v112_v17, %v107_v15  ;;  %v111_v26 = vld [vmem:[%s977_s1 + $0x2f8] sm:$0xff]  ;;  %v117_v27 = vld [vmem:[%s977_s1 + $0x328] sm:$0xff]  ;;  %v463_v28 = vpack.c.bf16 %v63_v20, %v58_v19  ;;  %v531_v15 = vmov 0.0|0.0  }
  0x16   :  { %418 = vmatprep.subr.bf16.mxu0 %v417_v35  ;;  %458 = vmatprep.subr.bf16.mxu1 %v457_v6  ;;  %v106_v25 = vld [vmem:[%s977_s1 + $0x2d0] sm:$0xff]  ;;  %v465_v30 = vpack.c.bf16 %v74_v22, %v69_v21  ;;  %v68_v31 = vld [vmem:[%s977_s1 + $0x1a0] sm:$0xff]  ;;  %v73_v32 = vld [vmem:[%s977_s1 + $0x1c8] sm:$0xff] }
  0x17   :  { %v122_v29 = vld [vmem:[%s977_s1 + $0x350] sm:$0xff]  ;;  %v79_v33 = vld [vmem:[%s977_s1 + $0x1f8] sm:$0xff]  ;;  %v84_v34 = vld [vmem:[%s977_s1 + $0x220] sm:$0xff]  ;;  %v435_v35 = vpack.c.bf16 %v111_v26, %v106_v25  ;;  %v467_v41 = vpack.c.bf16 %v73_v32, %v68_v31 }
  0x18   :  { %v437_v36 = vpack.c.bf16 %v122_v29, %v117_v27  ;;  %v116_v37 = vld [vmem:[%s977_s1 + $0x320] sm:$0xff]  ;;  %v121_v39 = vld [vmem:[%s977_s1 + $0x348] sm:$0xff]  ;;  %v127_v40 = vld [vmem:[%s977_s1 + $0x378] sm:$0xff]  ;;  %v469_v43 = vpack.c.bf16 %v84_v34, %v79_v33 }
  0x19   :  { %420 = vmatpush1.bf16.msra.mxu0 %v419_v47  ;;  %460 = vmatpush1.bf16.msra.mxu1 %v459_v16  ;;  %v132_v42 = vld [vmem:[%s977_s1 + $0x3a0] sm:$0xff]  ;;  %v78_v44 = vld [vmem:[%s977_s1 + $0x1f0] sm:$0xff]  ;;  %v83_v45 = vld [vmem:[%s977_s1 + $0x218] sm:$0xff]  ;;  %v439_v48 = vpack.c.bf16 %v121_v39, %v116_v37 }
  0x1a   :  { %422 = vmatprep.subr.bf16.mxu0 %v421_v52  ;;  %462 = vmatprep.subr.bf16.mxu1 %v461_v18  ;;  %v89_v46 = vld [vmem:[%s977_s1 + $0x248] sm:$0xff]  ;;  %v94_v47 = vld [vmem:[%s977_s1 + $0x270] sm:$0xff]  ;;  %v441_v49 = vpack.c.bf16 %v132_v42, %v127_v40  ;;  %v131_v51 = vld [vmem:[%s977_s1 + $0x398] sm:$0xff]  ;;  %v471_v52 = vpack.c.bf16 %v83_v45, %v78_v44 }
  0x1b   :  { %v126_v50 = vld [vmem:[%s977_s1 + $0x370] sm:$0xff]  ;;  %v473_v53 = vpack.c.bf16 %v94_v47, %v89_v46  ;;  %v88_v54 = vld [vmem:[%s977_s1 + $0x240] sm:$0xff]  ;;  %v93_v55 = vld [vmem:[%s977_s1 + $0x268] sm:$0xff] }
  0x1c   :  { %v99_v56 = vld [vmem:[%s977_s1 + $0x298] sm:$0xff]  ;;  %v104_v57 = vld [vmem:[%s977_s1 + $0x2c0] sm:$0xff]  ;;  %v443_v58 = vpack.c.bf16 %v131_v51, %v126_v50  ;;  %v475_v59 = vpack.c.bf16 %v93_v55, %v88_v54  ;;  %v137_v60 = vld [vmem:[%s977_s1 + $0x3c8] sm:$0xff] }
  0x1d   :  { %424 = vmatpush1.bf16.msra.mxu0 %v423_v63  ;;  %464 = vmatpush1.bf16.msra.mxu1 %v463_v28  ;;  %v20_v61 = vld [vmem:[%s977_s1 + $0x20] sm:$0xff]  ;;  %v477_v62 = vpack.c.bf16 %v104_v57, %v99_v56  ;;  %v25_v63 = vld [vmem:[%s977_s1 + $0x48] sm:$0xff]  ;;  %v103_v1 = vld [vmem:[%s977_s1 + $0x2b8] sm:$0xff] }
  0x1e   :  { %426 = vmatprep.subr.bf16.mxu0 %v425_v0  ;;  %466 = vmatprep.subr.bf16.mxu1 %v465_v30  ;;  %v98_v0 = vld [vmem:[%s977_s1 + $0x290] sm:$0xff]  ;;  %v109_v2 = vld [vmem:[%s977_s1 + $0x2e8] sm:$0xff]  ;;  %v136_v4 = vld [vmem:[%s977_s1 + $0x3c0] sm:$0xff]  ;;  %v494_v6 = vpack.c.bf16 %v25_v63, %v20_v61 }
  0x1f   :  { %v114_v3 = vld [vmem:[%s977_s1 + $0x310] sm:$0xff]  ;;  %v835_v5 = vld [vmem:[%s978_s0] sm:$0x3f]  ;;  %v479_v8 = vpack.c.bf16 %v103_v1, %v98_v0  ;;  %v35_v9 = vld [vmem:[%s977_s1 + $0x98] sm:$0xff] }
  0x20   :  { %v30_v7 = vld [vmem:[%s977_s1 + $0x70] sm:$0xff]  ;;  %v481_v10 = vpack.c.bf16 %v114_v3, %v109_v2  ;;  %v119_v13 = vld [vmem:[%s977_s1 + $0x338] sm:$0xff]  ;;  %v124_v14 = vld [vmem:[%s977_s1 + $0x360] sm:$0xff] }
  0x21   :  { %428 = vmatpush1.bf16.msra.mxu0 %v427_v11  ;;  %468 = vmatpush1.bf16.msra.mxu1 %v467_v41  ;;  %v108_v11 = vld [vmem:[%s977_s1 + $0x2e0] sm:$0xff]  ;;  %v497_v16 = vpack.c.bf16 %v35_v9, %v30_v7  ;;  %v45_v19 = vld [vmem:[%s977_s1 + $0xe8] sm:$0xff]  ;;  %v485_v20 = vpack.c.bf16 %v124_v14, %v119_v13  ;;  %v118_v21 = vld [vmem:[%s977_s1 + $0x330] sm:$0xff] }
  0x22   :  { %430 = vmatprep.subr.bf16.mxu0 %v429_v12  ;;  %470 = vmatprep.subr.bf16.mxu1 %v469_v43  ;;  %v113_v12 = vld [vmem:[%s977_s1 + $0x308] sm:$0xff]  ;;  %v40_v17 = vld [vmem:[%s977_s1 + $0xc0] sm:$0xff]  ;;  %v123_v22 = vld [vmem:[%s977_s1 + $0x358] sm:$0xff] }
  0x23   :  { %v483_v18 = vpack.c.bf16 %v113_v12, %v108_v11  ;;  %v500_v25 = vpack.c.bf16 %v45_v19, %v40_v17  ;;  %v50_v26 = vld [vmem:[%s977_s1 + $0x110] sm:$0xff]  ;;  %v487_v27 = vpack.c.bf16 %v123_v22, %v118_v21  ;;  %v55_v28 = vld [vmem:[%s977_s1 + $0x138] sm:$0xff]  ;;  %v133_v30 = vld [vmem:[%s977_s1 + $0x3a8] sm:$0xff] }
  0x24   :  { %v503_v31 = vpack.c.bf16 %v55_v28, %v50_v26  ;;  %v60_v33 = vld [vmem:[%s977_s1 + $0x160] sm:$0xff]  ;;  %v65_v34 = vld [vmem:[%s977_s1 + $0x188] sm:$0xff]  ;;  %v70_v37 = vld [vmem:[%s977_s1 + $0x1b0] sm:$0xff] }
  0x25   :  { %432 = vmatpush1.bf16.msra.mxu0 %v431_v23  ;;  %472 = vmatpush1.bf16.msra.mxu1 %v471_v52  ;;  %v129_v23 = vld [vmem:[%s977_s1 + $0x388] sm:$0xff]  ;;  %v75_v39 = vld [vmem:[%s977_s1 + $0x1d8] sm:$0xff]  ;;  %v138_v40 = vld [vmem:[%s977_s1 + $0x3d0] sm:$0xff] }
  0x26   :  { %434 = vmatprep.subr.bf16.mxu0 %v433_v24  ;;  %474 = vmatprep.subr.bf16.mxu1 %v473_v53  ;;  %v134_v24 = vld [vmem:[%s977_s1 + $0x3b0] sm:$0xff]  ;;  %v509_v41 = vpack.c.bf16 %v75_v39, %v70_v37  ;;  %v80_v42 = vld [vmem:[%s977_s1 + $0x200] sm:$0xff]  ;;  %v85_v43 = vld [vmem:[%s977_s1 + $0x228] sm:$0xff] }
  0x27   :  { %v489_v29 = vpack.c.bf16 %v134_v24, %v129_v23  ;;  %v512_v44 = vpack.c.bf16 %v85_v43, %v80_v42  ;;  %v90_v45 = vld [vmem:[%s977_s1 + $0x250] sm:$0xff]  ;;  %v95_v46 = vld [vmem:[%s977_s1 + $0x278] sm:$0xff]  ;;  %v120_v54 = vld [vmem:[%s977_s1 + $0x340] sm:$0xff] }
  0x28   :  { %v515_v47 = vpack.c.bf16 %v95_v46, %v90_v45  ;;  %v110_v51 = vld [vmem:[%s977_s1 + $0x2f0] sm:$0xff]  ;;  %v115_v52 = vld [vmem:[%s977_s1 + $0x318] sm:$0xff]  ;;  %v125_v55 = vld [vmem:[%s977_s1 + $0x368] sm:$0xff] }
  0x29   :  { %436 = vmatpush1.bf16.msra.mxu0 %v435_v35  ;;  %476 = vmatpush1.bf16.msra.mxu1 %v475_v59  ;;  %v139_v35 = vld [vmem:[%s977_s1 + $0x3d8] sm:$0xff]  ;;  %v521_v53 = vpack.c.bf16 %v115_v52, %v110_v51  ;;  %v524_v56 = vpack.c.bf16 %v125_v55, %v120_v54  ;;  %v130_v57 = vld [vmem:[%s977_s1 + $0x390] sm:$0xff]  ;;  %v140_v61 = vld [vmem:[%s977_s1 + $0x3e0] sm:$0xff] }
  0x2a   :  { %438 = vmatprep.subr.bf16.mxu0 %v437_v36  ;;  %478 = vmatprep.subr.bf16.mxu1 %v477_v62  ;;  %v506_v36 = vpack.c.bf16 %v65_v34, %v60_v33  ;;  %v143_v62 = vlaneseq  ;;  %v141_v1 = vld [vmem:[%s979_s2] sm:$0x1f] }
  0x2c   :  { %v144_v63 = vshrl.u32 %v143_v62, 7 }
  0x2d   :  { %440 = vmatpush1.bf16.msra.mxu0 %v439_v48  ;;  %480 = vmatpush1.bf16.msra.mxu1 %v479_v8  ;;  %v100_v48 = vld [vmem:[%s977_s1 + $0x2a0] sm:$0xff] }
  0x2e   :  { %442 = vmatprep.subr.bf16.mxu0 %v441_v49  ;;  %482 = vmatprep.subr.bf16.mxu1 %v481_v10  ;;  %v105_v49 = vld [vmem:[%s977_s1 + $0x2c8] sm:$0xff]  ;;  %v145_v0 = vsub.s32 0, %v144_v63  ;;  %v149_v2 = vsub.s32 1, %v144_v63  ;;  %v157_v10 = vsub.s32 3, %v144_v63  ;;  %v161_v17 = vsub.s32 4, %v144_v63 }
  0x2f   :  { %v518_v50 = vpack.c.bf16 %v105_v49, %v100_v48 }
  0x30   :  { %v146_v3 = vrot.slane %v141_v1, %v145_v0  ;;  %v158_v12 = vrot.slane %v141_v1, %v157_v10 }
  0x31   :  { %444 = vmatpush1.bf16.msra.mxu0 %v443_v58  ;;  %484 = vmatpush1.bf16.msra.mxu1 %v483_v18  ;;  %v135_v58 = vld [vmem:[%s977_s1 + $0x3b8] sm:$0xff]  ;;  %v162_v18 = vrot.slane %v141_v1, %v161_v17 }
  0x32   :  { %220 = vmatprep.subr.mxu0 %v137_v60  ;;  %486 = vmatprep.subr.bf16.mxu1 %v485_v20  ;;  %v527_v59 = vpack.c.bf16 %v135_v58, %v130_v57  ;;  %v532_v60 = vmov 0.0  }
  0x35   :  { %221 = vmatpush1.msra.mxu0 %v136_v4  ;;  %488 = vmatpush1.bf16.msra.mxu1 %v487_v27  ;;  %v150_v4 = vrot.slane %v141_v1, %v149_v2 }
  0x36   :  { %237 = vmatmul.mubr.f32.vlgmr.msra.gmra.mrb[0].mxu0 %v835_v5  ;;  %493 = vmatprep.subr.bf16.mxu0 %v531_v15 }
  0x37   :  { %495 = vmatpush1.bf16.msra.mxu0 %v494_v6  ;;  %396 = vmatprep.mubr.msk.f32.mxu0 %vm168_vm0, %v634_v38  ;;  %v128_v38 = vld [vmem:[%s977_s1 + $0x380] sm:$0xff] }
  0x38   :  { %496 = vmatprep.subr.bf16.mxu0 %v531_v15  ;;  %v491_v32 = vpack.c.bf16 %v133_v30, %v128_v38  ;;  %490 = vmatprep.subr.bf16.mxu1 %v489_v29 }
  0x3a   :  { %492 = vmatpush1.bf16.msra.mxu1 %v491_v32 }
  0x3b   :  { %498 = vmatpush1.bf16.msra.mxu0 %v497_v16  ;;  %291 = vmatprep.subr.mxu1 %v139_v35 }
  0x3c   :  { %499 = vmatprep.subr.bf16.mxu0 %v531_v15 }
  0x3e   :  { %292 = vmatpush1.msra.mxu1 %v138_v40 }
  0x3f   :  { %501 = vmatpush1.bf16.msra.mxu0 %v500_v25  ;;  %308 = vmatmul.mubr.f32.vlgmr.msra.gmra.mrb[0].mxu1 %v835_v5 }
  0x40   :  { %502 = vmatprep.subr.bf16.mxu0 %v531_v15 }
  0x43   :  { %504 = vmatpush1.bf16.msra.mxu0 %v503_v31 }
  0x44   :  { %505 = vmatprep.subr.bf16.mxu0 %v531_v15 }
  0x47   :  { %507 = vmatpush1.bf16.msra.mxu0 %v506_v36 }
  0x48   :  { %508 = vmatprep.subr.bf16.mxu0 %v531_v15 }
  0x4b   :  { %510 = vmatpush1.bf16.msra.mxu0 %v509_v41 }
  0x4c   :  { %511 = vmatprep.subr.bf16.mxu0 %v531_v15 }
  0x4f   :  { %513 = vmatpush1.bf16.msra.mxu0 %v512_v44 }
  0x50   :  { %514 = vmatprep.subr.bf16.mxu0 %v531_v15 }
  0x53   :  { %516 = vmatpush1.bf16.msra.mxu0 %v515_v47 }
  0x54   :  { %517 = vmatprep.subr.bf16.mxu0 %v531_v15 }
  0x57   :  { %519 = vmatpush1.bf16.msra.mxu0 %v518_v50 }
  0x58   :  { %520 = vmatprep.subr.bf16.mxu0 %v531_v15 }
  0x5b   :  { %522 = vmatpush1.bf16.msra.mxu0 %v521_v53 }
  0x5c   :  { %523 = vmatprep.subr.bf16.mxu0 %v531_v15 }
  0x5f   :  { %525 = vmatpush1.bf16.msra.mxu0 %v524_v56 }
  0x60   :  { %526 = vmatprep.subr.bf16.mxu0 %v531_v15 }
  0x63   :  { %528 = vmatpush1.bf16.msra.mxu0 %v527_v59 }
  0x64   :  { %362 = vmatprep.subr.mxu0 %v532_v60 }
  0x67   :  { %363 = vmatpush1.msra.mxu0 %v140_v61 }
  0x68   :  { %379 = vmatmul.mubr.f32.vlgmr.msra.gmra.mrb[2].mxu0 %v835_v5  ;;  %v153_v5 = vsub.s32 2, %v144_v63 }
  0x6a   :  { %v154_v11 = vrot.slane %v141_v1, %v153_v5 }
 0x109   :  { %v238_v6 = vpop.f32.mrb[0].mxu0 }
 0x10a   :  { %v239_v7 = vadd.f32 %v238_v6, %v146_v3  ;;  %v240_v8 = vpop.f32.mrb[1].mxu0 }
 0x10b   :  { %v241_v9 = vadd.f32 %v240_v8, %v150_v4 }
 0x10c   :  { %384 = vst [vmem:[%s980_s3] sm:$0x3f] %v239_v7 }
 0x10d   :  { %385 = vst [vmem:[%s980_s3 + $0x8] sm:$0x3f] %v241_v9 }
 0x112   :  { %v309_v13 = vpop.f32.mrb[0].mxu1 }
 0x113   :  { %v310_v14 = vadd.f32 %v309_v13, %v154_v11  ;;  %v311_v15 = vpop.f32.mrb[1].mxu1 }
 0x114   :  { %v312_v16 = vadd.f32 %v311_v15, %v158_v12 }
 0x115   :  { %386 = vst [vmem:[%s980_s3 + $0x10] sm:$0x3f] %v310_v14 }
 0x116   :  { %387 = vst [vmem:[%s980_s3 + $0x18] sm:$0x3f] %v312_v16 }
 0x13b   :  { %v380_v19 = vpop.f32.mrb[2].mxu0 }
 0x13c   :  { %v381_v20 = vadd.f32 %v380_v19, %v162_v18  ;;  %v382_v21 = vpop.f32.mrb[3].mxu0 }
 0x13e   :  { %389 = vst.msk [vmem:[%s980_s3 + $0x20] sm:$0x3f] %vm388_vm1, %v381_v20 }

// kernel: forward.17
= control target key start
LH: loop header
LB: loop body
LE: loop exit
PB: predicated region body
PF: predicated region fallthrough
CT: control target
= control target key end

     0   :  { %vm22_vm0 = vcmask 1041408   ;;  %vm23_vm1 = vcmask 584706   ;;  %v960_v2 = vmov 0.0   ;;  %s1003_s20 = smov 0   ;;  %s1586_s0 = inlined_call_operand.vmem [shape: f32[3,3,2,200], index: 0, kind: input, shape index: {}]   ;;  %s1587_s1 = inlined_call_operand.vmem [shape: f32[3,200,200], index: 1, kind: input, shape index: {}]   ;;  %s1588_s2 = inlined_call_operand.vmem [shape: f32[3,1,200], index: 2, kind: input, shape index: {}]   ;;  %s1589_s3 = inlined_call_operand.vmem [shape: f32[200,1], index: 3, kind: input, shape index: {}]   ;;  %s1590_s4 = inlined_call_operand.<no memory space> [shape: f32[1,1], index: 4, kind: input, shape index: {}]   ;;  %s1591_s5 = inlined_call_operand.vmem [shape: f32[2,1], index: 5, kind: output, shape index: {}]  }
   0x1   :  { %v10_v0 = vstv %s1590_s4  ;;  %vm996_vm2 = vmor %vm23_vm1, %vm22_vm0 }
   0x2   :  { %11 = vst [vmem:[#allocation3] sm:$0x1] %v10_v0  ;;  %25 = vst.msk [vmem:[#allocation2] sm:$0xf] %vm996_vm2, %v960_v2 }
   0x3 LB: > { %v40_v3 = vld [vmem:[%s1587_s1 + $0x8] sm:$0xff]  ;;  %v42_v4 = vld [vmem:[%s1587_s1 + $0x18] sm:$0xff]  ;;  %v39_v5 = vld [vmem:[%s1587_s1] sm:$0xff]  ;;  %v91_v28 = vlaneseq  ;;  %v961_v29 = vmov 1983009808   ;;  %vm111_vm3 = vcmask 588800   ;;  %s958_s20 = sphi %s1003_s20, %s31_s20  }
   0x4   : > { %v751_v6 = vpack.c.bf16 %v42_v4, %v40_v3  ;;  %v41_v7 = vld [vmem:[%s1587_s1 + $0x10] sm:$0xff]  ;;  %v44_v8 = vld [vmem:[%s1587_s1 + $0x28] sm:$0xff]  ;;  %v46_v9 = vld [vmem:[%s1587_s1 + $0x38] sm:$0xff]  ;;  %v103_v30 = vunpack.c.l.s4 %v961_v29  ;;  %s750_s24 = smul.u32 12, %s958_s20  ;;  %s31_s20 = sadd.s32 1, %s958_s20  }
   0x5   : > { %v753_v10 = vpack.c.bf16 %v41_v7, %v39_v5  ;;  %v755_v11 = vpack.c.bf16 %v46_v9, %v44_v8  ;;  %v43_v12 = vld [vmem:[%s1587_s1 + $0x20] sm:$0xff]  ;;  %v45_v13 = vld [vmem:[%s1587_s1 + $0x30] sm:$0xff]  ;;  %v48_v14 = vld [vmem:[%s1587_s1 + $0x48] sm:$0xff]  ;;  %v1098_v47 = vshrl.u32 %v91_v28, 7  ;;  %p28_p0 = scmp.ge.s32.totalorder %s31_s20, 3  }
   0x6   : > { %752 = vmatprep.subr.bf16.mxu0 %v751_v6  ;;  %v50_v15 = vld [vmem:[%s1587_s1 + $0x58] sm:$0xff]  ;;  %v757_v16 = vpack.c.bf16 %v45_v13, %v43_v12  ;;  %v47_v18 = vld [vmem:[%s1587_s1 + $0x40] sm:$0xff]  ;;  %v49_v19 = vld [vmem:[%s1587_s1 + $0x50] sm:$0xff]  ;;  %v104_v48 = vunpack.c.0.s8 %v103_v30  ;;  %s34_s27 = scalar_lea.vmem %s1586_s0, %s750_s24  ;;  %vm626_vm4 = vcmask (%p28_p0), 1024  }
   0x7   : > { %754 = vmatpush1.bf16.msra.mxu0 %v753_v10  ;;  %v759_v17 = vpack.c.bf16 %v50_v15, %v48_v14  ;;  %v52_v20 = vld [vmem:[%s1587_s1 + $0x68] sm:$0xff]  ;;  %v54_v21 = vld [vmem:[%s1587_s1 + $0x78] sm:$0xff]  ;;  %v761_v22 = vpack.c.bf16 %v49_v19, %v47_v18  ;;  %v51_v24 = vld [vmem:[%s1587_s1 + $0x60] sm:$0xff] }
   0x8   : > { %756 = vmatprep.subr.bf16.mxu0 %v755_v11  ;;  %v763_v23 = vpack.c.bf16 %v54_v21, %v52_v20  ;;  %v53_v25 = vld [vmem:[%s1587_s1 + $0x70] sm:$0xff]  ;;  %v56_v26 = vld [vmem:[%s1587_s1 + $0x88] sm:$0xff]  ;;  %v58_v27 = vld [vmem:[%s1587_s1 + $0x98] sm:$0xff]  ;;  %v1131_v0 = vsub.s32 %v104_v48, %v1098_v47 }
   0x9   : > { %v765_v31 = vpack.c.bf16 %v53_v25, %v51_v24  ;;  %v642_v32 = vld [vmem:[%s1587_s1 + $0x198] sm:$0xff]  ;;  %v644_v33 = vld [vmem:[%s1587_s1 + $0x1a8] sm:$0xff]  ;;  %v641_v34 = vld [vmem:[%s1587_s1 + $0x190] sm:$0xff]  ;;  %v767_v35 = vpack.c.bf16 %v58_v27, %v56_v26 }
   0xa   : > { %v55_v36 = vld [vmem:[%s1587_s1 + $0x80] sm:$0xff]  ;;  %v57_v37 = vld [vmem:[%s1587_s1 + $0x90] sm:$0xff]  ;;  %v799_v38 = vpack.c.bf16 %v644_v33, %v642_v32  ;;  %v60_v40 = vld [vmem:[%s1587_s1 + $0xa8] sm:$0xff] }
   0xb   : > { %758 = vmatpush1.bf16.msra.mxu0 %v757_v16  ;;  %v643_v39 = vld [vmem:[%s1587_s1 + $0x1a0] sm:$0xff]  ;;  %v62_v41 = vld [vmem:[%s1587_s1 + $0xb8] sm:$0xff]  ;;  %v648_v44 = vld [vmem:[%s1587_s1 + $0x1c8] sm:$0xff]  ;;  %v769_v49 = vpack.c.bf16 %v57_v37, %v55_v36 }
   0xc   : > { %760 = vmatprep.subr.bf16.mxu0 %v759_v17  ;;  %v801_v42 = vpack.c.bf16 %v643_v39, %v641_v34  ;;  %v646_v43 = vld [vmem:[%s1587_s1 + $0x1b8] sm:$0xff]  ;;  %800 = vmatprep.subr.bf16.mxu1 %v799_v38  ;;  %v645_v45 = vld [vmem:[%s1587_s1 + $0x1b0] sm:$0xff]  ;;  %v647_v46 = vld [vmem:[%s1587_s1 + $0x1c0] sm:$0xff]  ;;  %v771_v54 = vpack.c.bf16 %v62_v41, %v60_v40 }
   0xd   : > { %v59_v50 = vld [vmem:[%s1587_s1 + $0xa0] sm:$0xff]  ;;  %v61_v51 = vld [vmem:[%s1587_s1 + $0xb0] sm:$0xff]  ;;  %v803_v52 = vpack.c.bf16 %v648_v44, %v646_v43  ;;  %v805_v53 = vpack.c.bf16 %v647_v46, %v645_v45  ;;  %v64_v55 = vld [vmem:[%s1587_s1 + $0xc8] sm:$0xff] }
   0xe   : > { %802 = vmatpush1.bf16.msra.mxu1 %v801_v42  ;;  %v650_v56 = vld [vmem:[%s1587_s1 + $0x1d8] sm:$0xff]  ;;  %v652_v57 = vld [vmem:[%s1587_s1 + $0x1e8] sm:$0xff]  ;;  %v649_v60 = vld [vmem:[%s1587_s1 + $0x1d0] sm:$0xff]  ;;  %v773_v3 = vpack.c.bf16 %v61_v51, %v59_v50 }
   0xf   : > { %762 = vmatpush1.bf16.msra.mxu0 %v761_v22  ;;  %v66_v58 = vld [vmem:[%s1587_s1 + $0xd8] sm:$0xff]  ;;  %804 = vmatprep.subr.bf16.mxu1 %v803_v52  ;;  %v807_v59 = vpack.c.bf16 %v652_v57, %v650_v56  ;;  %v651_v61 = vld [vmem:[%s1587_s1 + $0x1e0] sm:$0xff]  ;;  %v65_v63 = vld [vmem:[%s1587_s1 + $0xd0] sm:$0xff] }
  0x10   : > { %764 = vmatprep.subr.bf16.mxu0 %v763_v23  ;;  %v63_v62 = vld [vmem:[%s1587_s1 + $0xc0] sm:$0xff]  ;;  %v68_v4 = vld [vmem:[%s1587_s1 + $0xe8] sm:$0xff]  ;;  %v809_v5 = vpack.c.bf16 %v651_v61, %v649_v60  ;;  %v654_v6 = vld [vmem:[%s1587_s1 + $0x1f8] sm:$0xff]  ;;  %v775_v8 = vpack.c.bf16 %v66_v58, %v64_v55 }
  0x11   : > { %v656_v7 = vld [vmem:[%s1587_s1 + $0x208] sm:$0xff]  ;;  %v70_v9 = vld [vmem:[%s1587_s1 + $0xf8] sm:$0xff]  ;;  %v653_v11 = vld [vmem:[%s1587_s1 + $0x1f0] sm:$0xff]  ;;  %v777_v17 = vpack.c.bf16 %v65_v63, %v63_v62 }
  0x12   : > { %806 = vmatpush1.bf16.msra.mxu1 %v805_v53  ;;  %v811_v10 = vpack.c.bf16 %v656_v7, %v654_v6  ;;  %v655_v12 = vld [vmem:[%s1587_s1 + $0x200] sm:$0xff]  ;;  %v658_v14 = vld [vmem:[%s1587_s1 + $0x218] sm:$0xff]  ;;  %v660_v15 = vld [vmem:[%s1587_s1 + $0x228] sm:$0xff]  ;;  %v779_v21 = vpack.c.bf16 %v70_v9, %v68_v4 }
  0x13   : > { %766 = vmatpush1.bf16.msra.mxu0 %v765_v31  ;;  %808 = vmatprep.subr.bf16.mxu1 %v807_v59  ;;  %v1151_v13 = vld [vmem:[#allocation2] sm:$0xf]  ;;  %v69_v19 = vld [vmem:[%s1587_s1 + $0xf0] sm:$0xff]  ;;  %v813_v20 = vpack.c.bf16 %v655_v12, %v653_v11  ;;  %v72_v22 = vld [vmem:[%s1587_s1 + $0x108] sm:$0xff]  ;;  %v815_v24 = vpack.c.bf16 %v660_v15, %v658_v14 }
  0x14   : > { %768 = vmatprep.subr.bf16.mxu0 %v767_v35  ;;  %v1161_v16 = vrot.slane %v1151_v13, %v1131_v0  ;;  %v67_v18 = vld [vmem:[%s1587_s1 + $0xe0] sm:$0xff]  ;;  %v657_v25 = vld [vmem:[%s1587_s1 + $0x210] sm:$0xff]  ;;  %v74_v27 = vld [vmem:[%s1587_s1 + $0x118] sm:$0xff] }
  0x15   : > { %v659_v26 = vld [vmem:[%s1587_s1 + $0x220] sm:$0xff]  ;;  %v662_v28 = vld [vmem:[%s1587_s1 + $0x238] sm:$0xff]  ;;  %v664_v29 = vld [vmem:[%s1587_s1 + $0x248] sm:$0xff]  ;;  %v781_v30 = vpack.c.bf16 %v69_v19, %v67_v18  ;;  %v783_v34 = vpack.c.bf16 %v74_v27, %v72_v22 }
  0x16   : > { %810 = vmatpush1.bf16.msra.mxu1 %v809_v5  ;;  %v1174_v23 = vcombine.high %v1161_v16, %v1161_v16  ;;  %v71_v31 = vld [vmem:[%s1587_s1 + $0x100] sm:$0xff]  ;;  %v73_v32 = vld [vmem:[%s1587_s1 + $0x110] sm:$0xff]  ;;  %v817_v33 = vpack.c.bf16 %v659_v26, %v657_v25  ;;  %v76_v35 = vld [vmem:[%s1587_s1 + $0x128] sm:$0xff]  ;;  %v819_v36 = vpack.c.bf16 %v664_v29, %v662_v28 }
  0x17   : > { %770 = vmatpush1.bf16.msra.mxu0 %v769_v49  ;;  %812 = vmatprep.subr.bf16.mxu1 %v811_v10  ;;  %v661_v37 = vld [vmem:[%s1587_s1 + $0x230] sm:$0xff]  ;;  %v663_v38 = vld [vmem:[%s1587_s1 + $0x240] sm:$0xff]  ;;  %v78_v39 = vld [vmem:[%s1587_s1 + $0x138] sm:$0xff]  ;;  %v785_v42 = vpack.c.bf16 %v73_v32, %v71_v31 }
  0x18   : > { %772 = vmatprep.subr.bf16.mxu0 %v771_v54  ;;  %640 = vmatprep.mubr.msk.f32.mxu0 %vm111_vm3, %v1174_v23  ;;  %v666_v40 = vld [vmem:[%s1587_s1 + $0x258] sm:$0xff]  ;;  %v668_v41 = vld [vmem:[%s1587_s1 + $0x268] sm:$0xff]  ;;  %v75_v43 = vld [vmem:[%s1587_s1 + $0x120] sm:$0xff]  ;;  %v821_v45 = vpack.c.bf16 %v663_v38, %v661_v37  ;;  %v787_v46 = vpack.c.bf16 %v78_v39, %v76_v35 }
  0x19   : > { %692 = vmatprep.mubr.msk.f32.mxu1 %vm111_vm3, %v1174_v23  ;;  %v77_v44 = vld [vmem:[%s1587_s1 + $0x130] sm:$0xff]  ;;  %v80_v48 = vld [vmem:[%s1587_s1 + $0x148] sm:$0xff]  ;;  %v823_v49 = vpack.c.bf16 %v668_v41, %v666_v40  ;;  %v667_v51 = vld [vmem:[%s1587_s1 + $0x260] sm:$0xff] }
  0x1a   : > { %814 = vmatpush1.bf16.msra.mxu1 %v813_v20  ;;  %v665_v50 = vld [vmem:[%s1587_s1 + $0x250] sm:$0xff]  ;;  %v82_v52 = vld [vmem:[%s1587_s1 + $0x158] sm:$0xff]  ;;  %v672_v54 = vld [vmem:[%s1587_s1 + $0x288] sm:$0xff]  ;;  %v789_v55 = vpack.c.bf16 %v77_v44, %v75_v43 }
  0x1b   : > { %774 = vmatpush1.bf16.msra.mxu0 %v773_v3  ;;  %816 = vmatprep.subr.bf16.mxu1 %v815_v24  ;;  %v670_v53 = vld [vmem:[%s1587_s1 + $0x278] sm:$0xff]  ;;  %v79_v56 = vld [vmem:[%s1587_s1 + $0x140] sm:$0xff]  ;;  %v81_v57 = vld [vmem:[%s1587_s1 + $0x150] sm:$0xff]  ;;  %v825_v58 = vpack.c.bf16 %v667_v51, %v665_v50  ;;  %v791_v59 = vpack.c.bf16 %v82_v52, %v80_v48 }
  0x1c   : > { %776 = vmatprep.subr.bf16.mxu0 %v775_v8  ;;  %v84_v60 = vld [vmem:[%s1587_s1 + $0x168] sm:$0xff]  ;;  %v827_v61 = vpack.c.bf16 %v672_v54, %v670_v53  ;;  %v669_v62 = vld [vmem:[%s1587_s1 + $0x270] sm:$0xff]  ;;  %v671_v63 = vld [vmem:[%s1587_s1 + $0x280] sm:$0xff]  ;;  %v793_v6 = vpack.c.bf16 %v81_v57, %v79_v56 }
  0x1d   : > { %v86_v3 = vld [vmem:[%s1587_s1 + $0x178] sm:$0xff]  ;;  %v676_v5 = vld [vmem:[%s1587_s1 + $0x2a8] sm:$0xff]  ;;  %v83_v7 = vld [vmem:[%s1587_s1 + $0x160] sm:$0xff]  ;;  %v829_v8 = vpack.c.bf16 %v671_v63, %v669_v62 }
  0x1e   : > { %818 = vmatpush1.bf16.msra.mxu1 %v817_v33  ;;  %v674_v4 = vld [vmem:[%s1587_s1 + $0x298] sm:$0xff]  ;;  %v795_v9 = vpack.c.bf16 %v86_v3, %v84_v60  ;;  %v85_v10 = vld [vmem:[%s1587_s1 + $0x170] sm:$0xff]  ;;  %v675_v14 = vld [vmem:[%s1587_s1 + $0x2a0] sm:$0xff] }
  0x1f   : > { %778 = vmatpush1.bf16.msra.mxu0 %v777_v17  ;;  %820 = vmatprep.subr.bf16.mxu1 %v819_v36  ;;  %v831_v11 = vpack.c.bf16 %v676_v5, %v674_v4  ;;  %v673_v12 = vld [vmem:[%s1587_s1 + $0x290] sm:$0xff]  ;;  %v678_v15 = vld [vmem:[%s1587_s1 + $0x2b8] sm:$0xff]  ;;  %v680_v17 = vld [vmem:[%s1587_s1 + $0x2c8] sm:$0xff]  ;;  %v797_v18 = vpack.c.bf16 %v85_v10, %v83_v7 }
  0x20   : > { %780 = vmatprep.subr.bf16.mxu0 %v779_v21  ;;  %v833_v19 = vpack.c.bf16 %v675_v14, %v673_v12  ;;  %v88_v20 = vld [vmem:[%s1587_s1 + $0x188] sm:$0xff]  ;;  %v835_v21 = vpack.c.bf16 %v680_v17, %v678_v15  ;;  %v677_v22 = vld [vmem:[%s1587_s1 + $0x2b0] sm:$0xff]  ;;  %v679_v24 = vld [vmem:[%s1587_s1 + $0x2c0] sm:$0xff] }
  0x21   : > { %v694_v25 = vld [vmem:[%s1587_s1 + $0x328] sm:$0xff]  ;;  %v696_v26 = vld [vmem:[%s1587_s1 + $0x338] sm:$0xff]  ;;  %v693_v27 = vld [vmem:[%s1587_s1 + $0x320] sm:$0xff]  ;;  %v837_v33 = vpack.c.bf16 %v679_v24, %v677_v22 }
  0x22   : > { %822 = vmatpush1.bf16.msra.mxu1 %v821_v45  ;;  %v695_v28 = vld [vmem:[%s1587_s1 + $0x330] sm:$0xff]  ;;  %v682_v29 = vld [vmem:[%s1587_s1 + $0x2d8] sm:$0xff]  ;;  %v698_v31 = vld [vmem:[%s1587_s1 + $0x348] sm:$0xff]  ;;  %v847_v35 = vpack.c.bf16 %v696_v26, %v694_v25 }
  0x23   : > { %782 = vmatpush1.bf16.msra.mxu0 %v781_v30  ;;  %824 = vmatprep.subr.bf16.mxu1 %v823_v49  ;;  %v684_v30 = vld [vmem:[%s1587_s1 + $0x2e8] sm:$0xff]  ;;  %v700_v32 = vld [vmem:[%s1587_s1 + $0x358] sm:$0xff]  ;;  %v681_v36 = vld [vmem:[%s1587_s1 + $0x2d0] sm:$0xff]  ;;  %v849_v38 = vpack.c.bf16 %v695_v28, %v693_v27 }
  0x24   : > { %784 = vmatprep.subr.bf16.mxu0 %v783_v34  ;;  %v87_v34 = vld [vmem:[%s1587_s1 + $0x180] sm:$0xff]  ;;  %v839_v39 = vpack.c.bf16 %v684_v30, %v682_v29  ;;  %v686_v40 = vld [vmem:[%s1587_s1 + $0x2f8] sm:$0xff]  ;;  %v688_v41 = vld [vmem:[%s1587_s1 + $0x308] sm:$0xff] }
  0x25   : > { %v683_v37 = vld [vmem:[%s1587_s1 + $0x2e0] sm:$0xff]  ;;  %v699_v44 = vld [vmem:[%s1587_s1 + $0x350] sm:$0xff]  ;;  %v702_v45 = vld [vmem:[%s1587_s1 + $0x368] sm:$0xff]  ;;  %v843_v49 = vpack.c.bf16 %v688_v41, %v686_v40 }
  0x26   : > { %826 = vmatpush1.bf16.msra.mxu1 %v825_v58  ;;  %v697_v43 = vld [vmem:[%s1587_s1 + $0x340] sm:$0xff]  ;;  %v841_v48 = vpack.c.bf16 %v683_v37, %v681_v36  ;;  %v685_v50 = vld [vmem:[%s1587_s1 + $0x2f0] sm:$0xff]  ;;  %v706_v56 = vld [vmem:[%s1587_s1 + $0x388] sm:$0xff] }
  0x27   : > { %786 = vmatpush1.bf16.msra.mxu0 %v785_v42  ;;  %828 = vmatprep.subr.bf16.mxu1 %v827_v61  ;;  %v851_v42 = vpack.c.bf16 %v700_v32, %v698_v31  ;;  %v687_v51 = vld [vmem:[%s1587_s1 + $0x300] sm:$0xff]  ;;  %v853_v52 = vpack.c.bf16 %v699_v44, %v697_v43  ;;  %v708_v57 = vld [vmem:[%s1587_s1 + $0x398] sm:$0xff]  ;;  %v707_v62 = vld [vmem:[%s1587_s1 + $0x390] sm:$0xff] }
  0x28   : > { %788 = vmatprep.subr.bf16.mxu0 %v787_v46  ;;  %v704_v46 = vld [vmem:[%s1587_s1 + $0x378] sm:$0xff]  ;;  %v701_v54 = vld [vmem:[%s1587_s1 + $0x360] sm:$0xff]  ;;  %v845_v58 = vpack.c.bf16 %v687_v51, %v685_v50  ;;  %v859_v61 = vpack.c.bf16 %v708_v57, %v706_v56  ;;  %v710_v63 = vld [vmem:[%s1587_s1 + $0x3a8] sm:$0xff] }
  0x29   : > { %v855_v53 = vpack.c.bf16 %v704_v46, %v702_v45  ;;  %v690_v60 = vld [vmem:[%s1587_s1 + $0x318] sm:$0xff]  ;;  %v689_v4 = vld [vmem:[%s1587_s1 + $0x310] sm:$0xff]  ;;  %v709_v7 = vld [vmem:[%s1587_s1 + $0x3a0] sm:$0xff] }
  0x2a   : > { %830 = vmatpush1.bf16.msra.mxu1 %v829_v8  ;;  %v712_v3 = vld [vmem:[%s1587_s1 + $0x3b8] sm:$0xff]  ;;  %v711_v8 = vld [vmem:[%s1587_s1 + $0x3b0] sm:$0xff]  ;;  %v713_v14 = vld [vmem:[%s1587_s1 + $0x3c0] sm:$0xff] }
  0x2b   : > { %790 = vmatpush1.bf16.msra.mxu0 %v789_v55  ;;  %832 = vmatprep.subr.bf16.mxu1 %v831_v11  ;;  %v703_v55 = vld [vmem:[%s1587_s1 + $0x370] sm:$0xff]  ;;  %v716_v10 = vld [vmem:[%s1587_s1 + $0x3d8] sm:$0xff]  ;;  %v865_v11 = vpack.c.bf16 %v711_v8, %v709_v7  ;;  %v718_v17 = vld [vmem:[%s1587_s1 + $0x3e8] sm:$0xff] }
  0x2c   : > { %792 = vmatprep.subr.bf16.mxu0 %v791_v59  ;;  %v857_v59 = vpack.c.bf16 %v703_v55, %v701_v54  ;;  %v715_v15 = vld [vmem:[%s1587_s1 + $0x3d0] sm:$0xff]  ;;  %v722_v24 = vld [vmem:[%s1587_s1 + $0x408] sm:$0xff]  ;;  %v724_v25 = vld [vmem:[%s1587_s1 + $0x418] sm:$0xff] }
  0x2d   : > { %v719_v22 = vld [vmem:[%s1587_s1 + $0x3f0] sm:$0xff]  ;;  %v875_v27 = vpack.c.bf16 %v724_v25, %v722_v24  ;;  %v721_v28 = vld [vmem:[%s1587_s1 + $0x400] sm:$0xff]  ;;  %v726_v30 = vld [vmem:[%s1587_s1 + $0x428] sm:$0xff] }
  0x2e   : > { %834 = vmatpush1.bf16.msra.mxu1 %v833_v19  ;;  %v869_v19 = vpack.c.bf16 %v715_v15, %v713_v14  ;;  %v723_v29 = vld [vmem:[%s1587_s1 + $0x410] sm:$0xff]  ;;  %v728_v31 = vld [vmem:[%s1587_s1 + $0x438] sm:$0xff]  ;;  %v730_v36 = vld [vmem:[%s1587_s1 + $0x448] sm:$0xff] }
  0x2f   : > { %794 = vmatpush1.bf16.msra.mxu0 %v793_v6  ;;  %836 = vmatprep.subr.bf16.mxu1 %v835_v21  ;;  %v863_v6 = vpack.c.bf16 %v712_v3, %v710_v63  ;;  %v717_v21 = vld [vmem:[%s1587_s1 + $0x3e0] sm:$0xff]  ;;  %v877_v32 = vpack.c.bf16 %v723_v29, %v721_v28  ;;  %v732_v37 = vld [vmem:[%s1587_s1 + $0x458] sm:$0xff]  ;;  %v731_v41 = vld [vmem:[%s1587_s1 + $0x450] sm:$0xff] }
  0x30   : > { %796 = vmatprep.subr.bf16.mxu0 %v795_v9  ;;  %v714_v9 = vld [vmem:[%s1587_s1 + $0x3c8] sm:$0xff]  ;;  %v873_v26 = vpack.c.bf16 %v719_v22, %v717_v21  ;;  %v729_v40 = vld [vmem:[%s1587_s1 + $0x440] sm:$0xff]  ;;  %v736_v43 = vld [vmem:[%s1587_s1 + $0x478] sm:$0xff] }
  0x31   : > { %v867_v12 = vpack.c.bf16 %v716_v10, %v714_v9  ;;  %v885_v44 = vpack.c.bf16 %v731_v41, %v729_v40  ;;  %v733_v46 = vld [vmem:[%s1587_s1 + $0x460] sm:$0xff]  ;;  %v740_v50 = vld [vmem:[%s1587_s1 + $0x498] sm:$0xff]  ;;  %v739_v54 = vld [vmem:[%s1587_s1 + $0x490] sm:$0xff] }
  0x32   : > { %838 = vmatpush1.bf16.msra.mxu1 %v837_v33  ;;  %v879_v33 = vpack.c.bf16 %v728_v31, %v726_v30  ;;  %v742_v56 = vld [vmem:[%s1587_s1 + $0x4a8] sm:$0xff]  ;;  %v741_v57 = vld [vmem:[%s1587_s1 + $0x4a0] sm:$0xff] }
  0x33   : > { %798 = vmatpush1.bf16.msra.mxu0 %v797_v18  ;;  %840 = vmatprep.subr.bf16.mxu1 %v839_v39  ;;  %v720_v18 = vld [vmem:[%s1587_s1 + $0x3f8] sm:$0xff]  ;;  %v883_v39 = vpack.c.bf16 %v732_v37, %v730_v36  ;;  %v35_v14 = vld [vmem:[%s34_s27] sm:$0xf]  ;;  %v743_v25 = vld [vmem:[%s1588_s2 + $0x4] sm:$0x3] }
  0x34   : > { %162 = vmatprep.subr.mxu0 %v88_v20  ;;  %v871_v20 = vpack.c.bf16 %v720_v18, %v718_v17  ;;  %v37_v37 = vld [vmem:[%s34_s27 + $0x8] sm:$0xf] }
  0x36   : > { %842 = vmatpush1.bf16.msra.mxu1 %v841_v48  ;;  %v735_v48 = vld [vmem:[%s1587_s1 + $0x470] sm:$0xff] }
  0x37   : > { %163 = vmatpush1.msra.mxu0 %v87_v34  ;;  %844 = vmatprep.subr.bf16.mxu1 %v843_v49  ;;  %v725_v34 = vld [vmem:[%s1587_s1 + $0x420] sm:$0xff]  ;;  %v738_v49 = vld [vmem:[%s1587_s1 + $0x488] sm:$0xff]  ;;  %v889_v51 = vpack.c.bf16 %v735_v48, %v733_v46  ;;  %v962_v48 = vmov (%p28_p0), 0.0|0.0  }
  0x38   : > { %179 = vmatmul.mubr.f32.vlgmr.msra.gmra.mrb[0].mxu0 %v1161_v16  ;;  %848 = vmatprep.subr.bf16.mxu0 %v847_v35  ;;  %v727_v35 = vld [vmem:[%s1587_s1 + $0x430] sm:$0xff]  ;;  %v512_v46 = vld [vmem:[%s1589_s3 + $0x8] sm:$0xff] (%p28_p0) }
  0x39   : > { %850 = vmatpush1.bf16.msra.mxu0 %v849_v38  ;;  %744 = vmatprep.mubr.msk.f32.mxu0 %vm111_vm3, %v1174_v23  ;;  %v705_v23 = vld [vmem:[%s1587_s1 + $0x380] sm:$0xff]  ;;  %v881_v38 = vpack.c.bf16 %v727_v35, %v725_v34 }
  0x3a   : > { %852 = vmatprep.subr.bf16.mxu0 %v851_v42  ;;  %846 = vmatpush1.bf16.msra.mxu1 %v845_v58  ;;  %v861_v5 = vpack.c.bf16 %v707_v62, %v705_v23  ;;  %v734_v42 = vld [vmem:[%s1587_s1 + $0x468] sm:$0xff]  ;;  %v93_v58 = vsub.s32 0, %v1098_v47 }
  0x3b   : > { %297 = vmatprep.subr.mxu1 %v690_v60  ;;  %v887_v45 = vpack.c.bf16 %v736_v43, %v734_v42  ;;  %v97_v60 = vsub.s32 1, %v1098_v47 }
  0x3d   : > { %854 = vmatpush1.bf16.msra.mxu0 %v853_v52  ;;  %v891_v52 = vpack.c.bf16 %v740_v50, %v738_v49  ;;  %v514_v50 = vld [vmem:[%s1589_s3 + $0x18] sm:$0xff] (%p28_p0) }
  0x3e   : > { %856 = vmatprep.subr.bf16.mxu0 %v855_v53  ;;  %298 = vmatpush1.msra.mxu1 %v689_v4  ;;  %v737_v53 = vld [vmem:[%s1587_s1 + $0x480] sm:$0xff] }
  0x3f   : > { %314 = vmatmul.mubr.f32.vlgmr.msra.gmra.mrb[0].mxu1 %v1161_v16  ;;  %v893_v55 = vpack.c.bf16 %v739_v54, %v737_v53  ;;  %v517_v54 = vld [vmem:[%s1589_s3 + $0x30] sm:$0xff] (%p28_p0) }
  0x41   : > { %858 = vmatpush1.bf16.msra.mxu0 %v857_v59  ;;  %v89_v59 = vld [vmem:[%s1588_s2] sm:$0x3] }
  0x42   : > { %860 = vmatprep.subr.bf16.mxu0 %v859_v61  ;;  %v94_v61 = vrot.slane %v89_v59, %v93_v58  ;;  %v98_v23 = vrot.slane %v89_v59, %v97_v60  ;;  %v519_v59 = vld [vmem:[%s1589_s3 + $0x40] sm:$0xff] (%p28_p0) }
  0x45   : > { %862 = vmatpush1.bf16.msra.mxu0 %v861_v5 }
  0x46   : > { %864 = vmatprep.subr.bf16.mxu0 %v863_v6  ;;  %v691_v6 = vld [vmem:[%s1588_s2 + $0x2] sm:$0x3] }
  0x47   : > { %v246_v7 = vrot.slane %v691_v6, %v97_v60 }
  0x49   : > { %866 = vmatpush1.bf16.msra.mxu0 %v865_v11 }
  0x4a   : > { %868 = vmatprep.subr.bf16.mxu0 %v867_v12 }
  0x4d   : > { %870 = vmatpush1.bf16.msra.mxu0 %v869_v19  ;;  %v36_v19 = vld [vmem:[%s34_s27 + $0x4] sm:$0xf] }
  0x4e   : > { %872 = vmatprep.subr.bf16.mxu0 %v871_v20 }
  0x51   : > { %874 = vmatpush1.bf16.msra.mxu0 %v873_v26  ;;  %v377_v26 = vrot.slane %v743_v25, %v93_v58 }
  0x52   : > { %876 = vmatprep.subr.bf16.mxu0 %v875_v27  ;;  %v381_v27 = vrot.slane %v743_v25, %v97_v60  ;;  %v520_v60 = vld [vmem:[%s1589_s3 + $0x48] sm:$0xff] (%p28_p0) }
  0x55   : > { %878 = vmatpush1.bf16.msra.mxu0 %v877_v32 }
  0x56   : > { %880 = vmatprep.subr.bf16.mxu0 %v879_v33 }
  0x59   : > { %882 = vmatpush1.bf16.msra.mxu0 %v881_v38 }
  0x5a   : > { %884 = vmatprep.subr.bf16.mxu0 %v883_v39 }
  0x5d   : > { %886 = vmatpush1.bf16.msra.mxu0 %v885_v44 }
  0x5e   : > { %888 = vmatprep.subr.bf16.mxu0 %v887_v45 }
  0x61   : > { %890 = vmatpush1.bf16.msra.mxu0 %v889_v51  ;;  %v515_v51 = vld [vmem:[%s1589_s3 + $0x20] sm:$0xff] (%p28_p0) }
  0x62   : > { %892 = vmatprep.subr.bf16.mxu0 %v891_v52  ;;  %v516_v52 = vld [vmem:[%s1589_s3 + $0x28] sm:$0xff] (%p28_p0) }
  0x63   :  { %v902_v53 = vpack.c.bf16 (%p28_p0), %v516_v52, %v515_v51 }
  0x65   : > { %894 = vmatpush1.bf16.msra.mxu0 %v893_v55  ;;  %v518_v55 = vld [vmem:[%s1589_s3 + $0x38] sm:$0xff] (%p28_p0) }
  0x66   : > { %432 = vmatprep.subr.mxu0 %v742_v56 }
  0x69   : > { %433 = vmatpush1.msra.mxu0 %v741_v57 }
  0x6a   : > { %449 = vmatmul.mubr.f32.vlgmr.msra.gmra.mrb[2].mxu0 %v1161_v16  ;;  %v242_v16 = vrot.slane %v691_v6, %v93_v58  ;;  %895 = vmatprep.subr.bf16.mxu0 (%p28_p0), %v962_v48  ;;  %v905_v58 = vpack.c.bf16 (%p28_p0), %v518_v55, %v517_v54  ;;  %v525_v6 = vld [vmem:[%s1589_s3 + $0x70] sm:$0xff] (%p28_p0) }
 0x10b   : > { %v180_v62 = vpop.f32.mrb[0].mxu0 }
 0x10c   : > { %v181_v63 = vadd.f32 %v180_v62, %v94_v61  ;;  %v182_v3 = vpop.f32.mrb[1].mxu0  ;;  %v908_v61 = vpack.c.bf16 (%p28_p0), %v520_v60, %v519_v59  ;;  %v522_v62 = vld [vmem:[%s1589_s3 + $0x58] sm:$0xff] (%p28_p0) }
 0x10d   : > { %v183_v4 = vadd.f32 %v182_v3, %v98_v23  ;;  %v521_v23 = vld [vmem:[%s1589_s3 + $0x50] sm:$0xff] (%p28_p0)  ;;  %v523_v3 = vld [vmem:[%s1589_s3 + $0x60] sm:$0xff] (%p28_p0) }
 0x10f   : > { %v457_v5 = vcombine.low %v181_v63, %v183_v4  ;;  %v911_v63 = vpack.c.bf16 (%p28_p0), %v522_v62, %v521_v23  ;;  %v524_v4 = vld [vmem:[%s1589_s3 + $0x68] sm:$0xff] (%p28_p0) }
 0x111   : > { %v464_v12 = vrot.slane %v457_v5, %v1131_v0  ;;  %v914_v5 = vpack.c.bf16 (%p28_p0), %v524_v4, %v523_v3 }
 0x112   : > { %v315_v8 = vpop.f32.mrb[0].mxu1 }
 0x113   : > { %v316_v9 = vadd.f32 %v315_v8, %v242_v16  ;;  %v317_v10 = vpop.f32.mrb[1].mxu1  ;;  %v466_v15 = vadd.f32 %v464_v12, %v35_v14  ;;  %v526_v16 = vld [vmem:[%s1589_s3 + $0x78] sm:$0xff] (%p28_p0)  ;;  %v527_v8 = vld [vmem:[%s1589_s3 + $0x80] sm:$0xff] (%p28_p0) }
 0x114   : > { %v318_v11 = vadd.f32 %v317_v10, %v246_v7  ;;  %v917_v7 = vpack.c.bf16 (%p28_p0), %v526_v16, %v525_v6  ;;  %v531_v14 = vld [vmem:[%s1589_s3 + $0xa0] sm:$0xff] (%p28_p0) }
 0x115   : > { %v745_v17 = vmul.f32 -1.442695, %v466_v15  ;;  %v532_v15 = vld [vmem:[%s1589_s3 + $0xa8] sm:$0xff] (%p28_p0) }
 0x116   : > { %v475_v47 = vcombine.low %v316_v9, %v318_v11  ;;  %v528_v9 = vld [vmem:[%s1589_s3 + $0x88] sm:$0xff] (%p28_p0)  ;;  %v529_v11 = vld [vmem:[%s1589_s3 + $0x90] sm:$0xff] (%p28_p0) }
 0x117   : > { %942 = vpow2.f32 %v745_v17  ;;  %v920_v10 = vpack.c.bf16 (%p28_p0), %v528_v9, %v527_v8  ;;  %v926_v17 = vpack.c.bf16 (%p28_p0), %v532_v15, %v531_v14 }
 0x118   : > { %v482_v18 = vrot.slane %v475_v47, %v1131_v0  ;;  %v530_v47 = vld [vmem:[%s1589_s3 + $0x98] sm:$0xff] (%p28_p0) }
 0x119   :  { %v923_v12 = vpack.c.bf16 (%p28_p0), %v530_v47, %v529_v11 }
 0x11a   : > { %v484_v20 = vadd.f32 %v482_v18, %v36_v19  ;;  %v533_v18 = vld [vmem:[%s1589_s3 + $0xb0] sm:$0xff] (%p28_p0)  ;;  %v534_v19 = vld [vmem:[%s1589_s3 + $0xb8] sm:$0xff] (%p28_p0) }
 0x11c   : > { %v746_v21 = vmul.f32 -1.442695, %v484_v20  ;;  %v929_v20 = vpack.c.bf16 (%p28_p0), %v534_v19, %v533_v18 }
 0x11e   : > { %944 = vpow2.f32 %v746_v21  ;;  %v535_v21 = vld [vmem:[%s1589_s3 + $0xc0] sm:$0xff] (%p28_p0) }
 0x121   : > { %v943_v22 = vpop.eup %942 }
 0x122   : > { %v470_v24 = vadd.f32 1.0, %v943_v22  ;;  %v747_v22 = vld [vmem:[#allocation3] ss:$0 sm:$0xff] (%p28_p0) }
 0x124   : > { %946 = vrcp.f32 %v470_v24 }
 0x128   : > { %v945_v28 = vpop.eup %944 }
 0x129   : > { %v488_v32 = vadd.f32 1.0, %v945_v28 }
 0x12b   : > { %948 = vrcp.f32 %v488_v32 }
 0x12e   : > { %v947_v36 = vpop.eup %946 }
 0x135   : > { %v949_v40 = vpop.eup %948 }
 0x136   : > { %v505_v41 = vsub.f32 1.0, %v949_v40  ;;  %v507_v43 = vmul.f32 %v949_v40, %v1151_v13  ;;  %v513_v13 = vld [vmem:[%s1589_s3 + $0x10] sm:$0xff] (%p28_p0) }
 0x137   :  { %v899_v1 = vpack.c.bf16 (%p28_p0), %v514_v50, %v513_v13 }
 0x13d   : > { %v450_v29 = vpop.f32.mrb[2].mxu0 }
 0x13e   : > { %v451_v30 = vadd.f32 %v450_v29, %v377_v26  ;;  %v452_v31 = vpop.f32.mrb[3].mxu0 }
 0x13f   : > { %v453_v33 = vadd.f32 %v452_v31, %v381_v27 }
 0x141   : > { %v493_v34 = vcombine.low %v451_v30, %v453_v33 }
 0x143   : > { %v500_v35 = vrot.slane %v493_v34, %v1131_v0  ;;  %v511_v0 = vld [vmem:[%s1589_s3] sm:$0xff] (%p28_p0) }
 0x144   :  { %v896_v49 = vpack.c.bf16 (%p28_p0), %v512_v46, %v511_v0 }
 0x145   : > { %v502_v38 = vmul.f32 %v947_v36, %v500_v35 }
 0x146   :  { %897 = vmatpush1.bf16.msra.mxu0 (%p28_p0), %v896_v49 }
 0x147   : > { %v503_v39 = vadd.f32 %v502_v38, %v37_v37  ;;  %898 = vmatprep.subr.bf16.mxu0 (%p28_p0), %v962_v48 }
 0x149   : > { %950 = vtanh.f32 %v503_v39 }
 0x14a   :  { %900 = vmatpush1.bf16.msra.mxu0 (%p28_p0), %v899_v1 }
 0x14b   :  { %901 = vmatprep.subr.bf16.mxu0 (%p28_p0), %v962_v48 }
 0x14e   :  { %903 = vmatpush1.bf16.msra.mxu0 (%p28_p0), %v902_v53 }
 0x14f   :  { %904 = vmatprep.subr.bf16.mxu0 (%p28_p0), %v962_v48 }
 0x152   :  { %30 = sbr.rel (!%p28_p0) target bundleno = 3 (0x3), region = 52  ;;  %906 = vmatpush1.bf16.msra.mxu0 (%p28_p0), %v905_v58 }
 0x153   : > { %v951_v42 = vpop.eup %950  ;;  %907 = vmatprep.subr.bf16.mxu0 (%p28_p0), %v962_v48 }
 0x154   : > { %v506_v44 = vmul.f32 %v951_v42, %v505_v41 }
 0x156   : > { %v508_v45 = vadd.f32 %v507_v43, %v506_v44  ;;  %909 = vmatpush1.bf16.msra.mxu0 (%p28_p0), %v908_v61 }
 0x157   :  { %910 = vmatprep.subr.bf16.mxu0 (%p28_p0), %v962_v48 }
 0x158   : > { %509 = vst.msk [vmem:[#allocation2] sm:$0xf] %vm996_vm2, %v508_v45 }
 0x15a   :  { %912 = vmatpush1.bf16.msra.mxu0 %v911_v63 }
 0x15b   :  { %913 = vmatprep.subr.bf16.mxu0 %v962_v48 }
 0x15e   :  { %915 = vmatpush1.bf16.msra.mxu0 %v914_v5 }
 0x15f   :  { %v748_v56 = vld.sshfl [vmem:[#allocation2] sm:$0x33 pattern:$0x76325410]  ;;  %916 = vmatprep.subr.bf16.mxu0 %v962_v48 }
 0x160   :  { %v551_v57 = vcombine.high %v748_v56, %v748_v56 }
 0x162   :  { %749 = vmatprep.mubr.msk.f32.mxu0 %vm111_vm3, %v551_v57  ;;  %918 = vmatpush1.bf16.msra.mxu0 %v917_v7 }
 0x163   :  { %919 = vmatprep.subr.bf16.mxu0 %v962_v48 }
 0x166   :  { %921 = vmatpush1.bf16.msra.mxu0 %v920_v10 }
 0x167   :  { %922 = vmatprep.subr.bf16.mxu0 %v962_v48 }
 0x16a   :  { %924 = vmatpush1.bf16.msra.mxu0 %v923_v12 }
 0x16b   :  { %925 = vmatprep.subr.bf16.mxu0 %v962_v48 }
 0x16e   :  { %927 = vmatpush1.bf16.msra.mxu0 %v926_v17 }
 0x16f   :  { %928 = vmatprep.subr.bf16.mxu0 %v962_v48 }
 0x172   :  { %930 = vmatpush1.bf16.msra.mxu0 %v929_v20 }
 0x173   :  { %604 = vmatprep.subr.mxu0 %v960_v2 }
 0x176   :  { %605 = vmatpush1.msra.mxu0 %v535_v21 }
 0x177   :  { %621 = vmatmul.mubr.f32.vlgmr.msra.gmra.mrb[0].mxu0 %v748_v56 }
 0x24a   :  { %v622_v24 = vpop.f32.mrb[0].mxu0 }
 0x24b   :  { %v623_v25 = vadd.f32 %v747_v22, %v622_v24  ;;  %v624_v26 = vpop.f32.mrb[1].mxu0 }
 0x24d   :  { %627 = vst.msk [vmem:[%s1591_s5] sm:$0x3] %vm626_vm4, %v623_v25 }

</bundles_post_ra>
